<compile_context>
chip_gen: v5e
topology: v5e:2x2
jax: 0.10.0
libtpu: 0.0.40
codegen_flags: <defaults>
</compile_context>

<pallas_src>
import jax
import jax.numpy as jnp
import numpy as np
from jax import lax
from jax.experimental import pallas as pl
from jax.experimental.pallas import tpu as pltpu

# ---- Model hyperparameters (match the PyTorch module spec) ----
INPUT_SIZE = 512
HIDDEN_SIZE = 1024
SCALE_FACTOR = 2.0
CLAMP_MIN = -10.0
CLAMP_MAX = 10.0
COMBINED_FACTOR = 2.0 * SCALE_FACTOR   # (x*s + x*s) == x * (2*s); folded into W and b

HIDDEN_CHUNK = 256                      # columns per in-kernel chunk (MXU/EUP overlap)
BATCH = 256                             # small but MXU-shaped self-test batch


def fused_kernel(x_ref, w_ref, b_ref, o_ref):
    """Fused forward for one batch tile.

    x_ref: (BT, K)  f32  VMEM -- activations
    w_ref: (K, H)   bf16 VMEM -- weight, pre-transposed and pre-scaled by 2*scale
    b_ref: (1, H)   f32  VMEM -- bias, pre-scaled by 2*scale
    o_ref: (BT, 1)  f32  VMEM -- lse * mish(lse) per row
    """
    x = x_ref[...].astype(jnp.bfloat16)            # native MXU dtype; f32 accumulation below
    bt = x_ref.shape[0]
    n_chunks = w_ref.shape[1] // HIDDEN_CHUNK

    def chunk_body(c, s):
        off = pl.multiple_of(c * HIDDEN_CHUNK, HIDDEN_CHUNK)
        w_c = w_ref[:, pl.ds(off, HIDDEN_CHUNK)]                         # (K, HC) bf16
        b_c = b_ref[:, pl.ds(off, HIDDEN_CHUNK)]                         # (1, HC) f32
        y = jnp.dot(x, w_c, preferred_element_type=jnp.float32) + b_c    # (BT, HC) f32
        y = jnp.clip(y, jnp.float32(CLAMP_MIN), jnp.float32(CLAMP_MAX))
        # y <= CLAMP_MAX, so exp(y - CLAMP_MAX) <= 1: exactly stable without a row max.
        return s + jnp.sum(jnp.exp(y - jnp.float32(CLAMP_MAX)),
                           axis=-1, keepdims=True)

    s = lax.fori_loop(0, n_chunks, chunk_body,
                      jnp.zeros((bt, 1), jnp.float32), unroll=True)

    lse = jnp.float32(CLAMP_MAX) + jnp.log(s)                            # (BT, 1)
    # lse in [-10, 10 + ln(H)] (< ~17), so plain softplus is exact and overflow-free.
    sp = jnp.log1p(jnp.exp(lse))
    # lse * mish(lse) == lse^2 * tanh(softplus(lse))
    o_ref[...] = (lse * lse) * jnp.tanh(sp)


def prepare_params(weight_hk, bias_h, scale_factor=SCALE_FACTOR):
    """One-time parameter transform: fold 2*scale into W and b, transpose W to (K, H).

    The weight is emitted in bf16 (native MXU dtype, half the HBM/VMEM bytes);
    the bias stays f32 and is added after the f32-accumulated matmul.
    """
    c = jnp.float32(2.0 * scale_factor)
    w_kh = jnp.asarray((weight_hk.astype(jnp.float32) * c).T, jnp.bfloat16)      # (K, H) bf16
    b_1h = jnp.asarray(bias_h.astype(jnp.float32) * c, jnp.float32).reshape(1, -1)  # (1, H) f32
    return w_kh, b_1h


def _pick_batch_tile(B):
    """One tile on single-TC chips (v5e/v6e); two parallel tiles on v7x (2 TCs)."""
    kind = ""
    try:
        kind = jax.devices()[0].device_kind.lower()
    except Exception:
        pass
    two_tc = ("v7" in kind) or ("7x" in kind)
    if two_tc and B >= 16 and B % 16 == 0:
        cap = max(min(256, B // 2), 8)      # give each TensorCore one tile
    else:
        cap = 512                            # single TC: avoid serial grid-step overhead
    bt = min(cap, B)
    while bt > 8 and B % bt != 0:
        bt //= 2
    if B % bt != 0:
        bt = B
    return bt


def fused_forward(x, w_kh, b_1h, *, batch_tile=None):
    B, K = x.shape
    Kw, H = w_kh.shape
    assert K == Kw
    assert H % HIDDEN_CHUNK == 0

    bt = batch_tile if batch_tile is not None else _pick_batch_tile(B)
    assert B % bt == 0
    grid = (B // bt,)

    cost = pl.CostEstimate(
        flops=2 * B * K * H + 6 * B * H,
        transcendentals=B * H + 4 * B,
        bytes_accessed=B * K * 4 + K * H * 2 + H * 4 + B * 4,
    )

    return pl.pallas_call(
        fused_kernel,
        out_shape=jax.ShapeDtypeStruct((B, 1), jnp.float32),
        grid_spec=pltpu.PrefetchScalarGridSpec(
            num_scalar_prefetch=0,
            grid=grid,
            in_specs=[
                pl.BlockSpec((bt, K), lambda i: (i, 0)),   # x tile (f32)
                pl.BlockSpec((K, H), lambda i: (0, 0)),    # full bf16 weight, VMEM-resident
                pl.BlockSpec((1, H), lambda i: (0, 0)),    # bias (f32)
            ],
            out_specs=pl.BlockSpec((bt, 1), lambda i: (i, 0)),
        ),
        compiler_params=pltpu.CompilerParams(
            dimension_semantics=("parallel",)),
        cost_estimate=cost,
    )(x, w_kh, b_1h)


def reference_forward(x, weight_hk, bias_h):
    """Pure-JAX f32 reference mirroring the PyTorch module semantics (unfolded params)."""
    y = x @ weight_hk.T + bias_h
    y = y * COMBINED_FACTOR
    y = jnp.clip(y, CLAMP_MIN, CLAMP_MAX)
    lse = jax.scipy.special.logsumexp(y, axis=1, keepdims=True)      # (B, 1)
    mish = lse * jnp.tanh(jax.nn.softplus(lse))
    return lse * mish


if __name__ == "__main__":
    key = jax.random.PRNGKey(0)
    kx, kw, kb = jax.random.split(key, 3)

    # Mimic nn.Linear init: uniform(-1/sqrt(K), 1/sqrt(K))
    bound = 1.0 / np.sqrt(INPUT_SIZE)
    weight = jax.random.uniform(kw, (HIDDEN_SIZE, INPUT_SIZE),
                                minval=-bound, maxval=bound, dtype=jnp.float32)
    bias = jax.random.uniform(kb, (HIDDEN_SIZE,),
                              minval=-bound, maxval=bound, dtype=jnp.float32)
    x = jax.random.normal(kx, (BATCH, INPUT_SIZE), dtype=jnp.float32)

    # One-time parameter transform (scale fold + transpose + bf16 weight), then run the kernel.
    w_kh, b_1h = prepare_params(weight, bias)
    out = jax.block_until_ready(fused_forward(x, w_kh, b_1h))

    # Tolerance loosened vs. the f32 version: the bf16 MXU path introduces
    # ~1e-3..1e-2 relative error in y / the final output (expected, per review).
    ref = reference_forward(x, weight, bias)
    np.testing.assert_allclose(np.asarray(out), np.asarray(ref), rtol=2e-2, atol=1e-2)

    print("KERNEL_OK")
</pallas_src>

<mosaic_0001>
module attributes {stable_mosaic.version = 11 : i64} {
  func.func @fused_kernel(%arg0: i32, %arg1: memref<256x512xf32, #tpu.memory_space<vmem>>, %arg2: memref<512x1024xbf16, #tpu.memory_space<vmem>>, %arg3: memref<1x1024xf32, #tpu.memory_space<vmem>>, %arg4: memref<256x1xf32, #tpu.memory_space<vmem>>) attributes {dimension_semantics = [#tpu.dimension_semantics<parallel>], iteration_bounds = array<i64: 1>, scalar_prefetch = 0 : i64, scratch_operands = 0 : i64, tpu.core_type = #tpu.core_type<tc>, window_params = [{transform_indices = @transform_0, window_bounds = array<i64: 256, 512>}, {pipeline_mode = #tpu.pipeline_mode<synchronous>, transform_indices = @transform_1, window_bounds = array<i64: 512, 1024>}, {pipeline_mode = #tpu.pipeline_mode<synchronous>, transform_indices = @transform_2, window_bounds = array<i64: 1, 1024>}, {transform_indices = @transform_3, window_bounds = array<i64: 256, 1>}]} {
    %c0 = arith.constant 0 : index
    %c0_0 = arith.constant 0 : index
    %0 = vector.load %arg1[%c0, %c0_0] : memref<256x512xf32, #tpu.memory_space<vmem>>, vector<256x512xf32>
    %1 = arith.truncf %0 : vector<256x512xf32> to vector<256x512xbf16>
    %cst = arith.constant 0.000000e+00 : f32
    %2 = vector.broadcast %cst : f32 to vector<256x1xf32>
    %c0_i32 = arith.constant 0 : i32
    %c256_i32 = arith.constant 256 : i32
    %3 = arith.muli %c0_i32, %c256_i32 : i32
    %4 = tpu.assume_multiple %3, 256 : i32
    %c0_1 = arith.constant 0 : index
    %5 = arith.index_cast %4 : i32 to index
    %6 = vector.load %arg2[%c0_1, %5] : memref<512x1024xbf16, #tpu.memory_space<vmem>>, vector<512x256xbf16>
    %c0_2 = arith.constant 0 : index
    %7 = arith.index_cast %4 : i32 to index
    %8 = vector.load %arg3[%c0_2, %7] : memref<1x1024xf32, #tpu.memory_space<vmem>>, vector<1x256xf32>
    %cst_3 = arith.constant dense<0.000000e+00> : vector<256x256xf32>
    %9 = tpu.matmul %1, %6, %cst_3 {dimension_numbers = #tpu.dot_dimension_numbers<[1], [0], [0], [1], [0, 0, 1, 1], [], []>} : vector<256x512xbf16>, vector<512x256xbf16>, vector<256x256xf32> -> vector<256x256xf32>
    %10 = vector.broadcast %8 : vector<1x256xf32> to vector<256x256xf32>
    %11 = arith.addf %9, %10 : vector<256x256xf32>
    %cst_4 = arith.constant -1.000000e+01 : f32
    %cst_5 = arith.constant 1.000000e+01 : f32
    %12 = vector.broadcast %cst_4 : f32 to vector<256x256xf32>
    %13 = arith.maximumf %12, %11 : vector<256x256xf32>
    %14 = vector.broadcast %cst_5 : f32 to vector<256x256xf32>
    %15 = arith.minimumf %14, %13 : vector<256x256xf32>
    %cst_6 = arith.constant 1.000000e+01 : f32
    %16 = vector.broadcast %cst_6 : f32 to vector<256x256xf32>
    %17 = arith.subf %15, %16 : vector<256x256xf32>
    %18 = math.exp %17 : vector<256x256xf32>
    %cst_7 = arith.constant dense<0.000000e+00> : vector<256xf32>
    %19 = vector.multi_reduction <add>, %18, %cst_7 [1] : vector<256x256xf32> to vector<256xf32>
    %20 = vector.shape_cast %19 : vector<256xf32> to vector<256x1xf32>
    %21 = arith.addf %2, %20 : vector<256x1xf32>
    %c1_i32 = arith.constant 1 : i32
    %c256_i32_8 = arith.constant 256 : i32
    %22 = arith.muli %c1_i32, %c256_i32_8 : i32
    %23 = tpu.assume_multiple %22, 256 : i32
    %c0_9 = arith.constant 0 : index
    %24 = arith.index_cast %23 : i32 to index
    %25 = vector.load %arg2[%c0_9, %24] : memref<512x1024xbf16, #tpu.memory_space<vmem>>, vector<512x256xbf16>
    %c0_10 = arith.constant 0 : index
    %26 = arith.index_cast %23 : i32 to index
    %27 = vector.load %arg3[%c0_10, %26] : memref<1x1024xf32, #tpu.memory_space<vmem>>, vector<1x256xf32>
    %cst_11 = arith.constant dense<0.000000e+00> : vector<256x256xf32>
    %28 = tpu.matmul %1, %25, %cst_11 {dimension_numbers = #tpu.dot_dimension_numbers<[1], [0], [0], [1], [0, 0, 1, 1], [], []>} : vector<256x512xbf16>, vector<512x256xbf16>, vector<256x256xf32> -> vector<256x256xf32>
    %29 = vector.broadcast %27 : vector<1x256xf32> to vector<256x256xf32>
    %30 = arith.addf %28, %29 : vector<256x256xf32>
    %cst_12 = arith.constant -1.000000e+01 : f32
    %cst_13 = arith.constant 1.000000e+01 : f32
    %31 = vector.broadcast %cst_12 : f32 to vector<256x256xf32>
    %32 = arith.maximumf %31, %30 : vector<256x256xf32>
    %33 = vector.broadcast %cst_13 : f32 to vector<256x256xf32>
    %34 = arith.minimumf %33, %32 : vector<256x256xf32>
    %cst_14 = arith.constant 1.000000e+01 : f32
    %35 = vector.broadcast %cst_14 : f32 to vector<256x256xf32>
    %36 = arith.subf %34, %35 : vector<256x256xf32>
    %37 = math.exp %36 : vector<256x256xf32>
    %cst_15 = arith.constant dense<0.000000e+00> : vector<256xf32>
    %38 = vector.multi_reduction <add>, %37, %cst_15 [1] : vector<256x256xf32> to vector<256xf32>
    %39 = vector.shape_cast %38 : vector<256xf32> to vector<256x1xf32>
    %40 = arith.addf %21, %39 : vector<256x1xf32>
    %c2_i32 = arith.constant 2 : i32
    %c256_i32_16 = arith.constant 256 : i32
    %41 = arith.muli %c2_i32, %c256_i32_16 : i32
    %42 = tpu.assume_multiple %41, 256 : i32
    %c0_17 = arith.constant 0 : index
    %43 = arith.index_cast %42 : i32 to index
    %44 = vector.load %arg2[%c0_17, %43] : memref<512x1024xbf16, #tpu.memory_space<vmem>>, vector<512x256xbf16>
    %c0_18 = arith.constant 0 : index
    %45 = arith.index_cast %42 : i32 to index
    %46 = vector.load %arg3[%c0_18, %45] : memref<1x1024xf32, #tpu.memory_space<vmem>>, vector<1x256xf32>
    %cst_19 = arith.constant dense<0.000000e+00> : vector<256x256xf32>
    %47 = tpu.matmul %1, %44, %cst_19 {dimension_numbers = #tpu.dot_dimension_numbers<[1], [0], [0], [1], [0, 0, 1, 1], [], []>} : vector<256x512xbf16>, vector<512x256xbf16>, vector<256x256xf32> -> vector<256x256xf32>
    %48 = vector.broadcast %46 : vector<1x256xf32> to vector<256x256xf32>
    %49 = arith.addf %47, %48 : vector<256x256xf32>
    %cst_20 = arith.constant -1.000000e+01 : f32
    %cst_21 = arith.constant 1.000000e+01 : f32
    %50 = vector.broadcast %cst_20 : f32 to vector<256x256xf32>
    %51 = arith.maximumf %50, %49 : vector<256x256xf32>
    %52 = vector.broadcast %cst_21 : f32 to vector<256x256xf32>
    %53 = arith.minimumf %52, %51 : vector<256x256xf32>
    %cst_22 = arith.constant 1.000000e+01 : f32
    %54 = vector.broadcast %cst_22 : f32 to vector<256x256xf32>
    %55 = arith.subf %53, %54 : vector<256x256xf32>
    %56 = math.exp %55 : vector<256x256xf32>
    %cst_23 = arith.constant dense<0.000000e+00> : vector<256xf32>
    %57 = vector.multi_reduction <add>, %56, %cst_23 [1] : vector<256x256xf32> to vector<256xf32>
    %58 = vector.shape_cast %57 : vector<256xf32> to vector<256x1xf32>
    %59 = arith.addf %40, %58 : vector<256x1xf32>
    %c3_i32 = arith.constant 3 : i32
    %c256_i32_24 = arith.constant 256 : i32
    %60 = arith.muli %c3_i32, %c256_i32_24 : i32
    %61 = tpu.assume_multiple %60, 256 : i32
    %c0_25 = arith.constant 0 : index
    %62 = arith.index_cast %61 : i32 to index
    %63 = vector.load %arg2[%c0_25, %62] : memref<512x1024xbf16, #tpu.memory_space<vmem>>, vector<512x256xbf16>
    %c0_26 = arith.constant 0 : index
    %64 = arith.index_cast %61 : i32 to index
    %65 = vector.load %arg3[%c0_26, %64] : memref<1x1024xf32, #tpu.memory_space<vmem>>, vector<1x256xf32>
    %cst_27 = arith.constant dense<0.000000e+00> : vector<256x256xf32>
    %66 = tpu.matmul %1, %63, %cst_27 {dimension_numbers = #tpu.dot_dimension_numbers<[1], [0], [0], [1], [0, 0, 1, 1], [], []>} : vector<256x512xbf16>, vector<512x256xbf16>, vector<256x256xf32> -> vector<256x256xf32>
    %67 = vector.broadcast %65 : vector<1x256xf32> to vector<256x256xf32>
    %68 = arith.addf %66, %67 : vector<256x256xf32>
    %cst_28 = arith.constant -1.000000e+01 : f32
    %cst_29 = arith.constant 1.000000e+01 : f32
    %69 = vector.broadcast %cst_28 : f32 to vector<256x256xf32>
    %70 = arith.maximumf %69, %68 : vector<256x256xf32>
    %71 = vector.broadcast %cst_29 : f32 to vector<256x256xf32>
    %72 = arith.minimumf %71, %70 : vector<256x256xf32>
    %cst_30 = arith.constant 1.000000e+01 : f32
    %73 = vector.broadcast %cst_30 : f32 to vector<256x256xf32>
    %74 = arith.subf %72, %73 : vector<256x256xf32>
    %75 = math.exp %74 : vector<256x256xf32>
    %cst_31 = arith.constant dense<0.000000e+00> : vector<256xf32>
    %76 = vector.multi_reduction <add>, %75, %cst_31 [1] : vector<256x256xf32> to vector<256xf32>
    %77 = vector.shape_cast %76 : vector<256xf32> to vector<256x1xf32>
    %78 = arith.addf %59, %77 : vector<256x1xf32>
    %c4_i32 = arith.constant 4 : i32
    %79 = math.log %78 : vector<256x1xf32>
    %cst_32 = arith.constant 1.000000e+01 : f32
    %80 = vector.broadcast %cst_32 : f32 to vector<256x1xf32>
    %81 = arith.addf %80, %79 : vector<256x1xf32>
    %82 = math.exp %81 : vector<256x1xf32>
    %83 = math.log1p %82 : vector<256x1xf32>
    %84 = arith.mulf %81, %81 : vector<256x1xf32>
    %85 = math.tanh %83 : vector<256x1xf32>
    %86 = arith.mulf %84, %85 : vector<256x1xf32>
    %c0_33 = arith.constant 0 : index
    %c0_34 = arith.constant 0 : index
    %87 = vector.load %arg4[%c0_33, %c0_34] : memref<256x1xf32, #tpu.memory_space<vmem>>, vector<256x1xf32>
    tpu.vector_store %arg4[%c0_33, %c0_34], %86 {strides = array<i32>} : memref<256x1xf32, #tpu.memory_space<vmem>>, vector<256x1xf32>,
    return
  }
  func.func @transform_0(%arg0: i32) -> (i32, i32) {
    %c0_i32 = arith.constant 0 : i32
    %c0_i32_0 = arith.constant 0 : i32
    return %arg0, %c0_i32 : i32, i32
  }
  func.func @transform_1(%arg0: i32) -> (i32, i32) {
    %c0_i32 = arith.constant 0 : i32
    %c0_i32_0 = arith.constant 0 : i32
    %c0_i32_1 = arith.constant 0 : i32
    return %c0_i32, %c0_i32_0 : i32, i32
  }
  func.func @transform_2(%arg0: i32) -> (i32, i32) {
    %c0_i32 = arith.constant 0 : i32
    %c0_i32_0 = arith.constant 0 : i32
    %c0_i32_1 = arith.constant 0 : i32
    return %c0_i32, %c0_i32_0 : i32, i32
  }
  func.func @transform_3(%arg0: i32) -> (i32, i32) {
    %c0_i32 = arith.constant 0 : i32
    %c0_i32_0 = arith.constant 0 : i32
    return %arg0, %c0_i32 : i32, i32
  }
}

</mosaic_0001>

<bundles_post_ra>
// kernel: tpu_custom_call.1
= control target key start
LH: loop header
LB: loop body
LE: loop exit
PB: predicated region body
PF: predicated region fallthrough
CT: control target
= control target key end

     0   :  { %8 = vsyncpa [#allocation3], 0  ;;  %s11644_s0 = inlined_call_operand.hbm [shape: f32[256,512], index: 0, kind: input, shape index: {}]   ;;  %s11645_s1 = inlined_call_operand.hbm [shape: bf16[512,1024], index: 1, kind: input, shape index: {}]   ;;  %s11646_s2 = inlined_call_operand.hbm [shape: f32[1,1024], index: 2, kind: input, shape index: {}]   ;;  %s11647_s3 = inlined_call_operand.vmem [shape: f32[256,1], index: 3, kind: output, shape index: {}]  }
   0x1   :  { %9 = vsyncpa [#allocation5], 0  ;;  %s27_s14 = sshll.u32 %s11645_s1, 4  ;;  %s9682_s15 = smov [#allocation4]   ;;  %s28_s14 = int_to_ptr.hbm [resolvable:$true] %s27_s14 }
   0x2   :  { %s29_s16 = sshll.u32 %s9682_s15, 4  ;;  %s14_s19 = sshll.u32 %s11644_s0, 4  ;;  %s30_s16 = int_to_ptr.vmem [resolvable:$true] %s29_s16  ;;  %s15_s19 = int_to_ptr.hbm [resolvable:$true] %s14_s19 }
   0x3   :  { %s9683_s20 = smov 512   ;;  %s9684_s21 = smov 32  }
   0x4   :  { %35 = dma.hbm_to_vmem [thread:$0]  %s28_s14, 32768, %s30_s16, [#allocation5], %s9683_s20, %s9683_s20, %s9684_s21  }
   0x5   :  { %s9685_s22 = smov [#allocation2]   ;;  %s41_s26 = sshll.u32 %s11646_s2, 4  ;;  %s42_s26 = int_to_ptr.hbm [resolvable:$true] %s41_s26 }
   0x6   :  { %s16_s23 = sshll.u32 %s9685_s22, 4  ;;  %s9686_s1 = smov [#allocation6]   ;;  %s17_s23 = int_to_ptr.vmem [resolvable:$true] %s16_s23 }
   0x7   :  { %22 = dma.hbm_to_vmem [thread:$0]  %s15_s19, 16384, %s17_s23, [#allocation3], %s9683_s20, %s9683_s20, %s9684_s21  }
   0x8   :  { %s43_s27 = sshll.u32 %s9686_s1, 4  ;;  %s44_s27 = int_to_ptr.vmem [resolvable:$true] %s43_s27 }
   0x9   :  { %46 = dma.hbm_to_vmem [thread:$0]  %s42_s26, 128, %s44_s27, [#allocation5]  }
   0xa   :  { %9678 = dma.done.wait [#allocation3], 16384  }
   0xb   :  { %9679 = vsyncadd [#allocation3], 4294950912 }
   0xc   :  { %9680 = dma.done.wait [#allocation5], 32896  }
   0xd   :  { %9681 = vsyncadd [#allocation5], 4294934400  ;;  %v7098_v0 = vld [vmem:[#allocation4 + $0x1c0] sm:$0xf]  ;;  %vm7001_vm1 = vcmask 7168  }
   0xe   :  { %v8591_v1 = vld [vmem:[#allocation4 + $0x1dc] sm:$0xf0] }
   0xf   :  { %v7162_v2 = vld [vmem:[#allocation4 + $0x3c0] sm:$0xf]  ;;  %v7099_v3 = vor.u32 %v8591_v1, %v7098_v0 }
  0x10   :  { %v8607_v4 = vld [vmem:[#allocation4 + $0x3dc] sm:$0xf0] }
  0x11   :  { %v7226_v5 = vld [vmem:[#allocation4 + $0x5c0] sm:$0xf]  ;;  %v7163_v7 = vor.u32 %v8607_v4, %v7162_v2  ;;  %641 = vmatpush.bf16.msra.mxu0 %v7099_v3 }
  0x12   :  { %v8623_v6 = vld [vmem:[#allocation4 + $0x5dc] sm:$0xf0] }
  0x13   :  { %v7227_v8 = vor.u32 %v8623_v6, %v7226_v5  ;;  %v7290_v9 = vld [vmem:[#allocation4 + $0x7c0] sm:$0xf]  ;;  %730 = vmatpush.bf16.msra.mxu1 %v7163_v7 }
  0x14   :  { %v8639_v10 = vld [vmem:[#allocation4 + $0x7dc] sm:$0xf0] }
  0x15   :  { %v7090_v11 = vld [vmem:[#allocation4 + $0x180] sm:$0xf]  ;;  %v7291_v12 = vor.u32 %v8639_v10, %v7290_v9  ;;  %819 = vmatpush.bf16.msra.mxu2 %v7227_v8 }
  0x16   :  { %v8589_v13 = vld [vmem:[#allocation4 + $0x19c] sm:$0xf0] }
  0x17   :  { %v7154_v14 = vld [vmem:[#allocation4 + $0x380] sm:$0xf]  ;;  %v7091_v16 = vor.u32 %v8589_v13, %v7090_v11  ;;  %908 = vmatpush.bf16.msra.mxu3 %v7291_v12 }
  0x18   :  { %v8605_v15 = vld [vmem:[#allocation4 + $0x39c] sm:$0xf0] }
  0x19   :  { %v7155_v17 = vor.u32 %v8605_v15, %v7154_v14  ;;  %v7218_v18 = vld [vmem:[#allocation4 + $0x580] sm:$0xf]  ;;  %642 = vmatpush.bf16.msra.mxu0 %v7091_v16 }
  0x1a   :  { %v8621_v19 = vld [vmem:[#allocation4 + $0x59c] sm:$0xf0] }
  0x1b   :  { %v7282_v20 = vld [vmem:[#allocation4 + $0x780] sm:$0xf]  ;;  %v7219_v21 = vor.u32 %v8621_v19, %v7218_v18  ;;  %731 = vmatpush.bf16.msra.mxu1 %v7155_v17 }
  0x1c   :  { %v8637_v22 = vld [vmem:[#allocation4 + $0x79c] sm:$0xf0] }
  0x1d   :  { %v7082_v23 = vld [vmem:[#allocation4 + $0x140] sm:$0xf]  ;;  %v7283_v25 = vor.u32 %v8637_v22, %v7282_v20  ;;  %820 = vmatpush.bf16.msra.mxu2 %v7219_v21 }
  0x1e   :  { %v8587_v24 = vld [vmem:[#allocation4 + $0x15c] sm:$0xf0] }
  0x1f   :  { %v7146_v26 = vld [vmem:[#allocation4 + $0x340] sm:$0xf]  ;;  %v7083_v29 = vor.u32 %v8587_v24, %v7082_v23  ;;  %909 = vmatpush.bf16.msra.mxu3 %v7283_v25 }
  0x20   :  { %v8603_v27 = vld [vmem:[#allocation4 + $0x35c] sm:$0xf0] }
  0x21   :  { %v7210_v28 = vld [vmem:[#allocation4 + $0x540] sm:$0xf]  ;;  %v7147_v33 = vor.u32 %v8603_v27, %v7146_v26  ;;  %643 = vmatpush.bf16.msra.mxu0 %v7083_v29 }
  0x22   :  { %v8619_v30 = vld [vmem:[#allocation4 + $0x55c] sm:$0xf0] }
  0x23   :  { %v7274_v31 = vld [vmem:[#allocation4 + $0x740] sm:$0xf]  ;;  %v7211_v34 = vor.u32 %v8619_v30, %v7210_v28  ;;  %732 = vmatpush.bf16.msra.mxu1 %v7147_v33  ;;  %v60_v30 = vld [vmem:[#allocation2 + $0x8] sm:$0xff] }
  0x24   :  { %v8635_v32 = vld [vmem:[#allocation4 + $0x75c] sm:$0xf0] }
  0x25   :  { %v7074_v35 = vld [vmem:[#allocation4 + $0x100] sm:$0xf]  ;;  %v7275_v38 = vor.u32 %v8635_v32, %v7274_v31  ;;  %821 = vmatpush.bf16.msra.mxu2 %v7211_v34  ;;  %v8622_v31 = vld [vmem:[#allocation4 + $0x5c4] sm:$0xf]  ;;  %v64_v34 = vld [vmem:[#allocation2 + $0x28] sm:$0xff] }
  0x26   :  { %v8585_v36 = vld [vmem:[#allocation4 + $0x11c] sm:$0xf0]  ;;  %v7228_v32 = vld [vmem:[#allocation4 + $0x5e0] sm:$0xf0] }
  0x27   :  { %v7138_v37 = vld [vmem:[#allocation4 + $0x300] sm:$0xf]  ;;  %v7075_v44 = vor.u32 %v8585_v36, %v7074_v35  ;;  %910 = vmatpush.bf16.msra.mxu3 %v7275_v38  ;;  %v8638_v35 = vld [vmem:[#allocation4 + $0x7c4] sm:$0xf] }
  0x28   :  { %v8601_v39 = vld [vmem:[#allocation4 + $0x31c] sm:$0xf0]  ;;  %v7292_v36 = vld [vmem:[#allocation4 + $0x7e0] sm:$0xf0] }
  0x29   :  { %v7202_v40 = vld [vmem:[#allocation4 + $0x500] sm:$0xf]  ;;  %v7139_v45 = vor.u32 %v8601_v39, %v7138_v37  ;;  %644 = vmatpush.bf16.msra.mxu0 %v7075_v44  ;;  %v61_v39 = vld [vmem:[#allocation2 + $0x10] sm:$0xff]  ;;  %v7231_v44 = vor.u32 %v8622_v31, %v7228_v32  ;;  %v7084_v32 = vld [vmem:[#allocation4 + $0x160] sm:$0xf0] }
  0x2a   :  { %v8617_v41 = vld [vmem:[#allocation4 + $0x51c] sm:$0xf0] }
  0x2b   :  { %v7266_v42 = vld [vmem:[#allocation4 + $0x700] sm:$0xf]  ;;  %v7203_v46 = vor.u32 %v8617_v41, %v7202_v40  ;;  %733 = vmatpush.bf16.msra.mxu1 %v7139_v45  ;;  %v65_v40 = vld [vmem:[#allocation2 + $0x30] sm:$0xff]  ;;  %v62_v41 = vld [vmem:[#allocation2 + $0x18] sm:$0xff] }
  0x2c   :  { %v8633_v43 = vld [vmem:[#allocation4 + $0x71c] sm:$0xf0]  ;;  %v8590_v45 = vld [vmem:[#allocation4 + $0x1c4] sm:$0xf] }
  0x2d   :  { %v7066_v47 = vld [vmem:[#allocation4 + $0xc0] sm:$0xf]  ;;  %v7267_v50 = vor.u32 %v8633_v43, %v7266_v42  ;;  %822 = vmatpush.bf16.msra.mxu2 %v7203_v46  ;;  %v66_v43 = vld [vmem:[#allocation2 + $0x38] sm:$0xff]  ;;  %v7100_v46 = vld [vmem:[#allocation4 + $0x1e0] sm:$0xf0] }
  0x2e   :  { %v8583_v48 = vld [vmem:[#allocation4 + $0xdc] sm:$0xf0] }
  0x2f   :  { %v7130_v49 = vld [vmem:[#allocation4 + $0x2c0] sm:$0xf]  ;;  %v7067_v56 = vor.u32 %v8583_v48, %v7066_v47  ;;  %911 = vmatpush.bf16.msra.mxu3 %v7267_v50  ;;  %v7295_v48 = vor.u32 %v8638_v35, %v7292_v36  ;;  %v7164_v50 = vld [vmem:[#allocation4 + $0x3e0] sm:$0xf0] }
  0x30   :  { %v8599_v51 = vld [vmem:[#allocation4 + $0x2dc] sm:$0xf0] }
  0x31   :  { %v7194_v52 = vld [vmem:[#allocation4 + $0x4c0] sm:$0xf]  ;;  %v7131_v57 = vor.u32 %v8599_v51, %v7130_v49  ;;  %645 = vmatpush.bf16.msra.mxu0 %v7067_v56  ;;  %v8606_v49 = vld [vmem:[#allocation4 + $0x3c4] sm:$0xf]  ;;  %v9718_v51 = vpack.c.bf16 %v64_v34, %v60_v30 }
  0x32   :  { %v8615_v53 = vld [vmem:[#allocation4 + $0x4dc] sm:$0xf0]  ;;  %v8620_v56 = vld [vmem:[#allocation4 + $0x584] sm:$0xf] }
  0x33   :  { %v7258_v54 = vld [vmem:[#allocation4 + $0x6c0] sm:$0xf]  ;;  %v7195_v58 = vor.u32 %v8615_v53, %v7194_v52  ;;  %734 = vmatpush.bf16.msra.mxu1 %v7131_v57  ;;  %11790 = vst [vmem:[#allocation10_spill] sm:$0xff] %v9718_v51  ;;  %v9720_v52 = vpack.c.bf16 %v65_v40, %v61_v39  ;;  %v9722_v53 = vpack.c.bf16 %v66_v43, %v62_v41  ;;  %v7220_v57 = vld [vmem:[#allocation4 + $0x5a0] sm:$0xf0]  ;;  %v88_v43 = vld [vmem:[#allocation2 + $0xe8] sm:$0xff] }
  0x34   :  { %v8631_v55 = vld [vmem:[#allocation4 + $0x6dc] sm:$0xf0]  ;;  %v8586_v30 = vld [vmem:[#allocation4 + $0x144] sm:$0xf] }
  0x35   :  { %v7058_v59 = vld [vmem:[#allocation4 + $0x80] sm:$0xf]  ;;  %v7259_v62 = vor.u32 %v8631_v55, %v7258_v54  ;;  %823 = vmatpush.bf16.msra.mxu2 %v7195_v58  ;;  %11791 = vst [vmem:[#allocation11_spill] sm:$0xff] %v9720_v52  ;;  %v7103_v54 = vor.u32 %v8590_v45, %v7100_v46  ;;  %v7167_v55 = vor.u32 %v8606_v49, %v7164_v50  ;;  %v8588_v58 = vld [vmem:[#allocation4 + $0x184] sm:$0xf]  ;;  %v89_v45 = vld [vmem:[#allocation2 + $0xf0] sm:$0xff] }
  0x36   :  { %v8581_v60 = vld [vmem:[#allocation4 + $0x9c] sm:$0xf0]  ;;  %11792 = vst [vmem:[#allocation12_spill] sm:$0xff] %v9722_v53  ;;  %v7276_v34 = vld [vmem:[#allocation4 + $0x760] sm:$0xf0]  ;;  %v7087_v35 = vor.u32 %v8586_v30, %v7084_v32  ;;  %v86_v46 = vld [vmem:[#allocation2 + $0xd8] sm:$0xff] }
  0x37   :  { %v7122_v61 = vld [vmem:[#allocation4 + $0x280] sm:$0xf]  ;;  %v7059_v4 = vor.u32 %v8581_v60, %v7058_v59  ;;  %912 = vmatpush.bf16.msra.mxu3 %v7259_v62  ;;  %v7223_v59 = vor.u32 %v8620_v56, %v7220_v57  ;;  %v7092_v60 = vld [vmem:[#allocation4 + $0x1a0] sm:$0xf0]  ;;  %v102_v30 = vld [vmem:[#allocation2 + $0x158] sm:$0xff] }
  0x38   :  { %v8597_v63 = vld [vmem:[#allocation4 + $0x29c] sm:$0xf0]  ;;  %v7284_v62 = vld [vmem:[#allocation4 + $0x7a0] sm:$0xf0] }
  0x39   :  { %v7186_v0 = vld [vmem:[#allocation4 + $0x480] sm:$0xf]  ;;  %v7123_v5 = vor.u32 %v8597_v63, %v7122_v61  ;;  %646 = vmatpush.bf16.msra.mxu0 %v7059_v4  ;;  %v8636_v61 = vld [vmem:[#allocation4 + $0x784] sm:$0xf]  ;;  %v7095_v63 = vor.u32 %v8588_v58, %v7092_v60  ;;  %v92_v58 = vld [vmem:[#allocation2 + $0x108] sm:$0xff] }
  0x3a   :  { %v8613_v1 = vld [vmem:[#allocation4 + $0x49c] sm:$0xf0]  ;;  %v93_v60 = vld [vmem:[#allocation2 + $0x110] sm:$0xff] }
  0x3b   :  { %v7250_v2 = vld [vmem:[#allocation4 + $0x680] sm:$0xf]  ;;  %v7187_v6 = vor.u32 %v8613_v1, %v7186_v0  ;;  %735 = vmatpush.bf16.msra.mxu1 %v7123_v5  ;;  %v7287_v0 = vor.u32 %v8636_v61, %v7284_v62  ;;  %v8604_v1 = vld [vmem:[#allocation4 + $0x384] sm:$0xf]  ;;  %v97_v61 = vld [vmem:[#allocation2 + $0x130] sm:$0xff] }
  0x3c   :  { %v8629_v3 = vld [vmem:[#allocation4 + $0x69c] sm:$0xf0]  ;;  %v94_v62 = vld [vmem:[#allocation2 + $0x118] sm:$0xff] }
  0x3d   :  { %v7050_v7 = vld [vmem:[#allocation4 + $0x40] sm:$0xf]  ;;  %v7251_v10 = vor.u32 %v8629_v3, %v7250_v2  ;;  %824 = vmatpush.bf16.msra.mxu2 %v7187_v6  ;;  %v7156_v2 = vld [vmem:[#allocation4 + $0x3a0] sm:$0xf0]  ;;  %v68_v6 = vld [vmem:[#allocation2 + $0x48] sm:$0xff] }
  0x3e   :  { %v8579_v8 = vld [vmem:[#allocation4 + $0x5c] sm:$0xf0]  ;;  %v7159_v3 = vor.u32 %v8604_v1, %v7156_v2  ;;  %v9768_v2 = vpack.c.bf16 %v97_v61, %v93_v60  ;;  %v7068_v60 = vld [vmem:[#allocation4 + $0xe0] sm:$0xf0] }
  0x3f   :  { %v7114_v9 = vld [vmem:[#allocation4 + $0x240] sm:$0xf]  ;;  %v7051_v17 = vor.u32 %v8579_v8, %v7050_v7  ;;  %913 = vmatpush.bf16.msra.mxu3 %v7251_v10  ;;  %v72_v7 = vld [vmem:[#allocation2 + $0x68] sm:$0xff]  ;;  %v69_v8 = vld [vmem:[#allocation2 + $0x50] sm:$0xff] }
  0x40   :  { %v8595_v11 = vld [vmem:[#allocation4 + $0x25c] sm:$0xf0]  ;;  %v70_v10 = vld [vmem:[#allocation2 + $0x58] sm:$0xff]  ;;  %11797 = vst [vmem:[#allocation17_spill] sm:$0xff] %v9768_v2  ;;  %v8630_v61 = vld [vmem:[#allocation4 + $0x6c4] sm:$0xf] }
  0x41   :  { %v7178_v12 = vld [vmem:[#allocation4 + $0x440] sm:$0xf]  ;;  %v7115_v21 = vor.u32 %v8595_v11, %v7114_v9  ;;  %647 = vmatpush.bf16.msra.mxu0 %v7051_v17  ;;  %v73_v9 = vld [vmem:[#allocation2 + $0x70] sm:$0xff]  ;;  %v74_v11 = vld [vmem:[#allocation2 + $0x78] sm:$0xff] }
  0x42   :  { %v8611_v13 = vld [vmem:[#allocation4 + $0x45c] sm:$0xf0] }
  0x43   :  { %v7242_v14 = vld [vmem:[#allocation4 + $0x640] sm:$0xf]  ;;  %v7179_v22 = vor.u32 %v8611_v13, %v7178_v12  ;;  %736 = vmatpush.bf16.msra.mxu1 %v7115_v21  ;;  %v9730_v13 = vpack.c.bf16 %v72_v7, %v68_v6  ;;  %v81_v21 = vld [vmem:[#allocation2 + $0xb0] sm:$0xff]  ;;  %v8584_v6 = vld [vmem:[#allocation4 + $0x104] sm:$0xf] }
  0x44   :  { %v8627_v15 = vld [vmem:[#allocation4 + $0x65c] sm:$0xf0] }
  0x45   :  { %v7042_v16 = vld [vmem:[#allocation4] sm:$0xf]  ;;  %v7243_v26 = vor.u32 %v8627_v15, %v7242_v14  ;;  %825 = vmatpush.bf16.msra.mxu2 %v7179_v22  ;;  %v9732_v14 = vpack.c.bf16 %v73_v9, %v69_v8  ;;  %v9734_v15 = vpack.c.bf16 %v74_v11, %v70_v10  ;;  %v78_v22 = vld [vmem:[#allocation2 + $0x98] sm:$0xff]  ;;  %v7076_v8 = vld [vmem:[#allocation4 + $0x120] sm:$0xf0] }
  0x46   :  { %v8577_v18 = vld [vmem:[#allocation4 + $0x1c] sm:$0xf0]  ;;  %v8632_v9 = vld [vmem:[#allocation4 + $0x704] sm:$0xf]  ;;  %v7079_v11 = vor.u32 %v8584_v6, %v7076_v8  ;;  %v120_v8 = vld [vmem:[#allocation2 + $0x1e8] sm:$0xff] }
  0x47   :  { %v7106_v19 = vld [vmem:[#allocation4 + $0x200] sm:$0xf]  ;;  %v7043_v33 = vor.u32 %v8577_v18, %v7042_v16  ;;  %914 = vmatpush.bf16.msra.mxu3 %v7243_v26  ;;  %v76_v18 = vld [vmem:[#allocation2 + $0x88] sm:$0xff]  ;;  %v7268_v10 = vld [vmem:[#allocation4 + $0x720] sm:$0xf0] }
  0x48   :  { %v8593_v20 = vld [vmem:[#allocation4 + $0x21c] sm:$0xf0] }
  0x49   :  { %v7170_v23 = vld [vmem:[#allocation4 + $0x400] sm:$0xf]  ;;  %v7107_v37 = vor.u32 %v8593_v20, %v7106_v19  ;;  %648 = vmatpush.bf16.msra.mxu0 %v7043_v33  ;;  %v80_v19 = vld [vmem:[#allocation2 + $0xa8] sm:$0xff]  ;;  %v77_v20 = vld [vmem:[#allocation2 + $0x90] sm:$0xff] }
  0x4a   :  { %v8609_v24 = vld [vmem:[#allocation4 + $0x41c] sm:$0xf0]  ;;  %v9744_v26 = vpack.c.bf16 %v81_v21, %v77_v20  ;;  %v8634_v33 = vld [vmem:[#allocation4 + $0x744] sm:$0xf] }
  0x4b   :  { %v7234_v25 = vld [vmem:[#allocation4 + $0x600] sm:$0xf]  ;;  %v7171_v38 = vor.u32 %v8609_v24, %v7170_v23  ;;  %737 = vmatpush.bf16.msra.mxu1 %v7107_v37  ;;  %v82_v23 = vld [vmem:[#allocation2 + $0xb8] sm:$0xff]  ;;  %v7279_v36 = vor.u32 %v8634_v33, %v7276_v34  ;;  %v8602_v37 = vld [vmem:[#allocation4 + $0x344] sm:$0xf] }
  0x4c   :  { %v8625_v27 = vld [vmem:[#allocation4 + $0x61c] sm:$0xf0]  ;;  %11794 = vst [vmem:[#allocation14_spill] sm:$0xff] %v9744_v26 }
  0x4d   :  { %v59_v28 = vld [vmem:[#allocation2] sm:$0xff]  ;;  %v7235_v42 = vor.u32 %v8625_v27, %v7234_v25  ;;  %826 = vmatpush.bf16.msra.mxu2 %v7171_v38  ;;  %997 = vmatpush.bf16.msrb.mxu0 %v7103_v54  ;;  %v9742_v25 = vpack.c.bf16 %v80_v19, %v76_v18  ;;  %v9746_v27 = vpack.c.bf16 %v82_v23, %v78_v22  ;;  %v100_v22 = vld [vmem:[#allocation2 + $0x148] sm:$0xff] }
  0x4e   :  { %v63_v29 = vld [vmem:[#allocation2 + $0x20] sm:$0xff]  ;;  %738 = vmatmul.bf16.vlgmr.msra.gmra.mxu1 %v9718_v51  ;;  %v104_v23 = vld [vmem:[#allocation2 + $0x168] sm:$0xff] }
  0x4f   :  { %v9716_v47 = vpack.c.bf16 %v63_v29, %v59_v28  ;;  %915 = vmatpush.bf16.msra.mxu3 %v7235_v42  ;;  %1086 = vmatpush.bf16.msrb.mxu1 %v7167_v55  ;;  %v67_v4 = vld [vmem:[#allocation2 + $0x40] sm:$0xff]  ;;  %11793 = vst [vmem:[#allocation13_spill] sm:$0xff] %v9742_v25  ;;  %v84_v42 = vld [vmem:[#allocation2 + $0xc8] sm:$0xff]  ;;  %v9778_v33 = vpack.c.bf16 %v104_v23, %v100_v22 }
  0x50   :  { %827 = vmatmul.bf16.vlgmr.msra.gmra.mxu2 %v9720_v52  ;;  %v71_v5 = vld [vmem:[#allocation2 + $0x60] sm:$0xff]  ;;  %11795 = vst [vmem:[#allocation15_spill] sm:$0xff] %v9746_v27  ;;  %v9754_v50 = vpack.c.bf16 %v88_v43, %v84_v42  ;;  %v110_v42 = vld [vmem:[#allocation2 + $0x198] sm:$0xff] }
  0x51   :  { %11789 = vst [vmem:[#allocation9_spill] sm:$0xff] %v9716_v47  ;;  %1175 = vmatpush.bf16.msrb.mxu2 %v7231_v44  ;;  %649 = vmatmul.bf16.vlgmr.msra.gmra.mxu0 %v9716_v47  ;;  %v9728_v12 = vpack.c.bf16 %v71_v5, %v67_v4  ;;  %v75_v16 = vld [vmem:[#allocation2 + $0x80] sm:$0xff]  ;;  %v85_v44 = vld [vmem:[#allocation2 + $0xd0] sm:$0xff]  ;;  %v114_v43 = vld [vmem:[#allocation2 + $0x1b8] sm:$0xff] }
  0x52   :  { %916 = vmatmul.bf16.vlgmr.msra.gmra.mxu3 %v9722_v53  ;;  %998 = vmatpush.bf16.msrb.mxu0 %v7095_v63  ;;  %v79_v17 = vld [vmem:[#allocation2 + $0xa0] sm:$0xff]  ;;  %v9756_v54 = vpack.c.bf16 %v89_v45, %v85_v44  ;;  %v98_v63 = vld [vmem:[#allocation2 + $0x138] sm:$0xff]  ;;  %11800 = vst [vmem:[#allocation20_spill] sm:$0xff] %v9778_v33 }
  0x53   :  { %1264 = vmatpush.bf16.msrb.mxu3 %v7295_v48  ;;  %1087 = vmatpush.bf16.msrb.mxu1 %v7159_v3  ;;  %v9740_v24 = vpack.c.bf16 %v79_v17, %v75_v16  ;;  %v8618_v28 = vld [vmem:[#allocation4 + $0x544] sm:$0xf]  ;;  %v90_v48 = vld [vmem:[#allocation2 + $0xf8] sm:$0xff]  ;;  %v9770_v3 = vpack.c.bf16 %v98_v63, %v94_v62  ;;  %v7271_v16 = vor.u32 %v8632_v9, %v7268_v10  ;;  %v117_v9 = vld [vmem:[#allocation2 + $0x1d0] sm:$0xff] }
  0x54   :  { %v7212_v29 = vld [vmem:[#allocation4 + $0x560] sm:$0xf0]  ;;  %v9758_v55 = vpack.c.bf16 %v90_v48, %v86_v46  ;;  %v9794_v48 = vpack.c.bf16 %v114_v43, %v110_v42  ;;  %v121_v10 = vld [vmem:[#allocation2 + $0x1f0] sm:$0xff] }
  0x55   :  { %1176 = vmatpush.bf16.msrb.mxu2 %v7223_v59  ;;  %v7215_v31 = vor.u32 %v8618_v28, %v7212_v29  ;;  %v7148_v38 = vld [vmem:[#allocation4 + $0x360] sm:$0xf0]  ;;  %v96_v59 = vld [vmem:[#allocation2 + $0x128] sm:$0xff]  ;;  %11798 = vst [vmem:[#allocation18_spill] sm:$0xff] %v9770_v3  ;;  %v101_v28 = vld [vmem:[#allocation2 + $0x150] sm:$0xff] }
  0x56   :  { %v7151_v39 = vor.u32 %v8602_v37, %v7148_v38  ;;  %999 = vmatpush.bf16.msrb.mxu0 %v7087_v35  ;;  %v83_v40 = vld [vmem:[#allocation2 + $0xc0] sm:$0xff]  ;;  %v9766_v1 = vpack.c.bf16 %v96_v59, %v92_v58  ;;  %v105_v29 = vld [vmem:[#allocation2 + $0x170] sm:$0xff]  ;;  %v108_v38 = vld [vmem:[#allocation2 + $0x188] sm:$0xff]  ;;  %11806 = vst [vmem:[#allocation26_spill] sm:$0xff] %v9794_v48 }
  0x57   :  { %1265 = vmatpush.bf16.msrb.mxu3 %v7287_v0  ;;  %v87_v41 = vld [vmem:[#allocation2 + $0xe0] sm:$0xff]  ;;  %v9780_v34 = vpack.c.bf16 %v105_v29, %v101_v28 }
  0x58   :  { %1088 = vmatpush.bf16.msrb.mxu1 %v7151_v39  ;;  %v9752_v49 = vpack.c.bf16 %v87_v41, %v83_v40  ;;  %v91_v56 = vld [vmem:[#allocation2 + $0x100] sm:$0xff]  ;;  %11796 = vst [vmem:[#allocation16_spill] sm:$0xff] %v9766_v1  ;;  %v112_v39 = vld [vmem:[#allocation2 + $0x1a8] sm:$0xff]  ;;  %v109_v40 = vld [vmem:[#allocation2 + $0x190] sm:$0xff] }
  0x59   :  { %1177 = vmatpush.bf16.msrb.mxu2 %v7215_v31  ;;  %v95_v57 = vld [vmem:[#allocation2 + $0x120] sm:$0xff]  ;;  %v106_v31 = vld [vmem:[#allocation2 + $0x178] sm:$0xff]  ;;  %11801 = vst [vmem:[#allocation21_spill] sm:$0xff] %v9780_v34  ;;  %v113_v41 = vld [vmem:[#allocation2 + $0x1b0] sm:$0xff]  ;;  %v9790_v45 = vpack.c.bf16 %v112_v39, %v108_v38 }
  0x5a   :  { %v9764_v0 = vpack.c.bf16 %v95_v57, %v91_v56  ;;  %v8616_v4 = vld [vmem:[#allocation4 + $0x504] sm:$0xf]  ;;  %1000 = vmatpush.bf16.msrb.mxu0 %v7079_v11  ;;  %v9782_v35 = vpack.c.bf16 %v106_v31, %v102_v30  ;;  %v9792_v46 = vpack.c.bf16 %v113_v41, %v109_v40  ;;  %v118_v11 = vld [vmem:[#allocation2 + $0x1d8] sm:$0xff]  ;;  %v315_v28 = vld [vmem:[#allocation6] sm:$0x3] }
  0x5b   :  { %1266 = vmatpush.bf16.msrb.mxu3 %v7279_v36  ;;  %v7204_v5 = vld [vmem:[#allocation4 + $0x520] sm:$0xf0]  ;;  %11804 = vst [vmem:[#allocation24_spill] sm:$0xff] %v9790_v45  ;;  %v124_v31 = vld [vmem:[#allocation2 + $0x208] sm:$0xff]  ;;  %v125_v38 = vld [vmem:[#allocation2 + $0x210] sm:$0xff] }
  0x5c   :  { %v7207_v7 = vor.u32 %v8616_v4, %v7204_v5  ;;  %v8600_v17 = vld [vmem:[#allocation4 + $0x304] sm:$0xf]  ;;  %11802 = vst [vmem:[#allocation22_spill] sm:$0xff] %v9782_v35  ;;  %v129_v39 = vld [vmem:[#allocation2 + $0x230] sm:$0xff]  ;;  %v126_v40 = vld [vmem:[#allocation2 + $0x218] sm:$0xff] }
  0x5d   :  { %v7140_v18 = vld [vmem:[#allocation4 + $0x320] sm:$0xf0]  ;;  %11805 = vst [vmem:[#allocation25_spill] sm:$0xff] %v9792_v46  ;;  %v130_v41 = vld [vmem:[#allocation2 + $0x238] sm:$0xff] }
  0x5e   :  { %743 = vmatmul.bf16.gmra.mxu1 %v9730_v13  ;;  %1178 = vmatpush.bf16.msrb.mxu2 %v7207_v7  ;;  %v7143_v19 = vor.u32 %v8600_v17, %v7140_v18  ;;  %v99_v20 = vld [vmem:[#allocation2 + $0x140] sm:$0xff]  ;;  %v116_v7 = vld [vmem:[#allocation2 + $0x1c8] sm:$0xff] }
  0x5f   :  { %1267 = vmatpush.bf16.msrb.mxu3 %v7271_v16  ;;  %v103_v21 = vld [vmem:[#allocation2 + $0x160] sm:$0xff]  ;;  %v122_v16 = vld [vmem:[#allocation2 + $0x1f8] sm:$0xff]  ;;  %v9802_v18 = vpack.c.bf16 %v120_v8, %v116_v7 }
  0x60   :  { %832 = vmatmul.bf16.gmra.mxu2 %v9732_v14  ;;  %1089 = vmatpush.bf16.msrb.mxu1 %v7143_v19  ;;  %v9776_v32 = vpack.c.bf16 %v103_v21, %v99_v20  ;;  %v107_v36 = vld [vmem:[#allocation2 + $0x180] sm:$0xff]  ;;  %v9804_v19 = vpack.c.bf16 %v121_v10, %v117_v9  ;;  %v9806_v20 = vpack.c.bf16 %v122_v16, %v118_v11 }
  0x61   :  { %654 = vmatmul.bf16.gmra.mxu0 %v9728_v12  ;;  %v111_v37 = vld [vmem:[#allocation2 + $0x1a0] sm:$0xff]  ;;  %11808 = vst [vmem:[#allocation28_spill] sm:$0xff] %v9802_v18 }
  0x62   :  { %921 = vmatmul.bf16.gmra.mxu3 %v9734_v15  ;;  %11799 = vst [vmem:[#allocation19_spill] sm:$0xff] %v9776_v32  ;;  %v9788_v44 = vpack.c.bf16 %v111_v37, %v107_v36  ;;  %v8614_v56 = vld [vmem:[#allocation4 + $0x4c4] sm:$0xf]  ;;  %v9812_v36 = vperm.slane %v315_v28, 0  ;;  %v128_v37 = vld [vmem:[#allocation2 + $0x228] sm:$0xff] }
  0x63   :  { %v7196_v57 = vld [vmem:[#allocation4 + $0x4e0] sm:$0xf0]  ;;  %11809 = vst [vmem:[#allocation29_spill] sm:$0xff] %v9804_v19 }
  0x64   :  { %11803 = vst [vmem:[#allocation23_spill] sm:$0xff] %v9788_v44  ;;  %v8582_v58 = vld [vmem:[#allocation4 + $0xc4] sm:$0xf]  ;;  %v7199_v59 = vor.u32 %v8614_v56, %v7196_v57  ;;  %v9816_v56 = vpack.c.bf16 %v128_v37, %v124_v31  ;;  %v9818_v57 = vpack.c.bf16 %v129_v39, %v125_v38  ;;  %v132_v31 = vld [vmem:[#allocation2 + $0x248] sm:$0xff] }
  0x65   :  { %v7260_v62 = vld [vmem:[#allocation4 + $0x6e0] sm:$0xf0]  ;;  %v7071_v63 = vor.u32 %v8582_v58, %v7068_v60  ;;  %11810 = vst [vmem:[#allocation30_spill] sm:$0xff] %v9806_v20  ;;  %v9821_v60 = vpack.c.bf16 %v130_v41, %v126_v40  ;;  %v136_v39 = vld [vmem:[#allocation2 + $0x268] sm:$0xff]  ;;  %v133_v40 = vld [vmem:[#allocation2 + $0x250] sm:$0xff] }
  0x66   :  { %v7263_v4 = vor.u32 %v8630_v61, %v7260_v62  ;;  %1179 = vmatpush.bf16.msrb.mxu2 %v7199_v59  ;;  %v115_v5 = vld [vmem:[#allocation2 + $0x1c0] sm:$0xff]  ;;  %11812 = vst [vmem:[#allocation32_spill] sm:$0xff] %v9816_v56  ;;  %v137_v41 = vld [vmem:[#allocation2 + $0x270] sm:$0xff] }
  0x67   :  { %1001 = vmatpush.bf16.msrb.mxu0 %v7071_v63  ;;  %v119_v6 = vld [vmem:[#allocation2 + $0x1e0] sm:$0xff]  ;;  %11813 = vst [vmem:[#allocation33_spill] sm:$0xff] %v9818_v57 }
  0x68   :  { %1268 = vmatpush.bf16.msrb.mxu3 %v7263_v4  ;;  %v9800_v17 = vpack.c.bf16 %v119_v6, %v115_v5  ;;  %v8598_v21 = vld [vmem:[#allocation4 + $0x2c4] sm:$0xf]  ;;  %11814 = vst [vmem:[#allocation34_spill] sm:$0xff] %v9821_v60 }
  0x69   :  { %v7132_v22 = vld [vmem:[#allocation4 + $0x2e0] sm:$0xf0] }
  0x6a   :  { %11807 = vst [vmem:[#allocation27_spill] sm:$0xff] %v9800_v17  ;;  %v7135_v23 = vor.u32 %v8598_v21, %v7132_v22  ;;  %v123_v29 = vld [vmem:[#allocation2 + $0x200] sm:$0xff] }
  0x6b   :  { %v127_v30 = vld [vmem:[#allocation2 + $0x220] sm:$0xff] }
  0x6c   :  { %1090 = vmatpush.bf16.msrb.mxu1 %v7135_v23  ;;  %v9814_v42 = vpack.c.bf16 %v127_v30, %v123_v29  ;;  %v8612_v9 = vld [vmem:[#allocation4 + $0x484] sm:$0xf] }
  0x6d   :  { %v7188_v10 = vld [vmem:[#allocation4 + $0x4a0] sm:$0xf0] }
  0x6e   :  { %748 = vmatmul.bf16.gmra.mxu1 %v9742_v25  ;;  %11811 = vst [vmem:[#allocation31_spill] sm:$0xff] %v9814_v42  ;;  %v8580_v11 = vld [vmem:[#allocation4 + $0x84] sm:$0xf]  ;;  %v7191_v21 = vor.u32 %v8612_v9, %v7188_v10 }
  0x6f   :  { %v7060_v22 = vld [vmem:[#allocation4 + $0xa0] sm:$0xf0] }
  0x70   :  { %837 = vmatmul.bf16.gmra.mxu2 %v9744_v26  ;;  %v8628_v23 = vld [vmem:[#allocation4 + $0x684] sm:$0xf]  ;;  %v7063_v37 = vor.u32 %v8580_v11, %v7060_v22 }
  0x71   :  { %659 = vmatmul.bf16.gmra.mxu0 %v9740_v24  ;;  %v7252_v28 = vld [vmem:[#allocation4 + $0x6a0] sm:$0xf0]  ;;  %1180 = vmatpush.bf16.msrb.mxu2 %v7191_v21 }
  0x72   :  { %926 = vmatmul.bf16.gmra.mxu3 %v9746_v27  ;;  %v131_v29 = vld [vmem:[#allocation2 + $0x240] sm:$0xff]  ;;  %v7255_v38 = vor.u32 %v8628_v23, %v7252_v28  ;;  %1002 = vmatpush.bf16.msrb.mxu0 %v7063_v37 }
  0x73   :  { %v135_v30 = vld [vmem:[#allocation2 + $0x260] sm:$0xff] }
  0x74   :  { %1269 = vmatpush.bf16.msrb.mxu3 %v7255_v38  ;;  %v8596_v21 = vld [vmem:[#allocation4 + $0x284] sm:$0xf] }
  0x75   :  { %v7124_v22 = vld [vmem:[#allocation4 + $0x2a0] sm:$0xf0] }
  0x76   :  { %v7127_v28 = vor.u32 %v8596_v21, %v7124_v22 }
  0x78   :  { %1091 = vmatpush.bf16.msrb.mxu1 %v7127_v28 }
  0x7e   :  { %753 = vmatmul.bf16.gmra.mxu1 %v9754_v50 }
  0x80   :  { %842 = vmatmul.bf16.gmra.mxu2 %v9756_v54 }
  0x81   :  { %664 = vmatmul.bf16.gmra.mxu0 %v9752_v49 }
  0x82   :  { %931 = vmatmul.bf16.gmra.mxu3 %v9758_v55 }
  0x8e   :  { %758 = vmatmul.bf16.gmra.mxu1 %v9766_v1 }
  0x90   :  { %847 = vmatmul.bf16.gmra.mxu2 %v9768_v2 }
  0x91   :  { %669 = vmatmul.bf16.gmra.mxu0 %v9764_v0 }
  0x92   :  { %936 = vmatmul.bf16.gmra.mxu3 %v9770_v3 }
  0x9e   :  { %763 = vmatmul.bf16.gmra.mxu1 %v9778_v33 }
  0xa0   :  { %852 = vmatmul.bf16.gmra.mxu2 %v9780_v34 }
  0xa1   :  { %674 = vmatmul.bf16.gmra.mxu0 %v9776_v32 }
  0xa2   :  { %941 = vmatmul.bf16.gmra.mxu3 %v9782_v35 }
  0xae   :  { %768 = vmatmul.bf16.gmra.mxu1 %v9790_v45 }
  0xb0   :  { %857 = vmatmul.bf16.gmra.mxu2 %v9792_v46 }
  0xb1   :  { %679 = vmatmul.bf16.gmra.mxu0 %v9788_v44 }
  0xb2   :  { %946 = vmatmul.bf16.gmra.mxu3 %v9794_v48 }
  0xbe   :  { %773 = vmatmul.bf16.gmra.mxu1 %v9802_v18 }
  0xc0   :  { %862 = vmatmul.bf16.gmra.mxu2 %v9804_v19 }
  0xc1   :  { %684 = vmatmul.bf16.gmra.mxu0 %v9800_v17 }
  0xc2   :  { %951 = vmatmul.bf16.gmra.mxu3 %v9806_v20 }
  0xcb   :  { %v739_v59 = vpop.f32.mrf.mxu1 }
  0xce   :  { %v650_v43 = vpop.f32.mrf.mxu0  ;;  %778 = vmatmul.bf16.gmra.mxu1 %v9816_v56 }
  0xcf   :  { %v651_v58 = vadd.f32 %v650_v43, %v9812_v36  ;;  %v134_v43 = vld [vmem:[#allocation2 + $0x258] sm:$0xff] }
  0xd0   :  { %867 = vmatmul.bf16.gmra.mxu2 %v9818_v57 }
  0xd1   :  { %v740_v61 = vadd.f32 %v739_v59, %v651_v58  ;;  %689 = vmatmul.bf16.gmra.mxu0 %v9814_v42  ;;  %v138_v58 = vld [vmem:[#allocation2 + $0x278] sm:$0xff] }
  0xd2   :  { %956 = vmatmul.bf16.gmra.mxu3 %v9821_v60  ;;  %v9837_v10 = vpack.c.bf16 %v138_v58, %v134_v43  ;;  %v143_v43 = vld [vmem:[#allocation2 + $0x2a0] sm:$0xff]  ;;  %v140_v58 = vld [vmem:[#allocation2 + $0x288] sm:$0xff] }
  0xd3   :  { %v828_v62 = vpop.f32.mrf.mxu2  ;;  %v741_v7 = vpop.f32.mrf.mxu1 }
  0xd4   :  { %v829_v63 = vadd.f32 %v828_v62, %v740_v61  ;;  %v9830_v61 = vpack.c.bf16 %v135_v30, %v131_v29  ;;  %11818 = vst [vmem:[#allocation38_spill] sm:$0xff] %v9837_v10 }
  0xd5   :  { %v917_v4 = vpop.f32.mrf.mxu3 }
  0xd6   :  { %v652_v5 = vpop.f32.mrf.mxu0  ;;  %v9828_v8 = vadd.f32 %v917_v4, %v829_v63  ;;  %11815 = vst [vmem:[#allocation35_spill] sm:$0xff] %v9830_v61 }
  0xd7   :  { %v653_v6 = vadd.f32 %v652_v5, %v9812_v36  ;;  %v9832_v5 = vpack.c.bf16 %v136_v39, %v132_v31 }
  0xd9   :  { %v742_v16 = vadd.f32 %v741_v7, %v653_v6  ;;  %11816 = vst [vmem:[#allocation36_spill] sm:$0xff] %v9832_v5  ;;  %v9834_v6 = vpack.c.bf16 %v137_v41, %v133_v40  ;;  %v139_v41 = vld [vmem:[#allocation2 + $0x280] sm:$0xff] }
  0xda   :  { %v9848_v21 = vpack.c.bf16 %v143_v43, %v139_v41 }
  0xdb   :  { %v830_v59 = vpop.f32.mrf.mxu2  ;;  %11817 = vst [vmem:[#allocation37_spill] sm:$0xff] %v9834_v6  ;;  %v744_v9 = vpop.f32.mrf.mxu1 }
  0xdc   :  { %v831_v62 = vadd.f32 %v830_v59, %v742_v16  ;;  %v144_v59 = vld [vmem:[#allocation2 + $0x2a8] sm:$0xff]  ;;  %11820 = vst [vmem:[#allocation40_spill] sm:$0xff] %v9848_v21 }
  0xdd   :  { %v919_v63 = vpop.f32.mrf.mxu3 }
  0xde   :  { %v655_v4 = vpop.f32.mrf.mxu0  ;;  %v9839_v11 = vadd.f32 %v919_v63, %v831_v62  ;;  %783 = vmatmul.bf16.gmra.mxu1 %v9832_v5  ;;  %v141_v62 = vld [vmem:[#allocation2 + $0x290] sm:$0xff] }
  0xdf   :  { %v656_v7 = vadd.f32 %v655_v4, %v9812_v36  ;;  %v145_v63 = vld [vmem:[#allocation2 + $0x2b0] sm:$0xff]  ;;  %v142_v4 = vld [vmem:[#allocation2 + $0x298] sm:$0xff] }
  0xe0   :  { %872 = vmatmul.bf16.gmra.mxu2 %v9834_v6 }
  0xe1   :  { %v745_v23 = vadd.f32 %v744_v9, %v656_v7  ;;  %694 = vmatmul.bf16.gmra.mxu0 %v9830_v61  ;;  %v146_v7 = vld [vmem:[#allocation2 + $0x2b8] sm:$0xff] }
  0xe2   :  { %961 = vmatmul.bf16.gmra.mxu3 %v9837_v10 }
  0xe3   :  { %v833_v16 = vpop.f32.mrf.mxu2  ;;  %v746_v38 = vpop.f32.mrf.mxu1 }
  0xe4   :  { %v834_v29 = vadd.f32 %v833_v16, %v745_v23  ;;  %v9850_v16 = vpack.c.bf16 %v144_v59, %v140_v58 }
  0xe5   :  { %v922_v30 = vpop.f32.mrf.mxu3 }
  0xe6   :  { %v657_v31 = vpop.f32.mrf.mxu0  ;;  %v9846_v39 = vadd.f32 %v922_v30, %v834_v29  ;;  %11821 = vst [vmem:[#allocation41_spill] sm:$0xff] %v9850_v16 }
  0xe7   :  { %v658_v37 = vadd.f32 %v657_v31, %v9812_v36  ;;  %v9852_v31 = vpack.c.bf16 %v145_v63, %v141_v62 }
  0xe8   :  { %11819 = vst [vmem:[#allocation39_spill] sm:$0xff] %v9846_v39  ;;  %v153_v39 = vld [vmem:[#allocation2 + $0x2f0] sm:$0xff] }
  0xe9   :  { %v747_v40 = vadd.f32 %v746_v38, %v658_v37  ;;  %11822 = vst [vmem:[#allocation42_spill] sm:$0xff] %v9852_v31  ;;  %v9855_v37 = vpack.c.bf16 %v146_v7, %v142_v4  ;;  %v8610_v4 = vld [vmem:[#allocation4 + $0x444] sm:$0xf] }
  0xea   :  { %v7180_v7 = vld [vmem:[#allocation4 + $0x460] sm:$0xf0] }
  0xeb   :  { %v835_v9 = vpop.f32.mrf.mxu2  ;;  %v749_v30 = vpop.f32.mrf.mxu1  ;;  %11823 = vst [vmem:[#allocation43_spill] sm:$0xff] %v9855_v37 }
  0xec   :  { %v836_v22 = vadd.f32 %v835_v9, %v747_v40  ;;  %v8578_v9 = vld [vmem:[#allocation4 + $0x44] sm:$0xf] }
  0xed   :  { %v924_v23 = vpop.f32.mrf.mxu3 }
  0xee   :  { %v660_v28 = vpop.f32.mrf.mxu0  ;;  %v9857_v38 = vadd.f32 %v924_v23, %v836_v22  ;;  %788 = vmatmul.bf16.gmra.mxu1 %v9850_v16  ;;  %v7183_v23 = vor.u32 %v8610_v4, %v7180_v7  ;;  %v151_v16 = vld [vmem:[#allocation2 + $0x2e0] sm:$0xff] }
  0xef   :  { %v661_v29 = vadd.f32 %v660_v28, %v9812_v36  ;;  %v7052_v28 = vld [vmem:[#allocation4 + $0x60] sm:$0xf0] }
  0xf0   :  { %11824 = vst [vmem:[#allocation44_spill] sm:$0xff] %v9857_v38  ;;  %877 = vmatmul.bf16.gmra.mxu2 %v9852_v31  ;;  %v147_v31 = vld [vmem:[#allocation2 + $0x2c0] sm:$0xff]  ;;  %v149_v38 = vld [vmem:[#allocation2 + $0x2d0] sm:$0xff] }
  0xf1   :  { %v750_v10 = vadd.f32 %v749_v30, %v661_v29  ;;  %699 = vmatmul.bf16.gmra.mxu0 %v9848_v21  ;;  %v8626_v29 = vld [vmem:[#allocation4 + $0x644] sm:$0xf]  ;;  %v7055_v21 = vor.u32 %v8578_v9, %v7052_v28  ;;  %1181 = vmatpush.bf16.msrb.mxu2 %v7183_v23  ;;  %v9870_v6 = vpack.c.bf16 %v153_v39, %v149_v38 }
  0xf2   :  { %966 = vmatmul.bf16.gmra.mxu3 %v9855_v37  ;;  %v7244_v30 = vld [vmem:[#allocation4 + $0x660] sm:$0xf0]  ;;  %v148_v37 = vld [vmem:[#allocation2 + $0x2c8] sm:$0xff] }
  0xf3   :  { %v838_v40 = vpop.f32.mrf.mxu2  ;;  %v751_v62 = vpop.f32.mrf.mxu1  ;;  %1003 = vmatpush.bf16.msrb.mxu0 %v7055_v21  ;;  %11828 = vst [vmem:[#allocation48_spill] sm:$0xff] %v9870_v6  ;;  %v7116_v21 = vld [vmem:[#allocation4 + $0x260] sm:$0xf0] }
  0xf4   :  { %v839_v41 = vadd.f32 %v838_v40, %v750_v10  ;;  %v7247_v10 = vor.u32 %v8626_v29, %v7244_v30  ;;  %v152_v40 = vld [vmem:[#allocation2 + $0x2e8] sm:$0xff]  ;;  %v8594_v30 = vld [vmem:[#allocation4 + $0x244] sm:$0xf] }
  0xf5   :  { %v927_v43 = vpop.f32.mrf.mxu3  ;;  %v9868_v7 = vpack.c.bf16 %v152_v40, %v148_v37 }
  0xf6   :  { %v662_v58 = vpop.f32.mrf.mxu0  ;;  %v9864_v63 = vadd.f32 %v927_v43, %v839_v41  ;;  %v154_v41 = vld [vmem:[#allocation2 + $0x2f8] sm:$0xff]  ;;  %1270 = vmatpush.bf16.msrb.mxu3 %v7247_v10 }
  0xf7   :  { %v663_v59 = vadd.f32 %v662_v58, %v9812_v36  ;;  %v150_v58 = vld [vmem:[#allocation2 + $0x2d8] sm:$0xff]  ;;  %11827 = vst [vmem:[#allocation47_spill] sm:$0xff] %v9868_v7 }
  0xf8   :  { %11825 = vst [vmem:[#allocation45_spill] sm:$0xff] %v9864_v63  ;;  %v9866_v63 = vpack.c.bf16 %v151_v16, %v147_v31  ;;  %v9873_v29 = vpack.c.bf16 %v154_v41, %v150_v58  ;;  %v7119_v16 = vor.u32 %v8594_v30, %v7116_v21  ;;  %v158_v30 = vld [vmem:[#allocation2 + $0x318] sm:$0xff] }
  0xf9   :  { %v752_v22 = vadd.f32 %v751_v62, %v663_v59  ;;  %v162_v21 = vld [vmem:[#allocation2 + $0x338] sm:$0xff] }
  0xfa   :  { %11826 = vst [vmem:[#allocation46_spill] sm:$0xff] %v9866_v63  ;;  %1092 = vmatpush.bf16.msrb.mxu1 %v7119_v16 }
  0xfb   :  { %v840_v43 = vpop.f32.mrf.mxu2  ;;  %v754_v28 = vpop.f32.mrf.mxu1  ;;  %11829 = vst [vmem:[#allocation49_spill] sm:$0xff] %v9873_v29 }
  0xfc   :  { %v841_v59 = vadd.f32 %v840_v43, %v752_v22  ;;  %v155_v43 = vld [vmem:[#allocation2 + $0x300] sm:$0xff] }
  0xfd   :  { %v929_v62 = vpop.f32.mrf.mxu3 }
  0xfe   :  { %v665_v4 = vpop.f32.mrf.mxu0  ;;  %v9875_v23 = vadd.f32 %v929_v62, %v841_v59  ;;  %793 = vmatmul.bf16.gmra.mxu1 %v9868_v7  ;;  %v159_v59 = vld [vmem:[#allocation2 + $0x320] sm:$0xff]  ;;  %v156_v62 = vld [vmem:[#allocation2 + $0x308] sm:$0xff] }
  0xff   :  { %v666_v9 = vadd.f32 %v665_v4, %v9812_v36  ;;  %v160_v4 = vld [vmem:[#allocation2 + $0x328] sm:$0xff]  ;;  %v9884_v16 = vpack.c.bf16 %v159_v59, %v155_v43 }
 0x100   :  { %11830 = vst [vmem:[#allocation50_spill] sm:$0xff] %v9875_v23  ;;  %882 = vmatmul.bf16.gmra.mxu2 %v9870_v6  ;;  %v9886_v7 = vpack.c.bf16 %v160_v4, %v156_v62 }
 0x101   :  { %v755_v10 = vadd.f32 %v754_v28, %v666_v9  ;;  %704 = vmatmul.bf16.gmra.mxu0 %v9866_v63  ;;  %v157_v9 = vld [vmem:[#allocation2 + $0x310] sm:$0xff]  ;;  %11832 = vst [vmem:[#allocation52_spill] sm:$0xff] %v9884_v16 }
 0x102   :  { %971 = vmatmul.bf16.gmra.mxu3 %v9873_v29  ;;  %v161_v28 = vld [vmem:[#allocation2 + $0x330] sm:$0xff]  ;;  %11833 = vst [vmem:[#allocation53_spill] sm:$0xff] %v9886_v7 }
 0x103   :  { %v843_v39 = vpop.f32.mrf.mxu2  ;;  %v756_v40 = vpop.f32.mrf.mxu1  ;;  %v169_v63 = vld [vmem:[#allocation2 + $0x370] sm:$0xff] }
 0x104   :  { %v844_v31 = vadd.f32 %v843_v39, %v755_v10 }
 0x105   :  { %v932_v37 = vpop.f32.mrf.mxu3 }
 0x106   :  { %v667_v38 = vpop.f32.mrf.mxu0  ;;  %v9882_v58 = vadd.f32 %v932_v37, %v844_v31 }
 0x107   :  { %v668_v22 = vadd.f32 %v667_v38, %v9812_v36  ;;  %v9888_v38 = vpack.c.bf16 %v161_v28, %v157_v9  ;;  %v8608_v9 = vld [vmem:[#allocation4 + $0x404] sm:$0xf] }
 0x108   :  { %11831 = vst [vmem:[#allocation51_spill] sm:$0xff] %v9882_v58  ;;  %v7172_v28 = vld [vmem:[#allocation4 + $0x420] sm:$0xf0] }
 0x109   :  { %v757_v41 = vadd.f32 %v756_v40, %v668_v22  ;;  %11834 = vst [vmem:[#allocation54_spill] sm:$0xff] %v9888_v38  ;;  %v9891_v22 = vpack.c.bf16 %v162_v21, %v158_v30  ;;  %v8576_v30 = vld [vmem:[#allocation4 + $0x4] sm:$0xf] }
 0x10b   :  { %v845_v29 = vpop.f32.mrf.mxu2  ;;  %v759_v37 = vpop.f32.mrf.mxu1  ;;  %11835 = vst [vmem:[#allocation55_spill] sm:$0xff] %v9891_v22 }
 0x10c   :  { %v846_v10 = vadd.f32 %v845_v29, %v757_v41 }
 0x10d   :  { %v934_v39 = vpop.f32.mrf.mxu3 }
 0x10e   :  { %v670_v6 = vpop.f32.mrf.mxu0  ;;  %v9893_v40 = vadd.f32 %v934_v39, %v846_v10  ;;  %798 = vmatmul.bf16.gmra.mxu1 %v9886_v7  ;;  %v7175_v10 = vor.u32 %v8608_v9, %v7172_v28  ;;  %v7044_v39 = vld [vmem:[#allocation4 + $0x20] sm:$0xf0] }
 0x10f   :  { %v671_v31 = vadd.f32 %v670_v6, %v9812_v36  ;;  %v167_v7 = vld [vmem:[#allocation2 + $0x360] sm:$0xff] }
 0x110   :  { %11836 = vst [vmem:[#allocation56_spill] sm:$0xff] %v9893_v40  ;;  %887 = vmatmul.bf16.gmra.mxu2 %v9888_v38  ;;  %v163_v38 = vld [vmem:[#allocation2 + $0x340] sm:$0xff]  ;;  %v165_v40 = vld [vmem:[#allocation2 + $0x350] sm:$0xff] }
 0x111   :  { %v760_v58 = vadd.f32 %v759_v37, %v671_v31  ;;  %709 = vmatmul.bf16.gmra.mxu0 %v9884_v16  ;;  %v8624_v31 = vld [vmem:[#allocation4 + $0x604] sm:$0xf]  ;;  %v7047_v16 = vor.u32 %v8576_v30, %v7044_v39  ;;  %1182 = vmatpush.bf16.msrb.mxu2 %v7175_v10  ;;  %v9906_v23 = vpack.c.bf16 %v169_v63, %v165_v40 }
 0x112   :  { %976 = vmatmul.bf16.gmra.mxu3 %v9891_v22  ;;  %v7236_v37 = vld [vmem:[#allocation4 + $0x620] sm:$0xf0]  ;;  %v164_v22 = vld [vmem:[#allocation2 + $0x348] sm:$0xff] }
 0x113   :  { %v848_v29 = vpop.f32.mrf.mxu2  ;;  %v761_v62 = vpop.f32.mrf.mxu1  ;;  %1004 = vmatpush.bf16.msrb.mxu0 %v7047_v16  ;;  %11840 = vst [vmem:[#allocation60_spill] sm:$0xff] %v9906_v23  ;;  %v7108_v16 = vld [vmem:[#allocation4 + $0x220] sm:$0xf0] }
 0x114   :  { %v849_v41 = vadd.f32 %v848_v29, %v760_v58  ;;  %v7239_v58 = vor.u32 %v8624_v31, %v7236_v37  ;;  %v168_v29 = vld [vmem:[#allocation2 + $0x368] sm:$0xff]  ;;  %v8592_v37 = vld [vmem:[#allocation4 + $0x204] sm:$0xf] }
 0x115   :  { %v937_v43 = vpop.f32.mrf.mxu3  ;;  %v9904_v28 = vpack.c.bf16 %v168_v29, %v164_v22 }
 0x116   :  { %v672_v59 = vpop.f32.mrf.mxu0  ;;  %v9900_v4 = vadd.f32 %v937_v43, %v849_v41  ;;  %v170_v41 = vld [vmem:[#allocation2 + $0x378] sm:$0xff]  ;;  %1271 = vmatpush.bf16.msrb.mxu3 %v7239_v58 }
 0x117   :  { %v673_v6 = vadd.f32 %v672_v59, %v9812_v36  ;;  %v166_v59 = vld [vmem:[#allocation2 + $0x358] sm:$0xff]  ;;  %11839 = vst [vmem:[#allocation59_spill] sm:$0xff] %v9904_v28 }
 0x118   :  { %11837 = vst [vmem:[#allocation57_spill] sm:$0xff] %v9900_v4  ;;  %v9902_v4 = vpack.c.bf16 %v167_v7, %v163_v38  ;;  %v9909_v31 = vpack.c.bf16 %v170_v41, %v166_v59  ;;  %v7111_v7 = vor.u32 %v8592_v37, %v7108_v16  ;;  %v174_v37 = vld [vmem:[#allocation2 + $0x398] sm:$0xff] }
 0x119   :  { %v762_v21 = vadd.f32 %v761_v62, %v673_v6  ;;  %v178_v16 = vld [vmem:[#allocation2 + $0x3b8] sm:$0xff] }
 0x11a   :  { %11838 = vst [vmem:[#allocation58_spill] sm:$0xff] %v9902_v4  ;;  %1093 = vmatpush.bf16.msrb.mxu1 %v7111_v7 }
 0x11b   :  { %v850_v43 = vpop.f32.mrf.mxu2  ;;  %v764_v39 = vpop.f32.mrf.mxu1  ;;  %11841 = vst [vmem:[#allocation61_spill] sm:$0xff] %v9909_v31 }
 0x11c   :  { %v851_v6 = vadd.f32 %v850_v43, %v762_v21  ;;  %v171_v43 = vld [vmem:[#allocation2 + $0x380] sm:$0xff] }
 0x11d   :  { %v939_v62 = vpop.f32.mrf.mxu3 }
 0x11e   :  { %v675_v9 = vpop.f32.mrf.mxu0  ;;  %v9911_v10 = vadd.f32 %v939_v62, %v851_v6  ;;  %803 = vmatmul.bf16.gmra.mxu1 %v9904_v28  ;;  %v175_v6 = vld [vmem:[#allocation2 + $0x3a0] sm:$0xff]  ;;  %v172_v62 = vld [vmem:[#allocation2 + $0x388] sm:$0xff] }
 0x11f   :  { %v676_v30 = vadd.f32 %v675_v9, %v9812_v36  ;;  %v176_v9 = vld [vmem:[#allocation2 + $0x3a8] sm:$0xff]  ;;  %v9920_v7 = vpack.c.bf16 %v175_v6, %v171_v43 }
 0x120   :  { %11842 = vst [vmem:[#allocation62_spill] sm:$0xff] %v9911_v10  ;;  %892 = vmatmul.bf16.gmra.mxu2 %v9906_v23  ;;  %v9922_v28 = vpack.c.bf16 %v176_v9, %v172_v62 }
 0x121   :  { %v765_v58 = vadd.f32 %v764_v39, %v676_v30  ;;  %714 = vmatmul.bf16.gmra.mxu0 %v9902_v4  ;;  %v173_v30 = vld [vmem:[#allocation2 + $0x390] sm:$0xff]  ;;  %11844 = vst [vmem:[#allocation64_spill] sm:$0xff] %v9920_v7 }
 0x122   :  { %981 = vmatmul.bf16.gmra.mxu3 %v9909_v31  ;;  %v177_v39 = vld [vmem:[#allocation2 + $0x3b0] sm:$0xff]  ;;  %11845 = vst [vmem:[#allocation65_spill] sm:$0xff] %v9922_v28 }
 0x123   :  { %v853_v63 = vpop.f32.mrf.mxu2  ;;  %v766_v29 = vpop.f32.mrf.mxu1  ;;  %v185_v4 = vld [vmem:[#allocation2 + $0x3f0] sm:$0xff] }
 0x124   :  { %v854_v38 = vadd.f32 %v853_v63, %v765_v58 }
 0x125   :  { %v942_v22 = vpop.f32.mrf.mxu3 }
 0x126   :  { %v677_v40 = vpop.f32.mrf.mxu0  ;;  %v9918_v59 = vadd.f32 %v942_v22, %v854_v38 }
 0x127   :  { %v678_v21 = vadd.f32 %v677_v40, %v9812_v36  ;;  %v9924_v40 = vpack.c.bf16 %v177_v39, %v173_v30  ;;  %v7610_v30 = vld [vmem:[#allocation4 + $0x5c8] sm:$0xf] }
 0x128   :  { %11843 = vst [vmem:[#allocation63_spill] sm:$0xff] %v9918_v59  ;;  %v8687_v39 = vld [vmem:[#allocation4 + $0x5e4] sm:$0xf0] }
 0x129   :  { %v767_v41 = vadd.f32 %v766_v29, %v678_v21  ;;  %11846 = vst [vmem:[#allocation66_spill] sm:$0xff] %v9924_v40  ;;  %v9927_v21 = vpack.c.bf16 %v178_v16, %v174_v37  ;;  %v7482_v37 = vld [vmem:[#allocation4 + $0x1c8] sm:$0xf] }
 0x12b   :  { %v855_v31 = vpop.f32.mrf.mxu2  ;;  %v769_v22 = vpop.f32.mrf.mxu1  ;;  %11847 = vst [vmem:[#allocation67_spill] sm:$0xff] %v9927_v21 }
 0x12c   :  { %v856_v58 = vadd.f32 %v855_v31, %v767_v41 }
 0x12d   :  { %v944_v63 = vpop.f32.mrf.mxu3 }
 0x12e   :  { %v680_v23 = vpop.f32.mrf.mxu0  ;;  %v9929_v29 = vadd.f32 %v944_v63, %v856_v58  ;;  %808 = vmatmul.bf16.gmra.mxu1 %v9922_v28  ;;  %v7611_v58 = vor.u32 %v8687_v39, %v7610_v30  ;;  %v8655_v63 = vld [vmem:[#allocation4 + $0x1e4] sm:$0xf0]  ;;  %v183_v28 = vld [vmem:[#allocation2 + $0x3e0] sm:$0xff] }
 0x12f   :  { %v681_v38 = vadd.f32 %v680_v23, %v9812_v36 }
 0x130   :  { %11848 = vst [vmem:[#allocation68_spill] sm:$0xff] %v9929_v29  ;;  %897 = vmatmul.bf16.gmra.mxu2 %v9924_v40  ;;  %v179_v40 = vld [vmem:[#allocation2 + $0x3c0] sm:$0xff]  ;;  %v181_v29 = vld [vmem:[#allocation2 + $0x3d0] sm:$0xff] }
 0x131   :  { %v770_v59 = vadd.f32 %v769_v22, %v681_v38  ;;  %719 = vmatmul.bf16.gmra.mxu0 %v9920_v7  ;;  %v7674_v38 = vld [vmem:[#allocation4 + $0x7c8] sm:$0xf]  ;;  %v7483_v7 = vor.u32 %v8655_v63, %v7482_v37  ;;  %2371 = vmatpush.bf16.msra.mxu2 %v7611_v58  ;;  %v9942_v10 = vpack.c.bf16 %v185_v4, %v181_v29 }
 0x132   :  { %986 = vmatmul.bf16.gmra.mxu3 %v9927_v21  ;;  %v8703_v22 = vld [vmem:[#allocation4 + $0x7e4] sm:$0xf0] }
 0x133   :  { %v858_v31 = vpop.f32.mrf.mxu2  ;;  %v771_v62 = vpop.f32.mrf.mxu1  ;;  %v180_v21 = vld [vmem:[#allocation2 + $0x3c8] sm:$0xff]  ;;  %2193 = vmatpush.bf16.msra.mxu0 %v7483_v7  ;;  %11852 = vst [vmem:[#allocation72_spill] sm:$0xff] %v9942_v10 }
 0x134   :  { %v859_v41 = vadd.f32 %v858_v31, %v770_v59  ;;  %v7675_v59 = vor.u32 %v8703_v22, %v7674_v38  ;;  %v184_v31 = vld [vmem:[#allocation2 + $0x3e8] sm:$0xff] }
 0x135   :  { %v947_v43 = vpop.f32.mrf.mxu3  ;;  %v9940_v39 = vpack.c.bf16 %v184_v31, %v180_v21  ;;  %v7546_v22 = vld [vmem:[#allocation4 + $0x3c8] sm:$0xf] }
 0x136   :  { %v682_v6 = vpop.f32.mrf.mxu0  ;;  %v9936_v9 = vadd.f32 %v947_v43, %v859_v41  ;;  %v186_v41 = vld [vmem:[#allocation2 + $0x3f8] sm:$0xff]  ;;  %2460 = vmatpush.bf16.msra.mxu3 %v7675_v59  ;;  %v8671_v7 = vld [vmem:[#allocation4 + $0x3e4] sm:$0xf0] }
 0x137   :  { %v683_v23 = vadd.f32 %v682_v6, %v9812_v36  ;;  %v182_v6 = vld [vmem:[#allocation2 + $0x3d8] sm:$0xff]  ;;  %11851 = vst [vmem:[#allocation71_spill] sm:$0xff] %v9940_v39 }
 0x138   :  { %11849 = vst [vmem:[#allocation69_spill] sm:$0xff] %v9936_v9  ;;  %v9938_v9 = vpack.c.bf16 %v183_v28, %v179_v40  ;;  %v9945_v38 = vpack.c.bf16 %v186_v41, %v182_v6  ;;  %v7547_v28 = vor.u32 %v8671_v7, %v7546_v22 }
 0x139   :  { %v772_v16 = vadd.f32 %v771_v62, %v683_v23 }
 0x13a   :  { %11850 = vst [vmem:[#allocation70_spill] sm:$0xff] %v9938_v9  ;;  %2282 = vmatpush.bf16.msra.mxu1 %v7547_v28 }
 0x13b   :  { %v860_v43 = vpop.f32.mrf.mxu2  ;;  %v774_v63 = vpop.f32.mrf.mxu1  ;;  %11853 = vst [vmem:[#allocation73_spill] sm:$0xff] %v9945_v38 }
 0x13c   :  { %v861_v23 = vadd.f32 %v860_v43, %v772_v16 }
 0x13d   :  { %v949_v62 = vpop.f32.mrf.mxu3 }
 0x13e   :  { %v685_v30 = vpop.f32.mrf.mxu0  ;;  %v9947_v58 = vadd.f32 %v949_v62, %v861_v23  ;;  %813 = vmatmul.bf16.gmra.mxu1 %v9940_v39 }
 0x13f   :  { %v686_v37 = vadd.f32 %v685_v30, %v9812_v36 }
 0x140   :  { %902 = vmatmul.bf16.gmra.mxu2 %v9942_v10 }
 0x141   :  { %v775_v59 = vadd.f32 %v774_v63, %v686_v37  ;;  %724 = vmatmul.bf16.gmra.mxu0 %v9938_v9 }
 0x142   :  { %991 = vmatmul.bf16.gmra.mxu3 %v9945_v38 }
 0x143   :  { %v863_v4 = vpop.f32.mrf.mxu2  ;;  %v776_v31 = vpop.f32.mrf.mxu1 }
 0x144   :  { %v864_v40 = vadd.f32 %v863_v4, %v775_v59 }
 0x145   :  { %v952_v21 = vpop.f32.mrf.mxu3 }
 0x146   :  { %v687_v29 = vpop.f32.mrf.mxu0  ;;  %v9954_v6 = vadd.f32 %v952_v21, %v864_v40 }
 0x147   :  { %v688_v16 = vadd.f32 %v687_v29, %v9812_v36 }
 0x149   :  { %v777_v41 = vadd.f32 %v776_v31, %v688_v16  ;;  %v7602_v31 = vld [vmem:[#allocation4 + $0x588] sm:$0xf] }
 0x14b   :  { %v865_v43 = vpop.f32.mrf.mxu2  ;;  %v779_v63 = vpop.f32.mrf.mxu1 }
 0x14c   :  { %v866_v23 = vadd.f32 %v865_v43, %v777_v41  ;;  %v8685_v41 = vld [vmem:[#allocation4 + $0x5a4] sm:$0xf0] }
 0x14d   :  { %v954_v62 = vpop.f32.mrf.mxu3  ;;  %v7474_v43 = vld [vmem:[#allocation4 + $0x188] sm:$0xf] }
 0x14e   :  { %v690_v30 = vpop.f32.mrf.mxu0  ;;  %v9957_v22 = vadd.f32 %v954_v62, %v866_v23  ;;  %1094 = vmatmul.bf16.vlgmr.msrb.gmra.mxu1 %v9718_v51  ;;  %v7603_v62 = vor.u32 %v8685_v41, %v7602_v31 }
 0x14f   :  { %v691_v37 = vadd.f32 %v690_v30, %v9812_v36  ;;  %v8653_v30 = vld [vmem:[#allocation4 + $0x1a4] sm:$0xf0] }
 0x150   :  { %1183 = vmatmul.bf16.vlgmr.msrb.gmra.mxu2 %v9720_v52  ;;  %v7475_v52 = vor.u32 %v8653_v30, %v7474_v43 }
 0x151   :  { %v780_v7 = vadd.f32 %v779_v63, %v691_v37  ;;  %1005 = vmatmul.bf16.vlgmr.msrb.gmra.mxu0 %v9716_v47  ;;  %v7666_v37 = vld [vmem:[#allocation4 + $0x788] sm:$0xf]  ;;  %2372 = vmatpush.bf16.msra.mxu2 %v7603_v62 }
 0x152   :  { %1272 = vmatmul.bf16.vlgmr.msrb.gmra.mxu3 %v9722_v53  ;;  %v8701_v63 = vld [vmem:[#allocation4 + $0x7a4] sm:$0xf0]  ;;  %2194 = vmatpush.bf16.msra.mxu0 %v7475_v52 }
 0x153   :  { %v868_v59 = vpop.f32.mrf.mxu2  ;;  %v781_v29 = vpop.f32.mrf.mxu1  ;;  %v7667_v51 = vor.u32 %v8701_v63, %v7666_v37  ;;  %v7538_v47 = vld [vmem:[#allocation4 + $0x388] sm:$0xf] }
 0x154   :  { %v869_v28 = vadd.f32 %v868_v59, %v780_v7 }
 0x155   :  { %v957_v4 = vpop.f32.mrf.mxu3  ;;  %2461 = vmatpush.bf16.msra.mxu3 %v7667_v51 }
 0x156   :  { %v692_v40 = vpop.f32.mrf.mxu0  ;;  %v9964_v16 = vadd.f32 %v957_v4, %v869_v28 }
 0x157   :  { %v693_v21 = vadd.f32 %v692_v40, %v9812_v36 }
 0x158   :  { %11854 = vst [vmem:[#allocation74_spill] sm:$0xff] %v9964_v16 }
 0x159   :  { %v782_v23 = vadd.f32 %v781_v29, %v693_v21  ;;  %v8669_v21 = vld [vmem:[#allocation4 + $0x3a4] sm:$0xf0] }
 0x15a   :  { %v7539_v31 = vor.u32 %v8669_v21, %v7538_v47 }
 0x15b   :  { %v870_v7 = vpop.f32.mrf.mxu2  ;;  %v784_v4 = vpop.f32.mrf.mxu1 }
 0x15c   :  { %v871_v59 = vadd.f32 %v870_v7, %v782_v23  ;;  %2283 = vmatpush.bf16.msra.mxu1 %v7539_v31 }
 0x15d   :  { %v959_v53 = vpop.f32.mrf.mxu3 }
 0x15e   :  { %v695_v40 = vpop.f32.mrf.mxu0  ;;  %v9967_v16 = vadd.f32 %v959_v53, %v871_v59  ;;  %1099 = vmatmul.bf16.gmra.mxu1 %v9730_v13 }
 0x15f   :  { %v696_v28 = vadd.f32 %v695_v40, %v9812_v36 }
 0x160   :  { %1188 = vmatmul.bf16.gmra.mxu2 %v9732_v14 }
 0x161   :  { %v785_v29 = vadd.f32 %v784_v4, %v696_v28  ;;  %1010 = vmatmul.bf16.gmra.mxu0 %v9728_v12 }
 0x162   :  { %1277 = vmatmul.bf16.gmra.mxu3 %v9734_v15 }
 0x163   :  { %v873_v51 = vpop.f32.mrf.mxu2  ;;  %v786_v23 = vpop.f32.mrf.mxu1 }
 0x164   :  { %v874_v52 = vadd.f32 %v873_v51, %v785_v29 }
 0x165   :  { %v962_v41 = vpop.f32.mrf.mxu3 }
 0x166   :  { %v697_v43 = vpop.f32.mrf.mxu0  ;;  %v9974_v62 = vadd.f32 %v962_v41, %v874_v52 }
 0x167   :  { %v698_v53 = vadd.f32 %v697_v43, %v9812_v36 }
 0x169   :  { %v787_v30 = vadd.f32 %v786_v23, %v698_v53  ;;  %v7594_v53 = vld [vmem:[#allocation4 + $0x548] sm:$0xf] }
 0x16a   :  { %v8683_v23 = vld [vmem:[#allocation4 + $0x564] sm:$0xf0] }
 0x16b   :  { %v875_v37 = vpop.f32.mrf.mxu2  ;;  %v789_v40 = vpop.f32.mrf.mxu1 }
 0x16c   :  { %v876_v63 = vadd.f32 %v875_v37, %v787_v30  ;;  %v7466_v30 = vld [vmem:[#allocation4 + $0x148] sm:$0xf] }
 0x16d   :  { %v964_v47 = vpop.f32.mrf.mxu3 }
 0x16e   :  { %v700_v7 = vpop.f32.mrf.mxu0  ;;  %v9977_v28 = vadd.f32 %v964_v47, %v876_v63  ;;  %1104 = vmatmul.bf16.gmra.mxu1 %v9742_v25  ;;  %v7595_v63 = vor.u32 %v8683_v23, %v7594_v53  ;;  %v8651_v47 = vld [vmem:[#allocation4 + $0x164] sm:$0xf0] }
 0x16f   :  { %v701_v59 = vadd.f32 %v700_v7, %v9812_v36  ;;  %v7658_v7 = vld [vmem:[#allocation4 + $0x748] sm:$0xf] }
 0x170   :  { %1193 = vmatmul.bf16.gmra.mxu2 %v9744_v26  ;;  %v7530_v25 = vld [vmem:[#allocation4 + $0x348] sm:$0xf] }
 0x171   :  { %v790_v4 = vadd.f32 %v789_v40, %v701_v59  ;;  %1015 = vmatmul.bf16.gmra.mxu0 %v9740_v24  ;;  %v8699_v59 = vld [vmem:[#allocation4 + $0x764] sm:$0xf0]  ;;  %v7467_v40 = vor.u32 %v8651_v47, %v7466_v30  ;;  %2373 = vmatpush.bf16.msra.mxu2 %v7595_v63 }
 0x172   :  { %1282 = vmatmul.bf16.gmra.mxu3 %v9746_v27  ;;  %v7659_v26 = vor.u32 %v8699_v59, %v7658_v7 }
 0x173   :  { %v878_v21 = vpop.f32.mrf.mxu2  ;;  %v791_v41 = vpop.f32.mrf.mxu1  ;;  %2195 = vmatpush.bf16.msra.mxu0 %v7467_v40 }
 0x174   :  { %v879_v29 = vadd.f32 %v878_v21, %v790_v4  ;;  %2462 = vmatpush.bf16.msra.mxu3 %v7659_v26 }
 0x175   :  { %v967_v31 = vpop.f32.mrf.mxu3 }
 0x176   :  { %v702_v51 = vpop.f32.mrf.mxu0  ;;  %v9984_v43 = vadd.f32 %v967_v31, %v879_v29 }
 0x177   :  { %v703_v52 = vadd.f32 %v702_v51, %v9812_v36 }
 0x178   :  { %11855 = vst [vmem:[#allocation75_spill] sm:$0xff] %v9984_v43 }
 0x179   :  { %v792_v37 = vadd.f32 %v791_v41, %v703_v52  ;;  %v8667_v52 = vld [vmem:[#allocation4 + $0x364] sm:$0xf0] }
 0x17a   :  { %v7531_v53 = vor.u32 %v8667_v52, %v7530_v25 }
 0x17b   :  { %v880_v4 = vpop.f32.mrf.mxu2  ;;  %v794_v31 = vpop.f32.mrf.mxu1 }
 0x17c   :  { %v881_v21 = vadd.f32 %v880_v4, %v792_v37  ;;  %2284 = vmatpush.bf16.msra.mxu1 %v7531_v53 }
 0x17d   :  { %v969_v27 = vpop.f32.mrf.mxu3 }
 0x17e   :  { %v705_v51 = vpop.f32.mrf.mxu0  ;;  %v9987_v43 = vadd.f32 %v969_v27, %v881_v21  ;;  %1109 = vmatmul.bf16.gmra.mxu1 %v9754_v50 }
 0x17f   :  { %v706_v29 = vadd.f32 %v705_v51, %v9812_v36 }
 0x180   :  { %1198 = vmatmul.bf16.gmra.mxu2 %v9756_v54 }
 0x181   :  { %v795_v41 = vadd.f32 %v794_v31, %v706_v29  ;;  %1020 = vmatmul.bf16.gmra.mxu0 %v9752_v49 }
 0x182   :  { %1287 = vmatmul.bf16.gmra.mxu3 %v9758_v55 }
 0x183   :  { %v883_v26 = vpop.f32.mrf.mxu2  ;;  %v796_v63 = vpop.f32.mrf.mxu1 }
 0x184   :  { %v884_v23 = vadd.f32 %v883_v26, %v795_v41 }
 0x185   :  { %v972_v30 = vpop.f32.mrf.mxu3 }
 0x186   :  { %v707_v37 = vpop.f32.mrf.mxu0  ;;  %v9994_v47 = vadd.f32 %v972_v30, %v884_v23 }
 0x187   :  { %v708_v27 = vadd.f32 %v707_v37, %v9812_v36 }
 0x189   :  { %v797_v7 = vadd.f32 %v796_v63, %v708_v27  ;;  %v7586_v27 = vld [vmem:[#allocation4 + $0x508] sm:$0xf] }
 0x18a   :  { %v8681_v63 = vld [vmem:[#allocation4 + $0x524] sm:$0xf0] }
 0x18b   :  { %v885_v59 = vpop.f32.mrf.mxu2  ;;  %v799_v51 = vpop.f32.mrf.mxu1 }
 0x18c   :  { %v886_v40 = vadd.f32 %v885_v59, %v797_v7  ;;  %v7458_v7 = vld [vmem:[#allocation4 + $0x108] sm:$0xf] }
 0x18d   :  { %v974_v25 = vpop.f32.mrf.mxu3 }
 0x18e   :  { %v710_v4 = vpop.f32.mrf.mxu0  ;;  %v9997_v29 = vadd.f32 %v974_v25, %v886_v40  ;;  %1114 = vmatmul.bf16.gmra.mxu1 %v9766_v1  ;;  %v7587_v40 = vor.u32 %v8681_v63, %v7586_v27  ;;  %v8649_v25 = vld [vmem:[#allocation4 + $0x124] sm:$0xf0] }
 0x18f   :  { %v711_v21 = vadd.f32 %v710_v4, %v9812_v36  ;;  %v7650_v4 = vld [vmem:[#allocation4 + $0x708] sm:$0xf] }
 0x190   :  { %1203 = vmatmul.bf16.gmra.mxu2 %v9768_v2  ;;  %v7522_v1 = vld [vmem:[#allocation4 + $0x308] sm:$0xf] }
 0x191   :  { %v800_v31 = vadd.f32 %v799_v51, %v711_v21  ;;  %1025 = vmatmul.bf16.gmra.mxu0 %v9764_v0  ;;  %v8697_v21 = vld [vmem:[#allocation4 + $0x724] sm:$0xf0]  ;;  %v7459_v51 = vor.u32 %v8649_v25, %v7458_v7  ;;  %2374 = vmatpush.bf16.msra.mxu2 %v7587_v40 }
 0x192   :  { %1292 = vmatmul.bf16.gmra.mxu3 %v9770_v3  ;;  %v7651_v2 = vor.u32 %v8697_v21, %v7650_v4 }
 0x193   :  { %v888_v52 = vpop.f32.mrf.mxu2  ;;  %v801_v30 = vpop.f32.mrf.mxu1  ;;  %2196 = vmatpush.bf16.msra.mxu0 %v7459_v51 }
 0x194   :  { %v889_v41 = vadd.f32 %v888_v52, %v800_v31  ;;  %2463 = vmatpush.bf16.msra.mxu3 %v7651_v2 }
 0x195   :  { %v977_v53 = vpop.f32.mrf.mxu3 }
 0x196   :  { %v712_v26 = vpop.f32.mrf.mxu0  ;;  %v10004_v37 = vadd.f32 %v977_v53, %v889_v41 }
 0x197   :  { %v713_v23 = vadd.f32 %v712_v26, %v9812_v36 }
 0x198   :  { %11856 = vst [vmem:[#allocation76_spill] sm:$0xff] %v10004_v37 }
 0x199   :  { %v802_v59 = vadd.f32 %v801_v30, %v713_v23  ;;  %v8665_v23 = vld [vmem:[#allocation4 + $0x324] sm:$0xf0] }
 0x19a   :  { %v7523_v27 = vor.u32 %v8665_v23, %v7522_v1 }
 0x19b   :  { %v890_v31 = vpop.f32.mrf.mxu2  ;;  %v804_v53 = vpop.f32.mrf.mxu1 }
 0x19c   :  { %v891_v52 = vadd.f32 %v890_v31, %v802_v59  ;;  %2285 = vmatpush.bf16.msra.mxu1 %v7523_v27 }
 0x19d   :  { %v979_v3 = vpop.f32.mrf.mxu3 }
 0x19e   :  { %v715_v26 = vpop.f32.mrf.mxu0  ;;  %v10007_v37 = vadd.f32 %v979_v3, %v891_v52  ;;  %1119 = vmatmul.bf16.gmra.mxu1 %v9778_v33 }
 0x19f   :  { %v716_v41 = vadd.f32 %v715_v26, %v9812_v36 }
 0x1a0   :  { %1208 = vmatmul.bf16.gmra.mxu2 %v9780_v34 }
 0x1a1   :  { %v805_v30 = vadd.f32 %v804_v53, %v716_v41  ;;  %1030 = vmatmul.bf16.gmra.mxu0 %v9776_v32 }
 0x1a2   :  { %1297 = vmatmul.bf16.gmra.mxu3 %v9782_v35 }
 0x1a3   :  { %v893_v2 = vpop.f32.mrf.mxu2  ;;  %v806_v40 = vpop.f32.mrf.mxu1 }
 0x1a4   :  { %v894_v63 = vadd.f32 %v893_v2, %v805_v30 }
 0x1a5   :  { %v982_v7 = vpop.f32.mrf.mxu3 }
 0x1a6   :  { %v717_v59 = vpop.f32.mrf.mxu0  ;;  %v10014_v25 = vadd.f32 %v982_v7, %v894_v63 }
 0x1a7   :  { %v718_v3 = vadd.f32 %v717_v59, %v9812_v36 }
 0x1a9   :  { %v807_v4 = vadd.f32 %v806_v40, %v718_v3  ;;  %v7578_v3 = vld [vmem:[#allocation4 + $0x4c8] sm:$0xf] }
 0x1aa   :  { %v8679_v40 = vld [vmem:[#allocation4 + $0x4e4] sm:$0xf0] }
 0x1ab   :  { %v895_v21 = vpop.f32.mrf.mxu2  ;;  %v809_v26 = vpop.f32.mrf.mxu1 }
 0x1ac   :  { %v896_v51 = vadd.f32 %v895_v21, %v807_v4  ;;  %v7450_v4 = vld [vmem:[#allocation4 + $0xc8] sm:$0xf] }
 0x1ad   :  { %v984_v1 = vpop.f32.mrf.mxu3 }
 0x1ae   :  { %v720_v31 = vpop.f32.mrf.mxu0  ;;  %v10017_v41 = vadd.f32 %v984_v1, %v896_v51  ;;  %1124 = vmatmul.bf16.gmra.mxu1 %v9790_v45  ;;  %v7579_v51 = vor.u32 %v8679_v40, %v7578_v3  ;;  %v8647_v1 = vld [vmem:[#allocation4 + $0xe4] sm:$0xf0] }
 0x1af   :  { %v721_v52 = vadd.f32 %v720_v31, %v9812_v36  ;;  %v7642_v31 = vld [vmem:[#allocation4 + $0x6c8] sm:$0xf] }
 0x1b0   :  { %1213 = vmatmul.bf16.gmra.mxu2 %v9792_v46  ;;  %v7514_v45 = vld [vmem:[#allocation4 + $0x2c8] sm:$0xf] }
 0x1b1   :  { %v810_v53 = vadd.f32 %v809_v26, %v721_v52  ;;  %1035 = vmatmul.bf16.gmra.mxu0 %v9788_v44  ;;  %v8695_v52 = vld [vmem:[#allocation4 + $0x6e4] sm:$0xf0]  ;;  %v7451_v26 = vor.u32 %v8647_v1, %v7450_v4  ;;  %2375 = vmatpush.bf16.msra.mxu2 %v7579_v51 }
 0x1b2   :  { %1302 = vmatmul.bf16.gmra.mxu3 %v9794_v48  ;;  %v7643_v46 = vor.u32 %v8695_v52, %v7642_v31  ;;  %v9605_v52 = vld [vmem:[#allocation6] sm:$0x3] }
 0x1b3   :  { %v898_v23 = vpop.f32.mrf.mxu2  ;;  %v811_v7 = vpop.f32.mrf.mxu1  ;;  %2197 = vmatpush.bf16.msra.mxu0 %v7451_v26  ;;  %v10036_v26 = vperm.slane %v9605_v52, 1  ;;  %v7570_v52 = vld [vmem:[#allocation4 + $0x488] sm:$0xf] }
 0x1b4   :  { %v899_v30 = vadd.f32 %v898_v23, %v810_v53  ;;  %2464 = vmatpush.bf16.msra.mxu3 %v7643_v46 }
 0x1b5   :  { %v987_v27 = vpop.f32.mrf.mxu3 }
 0x1b6   :  { %v722_v2 = vpop.f32.mrf.mxu0  ;;  %v10024_v59 = vadd.f32 %v987_v27, %v899_v30 }
 0x1b7   :  { %v723_v63 = vadd.f32 %v722_v2, %v9812_v36 }
 0x1b8   :  { %11857 = vst [vmem:[#allocation77_spill] sm:$0xff] %v10024_v59 }
 0x1b9   :  { %v812_v21 = vadd.f32 %v811_v7, %v723_v63  ;;  %v8663_v63 = vld [vmem:[#allocation4 + $0x2e4] sm:$0xf0] }
 0x1ba   :  { %v7515_v3 = vor.u32 %v8663_v63, %v7514_v45 }
 0x1bb   :  { %v900_v53 = vpop.f32.mrf.mxu2  ;;  %v814_v27 = vpop.f32.mrf.mxu1 }
 0x1bc   :  { %v901_v23 = vadd.f32 %v900_v53, %v812_v21  ;;  %2286 = vmatpush.bf16.msra.mxu1 %v7515_v3 }
 0x1bd   :  { %v989_v48 = vpop.f32.mrf.mxu3 }
 0x1be   :  { %v725_v2 = vpop.f32.mrf.mxu0  ;;  %v10027_v59 = vadd.f32 %v989_v48, %v901_v23  ;;  %1129 = vmatmul.bf16.gmra.mxu1 %v9802_v18 }
 0x1bf   :  { %v726_v30 = vadd.f32 %v725_v2, %v9812_v36 }
 0x1c0   :  { %1218 = vmatmul.bf16.gmra.mxu2 %v9804_v19 }
 0x1c1   :  { %v815_v7 = vadd.f32 %v814_v27, %v726_v30  ;;  %1040 = vmatmul.bf16.gmra.mxu0 %v9800_v17 }
 0x1c2   :  { %1307 = vmatmul.bf16.gmra.mxu3 %v9806_v20 }
 0x1c3   :  { %v903_v46 = vpop.f32.mrf.mxu2  ;;  %v816_v51 = vpop.f32.mrf.mxu1 }
 0x1c4   :  { %v904_v40 = vadd.f32 %v903_v46, %v815_v7 }
 0x1c5   :  { %v992_v4 = vpop.f32.mrf.mxu3 }
 0x1c6   :  { %v727_v21 = vpop.f32.mrf.mxu0  ;;  %v10034_v1 = vadd.f32 %v992_v4, %v904_v40 }
 0x1c7   :  { %v728_v48 = vadd.f32 %v727_v21, %v9812_v36  ;;  %v7296_v36 = vclamps-f32 %v9828_v8, 10.0 }
 0x1c9   :  { %v817_v31 = vadd.f32 %v816_v51, %v728_v48  ;;  %v7360_v21 = vadd.f32 -10.0, %v7296_v36 }
 0x1cb   :  { %v905_v45 = vpop.f32.mrf.mxu2  ;;  %v1095_v27 = vpop.f32.mrf.mxu1 }
 0x1cc   :  { %v906_v53 = vadd.f32 %v905_v45, %v817_v31  ;;  %v8677_v45 = vld [vmem:[#allocation4 + $0x4a4] sm:$0xf0] }
 0x1cd   :  { %v994_v23 = vpop.f32.mrf.mxu3 }
 0x1ce   :  { %v1006_v2 = vpop.f32.mrf.mxu0  ;;  %v10039_v63 = vadd.f32 %v994_v23, %v906_v53  ;;  %1134 = vmatmul.bf16.gmra.mxu1 %v9816_v56  ;;  %v7442_v53 = vld [vmem:[#allocation4 + $0x88] sm:$0xf]  ;;  %v7571_v23 = vor.u32 %v8677_v45, %v7570_v52 }
 0x1cf   :  { %v1007_v30 = vadd.f32 %v1006_v2, %v10036_v26  ;;  %v8645_v2 = vld [vmem:[#allocation4 + $0xa4] sm:$0xf0] }
 0x1d0   :  { %11858 = vst [vmem:[#allocation78_spill] sm:$0xff] %v10039_v63  ;;  %1223 = vmatmul.bf16.gmra.mxu2 %v9818_v57  ;;  %v7443_v8 = vor.u32 %v8645_v2, %v7442_v53  ;;  %v8661_v2 = vld [vmem:[#allocation4 + $0x2a4] sm:$0xf0] }
 0x1d1   :  { %1045 = vmatmul.bf16.gmra.mxu0 %v9814_v42  ;;  %v1096_v7 = vadd.f32 %v1095_v27, %v1007_v30  ;;  %v7634_v30 = vld [vmem:[#allocation4 + $0x688] sm:$0xf]  ;;  %2376 = vmatpush.bf16.msra.mxu2 %v7571_v23  ;;  %v11860_v23 = vld [vmem:[#allocation39_spill] sm:$0xff] }
 0x1d2   :  { %1312 = vmatmul.bf16.gmra.mxu3 %v9821_v60  ;;  %v8693_v27 = vld [vmem:[#allocation4 + $0x6a4] sm:$0xf0]  ;;  %v1545_v60 = vmul.f32 1.442695, %v7360_v21  ;;  %2198 = vmatpush.bf16.msra.mxu0 %v7443_v8 }
 0x1d3   :  { %v1184_v3 = vpop.f32.mrf.mxu2  ;;  %v1097_v48 = vpop.f32.mrf.mxu1  ;;  %v7635_v56 = vor.u32 %v8693_v27, %v7634_v30  ;;  %v7506_v21 = vld [vmem:[#allocation4 + $0x288] sm:$0xf]  ;;  %v11861_v30 = vld [vmem:[#allocation38_spill] sm:$0xff] }
 0x1d4   :  { %v1185_v46 = vadd.f32 %v1184_v3, %v1096_v7  ;;  %v7298_v7 = vclamps-f32 %v9839_v11, 10.0  ;;  %8837 = vpow2.f32 %v1545_v60  ;;  %v7300_v60 = vclamps-f32 %v11860_v23, 10.0 }
 0x1d5   :  { %v1273_v40 = vpop.f32.mrf.mxu3  ;;  %2465 = vmatpush.bf16.msra.mxu3 %v7635_v56  ;;  %v11859_v56 = vld [vmem:[#allocation37_spill] sm:$0xff] }
 0x1d6   :  { %v1008_v4 = vpop.f32.mrf.mxu0  ;;  %v1274_v51 = vadd.f32 %v1273_v40, %v1185_v46  ;;  %v7362_v52 = vadd.f32 -10.0, %v7298_v7 }
 0x1d7   :  { %v1009_v31 = vadd.f32 %v1008_v4, %v10036_v26 }
 0x1d8   :  { %v7297_v57 = vclamps-f32 %v1274_v51, 10.0 }
 0x1d9   :  { %v1098_v36 = vadd.f32 %v1097_v48, %v1009_v31  ;;  %v1549_v31 = vmul.f32 1.442695, %v7362_v52 }
 0x1da   :  { %v7361_v3 = vadd.f32 -10.0, %v7297_v57  ;;  %v7507_v57 = vor.u32 %v8661_v2, %v7506_v21  ;;  %v8838_v27 = vpop.eup %8837  ;;  %v11862_v2 = vld [vmem:[#allocation44_spill] sm:$0xff] }
 0x1db   :  { %v1186_v46 = vpop.f32.mrf.mxu2  ;;  %v1100_v51 = vpop.f32.mrf.mxu1 }
 0x1dc   :  { %v1547_v40 = vmul.f32 1.442695, %v7361_v3  ;;  %v1187_v4 = vadd.f32 %v1186_v46, %v1098_v36  ;;  %2287 = vmatpush.bf16.msra.mxu1 %v7507_v57  ;;  %v7302_v57 = vclamps-f32 %v11862_v2, 10.0 }
 0x1dd   :  { %v1275_v42 = vpop.f32.mrf.mxu3 }
 0x1de   :  { %v1011_v63 = vpop.f32.mrf.mxu0  ;;  %8839 = vpow2.f32 %v1547_v40  ;;  %v1276_v53 = vadd.f32 %v1275_v42, %v1187_v4  ;;  %1139 = vmatmul.bf16.gmra.mxu1 %v9832_v5  ;;  %v7364_v40 = vadd.f32 -10.0, %v7300_v60 }
 0x1df   :  { %v1012_v45 = vadd.f32 %v1011_v63, %v10036_v26  ;;  %8841 = vpow2.f32 %v1549_v31 }
 0x1e0   :  { %v7299_v11 = vclamps-f32 %v1276_v53, 10.0  ;;  %1228 = vmatmul.bf16.gmra.mxu2 %v11859_v56  ;;  %v1553_v21 = vmul.f32 1.442695, %v7364_v40 }
 0x1e1   :  { %1050 = vmatmul.bf16.gmra.mxu0 %v9830_v61  ;;  %v1101_v48 = vadd.f32 %v1100_v51, %v1012_v45 }
 0x1e2   :  { %1317 = vmatmul.bf16.gmra.mxu3 %v11861_v30  ;;  %v7363_v63 = vadd.f32 -10.0, %v7299_v11 }
 0x1e3   :  { %v1189_v42 = vpop.f32.mrf.mxu2  ;;  %v1102_v4 = vpop.f32.mrf.mxu1 }
 0x1e4   :  { %v8840_v8 = vpop.eup %8839  ;;  %v1551_v7 = vmul.f32 1.442695, %v7363_v63  ;;  %v1190_v3 = vadd.f32 %v1189_v42, %v1101_v48 }
 0x1e5   :  { %v1278_v36 = vpop.f32.mrf.mxu3  ;;  %v1673_v45 = vadd.f32 %v8840_v8, %v8838_v27  ;;  %v8842_v30 = vpop.eup %8841  ;;  %v7366_v27 = vadd.f32 -10.0, %v7302_v57 }
 0x1e6   :  { %v1013_v46 = vpop.f32.mrf.mxu0  ;;  %8843 = vpow2.f32 %v1551_v7  ;;  %v1279_v51 = vadd.f32 %v1278_v36, %v1190_v3 }
 0x1e7   :  { %v1014_v52 = vadd.f32 %v1013_v46, %v10036_v26  ;;  %1674 = vadd.xlane.f32.xlu0 %v1673_v45  ;;  %8845 = vpow2.f32 %v1553_v21  ;;  %v11863_v46 = vld [vmem:[#allocation40_spill] sm:$0xff]  ;;  %v11864_v45 = vld [vmem:[#allocation41_spill] sm:$0xff]  ;;  %v11867_v21 = vld [vmem:[#allocation43_spill] sm:$0xff] }
 0x1e8   :  { %v7301_v53 = vclamps-f32 %v1279_v51, 10.0  ;;  %v11865_v51 = vld [vmem:[#allocation42_spill] sm:$0xff] }
 0x1e9   :  { %v1103_v23 = vadd.f32 %v1102_v4, %v1014_v52  ;;  %v1557_v52 = vmul.f32 1.442695, %v7366_v27 }
 0x1ea   :  { %v7365_v11 = vadd.f32 -10.0, %v7301_v53  ;;  %v11866_v53 = vld [vmem:[#allocation45_spill] sm:$0xff] }
 0x1eb   :  { %v1191_v63 = vpop.f32.mrf.mxu2  ;;  %v1105_v7 = vpop.f32.mrf.mxu1  ;;  %v7304_v2 = vclamps-f32 %v11866_v53, 10.0  ;;  %v7434_v53 = vld [vmem:[#allocation4 + $0x48] sm:$0xf] }
 0x1ec   :  { %v8844_v48 = vpop.eup %8843  ;;  %v1555_v42 = vmul.f32 1.442695, %v7365_v11  ;;  %v1192_v56 = vadd.f32 %v1191_v63, %v1103_v23 }
 0x1ed   :  { %v1280_v31 = vpop.f32.mrf.mxu3  ;;  %v1676_v3 = vadd.f32 %v8844_v48, %v8842_v30  ;;  %v8846_v11 = vpop.eup %8845 }
 0x1ee   :  { %v1016_v60 = vpop.f32.mrf.mxu0  ;;  %8847 = vpow2.f32 %v1555_v42  ;;  %v1281_v36 = vadd.f32 %v1280_v31, %v1192_v56  ;;  %1144 = vmatmul.bf16.gmra.mxu1 %v11864_v45  ;;  %v7368_v31 = vadd.f32 -10.0, %v7304_v2  ;;  %v8691_v45 = vld [vmem:[#allocation4 + $0x664] sm:$0xf0] }
 0x1ef   :  { %v1017_v8 = vadd.f32 %v1016_v60, %v10036_v26  ;;  %1677 = vadd.xlane.f32.xlu0 %v1676_v3  ;;  %8849 = vpow2.f32 %v1557_v52  ;;  %v7562_v3 = vld [vmem:[#allocation4 + $0x448] sm:$0xf]  ;;  %v11868_v52 = vld [vmem:[#allocation50_spill] sm:$0xff] }
 0x1f0   :  { %v7303_v40 = vclamps-f32 %v1281_v36, 10.0  ;;  %1233 = vmatmul.bf16.gmra.mxu2 %v11865_v51  ;;  %v8675_v36 = vld [vmem:[#allocation4 + $0x464] sm:$0xf0]  ;;  %v7306_v2 = vclamps-f32 %v11868_v52, 10.0  ;;  %v11872_v52 = vld [vmem:[#allocation51_spill] sm:$0xff] }
 0x1f1   :  { %1055 = vmatmul.bf16.gmra.mxu0 %v11863_v46  ;;  %v1106_v4 = vadd.f32 %v1105_v7, %v1017_v8  ;;  %v7626_v51 = vld [vmem:[#allocation4 + $0x648] sm:$0xf]  ;;  %v1561_v46 = vmul.f32 1.442695, %v7368_v31 }
 0x1f2   :  { %1322 = vmatmul.bf16.gmra.mxu3 %v11867_v21  ;;  %v7367_v57 = vadd.f32 -10.0, %v7303_v40  ;;  %v7563_v40 = vor.u32 %v8675_v36, %v7562_v3  ;;  %v8643_v21 = vld [vmem:[#allocation4 + $0x64] sm:$0xf0]  ;;  %v7370_v5 = vadd.f32 -10.0, %v7306_v2  ;;  %v7308_v2 = vclamps-f32 %v11872_v52, 10.0 }
 0x1f3   :  { %v1194_v23 = vpop.f32.mrf.mxu2  ;;  %v1107_v60 = vpop.f32.mrf.mxu1 }
 0x1f4   :  { %v8848_v30 = vpop.eup %8847  ;;  %v1559_v63 = vmul.f32 1.442695, %v7367_v57  ;;  %v1195_v56 = vadd.f32 %v1194_v23, %v1106_v4  ;;  %v7435_v4 = vor.u32 %v8643_v21, %v7434_v53  ;;  %v7627_v23 = vor.u32 %v8691_v45, %v7626_v51  ;;  %2377 = vmatpush.bf16.msra.mxu2 %v7563_v40  ;;  %v8659_v53 = vld [vmem:[#allocation4 + $0x264] sm:$0xf0] }
 0x1f5   :  { %v1283_v48 = vpop.f32.mrf.mxu3  ;;  %v1679_v8 = vadd.f32 %v8848_v30, %v8846_v11 }
 0x1f6   :  { %v1018_v42 = vpop.f32.mrf.mxu0  ;;  %8851 = vpow2.f32 %v1559_v63  ;;  %v1284_v7 = vadd.f32 %v1283_v48, %v1195_v56  ;;  %2199 = vmatpush.bf16.msra.mxu0 %v7435_v4  ;;  %2466 = vmatpush.bf16.msra.mxu3 %v7627_v23  ;;  %v8850_v63 = vpop.eup %8849  ;;  %v11870_v4 = vld [vmem:[#allocation47_spill] sm:$0xff]  ;;  %v11871_v23 = vld [vmem:[#allocation48_spill] sm:$0xff] }
 0x1f7   :  { %v1019_v27 = vadd.f32 %v1018_v42, %v10036_v26  ;;  %1680 = vadd.xlane.f32.xlu1 %v1679_v8  ;;  %8853 = vpow2.f32 %v1561_v46  ;;  %v1565_v46 = vmul.f32 1.442695, %v7370_v5 }
 0x1f8   :  { %v7305_v57 = vclamps-f32 %v1284_v7, 10.0  ;;  %v7498_v7 = vld [vmem:[#allocation4 + $0x248] sm:$0xf] }
 0x1f9   :  { %v1108_v30 = vadd.f32 %v1107_v60, %v1019_v27  ;;  %v11869_v60 = vld [vmem:[#allocation46_spill] sm:$0xff]  ;;  %v7499_v27 = vor.u32 %v8659_v53, %v7498_v7 }
 0x1fa   :  { %v7369_v11 = vadd.f32 -10.0, %v7305_v57 }
 0x1fb   :  { %v1196_v56 = vpop.f32.mrf.mxu2  ;;  %v1110_v45 = vpop.f32.mrf.mxu1  ;;  %2288 = vmatpush.bf16.msra.mxu1 %v7499_v27  ;;  %v11874_v27 = vld [vmem:[#allocation56_spill] sm:$0xff] }
 0x1fc   :  { %v8852_v48 = vpop.eup %8851  ;;  %v1563_v42 = vmul.f32 1.442695, %v7369_v11  ;;  %v1197_v8 = vadd.f32 %v1196_v56, %v1108_v30  ;;  %v11873_v11 = vld [vmem:[#allocation49_spill] sm:$0xff] }
 0x1fd   :  { %v1285_v3 = vpop.f32.mrf.mxu3  ;;  %v1682_v51 = vadd.f32 %v8852_v48, %v8850_v63  ;;  %v8854_v63 = vpop.eup %8853 }
 0x1fe   :  { %v1021_v36 = vpop.f32.mrf.mxu0  ;;  %8855 = vpow2.f32 %v1563_v42  ;;  %v1286_v31 = vadd.f32 %v1285_v3, %v1197_v8  ;;  %1149 = vmatmul.bf16.gmra.mxu1 %v11870_v4 }
 0x1ff   :  { %v1022_v21 = vadd.f32 %v1021_v36, %v10036_v26  ;;  %1683 = vadd.xlane.f32.xlu1 %v1682_v51  ;;  %8857 = vpow2.f32 %v1565_v46 }
 0x200   :  { %v7307_v40 = vclamps-f32 %v1286_v31, 10.0  ;;  %1238 = vmatmul.bf16.gmra.mxu2 %v11871_v23 }
 0x201   :  { %1060 = vmatmul.bf16.gmra.mxu0 %v11869_v60  ;;  %v1111_v57 = vadd.f32 %v1110_v45, %v1022_v21  ;;  %v7372_v21 = vadd.f32 -10.0, %v7308_v2 }
 0x202   :  { %1327 = vmatmul.bf16.gmra.mxu3 %v11873_v11  ;;  %v7371_v30 = vadd.f32 -10.0, %v7307_v40  ;;  %v7310_v40 = vclamps-f32 %v11874_v27, 10.0 }
 0x203   :  { %v1199_v56 = vpop.f32.mrf.mxu2  ;;  %v1112_v45 = vpop.f32.mrf.mxu1  ;;  %v1569_v53 = vmul.f32 1.442695, %v7372_v21 }
 0x204   :  { %v8856_v48 = vpop.eup %8855  ;;  %v1567_v42 = vmul.f32 1.442695, %v7371_v30  ;;  %v1200_v8 = vadd.f32 %v1199_v56, %v1111_v57 }
 0x205   :  { %v1288_v3 = vpop.f32.mrf.mxu3  ;;  %v1685_v51 = vadd.f32 %v8856_v48, %v8854_v63  ;;  %v8858_v23 = vpop.eup %8857  ;;  %v7374_v63 = vadd.f32 -10.0, %v7310_v40 }
 0x206   :  { %v1023_v36 = vpop.f32.mrf.mxu0  ;;  %8859 = vpow2.f32 %v1567_v42  ;;  %v1289_v31 = vadd.f32 %v1288_v3, %v1200_v8 }
 0x207   :  { %v1024_v5 = vadd.f32 %v1023_v36, %v10036_v26  ;;  %1686 = vadd.xlane.f32.xlu2 %v1685_v51  ;;  %8861 = vpow2.f32 %v1569_v53  ;;  %v11875_v36 = vld [vmem:[#allocation52_spill] sm:$0xff]  ;;  %v11876_v51 = vld [vmem:[#allocation53_spill] sm:$0xff]  ;;  %v11879_v53 = vld [vmem:[#allocation55_spill] sm:$0xff] }
 0x208   :  { %v7309_v7 = vclamps-f32 %v1289_v31, 10.0  ;;  %v11877_v31 = vld [vmem:[#allocation54_spill] sm:$0xff] }
 0x209   :  { %v1113_v11 = vadd.f32 %v1112_v45, %v1024_v5  ;;  %v11878_v5 = vld [vmem:[#allocation57_spill] sm:$0xff] }
 0x20a   :  { %v7373_v52 = vadd.f32 -10.0, %v7309_v7  ;;  %v7312_v7 = vclamps-f32 %v11878_v5, 10.0  ;;  %v7426_v5 = vld [vmem:[#allocation4 + $0x8] sm:$0xf] }
 0x20b   :  { %v1201_v30 = vpop.f32.mrf.mxu2  ;;  %v1115_v42 = vpop.f32.mrf.mxu1 }
 0x20c   :  { %v8860_v57 = vpop.eup %8859  ;;  %v1571_v56 = vmul.f32 1.442695, %v7373_v52  ;;  %v1202_v4 = vadd.f32 %v1201_v30, %v1113_v11  ;;  %v1573_v11 = vmul.f32 1.442695, %v7374_v63 }
 0x20d   :  { %v1290_v46 = vpop.f32.mrf.mxu3  ;;  %v1688_v8 = vadd.f32 %v8860_v57, %v8858_v23  ;;  %v8862_v40 = vpop.eup %8861 }
 0x20e   :  { %v1026_v2 = vpop.f32.mrf.mxu0  ;;  %8863 = vpow2.f32 %v1571_v56  ;;  %v1291_v3 = vadd.f32 %v1290_v46, %v1202_v4  ;;  %1154 = vmatmul.bf16.gmra.mxu1 %v11876_v51  ;;  %v7376_v46 = vadd.f32 -10.0, %v7312_v7  ;;  %v8689_v51 = vld [vmem:[#allocation4 + $0x624] sm:$0xf0] }
 0x20f   :  { %v1027_v48 = vadd.f32 %v1026_v2, %v10036_v26  ;;  %1689 = vadd.xlane.f32.xlu2 %v1688_v8  ;;  %8865 = vpow2.f32 %v1573_v11  ;;  %v7554_v8 = vld [vmem:[#allocation4 + $0x408] sm:$0xf]  ;;  %v11880_v11 = vld [vmem:[#allocation62_spill] sm:$0xff] }
 0x210   :  { %v7311_v21 = vclamps-f32 %v1291_v3, 10.0  ;;  %1243 = vmatmul.bf16.gmra.mxu2 %v11877_v31  ;;  %v8673_v3 = vld [vmem:[#allocation4 + $0x424] sm:$0xf0]  ;;  %v7314_v7 = vclamps-f32 %v11880_v11, 10.0  ;;  %v11884_v11 = vld [vmem:[#allocation63_spill] sm:$0xff] }
 0x211   :  { %1065 = vmatmul.bf16.gmra.mxu0 %v11875_v36  ;;  %v1116_v45 = vadd.f32 %v1115_v42, %v1027_v48  ;;  %v7618_v31 = vld [vmem:[#allocation4 + $0x608] sm:$0xf]  ;;  %v1577_v36 = vmul.f32 1.442695, %v7376_v46 }
 0x212   :  { %1332 = vmatmul.bf16.gmra.mxu3 %v11879_v53  ;;  %v7375_v27 = vadd.f32 -10.0, %v7311_v21  ;;  %v7555_v21 = vor.u32 %v8673_v3, %v7554_v8  ;;  %v8641_v53 = vld [vmem:[#allocation4 + $0x24] sm:$0xf0]  ;;  %v7378_v60 = vadd.f32 -10.0, %v7314_v7  ;;  %v7316_v7 = vclamps-f32 %v11884_v11, 10.0 }
 0x213   :  { %v1204_v52 = vpop.f32.mrf.mxu2  ;;  %v1117_v2 = vpop.f32.mrf.mxu1 }
 0x214   :  { %v8864_v23 = vpop.eup %8863  ;;  %v1575_v30 = vmul.f32 1.442695, %v7375_v27  ;;  %v1205_v4 = vadd.f32 %v1204_v52, %v1116_v45  ;;  %v7427_v45 = vor.u32 %v8641_v53, %v7426_v5  ;;  %v7619_v52 = vor.u32 %v8689_v51, %v7618_v31  ;;  %2378 = vmatpush.bf16.msra.mxu2 %v7555_v21  ;;  %v8657_v5 = vld [vmem:[#allocation4 + $0x224] sm:$0xf0] }
 0x215   :  { %v1293_v57 = vpop.f32.mrf.mxu3  ;;  %v1691_v48 = vadd.f32 %v8864_v23, %v8862_v40 }
 0x216   :  { %v1028_v56 = vpop.f32.mrf.mxu0  ;;  %8867 = vpow2.f32 %v1575_v30  ;;  %v1294_v42 = vadd.f32 %v1293_v57, %v1205_v4  ;;  %2200 = vmatpush.bf16.msra.mxu0 %v7427_v45  ;;  %2467 = vmatpush.bf16.msra.mxu3 %v7619_v52  ;;  %v8866_v30 = vpop.eup %8865  ;;  %v11882_v45 = vld [vmem:[#allocation59_spill] sm:$0xff]  ;;  %v11883_v52 = vld [vmem:[#allocation60_spill] sm:$0xff] }
 0x217   :  { %v1029_v63 = vadd.f32 %v1028_v56, %v10036_v26  ;;  %1692 = vadd.xlane.f32.xlu0 %v1691_v48  ;;  %8869 = vpow2.f32 %v1577_v36  ;;  %v1581_v36 = vmul.f32 1.442695, %v7378_v60 }
 0x218   :  { %v7313_v27 = vclamps-f32 %v1294_v42, 10.0  ;;  %v7490_v42 = vld [vmem:[#allocation4 + $0x208] sm:$0xf] }
 0x219   :  { %v1118_v23 = vadd.f32 %v1117_v2, %v1029_v63  ;;  %v11881_v2 = vld [vmem:[#allocation58_spill] sm:$0xff]  ;;  %v7491_v63 = vor.u32 %v8657_v5, %v7490_v42 }
 0x21a   :  { %v7377_v40 = vadd.f32 -10.0, %v7313_v27 }
 0x21b   :  { %v1206_v4 = vpop.f32.mrf.mxu2  ;;  %v1120_v51 = vpop.f32.mrf.mxu1  ;;  %2289 = vmatpush.bf16.msra.mxu1 %v7491_v63  ;;  %v11886_v63 = vld [vmem:[#allocation68_spill] sm:$0xff] }
 0x21c   :  { %v8868_v57 = vpop.eup %8867  ;;  %v1579_v56 = vmul.f32 1.442695, %v7377_v40  ;;  %v1207_v48 = vadd.f32 %v1206_v4, %v1118_v23  ;;  %v11885_v40 = vld [vmem:[#allocation61_spill] sm:$0xff] }
 0x21d   :  { %v1295_v8 = vpop.f32.mrf.mxu3  ;;  %v1694_v31 = vadd.f32 %v8868_v57, %v8866_v30  ;;  %v8870_v30 = vpop.eup %8869 }
 0x21e   :  { %v1031_v3 = vpop.f32.mrf.mxu0  ;;  %8871 = vpow2.f32 %v1579_v56  ;;  %v1296_v46 = vadd.f32 %v1295_v8, %v1207_v48  ;;  %1159 = vmatmul.bf16.gmra.mxu1 %v11882_v45 }
 0x21f   :  { %v1032_v53 = vadd.f32 %v1031_v3, %v10036_v26  ;;  %1695 = vadd.xlane.f32.xlu1 %v1694_v31  ;;  %8873 = vpow2.f32 %v1581_v36 }
 0x220   :  { %v7315_v21 = vclamps-f32 %v1296_v46, 10.0  ;;  %1248 = vmatmul.bf16.gmra.mxu2 %v11883_v52 }
 0x221   :  { %1070 = vmatmul.bf16.gmra.mxu0 %v11881_v2  ;;  %v1121_v27 = vadd.f32 %v1120_v51, %v1032_v53  ;;  %v7380_v53 = vadd.f32 -10.0, %v7316_v7 }
 0x222   :  { %1337 = vmatmul.bf16.gmra.mxu3 %v11885_v40  ;;  %v7379_v23 = vadd.f32 -10.0, %v7315_v21  ;;  %v7318_v21 = vclamps-f32 %v11886_v63, 10.0 }
 0x223   :  { %v1209_v4 = vpop.f32.mrf.mxu2  ;;  %v1122_v51 = vpop.f32.mrf.mxu1  ;;  %v1585_v5 = vmul.f32 1.442695, %v7380_v53 }
 0x224   :  { %v8872_v57 = vpop.eup %8871  ;;  %v1583_v56 = vmul.f32 1.442695, %v7379_v23  ;;  %v1210_v48 = vadd.f32 %v1209_v4, %v1121_v27 }
 0x225   :  { %v1298_v8 = vpop.f32.mrf.mxu3  ;;  %v1697_v31 = vadd.f32 %v8872_v57, %v8870_v30  ;;  %v8874_v52 = vpop.eup %8873  ;;  %v7382_v30 = vadd.f32 -10.0, %v7318_v21 }
 0x226   :  { %v1033_v3 = vpop.f32.mrf.mxu0  ;;  %8875 = vpow2.f32 %v1583_v56  ;;  %v1299_v46 = vadd.f32 %v1298_v8, %v1210_v48 }
 0x227   :  { %v1034_v60 = vadd.f32 %v1033_v3, %v10036_v26  ;;  %1698 = vadd.xlane.f32.xlu2 %v1697_v31  ;;  %8877 = vpow2.f32 %v1585_v5  ;;  %v11887_v3 = vld [vmem:[#allocation64_spill] sm:$0xff]  ;;  %v11888_v31 = vld [vmem:[#allocation65_spill] sm:$0xff]  ;;  %v11891_v5 = vld [vmem:[#allocation67_spill] sm:$0xff] }
 0x228   :  { %v7317_v42 = vclamps-f32 %v1299_v46, 10.0  ;;  %v11889_v46 = vld [vmem:[#allocation66_spill] sm:$0xff] }
 0x229   :  { %v1123_v40 = vadd.f32 %v1122_v51, %v1034_v60  ;;  %v11890_v60 = vld [vmem:[#allocation69_spill] sm:$0xff] }
 0x22a   :  { %v7381_v11 = vadd.f32 -10.0, %v7317_v42  ;;  %v7320_v42 = vclamps-f32 %v11890_v60, 10.0  ;;  %v8654_v60 = vld [vmem:[#allocation4 + $0x1cc] sm:$0xf] }
 0x22b   :  { %v1211_v23 = vpop.f32.mrf.mxu2  ;;  %v1125_v56 = vpop.f32.mrf.mxu1 }
 0x22c   :  { %v8876_v27 = vpop.eup %8875  ;;  %v1587_v4 = vmul.f32 1.442695, %v7381_v11  ;;  %v1212_v45 = vadd.f32 %v1211_v23, %v1123_v40  ;;  %v1589_v40 = vmul.f32 1.442695, %v7382_v30 }
 0x22d   :  { %v1300_v36 = vpop.f32.mrf.mxu3  ;;  %v1700_v48 = vadd.f32 %v8876_v27, %v8874_v52  ;;  %v8878_v21 = vpop.eup %8877 }
 0x22e   :  { %v1036_v7 = vpop.f32.mrf.mxu0  ;;  %8879 = vpow2.f32 %v1587_v4  ;;  %v1301_v8 = vadd.f32 %v1300_v36, %v1212_v45  ;;  %1164 = vmatmul.bf16.gmra.mxu1 %v11888_v31  ;;  %v7384_v36 = vadd.f32 -10.0, %v7320_v42  ;;  %v7676_v31 = vld [vmem:[#allocation4 + $0x7e8] sm:$0xf0] }
 0x22f   :  { %v1037_v57 = vadd.f32 %v1036_v7, %v10036_v26  ;;  %1701 = vadd.xlane.f32.xlu0 %v1700_v48  ;;  %8881 = vpow2.f32 %v1589_v40  ;;  %v8686_v48 = vld [vmem:[#allocation4 + $0x5cc] sm:$0xf]  ;;  %v7322_v40 = vclamps-f32 %v9947_v58, 10.0 }
 0x230   :  { %v7319_v53 = vclamps-f32 %v1301_v8, 10.0  ;;  %1253 = vmatmul.bf16.gmra.mxu2 %v11889_v46  ;;  %v7612_v8 = vld [vmem:[#allocation4 + $0x5e8] sm:$0xf0] }
 0x231   :  { %1075 = vmatmul.bf16.gmra.mxu0 %v11887_v3  ;;  %v1126_v51 = vadd.f32 %v1125_v56, %v1037_v57  ;;  %v8702_v46 = vld [vmem:[#allocation4 + $0x7cc] sm:$0xf]  ;;  %v1593_v3 = vmul.f32 1.442695, %v7384_v36 }
 0x232   :  { %1342 = vmatmul.bf16.gmra.mxu3 %v11891_v5  ;;  %v7383_v63 = vadd.f32 -10.0, %v7319_v53  ;;  %v7615_v53 = vor.u32 %v8686_v48, %v7612_v8  ;;  %v7484_v5 = vld [vmem:[#allocation4 + $0x1e8] sm:$0xf0]  ;;  %v7386_v8 = vadd.f32 -10.0, %v7322_v40 }
 0x233   :  { %v1214_v11 = vpop.f32.mrf.mxu2  ;;  %v1127_v7 = vpop.f32.mrf.mxu1  ;;  %v8670_v36 = vld [vmem:[#allocation4 + $0x3cc] sm:$0xf] }
 0x234   :  { %v8880_v52 = vpop.eup %8879  ;;  %v1591_v23 = vmul.f32 1.442695, %v7383_v63  ;;  %v1215_v45 = vadd.f32 %v1214_v11, %v1126_v51  ;;  %v7487_v51 = vor.u32 %v8654_v60, %v7484_v5  ;;  %v7679_v11 = vor.u32 %v8702_v46, %v7676_v31  ;;  %2727 = vmatpush.bf16.msrb.mxu2 %v7615_v53 }
 0x235   :  { %v1303_v27 = vpop.f32.mrf.mxu3  ;;  %v1703_v57 = vadd.f32 %v8880_v52, %v8878_v21  ;;  %v8882_v52 = vpop.eup %8881  ;;  %v7324_v53 = vclamps-f32 %v9954_v6, 10.0 }
 0x236   :  { %v1038_v4 = vpop.f32.mrf.mxu0  ;;  %8883 = vpow2.f32 %v1591_v23  ;;  %v1304_v56 = vadd.f32 %v1303_v27, %v1215_v45  ;;  %2549 = vmatpush.bf16.msrb.mxu0 %v7487_v51  ;;  %2816 = vmatpush.bf16.msrb.mxu3 %v7679_v11 }
 0x237   :  { %v1039_v30 = vadd.f32 %v1038_v4, %v10036_v26  ;;  %1704 = vadd.xlane.f32.xlu1 %v1703_v57  ;;  %8885 = vpow2.f32 %v1593_v3  ;;  %v1597_v3 = vmul.f32 1.442695, %v7386_v8 }
 0x238   :  { %v7321_v63 = vclamps-f32 %v1304_v56, 10.0  ;;  %v7548_v56 = vld [vmem:[#allocation4 + $0x3e8] sm:$0xf0] }
 0x239   :  { %v1128_v21 = vadd.f32 %v1127_v7, %v1039_v30  ;;  %v7551_v7 = vor.u32 %v8670_v36, %v7548_v56 }
 0x23a   :  { %v7385_v42 = vadd.f32 -10.0, %v7321_v63 }
 0x23b   :  { %v1216_v23 = vpop.f32.mrf.mxu2  ;;  %v1130_v31 = vpop.f32.mrf.mxu1  ;;  %2638 = vmatpush.bf16.msrb.mxu1 %v7551_v7 }
 0x23c   :  { %v8884_v45 = vpop.eup %8883  ;;  %v1595_v27 = vmul.f32 1.442695, %v7385_v42  ;;  %v1217_v4 = vadd.f32 %v1216_v23, %v1128_v21 }
 0x23d   :  { %v1305_v57 = vpop.f32.mrf.mxu3  ;;  %v1706_v46 = vadd.f32 %v8884_v45, %v8882_v52  ;;  %v8886_v51 = vpop.eup %8885  ;;  %v7388_v45 = vadd.f32 -10.0, %v7324_v53 }
 0x23e   :  { %v1041_v48 = vpop.f32.mrf.mxu0  ;;  %8887 = vpow2.f32 %v1595_v27  ;;  %v1306_v58 = vadd.f32 %v1305_v57, %v1217_v4  ;;  %1169 = vmatmul.bf16.gmra.mxu1 %v9940_v39 }
 0x23f   :  { %v1042_v5 = vadd.f32 %v1041_v48, %v10036_v26  ;;  %1707 = vadd.xlane.f32.xlu2 %v1706_v46  ;;  %8889 = vpow2.f32 %v1597_v3  ;;  %v1601_v8 = vmul.f32 1.442695, %v7388_v45 }
 0x240   :  { %v7323_v30 = vclamps-f32 %v1306_v58, 10.0  ;;  %1258 = vmatmul.bf16.gmra.mxu2 %v9942_v10 }
 0x241   :  { %1080 = vmatmul.bf16.gmra.mxu0 %v9938_v9  ;;  %v1131_v60 = vadd.f32 %v1130_v31, %v1042_v5  ;;  %v7326_v5 = vclamps-f32 %v9957_v22, 10.0 }
 0x242   :  { %1347 = vmatmul.bf16.gmra.mxu3 %v9945_v38  ;;  %v7387_v63 = vadd.f32 -10.0, %v7323_v30 }
 0x243   :  { %v1219_v11 = vpop.f32.mrf.mxu2  ;;  %v1132_v27 = vpop.f32.mrf.mxu1  ;;  %v7390_v53 = vadd.f32 -10.0, %v7326_v5 }
 0x244   :  { %v8888_v40 = vpop.eup %8887  ;;  %v1599_v42 = vmul.f32 1.442695, %v7387_v63  ;;  %v1220_v21 = vadd.f32 %v1219_v11, %v1131_v60 }
 0x245   :  { %v1308_v52 = vpop.f32.mrf.mxu3  ;;  %v1709_v4 = vadd.f32 %v8888_v40, %v8886_v51  ;;  %v8890_v58 = vpop.eup %8889  ;;  %v1605_v45 = vmul.f32 1.442695, %v7390_v53  ;;  %v8684_v53 = vld [vmem:[#allocation4 + $0x58c] sm:$0xf] }
 0x246   :  { %v1043_v23 = vpop.f32.mrf.mxu0  ;;  %8891 = vpow2.f32 %v1599_v42  ;;  %v1309_v57 = vadd.f32 %v1308_v52, %v1220_v21  ;;  %v11892_v42 = vld [vmem:[#allocation9_spill] sm:$0xff]  ;;  %v11893_v52 = vld [vmem:[#allocation10_spill] sm:$0xff] }
 0x247   :  { %v1044_v48 = vadd.f32 %v1043_v23, %v10036_v26  ;;  %1710 = vadd.xlane.f32.xlu0 %v1709_v4  ;;  %8893 = vpow2.f32 %v1601_v8  ;;  %v11894_v23 = vld [vmem:[#allocation11_spill] sm:$0xff] }
 0x248   :  { %v7325_v6 = vclamps-f32 %v1309_v57, 10.0  ;;  %v11896_v57 = vld [vmem:[#allocation12_spill] sm:$0xff] }
 0x249   :  { %v1133_v46 = vadd.f32 %v1132_v27, %v1044_v48  ;;  %v11895_v27 = vld [vmem:[#allocation74_spill] sm:$0xff] }
 0x24a   :  { %v7389_v31 = vadd.f32 -10.0, %v7325_v6  ;;  %v7328_v4 = vclamps-f32 %v11895_v27, 10.0  ;;  %v7668_v27 = vld [vmem:[#allocation4 + $0x7a8] sm:$0xf0] }
 0x24b   :  { %v1221_v36 = vpop.f32.mrf.mxu2  ;;  %v1135_v51 = vpop.f32.mrf.mxu1 }
 0x24c   :  { %v8892_v56 = vpop.eup %8891  ;;  %v1603_v7 = vmul.f32 1.442695, %v7389_v31  ;;  %v1222_v30 = vadd.f32 %v1221_v36, %v1133_v46 }
 0x24d   :  { %v1310_v60 = vpop.f32.mrf.mxu3  ;;  %v1712_v11 = vadd.f32 %v8892_v56, %v8890_v58  ;;  %v8894_v6 = vpop.eup %8893  ;;  %v7392_v56 = vadd.f32 -10.0, %v7328_v4 }
 0x24e   :  { %v1046_v3 = vpop.f32.mrf.mxu0  ;;  %8895 = vpow2.f32 %v1603_v7  ;;  %v1311_v40 = vadd.f32 %v1310_v60, %v1222_v30  ;;  %2290 = vmatmul.bf16.vlgmr.msra.gmra.mxu1 %v11893_v52 }
 0x24f   :  { %v1047_v63 = vadd.f32 %v1046_v3, %v10036_v26  ;;  %1713 = vadd.xlane.f32.xlu1 %v1712_v11  ;;  %8897 = vpow2.f32 %v1605_v45  ;;  %v7330_v45 = vclamps-f32 %v9967_v16, 10.0 }
 0x250   :  { %v7327_v22 = vclamps-f32 %v1311_v40, 10.0  ;;  %2379 = vmatmul.bf16.vlgmr.msra.gmra.mxu2 %v11894_v23  ;;  %v7476_v40 = vld [vmem:[#allocation4 + $0x1a8] sm:$0xf0] }
 0x251   :  { %2201 = vmatmul.bf16.vlgmr.msra.gmra.mxu0 %v11892_v42  ;;  %v1136_v21 = vadd.f32 %v1135_v51, %v1047_v63  ;;  %v7604_v63 = vld [vmem:[#allocation4 + $0x5a8] sm:$0xf0] }
 0x252   :  { %2468 = vmatmul.bf16.vlgmr.msra.gmra.mxu3 %v11896_v57  ;;  %v7391_v48 = vadd.f32 -10.0, %v7327_v22  ;;  %v8652_v51 = vld [vmem:[#allocation4 + $0x18c] sm:$0xf]  ;;  %v7607_v11 = vor.u32 %v8684_v53, %v7604_v63  ;;  %v1609_v57 = vmul.f32 1.442695, %v7392_v56  ;;  %v7394_v63 = vadd.f32 -10.0, %v7330_v45 }
 0x253   :  { %v1224_v8 = vpop.f32.mrf.mxu2  ;;  %v1137_v7 = vpop.f32.mrf.mxu1  ;;  %v8700_v22 = vld [vmem:[#allocation4 + $0x78c] sm:$0xf] }
 0x254   :  { %v8896_v5 = vpop.eup %8895  ;;  %v1607_v31 = vmul.f32 1.442695, %v7391_v48  ;;  %v1225_v46 = vadd.f32 %v1224_v8, %v1136_v21  ;;  %v7479_v21 = vor.u32 %v8652_v51, %v7476_v40  ;;  %v7671_v8 = vor.u32 %v8700_v22, %v7668_v27  ;;  %2728 = vmatpush.bf16.msrb.mxu2 %v7607_v11  ;;  %v8668_v11 = vld [vmem:[#allocation4 + $0x38c] sm:$0xf] }
 0x255   :  { %v1313_v58 = vpop.f32.mrf.mxu3  ;;  %v1715_v30 = vadd.f32 %v8896_v5, %v8894_v6  ;;  %v8898_v5 = vpop.eup %8897  ;;  %v7540_v40 = vld [vmem:[#allocation4 + $0x3a8] sm:$0xf0]  ;;  %v7332_v27 = vclamps-f32 %v9974_v62, 10.0 }
 0x256   :  { %v1048_v36 = vpop.f32.mrf.mxu0  ;;  %8899 = vpow2.f32 %v1607_v31  ;;  %v1314_v60 = vadd.f32 %v1313_v58, %v1225_v46  ;;  %2550 = vmatpush.bf16.msrb.mxu0 %v7479_v21  ;;  %2817 = vmatpush.bf16.msrb.mxu3 %v7671_v8 }
 0x257   :  { %v1049_v3 = vadd.f32 %v1048_v36, %v10036_v26  ;;  %1716 = vadd.xlane.f32.xlu2 %v1715_v30  ;;  %8901 = vpow2.f32 %v1609_v57  ;;  %v1613_v57 = vmul.f32 1.442695, %v7394_v63 }
 0x258   :  { %v7329_v48 = vclamps-f32 %v1314_v60, 10.0 }
 0x259   :  { %v1138_v6 = vadd.f32 %v1137_v7, %v1049_v3  ;;  %v7543_v7 = vor.u32 %v8668_v11, %v7540_v40 }
 0x25a   :  { %v7393_v4 = vadd.f32 -10.0, %v7329_v48 }
 0x25b   :  { %v1226_v31 = vpop.f32.mrf.mxu2  ;;  %v1140_v51 = vpop.f32.mrf.mxu1  ;;  %2639 = vmatpush.bf16.msrb.mxu1 %v7543_v7 }
 0x25c   :  { %v8900_v46 = vpop.eup %8899  ;;  %v1611_v58 = vmul.f32 1.442695, %v7393_v4  ;;  %v1227_v36 = vadd.f32 %v1226_v31, %v1138_v6 }
 0x25d   :  { %v1315_v30 = vpop.f32.mrf.mxu3  ;;  %v1718_v56 = vadd.f32 %v8900_v46, %v8898_v5  ;;  %v8902_v21 = vpop.eup %8901  ;;  %v7396_v46 = vadd.f32 -10.0, %v7332_v27 }
 0x25e   :  { %v1051_v53 = vpop.f32.mrf.mxu0  ;;  %8903 = vpow2.f32 %v1611_v58  ;;  %v1316_v16 = vadd.f32 %v1315_v30, %v1227_v36  ;;  %2295 = vmatmul.bf16.gmra.mxu1 %v9730_v13 }
 0x25f   :  { %v1052_v60 = vadd.f32 %v1051_v53, %v10036_v26  ;;  %1719 = vadd.xlane.f32.xlu0 %v1718_v56  ;;  %8905 = vpow2.f32 %v1613_v57  ;;  %v1617_v63 = vmul.f32 1.442695, %v7396_v46  ;;  %v11899_v46 = vld [vmem:[#allocation75_spill] sm:$0xff] }
 0x260   :  { %v7331_v3 = vclamps-f32 %v1316_v16, 10.0  ;;  %2384 = vmatmul.bf16.gmra.mxu2 %v9732_v14 }
 0x261   :  { %2206 = vmatmul.bf16.gmra.mxu0 %v9728_v12  ;;  %v1141_v22 = vadd.f32 %v1140_v51, %v1052_v60  ;;  %v7334_v60 = vclamps-f32 %v9977_v28, 10.0 }
 0x262   :  { %2473 = vmatmul.bf16.gmra.mxu3 %v9734_v15  ;;  %v7395_v48 = vadd.f32 -10.0, %v7331_v3 }
 0x263   :  { %v1229_v8 = vpop.f32.mrf.mxu2  ;;  %v1142_v58 = vpop.f32.mrf.mxu1  ;;  %v7398_v27 = vadd.f32 -10.0, %v7334_v60 }
 0x264   :  { %v8904_v45 = vpop.eup %8903  ;;  %v1615_v4 = vmul.f32 1.442695, %v7395_v48  ;;  %v1230_v6 = vadd.f32 %v1229_v8, %v1141_v22 }
 0x265   :  { %v1318_v5 = vpop.f32.mrf.mxu3  ;;  %v1721_v36 = vadd.f32 %v8904_v45, %v8902_v21  ;;  %v8906_v16 = vpop.eup %8905 }
 0x266   :  { %v1053_v31 = vpop.f32.mrf.mxu0  ;;  %8907 = vpow2.f32 %v1615_v4  ;;  %v1319_v30 = vadd.f32 %v1318_v5, %v1230_v6  ;;  %v11897_v6 = vld [vmem:[#allocation13_spill] sm:$0xff]  ;;  %v11898_v5 = vld [vmem:[#allocation14_spill] sm:$0xff] }
 0x267   :  { %v1054_v53 = vadd.f32 %v1053_v31, %v10036_v26  ;;  %1722 = vadd.xlane.f32.xlu1 %v1721_v36  ;;  %8909 = vpow2.f32 %v1617_v63  ;;  %v1621_v31 = vmul.f32 1.442695, %v7398_v27  ;;  %v11900_v36 = vld [vmem:[#allocation15_spill] sm:$0xff]  ;;  %v7596_v27 = vld [vmem:[#allocation4 + $0x568] sm:$0xf0] }
 0x268   :  { %v7333_v62 = vclamps-f32 %v1319_v30, 10.0 }
 0x269   :  { %v1143_v56 = vadd.f32 %v1142_v58, %v1054_v53  ;;  %v7336_v58 = vclamps-f32 %v11899_v46, 10.0 }
 0x26a   :  { %v7397_v51 = vadd.f32 -10.0, %v7333_v62 }
 0x26b   :  { %v1231_v11 = vpop.f32.mrf.mxu2  ;;  %v1145_v21 = vpop.f32.mrf.mxu1 }
 0x26c   :  { %v8908_v40 = vpop.eup %8907  ;;  %v1619_v7 = vmul.f32 1.442695, %v7397_v51  ;;  %v1232_v3 = vadd.f32 %v1231_v11, %v1143_v56  ;;  %v7400_v11 = vadd.f32 -10.0, %v7336_v58 }
 0x26d   :  { %v1320_v22 = vpop.f32.mrf.mxu3  ;;  %v1724_v8 = vadd.f32 %v8908_v40, %v8906_v16  ;;  %v8910_v53 = vpop.eup %8909 }
 0x26e   :  { %v1056_v57 = vpop.f32.mrf.mxu0  ;;  %8911 = vpow2.f32 %v1619_v7  ;;  %v1321_v45 = vadd.f32 %v1320_v22, %v1232_v3  ;;  %2300 = vmatmul.bf16.gmra.mxu1 %v11897_v6 }
 0x26f   :  { %v1057_v48 = vadd.f32 %v1056_v57, %v10036_v26  ;;  %1725 = vadd.xlane.f32.xlu2 %v1724_v8  ;;  %8913 = vpow2.f32 %v1621_v31  ;;  %v8682_v57 = vld [vmem:[#allocation4 + $0x54c] sm:$0xf]  ;;  %v7338_v31 = vclamps-f32 %v9987_v43, 10.0 }
 0x270   :  { %v7335_v28 = vclamps-f32 %v1321_v45, 10.0  ;;  %2389 = vmatmul.bf16.gmra.mxu2 %v11898_v5  ;;  %v7468_v8 = vld [vmem:[#allocation4 + $0x168] sm:$0xf0] }
 0x271   :  { %2211 = vmatmul.bf16.gmra.mxu0 %v9740_v24  ;;  %v1146_v4 = vadd.f32 %v1145_v21, %v1057_v48  ;;  %v8650_v48 = vld [vmem:[#allocation4 + $0x14c] sm:$0xf]  ;;  %v7599_v21 = vor.u32 %v8682_v57, %v7596_v27  ;;  %v7402_v27 = vadd.f32 -10.0, %v7338_v31 }
 0x272   :  { %2478 = vmatmul.bf16.gmra.mxu3 %v11900_v36  ;;  %v7399_v30 = vadd.f32 -10.0, %v7335_v28  ;;  %v8698_v45 = vld [vmem:[#allocation4 + $0x74c] sm:$0xf] }
 0x273   :  { %v1234_v62 = vpop.f32.mrf.mxu2  ;;  %v1147_v40 = vpop.f32.mrf.mxu1  ;;  %v7660_v28 = vld [vmem:[#allocation4 + $0x768] sm:$0xf0]  ;;  %2729 = vmatpush.bf16.msrb.mxu2 %v7599_v21 }
 0x274   :  { %v8912_v63 = vpop.eup %8911  ;;  %v1623_v60 = vmul.f32 1.442695, %v7399_v30  ;;  %v1235_v51 = vadd.f32 %v1234_v62, %v1146_v4  ;;  %v7471_v4 = vor.u32 %v8650_v48, %v7468_v8  ;;  %v7663_v30 = vor.u32 %v8698_v45, %v7660_v28  ;;  %v8666_v21 = vld [vmem:[#allocation4 + $0x34c] sm:$0xf] }
 0x275   :  { %v1323_v56 = vpop.f32.mrf.mxu3  ;;  %v1727_v7 = vadd.f32 %v8912_v63, %v8910_v53  ;;  %v1625_v62 = vmul.f32 1.442695, %v7400_v11  ;;  %v8914_v63 = vpop.eup %8913  ;;  %v7532_v8 = vld [vmem:[#allocation4 + $0x368] sm:$0xf0]  ;;  %v1629_v28 = vmul.f32 1.442695, %v7402_v27 }
 0x276   :  { %v1058_v16 = vpop.f32.mrf.mxu0  ;;  %8915 = vpow2.f32 %v1623_v60  ;;  %v1324_v3 = vadd.f32 %v1323_v56, %v1235_v51  ;;  %2551 = vmatpush.bf16.msrb.mxu0 %v7471_v4  ;;  %2818 = vmatpush.bf16.msrb.mxu3 %v7663_v30 }
 0x277   :  { %v1059_v22 = vadd.f32 %v1058_v16, %v10036_v26  ;;  %1728 = vadd.xlane.f32.xlu0 %v1727_v7  ;;  %8917 = vpow2.f32 %v1625_v62 }
 0x278   :  { %v7337_v46 = vclamps-f32 %v1324_v3, 10.0 }
 0x279   :  { %v1148_v53 = vadd.f32 %v1147_v40, %v1059_v22  ;;  %v7535_v40 = vor.u32 %v8666_v21, %v7532_v8 }
 0x27a   :  { %v7401_v58 = vadd.f32 -10.0, %v7337_v46  ;;  %v7340_v46 = vclamps-f32 %v9994_v47, 10.0 }
 0x27b   :  { %v1236_v60 = vpop.f32.mrf.mxu2  ;;  %v1150_v48 = vpop.f32.mrf.mxu1  ;;  %2640 = vmatpush.bf16.msrb.mxu1 %v7535_v40 }
 0x27c   :  { %v8916_v51 = vpop.eup %8915  ;;  %v1627_v56 = vmul.f32 1.442695, %v7401_v58  ;;  %v1237_v16 = vadd.f32 %v1236_v60, %v1148_v53 }
 0x27d   :  { %v1325_v7 = vpop.f32.mrf.mxu3  ;;  %v1730_v11 = vadd.f32 %v8916_v51, %v8914_v63  ;;  %v8918_v30 = vpop.eup %8917  ;;  %v7404_v51 = vadd.f32 -10.0, %v7340_v46 }
 0x27e   :  { %v1061_v57 = vpop.f32.mrf.mxu0  ;;  %8919 = vpow2.f32 %v1627_v56  ;;  %v1326_v43 = vadd.f32 %v1325_v7, %v1237_v16  ;;  %2305 = vmatmul.bf16.gmra.mxu1 %v9754_v50 }
 0x27f   :  { %v1062_v3 = vadd.f32 %v1061_v57, %v10036_v26  ;;  %1731 = vadd.xlane.f32.xlu1 %v1730_v11  ;;  %8921 = vpow2.f32 %v1629_v28  ;;  %v1633_v27 = vmul.f32 1.442695, %v7404_v51  ;;  %v11903_v51 = vld [vmem:[#allocation76_spill] sm:$0xff] }
 0x280   :  { %v7339_v22 = vclamps-f32 %v1326_v43, 10.0  ;;  %2394 = vmatmul.bf16.gmra.mxu2 %v9756_v54 }
 0x281   :  { %2216 = vmatmul.bf16.gmra.mxu0 %v9752_v49  ;;  %v1151_v45 = vadd.f32 %v1150_v48, %v1062_v3  ;;  %v7342_v3 = vclamps-f32 %v9997_v29, 10.0 }
 0x282   :  { %2483 = vmatmul.bf16.gmra.mxu3 %v9758_v55  ;;  %v7403_v4 = vadd.f32 -10.0, %v7339_v22 }
 0x283   :  { %v1239_v62 = vpop.f32.mrf.mxu2  ;;  %v1152_v56 = vpop.f32.mrf.mxu1  ;;  %v7406_v46 = vadd.f32 -10.0, %v7342_v3 }
 0x284   :  { %v8920_v31 = vpop.eup %8919  ;;  %v1631_v58 = vmul.f32 1.442695, %v7403_v4  ;;  %v1240_v53 = vadd.f32 %v1239_v62, %v1151_v45 }
 0x285   :  { %v1328_v63 = vpop.f32.mrf.mxu3  ;;  %v1733_v16 = vadd.f32 %v8920_v31, %v8918_v30  ;;  %v8922_v43 = vpop.eup %8921 }
 0x286   :  { %v1063_v60 = vpop.f32.mrf.mxu0  ;;  %8923 = vpow2.f32 %v1631_v58  ;;  %v1329_v7 = vadd.f32 %v1328_v63, %v1240_v53  ;;  %v11901_v53 = vld [vmem:[#allocation16_spill] sm:$0xff]  ;;  %v11902_v63 = vld [vmem:[#allocation17_spill] sm:$0xff] }
 0x287   :  { %v1064_v57 = vadd.f32 %v1063_v60, %v10036_v26  ;;  %1734 = vadd.xlane.f32.xlu2 %v1733_v16  ;;  %8925 = vpow2.f32 %v1633_v27  ;;  %v1637_v60 = vmul.f32 1.442695, %v7406_v46  ;;  %v11904_v16 = vld [vmem:[#allocation18_spill] sm:$0xff]  ;;  %v7588_v46 = vld [vmem:[#allocation4 + $0x528] sm:$0xf0] }
 0x288   :  { %v7341_v47 = vclamps-f32 %v1329_v7, 10.0 }
 0x289   :  { %v1153_v11 = vadd.f32 %v1152_v56, %v1064_v57  ;;  %v7344_v56 = vclamps-f32 %v11903_v51, 10.0 }
 0x28a   :  { %v7405_v48 = vadd.f32 -10.0, %v7341_v47 }
 0x28b   :  { %v1241_v21 = vpop.f32.mrf.mxu2  ;;  %v1155_v30 = vpop.f32.mrf.mxu1 }
 0x28c   :  { %v8924_v8 = vpop.eup %8923  ;;  %v1635_v40 = vmul.f32 1.442695, %v7405_v48  ;;  %v1242_v22 = vadd.f32 %v1241_v21, %v1153_v11  ;;  %v7408_v21 = vadd.f32 -10.0, %v7344_v56 }
 0x28d   :  { %v1330_v45 = vpop.f32.mrf.mxu3  ;;  %v1736_v62 = vadd.f32 %v8924_v8, %v8922_v43  ;;  %v8926_v57 = vpop.eup %8925 }
 0x28e   :  { %v1066_v28 = vpop.f32.mrf.mxu0  ;;  %8927 = vpow2.f32 %v1635_v40  ;;  %v1331_v31 = vadd.f32 %v1330_v45, %v1242_v22  ;;  %2310 = vmatmul.bf16.gmra.mxu1 %v11901_v53 }
 0x28f   :  { %v1067_v4 = vadd.f32 %v1066_v28, %v10036_v26  ;;  %1737 = vadd.xlane.f32.xlu0 %v1736_v62  ;;  %8929 = vpow2.f32 %v1637_v60  ;;  %v8680_v28 = vld [vmem:[#allocation4 + $0x50c] sm:$0xf]  ;;  %v7346_v60 = vclamps-f32 %v10007_v37, 10.0 }
 0x290   :  { %v7343_v29 = vclamps-f32 %v1331_v31, 10.0  ;;  %2399 = vmatmul.bf16.gmra.mxu2 %v11902_v63  ;;  %v7460_v62 = vld [vmem:[#allocation4 + $0x128] sm:$0xf0] }
 0x291   :  { %2221 = vmatmul.bf16.gmra.mxu0 %v9764_v0  ;;  %v1156_v58 = vadd.f32 %v1155_v30, %v1067_v4  ;;  %v8648_v4 = vld [vmem:[#allocation4 + $0x10c] sm:$0xf]  ;;  %v7591_v30 = vor.u32 %v8680_v28, %v7588_v46  ;;  %v7410_v46 = vadd.f32 -10.0, %v7346_v60 }
 0x292   :  { %2488 = vmatmul.bf16.gmra.mxu3 %v11904_v16  ;;  %v7407_v7 = vadd.f32 -10.0, %v7343_v29  ;;  %v8696_v31 = vld [vmem:[#allocation4 + $0x70c] sm:$0xf] }
 0x293   :  { %v1244_v47 = vpop.f32.mrf.mxu2  ;;  %v1157_v8 = vpop.f32.mrf.mxu1  ;;  %v7652_v29 = vld [vmem:[#allocation4 + $0x728] sm:$0xf0]  ;;  %2730 = vmatpush.bf16.msrb.mxu2 %v7591_v30 }
 0x294   :  { %v8928_v27 = vpop.eup %8927  ;;  %v1639_v3 = vmul.f32 1.442695, %v7407_v7  ;;  %v1245_v48 = vadd.f32 %v1244_v47, %v1156_v58  ;;  %v7463_v58 = vor.u32 %v8648_v4, %v7460_v62  ;;  %v7655_v7 = vor.u32 %v8696_v31, %v7652_v29  ;;  %v8664_v30 = vld [vmem:[#allocation4 + $0x30c] sm:$0xf] }
 0x295   :  { %v1333_v11 = vpop.f32.mrf.mxu3  ;;  %v1739_v40 = vadd.f32 %v8928_v27, %v8926_v57  ;;  %v1641_v47 = vmul.f32 1.442695, %v7408_v21  ;;  %v8930_v27 = vpop.eup %8929  ;;  %v7524_v62 = vld [vmem:[#allocation4 + $0x328] sm:$0xf0]  ;;  %v1645_v29 = vmul.f32 1.442695, %v7410_v46 }
 0x296   :  { %v1068_v43 = vpop.f32.mrf.mxu0  ;;  %8931 = vpow2.f32 %v1639_v3  ;;  %v1334_v22 = vadd.f32 %v1333_v11, %v1245_v48  ;;  %2552 = vmatpush.bf16.msrb.mxu0 %v7463_v58  ;;  %2819 = vmatpush.bf16.msrb.mxu3 %v7655_v7 }
 0x297   :  { %v1069_v45 = vadd.f32 %v1068_v43, %v10036_v26  ;;  %1740 = vadd.xlane.f32.xlu1 %v1739_v40  ;;  %8933 = vpow2.f32 %v1641_v47 }
 0x298   :  { %v7345_v51 = vclamps-f32 %v1334_v22, 10.0 }
 0x299   :  { %v1158_v57 = vadd.f32 %v1157_v8, %v1069_v45  ;;  %v7527_v8 = vor.u32 %v8664_v30, %v7524_v62 }
 0x29a   :  { %v7409_v56 = vadd.f32 -10.0, %v7345_v51  ;;  %v7348_v51 = vclamps-f32 %v10014_v25, 10.0 }
 0x29b   :  { %v1246_v3 = vpop.f32.mrf.mxu2  ;;  %v1160_v4 = vpop.f32.mrf.mxu1  ;;  %2641 = vmatpush.bf16.msrb.mxu1 %v7527_v8 }
 0x29c   :  { %v8932_v48 = vpop.eup %8931  ;;  %v1643_v11 = vmul.f32 1.442695, %v7409_v56  ;;  %v1247_v43 = vadd.f32 %v1246_v3, %v1158_v57 }
 0x29d   :  { %v1335_v40 = vpop.f32.mrf.mxu3  ;;  %v1742_v21 = vadd.f32 %v8932_v48, %v8930_v27  ;;  %v8934_v7 = vpop.eup %8933  ;;  %v7412_v48 = vadd.f32 -10.0, %v7348_v51 }
 0x29e   :  { %v1071_v28 = vpop.f32.mrf.mxu0  ;;  %8935 = vpow2.f32 %v1643_v11  ;;  %v1336_v37 = vadd.f32 %v1335_v40, %v1247_v43  ;;  %2315 = vmatmul.bf16.gmra.mxu1 %v9778_v33 }
 0x29f   :  { %v1072_v22 = vadd.f32 %v1071_v28, %v10036_v26  ;;  %1743 = vadd.xlane.f32.xlu2 %v1742_v21  ;;  %8937 = vpow2.f32 %v1645_v29  ;;  %v1649_v46 = vmul.f32 1.442695, %v7412_v48  ;;  %v11907_v48 = vld [vmem:[#allocation77_spill] sm:$0xff] }
 0x2a0   :  { %v7347_v45 = vclamps-f32 %v1336_v37, 10.0  ;;  %2404 = vmatmul.bf16.gmra.mxu2 %v9780_v34 }
 0x2a1   :  { %2226 = vmatmul.bf16.gmra.mxu0 %v9776_v32  ;;  %v1161_v31 = vadd.f32 %v1160_v4, %v1072_v22  ;;  %v7350_v22 = vclamps-f32 %v10017_v41, 10.0 }
 0x2a2   :  { %2493 = vmatmul.bf16.gmra.mxu3 %v9782_v35  ;;  %v7411_v58 = vadd.f32 -10.0, %v7347_v45 }
 0x2a3   :  { %v1249_v47 = vpop.f32.mrf.mxu2  ;;  %v1162_v11 = vpop.f32.mrf.mxu1  ;;  %v7414_v51 = vadd.f32 -10.0, %v7350_v22 }
 0x2a4   :  { %v8936_v60 = vpop.eup %8935  ;;  %v1647_v56 = vmul.f32 1.442695, %v7411_v58  ;;  %v1250_v57 = vadd.f32 %v1249_v47, %v1161_v31 }
 0x2a5   :  { %v1338_v27 = vpop.f32.mrf.mxu3  ;;  %v1745_v43 = vadd.f32 %v8936_v60, %v8934_v7  ;;  %v8938_v37 = vpop.eup %8937 }
 0x2a6   :  { %v1073_v3 = vpop.f32.mrf.mxu0  ;;  %8939 = vpow2.f32 %v1647_v56  ;;  %v1339_v40 = vadd.f32 %v1338_v27, %v1250_v57  ;;  %v11905_v57 = vld [vmem:[#allocation24_spill] sm:$0xff]  ;;  %v11906_v27 = vld [vmem:[#allocation25_spill] sm:$0xff] }
 0x2a7   :  { %v1074_v28 = vadd.f32 %v1073_v3, %v10036_v26  ;;  %1746 = vadd.xlane.f32.xlu0 %v1745_v43  ;;  %8941 = vpow2.f32 %v1649_v46  ;;  %v1653_v3 = vmul.f32 1.442695, %v7414_v51  ;;  %v11908_v43 = vld [vmem:[#allocation26_spill] sm:$0xff]  ;;  %v7580_v51 = vld [vmem:[#allocation4 + $0x4e8] sm:$0xf0] }
 0x2a8   :  { %v7349_v25 = vclamps-f32 %v1339_v40, 10.0 }
 0x2a9   :  { %v1163_v21 = vadd.f32 %v1162_v11, %v1074_v28  ;;  %v7352_v11 = vclamps-f32 %v11907_v48, 10.0 }
 0x2aa   :  { %v7413_v4 = vadd.f32 -10.0, %v7349_v25 }
 0x2ab   :  { %v1251_v30 = vpop.f32.mrf.mxu2  ;;  %v1165_v7 = vpop.f32.mrf.mxu1 }
 0x2ac   :  { %v8940_v62 = vpop.eup %8939  ;;  %v1651_v8 = vmul.f32 1.442695, %v7413_v4  ;;  %v1252_v45 = vadd.f32 %v1251_v30, %v1163_v21  ;;  %v7416_v30 = vadd.f32 -10.0, %v7352_v11 }
 0x2ad   :  { %v1340_v31 = vpop.f32.mrf.mxu3  ;;  %v1748_v47 = vadd.f32 %v8940_v62, %v8938_v37  ;;  %v8942_v28 = vpop.eup %8941 }
 0x2ae   :  { %v1076_v29 = vpop.f32.mrf.mxu0  ;;  %8943 = vpow2.f32 %v1651_v8  ;;  %v1341_v60 = vadd.f32 %v1340_v31, %v1252_v45  ;;  %2320 = vmatmul.bf16.gmra.mxu1 %v11905_v57 }
 0x2af   :  { %v1077_v58 = vadd.f32 %v1076_v29, %v10036_v26  ;;  %1749 = vadd.xlane.f32.xlu1 %v1748_v47  ;;  %8945 = vpow2.f32 %v1653_v3  ;;  %v8678_v29 = vld [vmem:[#allocation4 + $0x4cc] sm:$0xf]  ;;  %v7354_v3 = vclamps-f32 %v10027_v59, 10.0 }
 0x2b0   :  { %v7351_v41 = vclamps-f32 %v1341_v60, 10.0  ;;  %2409 = vmatmul.bf16.gmra.mxu2 %v11906_v27  ;;  %v7452_v47 = vld [vmem:[#allocation4 + $0xe8] sm:$0xf0] }
 0x2b1   :  { %2231 = vmatmul.bf16.gmra.mxu0 %v9788_v44  ;;  %v1166_v56 = vadd.f32 %v1165_v7, %v1077_v58  ;;  %v8646_v58 = vld [vmem:[#allocation4 + $0xcc] sm:$0xf]  ;;  %v7583_v7 = vor.u32 %v8678_v29, %v7580_v51  ;;  %v7418_v51 = vadd.f32 -10.0, %v7354_v3 }
 0x2b2   :  { %2498 = vmatmul.bf16.gmra.mxu3 %v11908_v43  ;;  %v7415_v40 = vadd.f32 -10.0, %v7351_v41  ;;  %v8694_v60 = vld [vmem:[#allocation4 + $0x6cc] sm:$0xf] }
 0x2b3   :  { %v1254_v25 = vpop.f32.mrf.mxu2  ;;  %v1167_v62 = vpop.f32.mrf.mxu1  ;;  %v7644_v41 = vld [vmem:[#allocation4 + $0x6e8] sm:$0xf0]  ;;  %2731 = vmatpush.bf16.msrb.mxu2 %v7583_v7 }
 0x2b4   :  { %v8944_v46 = vpop.eup %8943  ;;  %v1655_v22 = vmul.f32 1.442695, %v7415_v40  ;;  %v1255_v4 = vadd.f32 %v1254_v25, %v1166_v56  ;;  %v7455_v56 = vor.u32 %v8646_v58, %v7452_v47  ;;  %v7647_v40 = vor.u32 %v8694_v60, %v7644_v41  ;;  %v8662_v7 = vld [vmem:[#allocation4 + $0x2cc] sm:$0xf] }
 0x2b5   :  { %v1343_v21 = vpop.f32.mrf.mxu3  ;;  %v1751_v8 = vadd.f32 %v8944_v46, %v8942_v28  ;;  %v1657_v25 = vmul.f32 1.442695, %v7416_v30  ;;  %v8946_v46 = vpop.eup %8945  ;;  %v7516_v47 = vld [vmem:[#allocation4 + $0x2e8] sm:$0xf0]  ;;  %v1661_v41 = vmul.f32 1.442695, %v7418_v51 }
 0x2b6   :  { %v1078_v37 = vpop.f32.mrf.mxu0  ;;  %8947 = vpow2.f32 %v1655_v22  ;;  %v1344_v45 = vadd.f32 %v1343_v21, %v1255_v4  ;;  %2553 = vmatpush.bf16.msrb.mxu0 %v7455_v56  ;;  %2820 = vmatpush.bf16.msrb.mxu3 %v7647_v40 }
 0x2b7   :  { %v1079_v31 = vadd.f32 %v1078_v37, %v10036_v26  ;;  %1752 = vadd.xlane.f32.xlu2 %v1751_v8  ;;  %8949 = vpow2.f32 %v1657_v25 }
 0x2b8   :  { %v7353_v48 = vclamps-f32 %v1344_v45, 10.0 }
 0x2b9   :  { %v1168_v28 = vadd.f32 %v1167_v62, %v1079_v31  ;;  %v7519_v62 = vor.u32 %v8662_v7, %v7516_v47 }
 0x2ba   :  { %v7417_v11 = vadd.f32 -10.0, %v7353_v48  ;;  %v7356_v48 = vclamps-f32 %v10034_v1, 10.0  ;;  %v10167_v1 = vld [vmem:[#allocation6 + $0x2] sm:$0x3] }
 0x2bb   :  { %v1256_v22 = vpop.f32.mrf.mxu2  ;;  %v1170_v58 = vpop.f32.mrf.mxu1  ;;  %2642 = vmatpush.bf16.msrb.mxu1 %v7519_v62 }
 0x2bc   :  { %v8948_v4 = vpop.eup %8947  ;;  %v1659_v21 = vmul.f32 1.442695, %v7417_v11  ;;  %v1257_v37 = vadd.f32 %v1256_v22, %v1168_v28 }
 0x2bd   :  { %v1345_v8 = vpop.f32.mrf.mxu3  ;;  %v1754_v30 = vadd.f32 %v8948_v4, %v8946_v46  ;;  %v8950_v40 = vpop.eup %8949  ;;  %v7420_v4 = vadd.f32 -10.0, %v7356_v48 }
 0x2be   :  { %v1081_v29 = vpop.f32.mrf.mxu0  ;;  %8951 = vpow2.f32 %v1659_v21  ;;  %v1346_v59 = vadd.f32 %v1345_v8, %v1257_v37  ;;  %2325 = vmatmul.bf16.gmra.mxu1 %v9802_v18 }
 0x2bf   :  { %v1082_v45 = vadd.f32 %v1081_v29, %v10036_v26  ;;  %1755 = vadd.xlane.f32.xlu0 %v1754_v30  ;;  %8953 = vpow2.f32 %v1661_v41 }
 0x2c0   :  { %v7355_v31 = vclamps-f32 %v1346_v59, 10.0  ;;  %2414 = vmatmul.bf16.gmra.mxu2 %v9804_v19  ;;  %v10171_v59 = vperm.slane %v10167_v1, 0 }
 0x2c1   :  { %2236 = vmatmul.bf16.gmra.mxu0 %v9800_v17  ;;  %v1171_v60 = vadd.f32 %v1170_v58, %v1082_v45  ;;  %v1665_v45 = vmul.f32 1.442695, %v7420_v4  ;;  %v11909_v58 = vld [vmem:[#allocation78_spill] sm:$0xff] }
 0x2c2   :  { %2503 = vmatmul.bf16.gmra.mxu3 %v9806_v20  ;;  %v7419_v56 = vadd.f32 -10.0, %v7355_v31  ;;  %v7358_v30 = vclamps-f32 %v11909_v58, 10.0 }
 0x2c3   :  { %v1259_v25 = vpop.f32.mrf.mxu2  ;;  %v1172_v21 = vpop.f32.mrf.mxu1 }
 0x2c4   :  { %v8952_v3 = vpop.eup %8951  ;;  %v1663_v11 = vmul.f32 1.442695, %v7419_v56  ;;  %v1260_v28 = vadd.f32 %v1259_v25, %v1171_v60 }
 0x2c5   :  { %v1348_v46 = vpop.f32.mrf.mxu3  ;;  %v1757_v37 = vadd.f32 %v8952_v3, %v8950_v40  ;;  %v8954_v62 = vpop.eup %8953 }
 0x2c6   :  { %v1083_v22 = vpop.f32.mrf.mxu0  ;;  %8955 = vpow2.f32 %v1663_v11  ;;  %v1349_v8 = vadd.f32 %v1348_v46, %v1260_v28 }
 0x2c7   :  { %v1084_v29 = vadd.f32 %v1083_v22, %v10036_v26  ;;  %1758 = vadd.xlane.f32.xlu1 %v1757_v37  ;;  %8957 = vpow2.f32 %v1665_v45  ;;  %v7422_v26 = vadd.f32 -10.0, %v7358_v30  ;;  %v11910_v22 = vld [vmem:[#allocation31_spill] sm:$0xff]  ;;  %v11912_v37 = vld [vmem:[#allocation33_spill] sm:$0xff] }
 0x2c8   :  { %v7357_v51 = vclamps-f32 %v1349_v8, 10.0 }
 0x2c9   :  { %v1173_v47 = vadd.f32 %v1172_v21, %v1084_v29  ;;  %v11911_v21 = vld [vmem:[#allocation32_spill] sm:$0xff]  ;;  %v1669_v8 = vmul.f32 1.442695, %v7422_v26  ;;  %v11913_v29 = vld [vmem:[#allocation34_spill] sm:$0xff]  ;;  %v7572_v26 = vld [vmem:[#allocation4 + $0x4a8] sm:$0xf0] }
 0x2ca   :  { %v7421_v7 = vadd.f32 -10.0, %v7357_v51 }
 0x2cb   :  { %v1261_v31 = vpop.f32.mrf.mxu2  ;;  %v2291_v3 = vpop.f32.mrf.mxu1 }
 0x2cc   :  { %v8956_v60 = vpop.eup %8955  ;;  %v1667_v41 = vmul.f32 1.442695, %v7421_v7  ;;  %v1262_v48 = vadd.f32 %v1261_v31, %v1173_v47 }
 0x2cd   :  { %v1350_v56 = vpop.f32.mrf.mxu3  ;;  %v1760_v11 = vadd.f32 %v8956_v60, %v8954_v62  ;;  %v8958_v45 = vpop.eup %8957 }
 0x2ce   :  { %v2202_v40 = vpop.f32.mrf.mxu0  ;;  %8959 = vpow2.f32 %v1667_v41  ;;  %v1351_v28 = vadd.f32 %v1350_v56, %v1262_v48  ;;  %2330 = vmatmul.bf16.gmra.mxu1 %v11911_v21 }
 0x2cf   :  { %v2203_v25 = vadd.f32 %v2202_v40, %v10171_v59  ;;  %1761 = vadd.xlane.f32.xlu2 %v1760_v11  ;;  %8961 = vpow2.f32 %v1669_v8  ;;  %v8676_v40 = vld [vmem:[#allocation4 + $0x48c] sm:$0xf] }
 0x2d0   :  { %v7359_v4 = vclamps-f32 %v1351_v28, 10.0  ;;  %2419 = vmatmul.bf16.gmra.mxu2 %v11912_v37  ;;  %v7575_v11 = vor.u32 %v8676_v40, %v7572_v26  ;;  %v7444_v28 = vld [vmem:[#allocation4 + $0xa8] sm:$0xf0] }
 0x2d1   :  { %v2292_v46 = vadd.f32 %v2291_v3, %v2203_v25  ;;  %2241 = vmatmul.bf16.gmra.mxu0 %v11910_v22  ;;  %v8644_v25 = vld [vmem:[#allocation4 + $0x8c] sm:$0xf] }
 0x2d2   :  { %2508 = vmatmul.bf16.gmra.mxu3 %v11913_v29  ;;  %v7423_v51 = vadd.f32 -10.0, %v7359_v4  ;;  %v8692_v4 = vld [vmem:[#allocation4 + $0x68c] sm:$0xf]  ;;  %2732 = vmatpush.bf16.msrb.mxu2 %v7575_v11  ;;  %v11914_v11 = vld [vmem:[#allocation36_spill] sm:$0xff] }
 0x2d3   :  { %v2380_v58 = vpop.f32.mrf.mxu2  ;;  %v2293_v41 = vpop.f32.mrf.mxu1  ;;  %v7508_v40 = vld [vmem:[#allocation4 + $0x2a8] sm:$0xf0] }
 0x2d4   :  { %v8960_v30 = vpop.eup %8959  ;;  %v1671_v7 = vmul.f32 1.442695, %v7423_v51  ;;  %v2381_v47 = vadd.f32 %v2380_v58, %v2292_v46  ;;  %v7636_v51 = vld [vmem:[#allocation4 + $0x6a8] sm:$0xf0]  ;;  %v7447_v46 = vor.u32 %v8644_v25, %v7444_v28 }
 0x2d5   :  { %v2469_v62 = vpop.f32.mrf.mxu3  ;;  %v1763_v48 = vadd.f32 %v8960_v30, %v8958_v45  ;;  %v7639_v58 = vor.u32 %v8692_v4, %v7636_v51  ;;  %v8962_v8 = vpop.eup %8961  ;;  %v11915_v28 = vld [vmem:[#allocation37_spill] sm:$0xff] }
 0x2d6   :  { %v2204_v31 = vpop.f32.mrf.mxu0  ;;  %8963 = vpow2.f32 %v1671_v7  ;;  %v10179_v56 = vadd.f32 %v2469_v62, %v2381_v47  ;;  %2554 = vmatpush.bf16.msrb.mxu0 %v7447_v46 }
 0x2d7   :  { %v2205_v60 = vadd.f32 %v2204_v31, %v10171_v59  ;;  %1764 = vadd.xlane.f32.xlu0 %v1763_v48  ;;  %2821 = vmatpush.bf16.msrb.mxu3 %v7639_v58  ;;  %v8660_v48 = vld [vmem:[#allocation4 + $0x28c] sm:$0xf] }
 0x2d8   :  { %v7511_v25 = vor.u32 %v8660_v48, %v7508_v40 }
 0x2d9   :  { %v2294_v3 = vadd.f32 %v2293_v41, %v2205_v60 }
 0x2da   :  { %2643 = vmatpush.bf16.msrb.mxu1 %v7511_v25 }
 0x2db   :  { %v2382_v31 = vpop.f32.mrf.mxu2  ;;  %v2296_v29 = vpop.f32.mrf.mxu1 }
 0x2dc   :  { %v8964_v45 = vpop.eup %8963  ;;  %v2383_v30 = vadd.f32 %v2382_v31, %v2294_v3  ;;  %v11916_v3 = vld [vmem:[#allocation38_spill] sm:$0xff] }
 0x2dd   :  { %v2471_v7 = vpop.f32.mrf.mxu3  ;;  %v1766_v60 = vadd.f32 %v8964_v45, %v8962_v8 }
 0x2de   :  { %v2207_v47 = vpop.f32.mrf.mxu0  ;;  %v10182_v41 = vadd.f32 %v2471_v7, %v2383_v30  ;;  %2335 = vmatmul.bf16.gmra.mxu1 %v11914_v11  ;;  %v8658_v11 = vld [vmem:[#allocation4 + $0x24c] sm:$0xf] }
 0x2df   :  { %v2208_v62 = vadd.f32 %v2207_v47, %v10171_v59  ;;  %1767 = vadd.xlane.f32.xlu1 %v1766_v60 }
 0x2e0   :  { %2424 = vmatmul.bf16.gmra.mxu2 %v11915_v28 }
 0x2e1   :  { %v2297_v26 = vadd.f32 %v2296_v29, %v2208_v62  ;;  %2246 = vmatmul.bf16.gmra.mxu0 %v9830_v61 }
 0x2e2   :  { %2513 = vmatmul.bf16.gmra.mxu3 %v11916_v3  ;;  %v11919_v3 = vld [vmem:[#allocation40_spill] sm:$0xff] }
 0x2e3   :  { %v2385_v4 = vpop.f32.mrf.mxu2  ;;  %v2298_v31 = vpop.f32.mrf.mxu1 }
 0x2e4   :  { %v2386_v51 = vadd.f32 %v2385_v4, %v2297_v26  ;;  %v11920_v26 = vld [vmem:[#allocation41_spill] sm:$0xff]  ;;  %v11921_v4 = vld [vmem:[#allocation42_spill] sm:$0xff] }
 0x2e5   :  { %v2474_v46 = vpop.f32.mrf.mxu3 }
 0x2e6   :  { %v2209_v58 = vpop.f32.mrf.mxu0  ;;  %v10189_v45 = vadd.f32 %v2474_v46, %v2386_v51 }
 0x2e7   :  { %v2210_v8 = vadd.f32 %v2209_v58, %v10171_v59  ;;  %v11922_v58 = vld [vmem:[#allocation43_spill] sm:$0xff] }
 0x2e8   :  { %11917 = vst [vmem:[#allocation39_spill] sm:$0xff] %v10189_v45  ;;  %v7628_v45 = vld [vmem:[#allocation4 + $0x668] sm:$0xf0] }
 0x2e9   :  { %v2299_v29 = vadd.f32 %v2298_v31, %v2210_v8 }
 0x2eb   :  { %v2387_v30 = vpop.f32.mrf.mxu2  ;;  %v2301_v48 = vpop.f32.mrf.mxu1 }
 0x2ec   :  { %v2388_v7 = vadd.f32 %v2387_v30, %v2299_v29 }
 0x2ed   :  { %v2476_v47 = vpop.f32.mrf.mxu3 }
 0x2ee   :  { %v2212_v62 = vpop.f32.mrf.mxu0  ;;  %v10192_v40 = vadd.f32 %v2476_v47, %v2388_v7  ;;  %2340 = vmatmul.bf16.gmra.mxu1 %v11920_v26  ;;  %v8674_v7 = vld [vmem:[#allocation4 + $0x44c] sm:$0xf] }
 0x2ef   :  { %v2213_v60 = vadd.f32 %v2212_v62, %v10171_v59  ;;  %v7564_v47 = vld [vmem:[#allocation4 + $0x468] sm:$0xf0] }
 0x2f0   :  { %11918 = vst [vmem:[#allocation44_spill] sm:$0xff] %v10192_v40  ;;  %2429 = vmatmul.bf16.gmra.mxu2 %v11921_v4  ;;  %v7436_v40 = vld [vmem:[#allocation4 + $0x68] sm:$0xf0] }
 0x2f1   :  { %v2302_v25 = vadd.f32 %v2301_v48, %v2213_v60  ;;  %2251 = vmatmul.bf16.gmra.mxu0 %v11919_v3  ;;  %v8642_v60 = vld [vmem:[#allocation4 + $0x4c] sm:$0xf]  ;;  %v7567_v3 = vor.u32 %v8674_v7, %v7564_v47  ;;  %v11925_v7 = vld [vmem:[#allocation46_spill] sm:$0xff] }
 0x2f2   :  { %2518 = vmatmul.bf16.gmra.mxu3 %v11922_v58  ;;  %v8690_v26 = vld [vmem:[#allocation4 + $0x64c] sm:$0xf]  ;;  %v7439_v4 = vor.u32 %v8642_v60, %v7436_v40  ;;  %v11926_v40 = vld [vmem:[#allocation47_spill] sm:$0xff] }
 0x2f3   :  { %v2390_v51 = vpop.f32.mrf.mxu2  ;;  %v2303_v30 = vpop.f32.mrf.mxu1  ;;  %v7631_v28 = vor.u32 %v8690_v26, %v7628_v45  ;;  %2733 = vmatpush.bf16.msrb.mxu2 %v7567_v3  ;;  %v11927_v3 = vld [vmem:[#allocation48_spill] sm:$0xff] }
 0x2f4   :  { %v2391_v46 = vadd.f32 %v2390_v51, %v2302_v25  ;;  %2555 = vmatpush.bf16.msrb.mxu0 %v7439_v4 }
 0x2f5   :  { %v2479_v8 = vpop.f32.mrf.mxu3  ;;  %2822 = vmatpush.bf16.msrb.mxu3 %v7631_v28  ;;  %v11928_v28 = vld [vmem:[#allocation49_spill] sm:$0xff] }
 0x2f6   :  { %v2214_v31 = vpop.f32.mrf.mxu0  ;;  %v10199_v62 = vadd.f32 %v2479_v8, %v2391_v46 }
 0x2f7   :  { %v2215_v29 = vadd.f32 %v2214_v31, %v10171_v59 }
 0x2f8   :  { %11923 = vst [vmem:[#allocation45_spill] sm:$0xff] %v10199_v62 }
 0x2f9   :  { %v2304_v48 = vadd.f32 %v2303_v30, %v2215_v29  ;;  %v7500_v29 = vld [vmem:[#allocation4 + $0x268] sm:$0xf0] }
 0x2fa   :  { %v7503_v47 = vor.u32 %v8658_v11, %v7500_v29 }
 0x2fb   :  { %v2392_v25 = vpop.f32.mrf.mxu2  ;;  %v2306_v8 = vpop.f32.mrf.mxu1 }
 0x2fc   :  { %v2393_v51 = vadd.f32 %v2392_v25, %v2304_v48  ;;  %2644 = vmatpush.bf16.msrb.mxu1 %v7503_v47 }
 0x2fd   :  { %v2481_v58 = vpop.f32.mrf.mxu3 }
 0x2fe   :  { %v2217_v31 = vpop.f32.mrf.mxu0  ;;  %v10202_v62 = vadd.f32 %v2481_v58, %v2393_v51  ;;  %2345 = vmatmul.bf16.gmra.mxu1 %v11926_v40 }
 0x2ff   :  { %v2218_v46 = vadd.f32 %v2217_v31, %v10171_v59 }
 0x300   :  { %11924 = vst [vmem:[#allocation50_spill] sm:$0xff] %v10202_v62  ;;  %2434 = vmatmul.bf16.gmra.mxu2 %v11927_v3  ;;  %v8656_v62 = vld [vmem:[#allocation4 + $0x20c] sm:$0xf] }
 0x301   :  { %v2307_v30 = vadd.f32 %v2306_v8, %v2218_v46  ;;  %2256 = vmatmul.bf16.gmra.mxu0 %v11925_v7 }
 0x302   :  { %2523 = vmatmul.bf16.gmra.mxu3 %v11928_v28  ;;  %v11931_v28 = vld [vmem:[#allocation52_spill] sm:$0xff] }
 0x303   :  { %v2395_v45 = vpop.f32.mrf.mxu2  ;;  %v2308_v48 = vpop.f32.mrf.mxu1 }
 0x304   :  { %v2396_v26 = vadd.f32 %v2395_v45, %v2307_v30  ;;  %v11932_v30 = vld [vmem:[#allocation53_spill] sm:$0xff]  ;;  %v11933_v45 = vld [vmem:[#allocation54_spill] sm:$0xff] }
 0x305   :  { %v2484_v4 = vpop.f32.mrf.mxu3 }
 0x306   :  { %v2219_v60 = vpop.f32.mrf.mxu0  ;;  %v10209_v25 = vadd.f32 %v2484_v4, %v2396_v26 }
 0x307   :  { %v2220_v58 = vadd.f32 %v2219_v60, %v10171_v59  ;;  %v11934_v60 = vld [vmem:[#allocation55_spill] sm:$0xff] }
 0x308   :  { %11929 = vst [vmem:[#allocation51_spill] sm:$0xff] %v10209_v25  ;;  %v7620_v25 = vld [vmem:[#allocation4 + $0x628] sm:$0xf0] }
 0x309   :  { %v2309_v51 = vadd.f32 %v2308_v48, %v2220_v58 }
 0x30b   :  { %v2397_v31 = vpop.f32.mrf.mxu2  ;;  %v2311_v3 = vpop.f32.mrf.mxu1 }
 0x30c   :  { %v2398_v46 = vadd.f32 %v2397_v31, %v2309_v51 }
 0x30d   :  { %v2486_v11 = vpop.f32.mrf.mxu3 }
 0x30e   :  { %v2222_v8 = vpop.f32.mrf.mxu0  ;;  %v10212_v40 = vadd.f32 %v2486_v11, %v2398_v46  ;;  %2350 = vmatmul.bf16.gmra.mxu1 %v11932_v30  ;;  %v8672_v46 = vld [vmem:[#allocation4 + $0x40c] sm:$0xf] }
 0x30f   :  { %v2223_v29 = vadd.f32 %v2222_v8, %v10171_v59  ;;  %v7556_v11 = vld [vmem:[#allocation4 + $0x428] sm:$0xf0] }
 0x310   :  { %11930 = vst [vmem:[#allocation56_spill] sm:$0xff] %v10212_v40  ;;  %2439 = vmatmul.bf16.gmra.mxu2 %v11933_v45  ;;  %v7428_v40 = vld [vmem:[#allocation4 + $0x28] sm:$0xf0] }
 0x311   :  { %v2312_v47 = vadd.f32 %v2311_v3, %v2223_v29  ;;  %2261 = vmatmul.bf16.gmra.mxu0 %v11931_v28  ;;  %v8640_v3 = vld [vmem:[#allocation4 + $0xc] sm:$0xf]  ;;  %v7559_v28 = vor.u32 %v8672_v46, %v7556_v11 }
 0x312   :  { %2528 = vmatmul.bf16.gmra.mxu3 %v11934_v60  ;;  %v8688_v30 = vld [vmem:[#allocation4 + $0x60c] sm:$0xf]  ;;  %v7431_v45 = vor.u32 %v8640_v3, %v7428_v40  ;;  %v11936_v40 = vld [vmem:[#allocation59_spill] sm:$0xff] }
 0x313   :  { %v2400_v26 = vpop.f32.mrf.mxu2  ;;  %v2313_v31 = vpop.f32.mrf.mxu1  ;;  %v7623_v7 = vor.u32 %v8688_v30, %v7620_v25  ;;  %2734 = vmatpush.bf16.msrb.mxu2 %v7559_v28  ;;  %v11937_v28 = vld [vmem:[#allocation60_spill] sm:$0xff] }
 0x314   :  { %v2401_v4 = vadd.f32 %v2400_v26, %v2312_v47  ;;  %2556 = vmatpush.bf16.msrb.mxu0 %v7431_v45 }
 0x315   :  { %v2489_v58 = vpop.f32.mrf.mxu3  ;;  %2823 = vmatpush.bf16.msrb.mxu3 %v7623_v7  ;;  %v11938_v7 = vld [vmem:[#allocation61_spill] sm:$0xff] }
 0x316   :  { %v2224_v48 = vpop.f32.mrf.mxu0  ;;  %v10219_v8 = vadd.f32 %v2489_v58, %v2401_v4 }
 0x317   :  { %v2225_v51 = vadd.f32 %v2224_v48, %v10171_v59 }
 0x318   :  { %11935 = vst [vmem:[#allocation57_spill] sm:$0xff] %v10219_v8 }
 0x319   :  { %v2314_v29 = vadd.f32 %v2313_v31, %v2225_v51  ;;  %v7492_v51 = vld [vmem:[#allocation4 + $0x228] sm:$0xf0] }
 0x31a   :  { %v7495_v46 = vor.u32 %v8656_v62, %v7492_v51 }
 0x31b   :  { %v2402_v47 = vpop.f32.mrf.mxu2  ;;  %v2316_v58 = vpop.f32.mrf.mxu1 }
 0x31c   :  { %v2403_v26 = vadd.f32 %v2402_v47, %v2314_v29  ;;  %2645 = vmatpush.bf16.msrb.mxu1 %v7495_v46 }
 0x31d   :  { %v2491_v60 = vpop.f32.mrf.mxu3 }
 0x31e   :  { %v2227_v48 = vpop.f32.mrf.mxu0  ;;  %v10222_v8 = vadd.f32 %v2491_v60, %v2403_v26  ;;  %2355 = vmatmul.bf16.gmra.mxu1 %v11936_v40 }
 0x31f   :  { %v2228_v4 = vadd.f32 %v2227_v48, %v10171_v59 }
 0x320   :  { %2444 = vmatmul.bf16.gmra.mxu2 %v11937_v28 }
 0x321   :  { %v2317_v31 = vadd.f32 %v2316_v58, %v2228_v4  ;;  %2266 = vmatmul.bf16.gmra.mxu0 %v11881_v2  ;;  %v7930_v2 = vld [vmem:[#allocation4 + $0x3d0] sm:$0xf] }
 0x322   :  { %2533 = vmatmul.bf16.gmra.mxu3 %v11938_v7  ;;  %v11941_v7 = vld [vmem:[#allocation64_spill] sm:$0xff] }
 0x323   :  { %v2405_v25 = vpop.f32.mrf.mxu2  ;;  %v2318_v3 = vpop.f32.mrf.mxu1 }
 0x324   :  { %v2406_v30 = vadd.f32 %v2405_v25, %v2317_v31  ;;  %v11942_v31 = vld [vmem:[#allocation65_spill] sm:$0xff]  ;;  %v11943_v25 = vld [vmem:[#allocation66_spill] sm:$0xff] }
 0x325   :  { %v2494_v45 = vpop.f32.mrf.mxu3 }
 0x326   :  { %v2229_v11 = vpop.f32.mrf.mxu0  ;;  %v10229_v29 = vadd.f32 %v2494_v45, %v2406_v30 }
 0x327   :  { %v2230_v60 = vadd.f32 %v2229_v11, %v10171_v59  ;;  %v11944_v11 = vld [vmem:[#allocation67_spill] sm:$0xff] }
 0x328   :  { %11939 = vst [vmem:[#allocation62_spill] sm:$0xff] %v10229_v29  ;;  %v8767_v29 = vld [vmem:[#allocation4 + $0x7ec] sm:$0xf0] }
 0x329   :  { %v2319_v47 = vadd.f32 %v2318_v3, %v2230_v60 }
 0x32b   :  { %v2407_v26 = vpop.f32.mrf.mxu2  ;;  %v2321_v51 = vpop.f32.mrf.mxu1 }
 0x32c   :  { %v2408_v48 = vadd.f32 %v2407_v26, %v2319_v47 }
 0x32d   :  { %v2496_v62 = vpop.f32.mrf.mxu3 }
 0x32e   :  { %v2232_v4 = vpop.f32.mrf.mxu0  ;;  %v10232_v28 = vadd.f32 %v2496_v62, %v2408_v48  ;;  %2360 = vmatmul.bf16.gmra.mxu1 %v11942_v31  ;;  %v7994_v48 = vld [vmem:[#allocation4 + $0x5d0] sm:$0xf] }
 0x32f   :  { %v2233_v58 = vadd.f32 %v2232_v4, %v10171_v59  ;;  %v8751_v62 = vld [vmem:[#allocation4 + $0x5ec] sm:$0xf0] }
 0x330   :  { %11940 = vst [vmem:[#allocation63_spill] sm:$0xff] %v10232_v28  ;;  %2449 = vmatmul.bf16.gmra.mxu2 %v11943_v25  ;;  %v8719_v28 = vld [vmem:[#allocation4 + $0x1ec] sm:$0xf0] }
 0x331   :  { %v2322_v46 = vadd.f32 %v2321_v51, %v2233_v58  ;;  %2271 = vmatmul.bf16.gmra.mxu0 %v11941_v7  ;;  %v7866_v58 = vld [vmem:[#allocation4 + $0x1d0] sm:$0xf]  ;;  %v7995_v7 = vor.u32 %v8751_v62, %v7994_v48 }
 0x332   :  { %2538 = vmatmul.bf16.gmra.mxu3 %v11944_v11  ;;  %v8058_v31 = vld [vmem:[#allocation4 + $0x7d0] sm:$0xf]  ;;  %v7867_v25 = vor.u32 %v8719_v28, %v7866_v58 }
 0x333   :  { %v2410_v30 = vpop.f32.mrf.mxu2  ;;  %v2323_v26 = vpop.f32.mrf.mxu1  ;;  %v8059_v40 = vor.u32 %v8767_v29, %v8058_v31  ;;  %3923 = vmatpush.bf16.msra.mxu2 %v7995_v7 }
 0x334   :  { %v2411_v45 = vadd.f32 %v2410_v30, %v2322_v46  ;;  %3745 = vmatpush.bf16.msra.mxu0 %v7867_v25 }
 0x335   :  { %v2499_v60 = vpop.f32.mrf.mxu3  ;;  %4012 = vmatpush.bf16.msra.mxu3 %v8059_v40 }
 0x336   :  { %v2234_v3 = vpop.f32.mrf.mxu0  ;;  %v10239_v4 = vadd.f32 %v2499_v60, %v2411_v45 }
 0x337   :  { %v2235_v47 = vadd.f32 %v2234_v3, %v10171_v59 }
 0x338   :  { %11945 = vst [vmem:[#allocation68_spill] sm:$0xff] %v10239_v4 }
 0x339   :  { %v2324_v51 = vadd.f32 %v2323_v26, %v2235_v47  ;;  %v8735_v47 = vld [vmem:[#allocation4 + $0x3ec] sm:$0xf0] }
 0x33a   :  { %v7931_v48 = vor.u32 %v8735_v47, %v7930_v2  ;;  %v11946_v47 = vld [vmem:[#allocation12_spill] sm:$0xff] }
 0x33b   :  { %v2412_v46 = vpop.f32.mrf.mxu2  ;;  %v2326_v60 = vpop.f32.mrf.mxu1 }
 0x33c   :  { %v2413_v30 = vadd.f32 %v2412_v46, %v2324_v51  ;;  %3834 = vmatpush.bf16.msra.mxu1 %v7931_v48 }
 0x33d   :  { %v2501_v11 = vpop.f32.mrf.mxu3 }
 0x33e   :  { %v2237_v3 = vpop.f32.mrf.mxu0  ;;  %v10242_v4 = vadd.f32 %v2501_v11, %v2413_v30  ;;  %2365 = vmatmul.bf16.gmra.mxu1 %v9940_v39 }
 0x33f   :  { %v2238_v45 = vadd.f32 %v2237_v3, %v10171_v59 }
 0x340   :  { %2454 = vmatmul.bf16.gmra.mxu2 %v9942_v10 }
 0x341   :  { %v2327_v26 = vadd.f32 %v2326_v60, %v2238_v45  ;;  %2276 = vmatmul.bf16.gmra.mxu0 %v9938_v9 }
 0x342   :  { %2543 = vmatmul.bf16.gmra.mxu3 %v9945_v38 }
 0x343   :  { %v2415_v40 = vpop.f32.mrf.mxu2  ;;  %v2328_v25 = vpop.f32.mrf.mxu1 }
 0x344   :  { %v2416_v28 = vadd.f32 %v2415_v40, %v2327_v26 }
 0x345   :  { %v2504_v7 = vpop.f32.mrf.mxu3 }
 0x346   :  { %v2239_v29 = vpop.f32.mrf.mxu0  ;;  %v10249_v11 = vadd.f32 %v2504_v7, %v2416_v28 }
 0x347   :  { %v2240_v31 = vadd.f32 %v2239_v29, %v10171_v59 }
 0x349   :  { %v2329_v62 = vadd.f32 %v2328_v25, %v2240_v31  ;;  %v7986_v25 = vld [vmem:[#allocation4 + $0x590] sm:$0xf] }
 0x34b   :  { %v2417_v58 = vpop.f32.mrf.mxu2  ;;  %v2331_v3 = vpop.f32.mrf.mxu1 }
 0x34c   :  { %v2418_v51 = vadd.f32 %v2417_v58, %v2329_v62  ;;  %v8749_v62 = vld [vmem:[#allocation4 + $0x5ac] sm:$0xf0] }
 0x34d   :  { %v2506_v2 = vpop.f32.mrf.mxu3  ;;  %v7858_v58 = vld [vmem:[#allocation4 + $0x190] sm:$0xf] }
 0x34e   :  { %v2242_v46 = vpop.f32.mrf.mxu0  ;;  %v10252_v45 = vadd.f32 %v2506_v2, %v2418_v51  ;;  %2646 = vmatmul.bf16.vlgmr.msrb.gmra.mxu1 %v11893_v52  ;;  %v7987_v2 = vor.u32 %v8749_v62, %v7986_v25 }
 0x34f   :  { %v2243_v30 = vadd.f32 %v2242_v46, %v10171_v59  ;;  %v8717_v46 = vld [vmem:[#allocation4 + $0x1ac] sm:$0xf0] }
 0x350   :  { %2735 = vmatmul.bf16.vlgmr.msrb.gmra.mxu2 %v11894_v23  ;;  %v7859_v23 = vor.u32 %v8717_v46, %v7858_v58 }
 0x351   :  { %v2332_v60 = vadd.f32 %v2331_v3, %v2243_v30  ;;  %2557 = vmatmul.bf16.vlgmr.msrb.gmra.mxu0 %v11892_v42  ;;  %v8050_v30 = vld [vmem:[#allocation4 + $0x790] sm:$0xf]  ;;  %3924 = vmatpush.bf16.msra.mxu2 %v7987_v2 }
 0x352   :  { %2824 = vmatmul.bf16.vlgmr.msrb.gmra.mxu3 %v11946_v47  ;;  %v8765_v3 = vld [vmem:[#allocation4 + $0x7ac] sm:$0xf0]  ;;  %3746 = vmatpush.bf16.msra.mxu0 %v7859_v23 }
 0x353   :  { %v2420_v26 = vpop.f32.mrf.mxu2  ;;  %v2333_v29 = vpop.f32.mrf.mxu1  ;;  %v8051_v52 = vor.u32 %v8765_v3, %v8050_v30  ;;  %v7922_v42 = vld [vmem:[#allocation4 + $0x390] sm:$0xf] }
 0x354   :  { %v2421_v48 = vadd.f32 %v2420_v26, %v2332_v60 }
 0x355   :  { %v2509_v40 = vpop.f32.mrf.mxu3  ;;  %4013 = vmatpush.bf16.msra.mxu3 %v8051_v52 }
 0x356   :  { %v2244_v28 = vpop.f32.mrf.mxu0  ;;  %v10259_v31 = vadd.f32 %v2509_v40, %v2421_v48 }
 0x357   :  { %v2245_v7 = vadd.f32 %v2244_v28, %v10171_v59 }
 0x358   :  { %11947 = vst [vmem:[#allocation69_spill] sm:$0xff] %v10259_v31 }
 0x359   :  { %v2334_v51 = vadd.f32 %v2333_v29, %v2245_v7  ;;  %v8733_v7 = vld [vmem:[#allocation4 + $0x3ac] sm:$0xf0] }
 0x35a   :  { %v7923_v25 = vor.u32 %v8733_v7, %v7922_v42 }
 0x35b   :  { %v2422_v60 = vpop.f32.mrf.mxu2  ;;  %v2336_v40 = vpop.f32.mrf.mxu1 }
 0x35c   :  { %v2423_v26 = vadd.f32 %v2422_v60, %v2334_v51  ;;  %3835 = vmatpush.bf16.msra.mxu1 %v7923_v25 }
 0x35d   :  { %v2511_v47 = vpop.f32.mrf.mxu3 }
 0x35e   :  { %v2247_v28 = vpop.f32.mrf.mxu0  ;;  %v10262_v31 = vadd.f32 %v2511_v47, %v2423_v26  ;;  %2651 = vmatmul.bf16.gmra.mxu1 %v9730_v13 }
 0x35f   :  { %v2248_v48 = vadd.f32 %v2247_v28, %v10171_v59 }
 0x360   :  { %2740 = vmatmul.bf16.gmra.mxu2 %v9732_v14 }
 0x361   :  { %v2337_v29 = vadd.f32 %v2336_v40, %v2248_v48  ;;  %2562 = vmatmul.bf16.gmra.mxu0 %v9728_v12 }
 0x362   :  { %2829 = vmatmul.bf16.gmra.mxu3 %v9734_v15 }
 0x363   :  { %v2425_v52 = vpop.f32.mrf.mxu2  ;;  %v2338_v51 = vpop.f32.mrf.mxu1 }
 0x364   :  { %v2426_v23 = vadd.f32 %v2425_v52, %v2337_v29 }
 0x365   :  { %v2514_v62 = vpop.f32.mrf.mxu3 }
 0x366   :  { %v2249_v58 = vpop.f32.mrf.mxu0  ;;  %v10269_v2 = vadd.f32 %v2514_v62, %v2426_v23 }
 0x367   :  { %v2250_v47 = vadd.f32 %v2249_v58, %v10171_v59 }
 0x369   :  { %v2339_v46 = vadd.f32 %v2338_v51, %v2250_v47  ;;  %v7978_v47 = vld [vmem:[#allocation4 + $0x550] sm:$0xf] }
 0x36a   :  { %v8747_v51 = vld [vmem:[#allocation4 + $0x56c] sm:$0xf0] }
 0x36b   :  { %v2427_v30 = vpop.f32.mrf.mxu2  ;;  %v2341_v28 = vpop.f32.mrf.mxu1 }
 0x36c   :  { %v2428_v3 = vadd.f32 %v2427_v30, %v2339_v46  ;;  %v7850_v46 = vld [vmem:[#allocation4 + $0x150] sm:$0xf] }
 0x36d   :  { %v2516_v42 = vpop.f32.mrf.mxu3 }
 0x36e   :  { %v2252_v60 = vpop.f32.mrf.mxu0  ;;  %v10272_v48 = vadd.f32 %v2516_v42, %v2428_v3  ;;  %2656 = vmatmul.bf16.gmra.mxu1 %v11897_v6  ;;  %v7979_v3 = vor.u32 %v8747_v51, %v7978_v47  ;;  %v8715_v42 = vld [vmem:[#allocation4 + $0x16c] sm:$0xf0] }
 0x36f   :  { %v2253_v26 = vadd.f32 %v2252_v60, %v10171_v59  ;;  %v8042_v60 = vld [vmem:[#allocation4 + $0x750] sm:$0xf] }
 0x370   :  { %2745 = vmatmul.bf16.gmra.mxu2 %v11898_v5  ;;  %v7914_v6 = vld [vmem:[#allocation4 + $0x350] sm:$0xf] }
 0x371   :  { %v2342_v40 = vadd.f32 %v2341_v28, %v2253_v26  ;;  %2567 = vmatmul.bf16.gmra.mxu0 %v9740_v24  ;;  %v8763_v26 = vld [vmem:[#allocation4 + $0x76c] sm:$0xf0]  ;;  %v7851_v28 = vor.u32 %v8715_v42, %v7850_v46  ;;  %3925 = vmatpush.bf16.msra.mxu2 %v7979_v3 }
 0x372   :  { %2834 = vmatmul.bf16.gmra.mxu3 %v11900_v36  ;;  %v8043_v5 = vor.u32 %v8763_v26, %v8042_v60 }
 0x373   :  { %v2430_v7 = vpop.f32.mrf.mxu2  ;;  %v2343_v62 = vpop.f32.mrf.mxu1  ;;  %3747 = vmatpush.bf16.msra.mxu0 %v7851_v28 }
 0x374   :  { %v2431_v29 = vadd.f32 %v2430_v7, %v2342_v40  ;;  %4014 = vmatpush.bf16.msra.mxu3 %v8043_v5 }
 0x375   :  { %v2519_v25 = vpop.f32.mrf.mxu3 }
 0x376   :  { %v2254_v52 = vpop.f32.mrf.mxu0  ;;  %v10279_v58 = vadd.f32 %v2519_v25, %v2431_v29 }
 0x377   :  { %v2255_v23 = vadd.f32 %v2254_v52, %v10171_v59 }
 0x378   :  { %11948 = vst [vmem:[#allocation74_spill] sm:$0xff] %v10279_v58 }
 0x379   :  { %v2344_v30 = vadd.f32 %v2343_v62, %v2255_v23  ;;  %v8731_v23 = vld [vmem:[#allocation4 + $0x36c] sm:$0xf0] }
 0x37a   :  { %v7915_v47 = vor.u32 %v8731_v23, %v7914_v6 }
 0x37b   :  { %v2432_v40 = vpop.f32.mrf.mxu2  ;;  %v2346_v25 = vpop.f32.mrf.mxu1 }
 0x37c   :  { %v2433_v7 = vadd.f32 %v2432_v40, %v2344_v30  ;;  %3836 = vmatpush.bf16.msra.mxu1 %v7915_v47 }
 0x37d   :  { %v2521_v36 = vpop.f32.mrf.mxu3 }
 0x37e   :  { %v2257_v52 = vpop.f32.mrf.mxu0  ;;  %v10282_v58 = vadd.f32 %v2521_v36, %v2433_v7  ;;  %2661 = vmatmul.bf16.gmra.mxu1 %v9754_v50 }
 0x37f   :  { %v2258_v29 = vadd.f32 %v2257_v52, %v10171_v59 }
 0x380   :  { %2750 = vmatmul.bf16.gmra.mxu2 %v9756_v54 }
 0x381   :  { %v2347_v62 = vadd.f32 %v2346_v25, %v2258_v29  ;;  %2572 = vmatmul.bf16.gmra.mxu0 %v9752_v49 }
 0x382   :  { %2839 = vmatmul.bf16.gmra.mxu3 %v9758_v55 }
 0x383   :  { %v2435_v5 = vpop.f32.mrf.mxu2  ;;  %v2348_v3 = vpop.f32.mrf.mxu1 }
 0x384   :  { %v2436_v51 = vadd.f32 %v2435_v5, %v2347_v62 }
 0x385   :  { %v2524_v46 = vpop.f32.mrf.mxu3 }
 0x386   :  { %v2259_v30 = vpop.f32.mrf.mxu0  ;;  %v10289_v42 = vadd.f32 %v2524_v46, %v2436_v51 }
 0x387   :  { %v2260_v36 = vadd.f32 %v2259_v30, %v10171_v59 }
 0x389   :  { %v2349_v60 = vadd.f32 %v2348_v3, %v2260_v36  ;;  %v7970_v36 = vld [vmem:[#allocation4 + $0x510] sm:$0xf] }
 0x38a   :  { %v8745_v3 = vld [vmem:[#allocation4 + $0x52c] sm:$0xf0] }
 0x38b   :  { %v2437_v26 = vpop.f32.mrf.mxu2  ;;  %v2351_v52 = vpop.f32.mrf.mxu1 }
 0x38c   :  { %v2438_v28 = vadd.f32 %v2437_v26, %v2349_v60  ;;  %v7842_v60 = vld [vmem:[#allocation4 + $0x110] sm:$0xf] }
 0x38d   :  { %v2526_v6 = vpop.f32.mrf.mxu3 }
 0x38e   :  { %v2262_v40 = vpop.f32.mrf.mxu0  ;;  %v10292_v29 = vadd.f32 %v2526_v6, %v2438_v28  ;;  %2666 = vmatmul.bf16.gmra.mxu1 %v11901_v53  ;;  %v7971_v28 = vor.u32 %v8745_v3, %v7970_v36  ;;  %v8713_v6 = vld [vmem:[#allocation4 + $0x12c] sm:$0xf0] }
 0x38f   :  { %v2263_v7 = vadd.f32 %v2262_v40, %v10171_v59  ;;  %v8034_v40 = vld [vmem:[#allocation4 + $0x710] sm:$0xf] }
 0x390   :  { %2755 = vmatmul.bf16.gmra.mxu2 %v11902_v63  ;;  %v7906_v53 = vld [vmem:[#allocation4 + $0x310] sm:$0xf] }
 0x391   :  { %v2352_v25 = vadd.f32 %v2351_v52, %v2263_v7  ;;  %2577 = vmatmul.bf16.gmra.mxu0 %v9764_v0  ;;  %v8761_v7 = vld [vmem:[#allocation4 + $0x72c] sm:$0xf0]  ;;  %v7843_v52 = vor.u32 %v8713_v6, %v7842_v60  ;;  %3926 = vmatpush.bf16.msra.mxu2 %v7971_v28 }
 0x392   :  { %2844 = vmatmul.bf16.gmra.mxu3 %v11904_v16  ;;  %v8035_v63 = vor.u32 %v8761_v7, %v8034_v40 }
 0x393   :  { %v2440_v23 = vpop.f32.mrf.mxu2  ;;  %v2353_v46 = vpop.f32.mrf.mxu1  ;;  %3748 = vmatpush.bf16.msra.mxu0 %v7843_v52 }
 0x394   :  { %v2441_v62 = vadd.f32 %v2440_v23, %v2352_v25  ;;  %4015 = vmatpush.bf16.msra.mxu3 %v8035_v63 }
 0x395   :  { %v2529_v47 = vpop.f32.mrf.mxu3 }
 0x396   :  { %v2264_v5 = vpop.f32.mrf.mxu0  ;;  %v10299_v30 = vadd.f32 %v2529_v47, %v2441_v62 }
 0x397   :  { %v2265_v51 = vadd.f32 %v2264_v5, %v10171_v59 }
 0x398   :  { %11949 = vst [vmem:[#allocation75_spill] sm:$0xff] %v10299_v30 }
 0x399   :  { %v2354_v26 = vadd.f32 %v2353_v46, %v2265_v51  ;;  %v8729_v51 = vld [vmem:[#allocation4 + $0x32c] sm:$0xf0] }
 0x39a   :  { %v7907_v36 = vor.u32 %v8729_v51, %v7906_v53 }
 0x39b   :  { %v2442_v25 = vpop.f32.mrf.mxu2  ;;  %v2356_v47 = vpop.f32.mrf.mxu1 }
 0x39c   :  { %v2443_v23 = vadd.f32 %v2442_v25, %v2354_v26  ;;  %3837 = vmatpush.bf16.msra.mxu1 %v7907_v36 }
 0x39d   :  { %v2531_v16 = vpop.f32.mrf.mxu3 }
 0x39e   :  { %v2267_v5 = vpop.f32.mrf.mxu0  ;;  %v10302_v30 = vadd.f32 %v2531_v16, %v2443_v23  ;;  %2671 = vmatmul.bf16.gmra.mxu1 %v9778_v33 }
 0x39f   :  { %v2268_v62 = vadd.f32 %v2267_v5, %v10171_v59 }
 0x3a0   :  { %2760 = vmatmul.bf16.gmra.mxu2 %v9780_v34 }
 0x3a1   :  { %v2357_v46 = vadd.f32 %v2356_v47, %v2268_v62  ;;  %2582 = vmatmul.bf16.gmra.mxu0 %v9776_v32 }
 0x3a2   :  { %2849 = vmatmul.bf16.gmra.mxu3 %v9782_v35 }
 0x3a3   :  { %v2445_v63 = vpop.f32.mrf.mxu2  ;;  %v2358_v28 = vpop.f32.mrf.mxu1 }
 0x3a4   :  { %v2446_v3 = vadd.f32 %v2445_v63, %v2357_v46 }
 0x3a5   :  { %v2534_v60 = vpop.f32.mrf.mxu3 }
 0x3a6   :  { %v2269_v26 = vpop.f32.mrf.mxu0  ;;  %v10309_v6 = vadd.f32 %v2534_v60, %v2446_v3 }
 0x3a7   :  { %v2270_v16 = vadd.f32 %v2269_v26, %v10171_v59 }
 0x3a9   :  { %v2359_v40 = vadd.f32 %v2358_v28, %v2270_v16  ;;  %v7962_v16 = vld [vmem:[#allocation4 + $0x4d0] sm:$0xf] }
 0x3aa   :  { %v8743_v28 = vld [vmem:[#allocation4 + $0x4ec] sm:$0xf0] }
 0x3ab   :  { %v2447_v7 = vpop.f32.mrf.mxu2  ;;  %v2361_v5 = vpop.f32.mrf.mxu1 }
 0x3ac   :  { %v2448_v52 = vadd.f32 %v2447_v7, %v2359_v40  ;;  %v7834_v40 = vld [vmem:[#allocation4 + $0xd0] sm:$0xf] }
 0x3ad   :  { %v2536_v53 = vpop.f32.mrf.mxu3 }
 0x3ae   :  { %v2272_v25 = vpop.f32.mrf.mxu0  ;;  %v10312_v62 = vadd.f32 %v2536_v53, %v2448_v52  ;;  %2676 = vmatmul.bf16.gmra.mxu1 %v11905_v57  ;;  %v7963_v52 = vor.u32 %v8743_v28, %v7962_v16  ;;  %v8711_v53 = vld [vmem:[#allocation4 + $0xec] sm:$0xf0] }
 0x3af   :  { %v2273_v23 = vadd.f32 %v2272_v25, %v10171_v59  ;;  %v8026_v25 = vld [vmem:[#allocation4 + $0x6d0] sm:$0xf] }
 0x3b0   :  { %2765 = vmatmul.bf16.gmra.mxu2 %v11906_v27  ;;  %v7898_v57 = vld [vmem:[#allocation4 + $0x2d0] sm:$0xf] }
 0x3b1   :  { %v2362_v47 = vadd.f32 %v2361_v5, %v2273_v23  ;;  %2587 = vmatmul.bf16.gmra.mxu0 %v9788_v44  ;;  %v8759_v23 = vld [vmem:[#allocation4 + $0x6ec] sm:$0xf0]  ;;  %v7835_v5 = vor.u32 %v8711_v53, %v7834_v40  ;;  %3927 = vmatpush.bf16.msra.mxu2 %v7963_v52 }
 0x3b2   :  { %2854 = vmatmul.bf16.gmra.mxu3 %v11908_v43  ;;  %v8027_v27 = vor.u32 %v8759_v23, %v8026_v25  ;;  %v10332_v23 = vperm.slane %v10167_v1, 1  ;;  %v11952_v1 = vld [vmem:[#allocation34_spill] sm:$0xff] }
 0x3b3   :  { %v2450_v51 = vpop.f32.mrf.mxu2  ;;  %v2363_v60 = vpop.f32.mrf.mxu1  ;;  %3749 = vmatpush.bf16.msra.mxu0 %v7835_v5 }
 0x3b4   :  { %v2451_v46 = vadd.f32 %v2450_v51, %v2362_v47  ;;  %4016 = vmatpush.bf16.msra.mxu3 %v8027_v27 }
 0x3b5   :  { %v2539_v36 = vpop.f32.mrf.mxu3 }
 0x3b6   :  { %v2274_v63 = vpop.f32.mrf.mxu0  ;;  %v10319_v26 = vadd.f32 %v2539_v36, %v2451_v46 }
 0x3b7   :  { %v2275_v3 = vadd.f32 %v2274_v63, %v10171_v59 }
 0x3b8   :  { %11950 = vst [vmem:[#allocation76_spill] sm:$0xff] %v10319_v26 }
 0x3b9   :  { %v2364_v7 = vadd.f32 %v2363_v60, %v2275_v3  ;;  %v8727_v3 = vld [vmem:[#allocation4 + $0x2ec] sm:$0xf0] }
 0x3ba   :  { %v7899_v16 = vor.u32 %v8727_v3, %v7898_v57 }
 0x3bb   :  { %v2452_v47 = vpop.f32.mrf.mxu2  ;;  %v2366_v36 = vpop.f32.mrf.mxu1 }
 0x3bc   :  { %v2453_v51 = vadd.f32 %v2452_v47, %v2364_v7  ;;  %3838 = vmatpush.bf16.msra.mxu1 %v7899_v16 }
 0x3bd   :  { %v2541_v43 = vpop.f32.mrf.mxu3 }
 0x3be   :  { %v2277_v63 = vpop.f32.mrf.mxu0  ;;  %v10322_v26 = vadd.f32 %v2541_v43, %v2453_v51  ;;  %2681 = vmatmul.bf16.gmra.mxu1 %v9802_v18 }
 0x3bf   :  { %v2278_v46 = vadd.f32 %v2277_v63, %v10171_v59 }
 0x3c0   :  { %2770 = vmatmul.bf16.gmra.mxu2 %v9804_v19 }
 0x3c1   :  { %v2367_v60 = vadd.f32 %v2366_v36, %v2278_v46  ;;  %2592 = vmatmul.bf16.gmra.mxu0 %v9800_v17 }
 0x3c2   :  { %2859 = vmatmul.bf16.gmra.mxu3 %v9806_v20 }
 0x3c3   :  { %v2455_v27 = vpop.f32.mrf.mxu2  ;;  %v2368_v52 = vpop.f32.mrf.mxu1 }
 0x3c4   :  { %v2456_v28 = vadd.f32 %v2455_v27, %v2367_v60 }
 0x3c5   :  { %v2544_v40 = vpop.f32.mrf.mxu3 }
 0x3c6   :  { %v2279_v7 = vpop.f32.mrf.mxu0  ;;  %v10329_v53 = vadd.f32 %v2544_v40, %v2456_v28 }
 0x3c7   :  { %v2280_v43 = vadd.f32 %v2279_v7, %v10171_v59  ;;  %v7680_v59 = vclamps-f32 %v10179_v56, 10.0 }
 0x3c9   :  { %v2369_v25 = vadd.f32 %v2368_v52, %v2280_v43  ;;  %v7744_v40 = vadd.f32 -10.0, %v7680_v59 }
 0x3cb   :  { %v2457_v57 = vpop.f32.mrf.mxu2  ;;  %v2647_v46 = vpop.f32.mrf.mxu1 }
 0x3cc   :  { %v2458_v5 = vadd.f32 %v2457_v57, %v2369_v25  ;;  %v7954_v25 = vld [vmem:[#allocation4 + $0x490] sm:$0xf] }
 0x3cd   :  { %v2546_v47 = vpop.f32.mrf.mxu3  ;;  %v8741_v57 = vld [vmem:[#allocation4 + $0x4ac] sm:$0xf0] }
 0x3ce   :  { %v2558_v51 = vpop.f32.mrf.mxu0  ;;  %v10335_v36 = vadd.f32 %v2546_v47, %v2458_v5  ;;  %2686 = vmatmul.bf16.gmra.mxu1 %v11911_v21  ;;  %v7826_v5 = vld [vmem:[#allocation4 + $0x90] sm:$0xf]  ;;  %v7955_v47 = vor.u32 %v8741_v57, %v7954_v25 }
 0x3cf   :  { %v2559_v63 = vadd.f32 %v2558_v51, %v10332_v23  ;;  %v8709_v51 = vld [vmem:[#allocation4 + $0xac] sm:$0xf0] }
 0x3d0   :  { %11951 = vst [vmem:[#allocation77_spill] sm:$0xff] %v10335_v36  ;;  %2775 = vmatmul.bf16.gmra.mxu2 %v11912_v37  ;;  %v7827_v56 = vor.u32 %v8709_v51, %v7826_v5  ;;  %v8725_v51 = vld [vmem:[#allocation4 + $0x2ac] sm:$0xf0] }
 0x3d1   :  { %2597 = vmatmul.bf16.gmra.mxu0 %v11910_v22  ;;  %v2648_v3 = vadd.f32 %v2647_v46, %v2559_v63  ;;  %v8018_v63 = vld [vmem:[#allocation4 + $0x690] sm:$0xf]  ;;  %3928 = vmatpush.bf16.msra.mxu2 %v7955_v47 }
 0x3d2   :  { %2864 = vmatmul.bf16.gmra.mxu3 %v11952_v1  ;;  %v8757_v46 = vld [vmem:[#allocation4 + $0x6ac] sm:$0xf0]  ;;  %v3097_v1 = vmul.f32 1.442695, %v7744_v40  ;;  %3750 = vmatpush.bf16.msra.mxu0 %v7827_v56 }
 0x3d3   :  { %v2736_v60 = vpop.f32.mrf.mxu2  ;;  %v2649_v7 = vpop.f32.mrf.mxu1  ;;  %v8019_v21 = vor.u32 %v8757_v46, %v8018_v63  ;;  %v7890_v40 = vld [vmem:[#allocation4 + $0x290] sm:$0xf]  ;;  %v11955_v63 = vld [vmem:[#allocation39_spill] sm:$0xff] }
 0x3d4   :  { %v2737_v16 = vadd.f32 %v2736_v60, %v2648_v3  ;;  %v7682_v3 = vclamps-f32 %v10182_v41, 10.0  ;;  %8965 = vpow2.f32 %v3097_v1  ;;  %v7684_v1 = vclamps-f32 %v11955_v63, 10.0  ;;  %v11956_v46 = vld [vmem:[#allocation38_spill] sm:$0xff] }
 0x3d5   :  { %v2825_v27 = vpop.f32.mrf.mxu3  ;;  %4017 = vmatpush.bf16.msra.mxu3 %v8019_v21  ;;  %v11953_v21 = vld [vmem:[#allocation36_spill] sm:$0xff] }
 0x3d6   :  { %v2560_v28 = vpop.f32.mrf.mxu0  ;;  %v2826_v43 = vadd.f32 %v2825_v27, %v2737_v16  ;;  %v7746_v25 = vadd.f32 -10.0, %v7682_v3 }
 0x3d7   :  { %v2561_v52 = vadd.f32 %v2560_v28, %v10332_v23 }
 0x3d8   :  { %v7681_v37 = vclamps-f32 %v2826_v43, 10.0  ;;  %v3101_v47 = vmul.f32 1.442695, %v7746_v25 }
 0x3d9   :  { %v2650_v59 = vadd.f32 %v2649_v7, %v2561_v52  ;;  %v11954_v52 = vld [vmem:[#allocation37_spill] sm:$0xff] }
 0x3da   :  { %v7745_v60 = vadd.f32 -10.0, %v7681_v37  ;;  %v7891_v37 = vor.u32 %v8725_v51, %v7890_v40  ;;  %v8966_v56 = vpop.eup %8965 }
 0x3db   :  { %v2738_v16 = vpop.f32.mrf.mxu2  ;;  %v2652_v43 = vpop.f32.mrf.mxu1 }
 0x3dc   :  { %v3099_v27 = vmul.f32 1.442695, %v7745_v60  ;;  %v2739_v28 = vadd.f32 %v2738_v16, %v2650_v59  ;;  %3839 = vmatpush.bf16.msra.mxu1 %v7891_v37  ;;  %v11957_v37 = vld [vmem:[#allocation44_spill] sm:$0xff] }
 0x3dd   :  { %v2827_v22 = vpop.f32.mrf.mxu3 }
 0x3de   :  { %v2563_v36 = vpop.f32.mrf.mxu0  ;;  %8967 = vpow2.f32 %v3099_v27  ;;  %v2828_v5 = vadd.f32 %v2827_v22, %v2739_v28  ;;  %2691 = vmatmul.bf16.gmra.mxu1 %v11953_v21  ;;  %v7748_v28 = vadd.f32 -10.0, %v7684_v1 }
 0x3df   :  { %v2564_v57 = vadd.f32 %v2563_v36, %v10332_v23  ;;  %8969 = vpow2.f32 %v3101_v47 }
 0x3e0   :  { %v7683_v41 = vclamps-f32 %v2828_v5, 10.0  ;;  %2780 = vmatmul.bf16.gmra.mxu2 %v11954_v52  ;;  %v3105_v51 = vmul.f32 1.442695, %v7748_v28 }
 0x3e1   :  { %2602 = vmatmul.bf16.gmra.mxu0 %v9830_v61  ;;  %v2653_v7 = vadd.f32 %v2652_v43, %v2564_v57 }
 0x3e2   :  { %2869 = vmatmul.bf16.gmra.mxu3 %v11956_v46  ;;  %v7747_v36 = vadd.f32 -10.0, %v7683_v41  ;;  %v7686_v41 = vclamps-f32 %v11957_v37, 10.0 }
 0x3e3   :  { %v2741_v22 = vpop.f32.mrf.mxu2  ;;  %v2654_v57 = vpop.f32.mrf.mxu1 }
 0x3e4   :  { %v8968_v3 = vpop.eup %8967  ;;  %v3103_v60 = vmul.f32 1.442695, %v7747_v36  ;;  %v2742_v59 = vadd.f32 %v2741_v22, %v2653_v7 }
 0x3e5   :  { %v2830_v16 = vpop.f32.mrf.mxu3  ;;  %v3225_v43 = vadd.f32 %v8968_v3, %v8966_v56  ;;  %v8970_v52 = vpop.eup %8969  ;;  %v7750_v56 = vadd.f32 -10.0, %v7686_v41 }
 0x3e6   :  { %v2565_v27 = vpop.f32.mrf.mxu0  ;;  %8971 = vpow2.f32 %v3103_v60  ;;  %v2831_v5 = vadd.f32 %v2830_v16, %v2742_v59 }
 0x3e7   :  { %v2566_v25 = vadd.f32 %v2565_v27, %v10332_v23  ;;  %3226 = vadd.xlane.f32.xlu2 %v3225_v43  ;;  %8973 = vpow2.f32 %v3105_v51  ;;  %v11958_v27 = vld [vmem:[#allocation40_spill] sm:$0xff]  ;;  %v11959_v43 = vld [vmem:[#allocation41_spill] sm:$0xff]  ;;  %v11962_v51 = vld [vmem:[#allocation43_spill] sm:$0xff] }
 0x3e8   :  { %v7685_v40 = vclamps-f32 %v2831_v5, 10.0  ;;  %v11960_v5 = vld [vmem:[#allocation42_spill] sm:$0xff] }
 0x3e9   :  { %v2655_v46 = vadd.f32 %v2654_v57, %v2566_v25  ;;  %v11961_v25 = vld [vmem:[#allocation45_spill] sm:$0xff] }
 0x3ea   :  { %v7749_v63 = vadd.f32 -10.0, %v7685_v40  ;;  %v7688_v40 = vclamps-f32 %v11961_v25, 10.0  ;;  %v7818_v25 = vld [vmem:[#allocation4 + $0x50] sm:$0xf] }
 0x3eb   :  { %v2743_v36 = vpop.f32.mrf.mxu2  ;;  %v2657_v60 = vpop.f32.mrf.mxu1 }
 0x3ec   :  { %v8972_v7 = vpop.eup %8971  ;;  %v3107_v22 = vmul.f32 1.442695, %v7749_v63  ;;  %v2744_v21 = vadd.f32 %v2743_v36, %v2655_v46  ;;  %v3109_v46 = vmul.f32 1.442695, %v7750_v56 }
 0x3ed   :  { %v2832_v47 = vpop.f32.mrf.mxu3  ;;  %v3228_v59 = vadd.f32 %v8972_v7, %v8970_v52  ;;  %v8974_v41 = vpop.eup %8973 }
 0x3ee   :  { %v2568_v1 = vpop.f32.mrf.mxu0  ;;  %8975 = vpow2.f32 %v3107_v22  ;;  %v2833_v16 = vadd.f32 %v2832_v47, %v2744_v21  ;;  %2696 = vmatmul.bf16.gmra.mxu1 %v11959_v43  ;;  %v7752_v47 = vadd.f32 -10.0, %v7688_v40  ;;  %v8755_v43 = vld [vmem:[#allocation4 + $0x66c] sm:$0xf0] }
 0x3ef   :  { %v2569_v3 = vadd.f32 %v2568_v1, %v10332_v23  ;;  %3229 = vadd.xlane.f32.xlu0 %v3228_v59  ;;  %8977 = vpow2.f32 %v3109_v46  ;;  %v7946_v59 = vld [vmem:[#allocation4 + $0x450] sm:$0xf] }
 0x3f0   :  { %v7687_v28 = vclamps-f32 %v2833_v16, 10.0  ;;  %2785 = vmatmul.bf16.gmra.mxu2 %v11960_v5  ;;  %v8739_v16 = vld [vmem:[#allocation4 + $0x46c] sm:$0xf0] }
 0x3f1   :  { %2607 = vmatmul.bf16.gmra.mxu0 %v11958_v27  ;;  %v2658_v57 = vadd.f32 %v2657_v60, %v2569_v3  ;;  %v8010_v5 = vld [vmem:[#allocation4 + $0x650] sm:$0xf]  ;;  %v3113_v27 = vmul.f32 1.442695, %v7752_v47 }
 0x3f2   :  { %2874 = vmatmul.bf16.gmra.mxu3 %v11962_v51  ;;  %v7751_v37 = vadd.f32 -10.0, %v7687_v28  ;;  %v7947_v28 = vor.u32 %v8739_v16, %v7946_v59  ;;  %v8707_v51 = vld [vmem:[#allocation4 + $0x6c] sm:$0xf0] }
 0x3f3   :  { %v2746_v63 = vpop.f32.mrf.mxu2  ;;  %v2659_v1 = vpop.f32.mrf.mxu1  ;;  %v11963_v46 = vld [vmem:[#allocation50_spill] sm:$0xff] }
 0x3f4   :  { %v8976_v52 = vpop.eup %8975  ;;  %v3111_v36 = vmul.f32 1.442695, %v7751_v37  ;;  %v2747_v21 = vadd.f32 %v2746_v63, %v2658_v57  ;;  %v7819_v57 = vor.u32 %v8707_v51, %v7818_v25  ;;  %v8011_v63 = vor.u32 %v8755_v43, %v8010_v5  ;;  %3929 = vmatpush.bf16.msra.mxu2 %v7947_v28  ;;  %v8723_v25 = vld [vmem:[#allocation4 + $0x26c] sm:$0xf0] }
 0x3f5   :  { %v2835_v7 = vpop.f32.mrf.mxu3  ;;  %v3231_v3 = vadd.f32 %v8976_v52, %v8974_v41  ;;  %v7690_v40 = vclamps-f32 %v11963_v46, 10.0  ;;  %v11967_v46 = vld [vmem:[#allocation51_spill] sm:$0xff] }
 0x3f6   :  { %v2570_v22 = vpop.f32.mrf.mxu0  ;;  %8979 = vpow2.f32 %v3111_v36  ;;  %v2836_v60 = vadd.f32 %v2835_v7, %v2747_v21  ;;  %3751 = vmatpush.bf16.msra.mxu0 %v7819_v57  ;;  %4018 = vmatpush.bf16.msra.mxu3 %v8011_v63  ;;  %v8978_v36 = vpop.eup %8977  ;;  %v11965_v57 = vld [vmem:[#allocation47_spill] sm:$0xff]  ;;  %v11966_v63 = vld [vmem:[#allocation48_spill] sm:$0xff] }
 0x3f7   :  { %v2571_v56 = vadd.f32 %v2570_v22, %v10332_v23  ;;  %3232 = vadd.xlane.f32.xlu1 %v3231_v3  ;;  %8981 = vpow2.f32 %v3113_v27  ;;  %v7754_v61 = vadd.f32 -10.0, %v7690_v40  ;;  %v7692_v40 = vclamps-f32 %v11967_v46, 10.0 }
 0x3f8   :  { %v7689_v37 = vclamps-f32 %v2836_v60, 10.0  ;;  %v7882_v60 = vld [vmem:[#allocation4 + $0x250] sm:$0xf] }
 0x3f9   :  { %v2660_v52 = vadd.f32 %v2659_v1, %v2571_v56  ;;  %v11964_v1 = vld [vmem:[#allocation46_spill] sm:$0xff]  ;;  %v7883_v56 = vor.u32 %v8723_v25, %v7882_v60  ;;  %v3117_v27 = vmul.f32 1.442695, %v7754_v61 }
 0x3fa   :  { %v7753_v41 = vadd.f32 -10.0, %v7689_v37 }
 0x3fb   :  { %v2748_v21 = vpop.f32.mrf.mxu2  ;;  %v2662_v43 = vpop.f32.mrf.mxu1  ;;  %3840 = vmatpush.bf16.msra.mxu1 %v7883_v56  ;;  %v11969_v56 = vld [vmem:[#allocation56_spill] sm:$0xff] }
 0x3fc   :  { %v8980_v7 = vpop.eup %8979  ;;  %v3115_v22 = vmul.f32 1.442695, %v7753_v41  ;;  %v2749_v3 = vadd.f32 %v2748_v21, %v2660_v52  ;;  %v11968_v41 = vld [vmem:[#allocation49_spill] sm:$0xff] }
 0x3fd   :  { %v2837_v59 = vpop.f32.mrf.mxu3  ;;  %v3234_v5 = vadd.f32 %v8980_v7, %v8978_v36  ;;  %v8982_v36 = vpop.eup %8981 }
 0x3fe   :  { %v2573_v16 = vpop.f32.mrf.mxu0  ;;  %8983 = vpow2.f32 %v3115_v22  ;;  %v2838_v47 = vadd.f32 %v2837_v59, %v2749_v3  ;;  %2701 = vmatmul.bf16.gmra.mxu1 %v11965_v57 }
 0x3ff   :  { %v2574_v51 = vadd.f32 %v2573_v16, %v10332_v23  ;;  %3235 = vadd.xlane.f32.xlu2 %v3234_v5  ;;  %8985 = vpow2.f32 %v3117_v27 }
 0x400   :  { %v7691_v28 = vclamps-f32 %v2838_v47, 10.0  ;;  %2790 = vmatmul.bf16.gmra.mxu2 %v11966_v63 }
 0x401   :  { %2612 = vmatmul.bf16.gmra.mxu0 %v11964_v1  ;;  %v2663_v37 = vadd.f32 %v2662_v43, %v2574_v51  ;;  %v7756_v51 = vadd.f32 -10.0, %v7692_v40 }
 0x402   :  { %2879 = vmatmul.bf16.gmra.mxu3 %v11968_v41  ;;  %v7755_v52 = vadd.f32 -10.0, %v7691_v28  ;;  %v7694_v28 = vclamps-f32 %v11969_v56, 10.0 }
 0x403   :  { %v2751_v21 = vpop.f32.mrf.mxu2  ;;  %v2664_v43 = vpop.f32.mrf.mxu1  ;;  %v3121_v25 = vmul.f32 1.442695, %v7756_v51 }
 0x404   :  { %v8984_v7 = vpop.eup %8983  ;;  %v3119_v22 = vmul.f32 1.442695, %v7755_v52  ;;  %v2752_v3 = vadd.f32 %v2751_v21, %v2663_v37 }
 0x405   :  { %v2840_v59 = vpop.f32.mrf.mxu3  ;;  %v3237_v5 = vadd.f32 %v8984_v7, %v8982_v36  ;;  %v8986_v63 = vpop.eup %8985  ;;  %v7758_v36 = vadd.f32 -10.0, %v7694_v28 }
 0x406   :  { %v2575_v16 = vpop.f32.mrf.mxu0  ;;  %8987 = vpow2.f32 %v3119_v22  ;;  %v2841_v47 = vadd.f32 %v2840_v59, %v2752_v3 }
 0x407   :  { %v2576_v61 = vadd.f32 %v2575_v16, %v10332_v23  ;;  %3238 = vadd.xlane.f32.xlu0 %v3237_v5  ;;  %8989 = vpow2.f32 %v3121_v25  ;;  %v11970_v16 = vld [vmem:[#allocation52_spill] sm:$0xff]  ;;  %v11971_v5 = vld [vmem:[#allocation53_spill] sm:$0xff]  ;;  %v11974_v25 = vld [vmem:[#allocation55_spill] sm:$0xff] }
 0x408   :  { %v7693_v60 = vclamps-f32 %v2841_v47, 10.0  ;;  %v11972_v47 = vld [vmem:[#allocation54_spill] sm:$0xff] }
 0x409   :  { %v2665_v41 = vadd.f32 %v2664_v43, %v2576_v61  ;;  %v11973_v61 = vld [vmem:[#allocation57_spill] sm:$0xff] }
 0x40a   :  { %v7757_v46 = vadd.f32 -10.0, %v7693_v60  ;;  %v7696_v60 = vclamps-f32 %v11973_v61, 10.0  ;;  %v7810_v61 = vld [vmem:[#allocation4 + $0x10] sm:$0xf] }
 0x40b   :  { %v2753_v52 = vpop.f32.mrf.mxu2  ;;  %v2667_v22 = vpop.f32.mrf.mxu1 }
 0x40c   :  { %v8988_v37 = vpop.eup %8987  ;;  %v3123_v21 = vmul.f32 1.442695, %v7757_v46  ;;  %v2754_v57 = vadd.f32 %v2753_v52, %v2665_v41  ;;  %v3125_v41 = vmul.f32 1.442695, %v7758_v36 }
 0x40d   :  { %v2842_v27 = vpop.f32.mrf.mxu3  ;;  %v3240_v3 = vadd.f32 %v8988_v37, %v8986_v63  ;;  %v8990_v28 = vpop.eup %8989 }
 0x40e   :  { %v2578_v40 = vpop.f32.mrf.mxu0  ;;  %8991 = vpow2.f32 %v3123_v21  ;;  %v2843_v59 = vadd.f32 %v2842_v27, %v2754_v57  ;;  %2706 = vmatmul.bf16.gmra.mxu1 %v11971_v5  ;;  %v7760_v27 = vadd.f32 -10.0, %v7696_v60  ;;  %v8753_v5 = vld [vmem:[#allocation4 + $0x62c] sm:$0xf0] }
 0x40f   :  { %v2579_v7 = vadd.f32 %v2578_v40, %v10332_v23  ;;  %3241 = vadd.xlane.f32.xlu1 %v3240_v3  ;;  %8993 = vpow2.f32 %v3125_v41  ;;  %v7938_v3 = vld [vmem:[#allocation4 + $0x410] sm:$0xf]  ;;  %v7698_v41 = vclamps-f32 %v10222_v8, 10.0 }
 0x410   :  { %v7695_v51 = vclamps-f32 %v2843_v59, 10.0  ;;  %2795 = vmatmul.bf16.gmra.mxu2 %v11972_v47  ;;  %v8737_v59 = vld [vmem:[#allocation4 + $0x42c] sm:$0xf0] }
 0x411   :  { %2617 = vmatmul.bf16.gmra.mxu0 %v11970_v16  ;;  %v2668_v43 = vadd.f32 %v2667_v22, %v2579_v7  ;;  %v8002_v47 = vld [vmem:[#allocation4 + $0x610] sm:$0xf]  ;;  %v3129_v16 = vmul.f32 1.442695, %v7760_v27 }
 0x412   :  { %2884 = vmatmul.bf16.gmra.mxu3 %v11974_v25  ;;  %v7759_v56 = vadd.f32 -10.0, %v7695_v51  ;;  %v7939_v51 = vor.u32 %v8737_v59, %v7938_v3  ;;  %v8705_v25 = vld [vmem:[#allocation4 + $0x2c] sm:$0xf0]  ;;  %v7762_v59 = vadd.f32 -10.0, %v7698_v41 }
 0x413   :  { %v2756_v46 = vpop.f32.mrf.mxu2  ;;  %v2669_v40 = vpop.f32.mrf.mxu1  ;;  %v7874_v27 = vld [vmem:[#allocation4 + $0x210] sm:$0xf] }
 0x414   :  { %v8992_v63 = vpop.eup %8991  ;;  %v3127_v52 = vmul.f32 1.442695, %v7759_v56  ;;  %v2757_v57 = vadd.f32 %v2756_v46, %v2668_v43  ;;  %v7811_v43 = vor.u32 %v8705_v25, %v7810_v61  ;;  %v8003_v46 = vor.u32 %v8753_v5, %v8002_v47  ;;  %3930 = vmatpush.bf16.msra.mxu2 %v7939_v51 }
 0x415   :  { %v2845_v37 = vpop.f32.mrf.mxu3  ;;  %v3243_v7 = vadd.f32 %v8992_v63, %v8990_v28  ;;  %v8994_v63 = vpop.eup %8993 }
 0x416   :  { %v2580_v21 = vpop.f32.mrf.mxu0  ;;  %8995 = vpow2.f32 %v3127_v52  ;;  %v2846_v22 = vadd.f32 %v2845_v37, %v2757_v57  ;;  %3752 = vmatpush.bf16.msra.mxu0 %v7811_v43  ;;  %4019 = vmatpush.bf16.msra.mxu3 %v8003_v46  ;;  %v11977_v43 = vld [vmem:[#allocation60_spill] sm:$0xff]  ;;  %v11978_v46 = vld [vmem:[#allocation62_spill] sm:$0xff] }
 0x417   :  { %v2581_v36 = vadd.f32 %v2580_v21, %v10332_v23  ;;  %3244 = vadd.xlane.f32.xlu2 %v3243_v7  ;;  %8997 = vpow2.f32 %v3129_v16  ;;  %v3133_v16 = vmul.f32 1.442695, %v7762_v59  ;;  %v7700_v41 = vclamps-f32 %v11978_v46, 10.0 }
 0x418   :  { %v7697_v56 = vclamps-f32 %v2846_v22, 10.0  ;;  %v8721_v22 = vld [vmem:[#allocation4 + $0x22c] sm:$0xf0] }
 0x419   :  { %v2670_v28 = vadd.f32 %v2669_v40, %v2581_v36  ;;  %v11975_v40 = vld [vmem:[#allocation58_spill] sm:$0xff]  ;;  %v7875_v36 = vor.u32 %v8721_v22, %v7874_v27 }
 0x41a   :  { %v7761_v60 = vadd.f32 -10.0, %v7697_v56  ;;  %v11976_v56 = vld [vmem:[#allocation59_spill] sm:$0xff] }
 0x41b   :  { %v2758_v52 = vpop.f32.mrf.mxu2  ;;  %v2672_v5 = vpop.f32.mrf.mxu1  ;;  %3841 = vmatpush.bf16.msra.mxu1 %v7875_v36  ;;  %v11980_v36 = vld [vmem:[#allocation63_spill] sm:$0xff] }
 0x41c   :  { %v8996_v57 = vpop.eup %8995  ;;  %v3131_v37 = vmul.f32 1.442695, %v7761_v60  ;;  %v2759_v21 = vadd.f32 %v2758_v52, %v2670_v28  ;;  %v11979_v60 = vld [vmem:[#allocation61_spill] sm:$0xff] }
 0x41d   :  { %v2847_v7 = vpop.f32.mrf.mxu3  ;;  %v3246_v47 = vadd.f32 %v8996_v57, %v8994_v63  ;;  %v8998_v63 = vpop.eup %8997 }
 0x41e   :  { %v2583_v3 = vpop.f32.mrf.mxu0  ;;  %8999 = vpow2.f32 %v3131_v37  ;;  %v2848_v8 = vadd.f32 %v2847_v7, %v2759_v21  ;;  %2711 = vmatmul.bf16.gmra.mxu1 %v11976_v56 }
 0x41f   :  { %v2584_v25 = vadd.f32 %v2583_v3, %v10332_v23  ;;  %3247 = vadd.xlane.f32.xlu0 %v3246_v47  ;;  %9001 = vpow2.f32 %v3133_v16 }
 0x420   :  { %v7699_v61 = vclamps-f32 %v2848_v8, 10.0  ;;  %2800 = vmatmul.bf16.gmra.mxu2 %v11977_v43 }
 0x421   :  { %2622 = vmatmul.bf16.gmra.mxu0 %v11975_v40  ;;  %v2673_v51 = vadd.f32 %v2672_v5, %v2584_v25  ;;  %v7764_v25 = vadd.f32 -10.0, %v7700_v41 }
 0x422   :  { %2889 = vmatmul.bf16.gmra.mxu3 %v11979_v60  ;;  %v7763_v28 = vadd.f32 -10.0, %v7699_v61  ;;  %v7702_v61 = vclamps-f32 %v11980_v36, 10.0 }
 0x423   :  { %v2761_v52 = vpop.f32.mrf.mxu2  ;;  %v2674_v5 = vpop.f32.mrf.mxu1  ;;  %v3137_v22 = vmul.f32 1.442695, %v7764_v25 }
 0x424   :  { %v9000_v57 = vpop.eup %8999  ;;  %v3135_v37 = vmul.f32 1.442695, %v7763_v28  ;;  %v2762_v21 = vadd.f32 %v2761_v52, %v2673_v51 }
 0x425   :  { %v2850_v7 = vpop.f32.mrf.mxu3  ;;  %v3249_v47 = vadd.f32 %v9000_v57, %v8998_v63  ;;  %v9002_v43 = vpop.eup %9001  ;;  %v7766_v63 = vadd.f32 -10.0, %v7702_v61 }
 0x426   :  { %v2585_v3 = vpop.f32.mrf.mxu0  ;;  %9003 = vpow2.f32 %v3135_v37  ;;  %v2851_v8 = vadd.f32 %v2850_v7, %v2762_v21 }
 0x427   :  { %v2586_v59 = vadd.f32 %v2585_v3, %v10332_v23  ;;  %3250 = vadd.xlane.f32.xlu1 %v3249_v47  ;;  %9005 = vpow2.f32 %v3137_v22  ;;  %v11981_v3 = vld [vmem:[#allocation64_spill] sm:$0xff]  ;;  %v11982_v47 = vld [vmem:[#allocation65_spill] sm:$0xff]  ;;  %v11985_v22 = vld [vmem:[#allocation67_spill] sm:$0xff] }
 0x428   :  { %v7701_v27 = vclamps-f32 %v2851_v8, 10.0  ;;  %v11983_v8 = vld [vmem:[#allocation66_spill] sm:$0xff] }
 0x429   :  { %v2675_v60 = vadd.f32 %v2674_v5, %v2586_v59  ;;  %v11984_v59 = vld [vmem:[#allocation68_spill] sm:$0xff] }
 0x42a   :  { %v7765_v46 = vadd.f32 -10.0, %v7701_v27  ;;  %v7704_v27 = vclamps-f32 %v11984_v59, 10.0  ;;  %v8718_v59 = vld [vmem:[#allocation4 + $0x1d4] sm:$0xf] }
 0x42b   :  { %v2763_v28 = vpop.f32.mrf.mxu2  ;;  %v2677_v37 = vpop.f32.mrf.mxu1 }
 0x42c   :  { %v9004_v51 = vpop.eup %9003  ;;  %v3139_v52 = vmul.f32 1.442695, %v7765_v46  ;;  %v2764_v56 = vadd.f32 %v2763_v28, %v2675_v60  ;;  %v3141_v60 = vmul.f32 1.442695, %v7766_v63 }
 0x42d   :  { %v2852_v16 = vpop.f32.mrf.mxu3  ;;  %v3252_v21 = vadd.f32 %v9004_v51, %v9002_v43  ;;  %v9006_v61 = vpop.eup %9005 }
 0x42e   :  { %v2588_v41 = vpop.f32.mrf.mxu0  ;;  %9007 = vpow2.f32 %v3139_v52  ;;  %v2853_v7 = vadd.f32 %v2852_v16, %v2764_v56  ;;  %2716 = vmatmul.bf16.gmra.mxu1 %v11982_v47  ;;  %v7768_v16 = vadd.f32 -10.0, %v7704_v27  ;;  %v8060_v47 = vld [vmem:[#allocation4 + $0x7f0] sm:$0xf0] }
 0x42f   :  { %v2589_v57 = vadd.f32 %v2588_v41, %v10332_v23  ;;  %3253 = vadd.xlane.f32.xlu2 %v3252_v21  ;;  %9009 = vpow2.f32 %v3141_v60  ;;  %v8750_v21 = vld [vmem:[#allocation4 + $0x5d4] sm:$0xf]  ;;  %v7706_v60 = vclamps-f32 %v10242_v4, 10.0 }
 0x430   :  { %v7703_v25 = vclamps-f32 %v2853_v7, 10.0  ;;  %2805 = vmatmul.bf16.gmra.mxu2 %v11983_v8  ;;  %v7996_v7 = vld [vmem:[#allocation4 + $0x5f0] sm:$0xf0] }
 0x431   :  { %2627 = vmatmul.bf16.gmra.mxu0 %v11981_v3  ;;  %v2678_v5 = vadd.f32 %v2677_v37, %v2589_v57  ;;  %v8766_v8 = vld [vmem:[#allocation4 + $0x7d4] sm:$0xf]  ;;  %v3145_v3 = vmul.f32 1.442695, %v7768_v16 }
 0x432   :  { %2894 = vmatmul.bf16.gmra.mxu3 %v11985_v22  ;;  %v7767_v36 = vadd.f32 -10.0, %v7703_v25  ;;  %v7999_v25 = vor.u32 %v8750_v21, %v7996_v7  ;;  %v7868_v22 = vld [vmem:[#allocation4 + $0x1f0] sm:$0xf0]  ;;  %v7770_v7 = vadd.f32 -10.0, %v7706_v60 }
 0x433   :  { %v2766_v46 = vpop.f32.mrf.mxu2  ;;  %v2679_v41 = vpop.f32.mrf.mxu1  ;;  %v8734_v16 = vld [vmem:[#allocation4 + $0x3d4] sm:$0xf] }
 0x434   :  { %v9008_v43 = vpop.eup %9007  ;;  %v3143_v28 = vmul.f32 1.442695, %v7767_v36  ;;  %v2767_v56 = vadd.f32 %v2766_v46, %v2678_v5  ;;  %v7871_v5 = vor.u32 %v8718_v59, %v7868_v22  ;;  %v8063_v46 = vor.u32 %v8766_v8, %v8060_v47  ;;  %4279 = vmatpush.bf16.msrb.mxu2 %v7999_v25 }
 0x435   :  { %v2855_v51 = vpop.f32.mrf.mxu3  ;;  %v3255_v57 = vadd.f32 %v9008_v43, %v9006_v61  ;;  %v9010_v43 = vpop.eup %9009  ;;  %v7708_v25 = vclamps-f32 %v10249_v11, 10.0 }
 0x436   :  { %v2590_v52 = vpop.f32.mrf.mxu0  ;;  %9011 = vpow2.f32 %v3143_v28  ;;  %v2856_v37 = vadd.f32 %v2855_v51, %v2767_v56  ;;  %4101 = vmatpush.bf16.msrb.mxu0 %v7871_v5  ;;  %4368 = vmatpush.bf16.msrb.mxu3 %v8063_v46 }
 0x437   :  { %v2591_v63 = vadd.f32 %v2590_v52, %v10332_v23  ;;  %3256 = vadd.xlane.f32.xlu0 %v3255_v57  ;;  %9013 = vpow2.f32 %v3145_v3  ;;  %v3149_v3 = vmul.f32 1.442695, %v7770_v7 }
 0x438   :  { %v7705_v36 = vclamps-f32 %v2856_v37, 10.0  ;;  %v7932_v37 = vld [vmem:[#allocation4 + $0x3f0] sm:$0xf0] }
 0x439   :  { %v2680_v61 = vadd.f32 %v2679_v41, %v2591_v63  ;;  %v7935_v41 = vor.u32 %v8734_v16, %v7932_v37 }
 0x43a   :  { %v7769_v27 = vadd.f32 -10.0, %v7705_v36 }
 0x43b   :  { %v2768_v28 = vpop.f32.mrf.mxu2  ;;  %v2682_v47 = vpop.f32.mrf.mxu1  ;;  %4190 = vmatpush.bf16.msrb.mxu1 %v7935_v41 }
 0x43c   :  { %v9012_v56 = vpop.eup %9011  ;;  %v3147_v51 = vmul.f32 1.442695, %v7769_v27  ;;  %v2769_v52 = vadd.f32 %v2768_v28, %v2680_v61 }
 0x43d   :  { %v2857_v57 = vpop.f32.mrf.mxu3  ;;  %v3258_v8 = vadd.f32 %v9012_v56, %v9010_v43  ;;  %v9014_v5 = vpop.eup %9013  ;;  %v7772_v56 = vadd.f32 -10.0, %v7708_v25 }
 0x43e   :  { %v2593_v21 = vpop.f32.mrf.mxu0  ;;  %9015 = vpow2.f32 %v3147_v51  ;;  %v2858_v4 = vadd.f32 %v2857_v57, %v2769_v52  ;;  %2721 = vmatmul.bf16.gmra.mxu1 %v9940_v39 }
 0x43f   :  { %v2594_v22 = vadd.f32 %v2593_v21, %v10332_v23  ;;  %3259 = vadd.xlane.f32.xlu1 %v3258_v8  ;;  %9017 = vpow2.f32 %v3149_v3  ;;  %v3153_v7 = vmul.f32 1.442695, %v7772_v56 }
 0x440   :  { %v7707_v63 = vclamps-f32 %v2858_v4, 10.0  ;;  %2810 = vmatmul.bf16.gmra.mxu2 %v9942_v10 }
 0x441   :  { %2632 = vmatmul.bf16.gmra.mxu0 %v9938_v9  ;;  %v2683_v59 = vadd.f32 %v2682_v47, %v2594_v22  ;;  %v7710_v22 = vclamps-f32 %v10252_v45, 10.0 }
 0x442   :  { %2899 = vmatmul.bf16.gmra.mxu3 %v9945_v38  ;;  %v7771_v36 = vadd.f32 -10.0, %v7707_v63 }
 0x443   :  { %v2771_v46 = vpop.f32.mrf.mxu2  ;;  %v2684_v51 = vpop.f32.mrf.mxu1  ;;  %v7774_v25 = vadd.f32 -10.0, %v7710_v22 }
 0x444   :  { %v9016_v60 = vpop.eup %9015  ;;  %v3151_v27 = vmul.f32 1.442695, %v7771_v36  ;;  %v2772_v61 = vadd.f32 %v2771_v46, %v2683_v59 }
 0x445   :  { %v2860_v43 = vpop.f32.mrf.mxu3  ;;  %v3261_v52 = vadd.f32 %v9016_v60, %v9014_v5  ;;  %v9018_v4 = vpop.eup %9017  ;;  %v3157_v56 = vmul.f32 1.442695, %v7774_v25  ;;  %v8748_v25 = vld [vmem:[#allocation4 + $0x594] sm:$0xf] }
 0x446   :  { %v2595_v28 = vpop.f32.mrf.mxu0  ;;  %9019 = vpow2.f32 %v3151_v27  ;;  %v2861_v57 = vadd.f32 %v2860_v43, %v2772_v61  ;;  %v11986_v27 = vld [vmem:[#allocation9_spill] sm:$0xff]  ;;  %v11987_v43 = vld [vmem:[#allocation10_spill] sm:$0xff] }
 0x447   :  { %v2596_v21 = vadd.f32 %v2595_v28, %v10332_v23  ;;  %3262 = vadd.xlane.f32.xlu2 %v3261_v52  ;;  %9021 = vpow2.f32 %v3153_v7  ;;  %v11988_v28 = vld [vmem:[#allocation11_spill] sm:$0xff] }
 0x448   :  { %v7709_v11 = vclamps-f32 %v2861_v57, 10.0  ;;  %v11990_v57 = vld [vmem:[#allocation12_spill] sm:$0xff] }
 0x449   :  { %v2685_v8 = vadd.f32 %v2684_v51, %v2596_v21  ;;  %v11989_v51 = vld [vmem:[#allocation69_spill] sm:$0xff] }
 0x44a   :  { %v7773_v47 = vadd.f32 -10.0, %v7709_v11  ;;  %v7712_v52 = vclamps-f32 %v11989_v51, 10.0  ;;  %v8052_v51 = vld [vmem:[#allocation4 + $0x7b0] sm:$0xf0] }
 0x44b   :  { %v2773_v16 = vpop.f32.mrf.mxu2  ;;  %v2687_v5 = vpop.f32.mrf.mxu1 }
 0x44c   :  { %v9020_v37 = vpop.eup %9019  ;;  %v3155_v41 = vmul.f32 1.442695, %v7773_v47  ;;  %v2774_v63 = vadd.f32 %v2773_v16, %v2685_v8 }
 0x44d   :  { %v2862_v59 = vpop.f32.mrf.mxu3  ;;  %v3264_v46 = vadd.f32 %v9020_v37, %v9018_v4  ;;  %v9022_v11 = vpop.eup %9021  ;;  %v7776_v37 = vadd.f32 -10.0, %v7712_v52 }
 0x44e   :  { %v2598_v3 = vpop.f32.mrf.mxu0  ;;  %9023 = vpow2.f32 %v3155_v41  ;;  %v2863_v60 = vadd.f32 %v2862_v59, %v2774_v63  ;;  %3842 = vmatmul.bf16.vlgmr.msra.gmra.mxu1 %v11987_v43 }
 0x44f   :  { %v2599_v36 = vadd.f32 %v2598_v3, %v10332_v23  ;;  %3265 = vadd.xlane.f32.xlu0 %v3264_v46  ;;  %9025 = vpow2.f32 %v3157_v56  ;;  %v7714_v56 = vclamps-f32 %v10262_v31, 10.0 }
 0x450   :  { %v7711_v45 = vclamps-f32 %v2863_v60, 10.0  ;;  %3931 = vmatmul.bf16.vlgmr.msra.gmra.mxu2 %v11988_v28  ;;  %v7860_v60 = vld [vmem:[#allocation4 + $0x1b0] sm:$0xf0] }
 0x451   :  { %3753 = vmatmul.bf16.vlgmr.msra.gmra.mxu0 %v11986_v27  ;;  %v2688_v61 = vadd.f32 %v2687_v5, %v2599_v36  ;;  %v7988_v36 = vld [vmem:[#allocation4 + $0x5b0] sm:$0xf0] }
 0x452   :  { %4020 = vmatmul.bf16.vlgmr.msra.gmra.mxu3 %v11990_v57  ;;  %v7775_v21 = vadd.f32 -10.0, %v7711_v45  ;;  %v8716_v5 = vld [vmem:[#allocation4 + $0x194] sm:$0xf]  ;;  %v7991_v46 = vor.u32 %v8748_v25, %v7988_v36  ;;  %v3161_v57 = vmul.f32 1.442695, %v7776_v37  ;;  %v7778_v36 = vadd.f32 -10.0, %v7714_v56 }
 0x453   :  { %v2776_v7 = vpop.f32.mrf.mxu2  ;;  %v2689_v41 = vpop.f32.mrf.mxu1  ;;  %v8764_v45 = vld [vmem:[#allocation4 + $0x794] sm:$0xf] }
 0x454   :  { %v9024_v22 = vpop.eup %9023  ;;  %v3159_v47 = vmul.f32 1.442695, %v7775_v21  ;;  %v2777_v8 = vadd.f32 %v2776_v7, %v2688_v61  ;;  %v7863_v61 = vor.u32 %v8716_v5, %v7860_v60  ;;  %v8055_v7 = vor.u32 %v8764_v45, %v8052_v51  ;;  %4280 = vmatpush.bf16.msrb.mxu2 %v7991_v46  ;;  %v8732_v46 = vld [vmem:[#allocation4 + $0x394] sm:$0xf] }
 0x455   :  { %v2865_v4 = vpop.f32.mrf.mxu3  ;;  %v3267_v63 = vadd.f32 %v9024_v22, %v9022_v11  ;;  %v9026_v22 = vpop.eup %9025  ;;  %v7924_v60 = vld [vmem:[#allocation4 + $0x3b0] sm:$0xf0]  ;;  %v7716_v51 = vclamps-f32 %v10269_v2, 10.0 }
 0x456   :  { %v2600_v16 = vpop.f32.mrf.mxu0  ;;  %9027 = vpow2.f32 %v3159_v47  ;;  %v2866_v59 = vadd.f32 %v2865_v4, %v2777_v8  ;;  %4102 = vmatpush.bf16.msrb.mxu0 %v7863_v61  ;;  %4369 = vmatpush.bf16.msrb.mxu3 %v8055_v7 }
 0x457   :  { %v2601_v3 = vadd.f32 %v2600_v16, %v10332_v23  ;;  %3268 = vadd.xlane.f32.xlu1 %v3267_v63  ;;  %9029 = vpow2.f32 %v3161_v57  ;;  %v3165_v57 = vmul.f32 1.442695, %v7778_v36 }
 0x458   :  { %v7713_v21 = vclamps-f32 %v2866_v59, 10.0 }
 0x459   :  { %v2690_v11 = vadd.f32 %v2689_v41, %v2601_v3  ;;  %v7927_v41 = vor.u32 %v8732_v46, %v7924_v60 }
 0x45a   :  { %v7777_v52 = vadd.f32 -10.0, %v7713_v21 }
 0x45b   :  { %v2778_v47 = vpop.f32.mrf.mxu2  ;;  %v2692_v5 = vpop.f32.mrf.mxu1  ;;  %4191 = vmatpush.bf16.msrb.mxu1 %v7927_v41 }
 0x45c   :  { %v9028_v8 = vpop.eup %9027  ;;  %v3163_v4 = vmul.f32 1.442695, %v7777_v52  ;;  %v2779_v16 = vadd.f32 %v2778_v47, %v2690_v11 }
 0x45d   :  { %v2867_v63 = vpop.f32.mrf.mxu3  ;;  %v3270_v37 = vadd.f32 %v9028_v8, %v9026_v22  ;;  %v9030_v61 = vpop.eup %9029  ;;  %v7780_v8 = vadd.f32 -10.0, %v7716_v51 }
 0x45e   :  { %v2603_v25 = vpop.f32.mrf.mxu0  ;;  %9031 = vpow2.f32 %v3163_v4  ;;  %v2868_v31 = vadd.f32 %v2867_v63, %v2779_v16  ;;  %3847 = vmatmul.bf16.gmra.mxu1 %v9730_v13 }
 0x45f   :  { %v2604_v59 = vadd.f32 %v2603_v25, %v10332_v23  ;;  %3271 = vadd.xlane.f32.xlu2 %v3270_v37  ;;  %9033 = vpow2.f32 %v3165_v57  ;;  %v3169_v36 = vmul.f32 1.442695, %v7780_v8  ;;  %v11993_v8 = vld [vmem:[#allocation74_spill] sm:$0xff] }
 0x460   :  { %v7715_v3 = vclamps-f32 %v2868_v31, 10.0  ;;  %3936 = vmatmul.bf16.gmra.mxu2 %v9732_v14 }
 0x461   :  { %3758 = vmatmul.bf16.gmra.mxu0 %v9728_v12  ;;  %v2693_v45 = vadd.f32 %v2692_v5, %v2604_v59  ;;  %v7718_v59 = vclamps-f32 %v10272_v48, 10.0 }
 0x462   :  { %4025 = vmatmul.bf16.gmra.mxu3 %v9734_v15  ;;  %v7779_v21 = vadd.f32 -10.0, %v7715_v3 }
 0x463   :  { %v2781_v7 = vpop.f32.mrf.mxu2  ;;  %v2694_v4 = vpop.f32.mrf.mxu1  ;;  %v7782_v51 = vadd.f32 -10.0, %v7718_v59 }
 0x464   :  { %v9032_v56 = vpop.eup %9031  ;;  %v3167_v52 = vmul.f32 1.442695, %v7779_v21  ;;  %v2782_v11 = vadd.f32 %v2781_v7, %v2693_v45 }
 0x465   :  { %v2870_v22 = vpop.f32.mrf.mxu3  ;;  %v3273_v16 = vadd.f32 %v9032_v56, %v9030_v61  ;;  %v9034_v31 = vpop.eup %9033 }
 0x466   :  { %v2605_v47 = vpop.f32.mrf.mxu0  ;;  %9035 = vpow2.f32 %v3167_v52  ;;  %v2871_v63 = vadd.f32 %v2870_v22, %v2782_v11  ;;  %v11991_v11 = vld [vmem:[#allocation13_spill] sm:$0xff]  ;;  %v11992_v22 = vld [vmem:[#allocation14_spill] sm:$0xff] }
 0x467   :  { %v2606_v25 = vadd.f32 %v2605_v47, %v10332_v23  ;;  %3274 = vadd.xlane.f32.xlu0 %v3273_v16  ;;  %9037 = vpow2.f32 %v3169_v36  ;;  %v3173_v47 = vmul.f32 1.442695, %v7782_v51  ;;  %v11994_v16 = vld [vmem:[#allocation15_spill] sm:$0xff]  ;;  %v7980_v51 = vld [vmem:[#allocation4 + $0x570] sm:$0xf0] }
 0x468   :  { %v7717_v2 = vclamps-f32 %v2871_v63, 10.0 }
 0x469   :  { %v2695_v37 = vadd.f32 %v2694_v4, %v2606_v25  ;;  %v7720_v4 = vclamps-f32 %v11993_v8, 10.0 }
 0x46a   :  { %v7781_v5 = vadd.f32 -10.0, %v7717_v2 }
 0x46b   :  { %v2783_v46 = vpop.f32.mrf.mxu2  ;;  %v2697_v61 = vpop.f32.mrf.mxu1 }
 0x46c   :  { %v9036_v60 = vpop.eup %9035  ;;  %v3171_v41 = vmul.f32 1.442695, %v7781_v5  ;;  %v2784_v3 = vadd.f32 %v2783_v46, %v2695_v37  ;;  %v7784_v46 = vadd.f32 -10.0, %v7720_v4 }
 0x46d   :  { %v2872_v45 = vpop.f32.mrf.mxu3  ;;  %v3276_v7 = vadd.f32 %v9036_v60, %v9034_v31  ;;  %v9038_v25 = vpop.eup %9037 }
 0x46e   :  { %v2608_v57 = vpop.f32.mrf.mxu0  ;;  %9039 = vpow2.f32 %v3171_v41  ;;  %v2873_v56 = vadd.f32 %v2872_v45, %v2784_v3  ;;  %3852 = vmatmul.bf16.gmra.mxu1 %v11991_v11 }
 0x46f   :  { %v2609_v21 = vadd.f32 %v2608_v57, %v10332_v23  ;;  %3277 = vadd.xlane.f32.xlu1 %v3276_v7  ;;  %9041 = vpow2.f32 %v3173_v47  ;;  %v8746_v57 = vld [vmem:[#allocation4 + $0x554] sm:$0xf]  ;;  %v7722_v47 = vclamps-f32 %v10282_v58, 10.0 }
 0x470   :  { %v7719_v48 = vclamps-f32 %v2873_v56, 10.0  ;;  %3941 = vmatmul.bf16.gmra.mxu2 %v11992_v22  ;;  %v7852_v7 = vld [vmem:[#allocation4 + $0x170] sm:$0xf0] }
 0x471   :  { %3763 = vmatmul.bf16.gmra.mxu0 %v9740_v24  ;;  %v2698_v52 = vadd.f32 %v2697_v61, %v2609_v21  ;;  %v8714_v21 = vld [vmem:[#allocation4 + $0x154] sm:$0xf]  ;;  %v7983_v61 = vor.u32 %v8746_v57, %v7980_v51  ;;  %v7786_v51 = vadd.f32 -10.0, %v7722_v47 }
 0x472   :  { %4030 = vmatmul.bf16.gmra.mxu3 %v11994_v16  ;;  %v7783_v63 = vadd.f32 -10.0, %v7719_v48  ;;  %v8762_v56 = vld [vmem:[#allocation4 + $0x754] sm:$0xf] }
 0x473   :  { %v2786_v2 = vpop.f32.mrf.mxu2  ;;  %v2699_v60 = vpop.f32.mrf.mxu1  ;;  %v8044_v48 = vld [vmem:[#allocation4 + $0x770] sm:$0xf0]  ;;  %4281 = vmatpush.bf16.msrb.mxu2 %v7983_v61 }
 0x474   :  { %v9040_v36 = vpop.eup %9039  ;;  %v3175_v59 = vmul.f32 1.442695, %v7783_v63  ;;  %v2787_v5 = vadd.f32 %v2786_v2, %v2698_v52  ;;  %v7855_v52 = vor.u32 %v8714_v21, %v7852_v7  ;;  %v8047_v63 = vor.u32 %v8762_v56, %v8044_v48  ;;  %v8730_v61 = vld [vmem:[#allocation4 + $0x354] sm:$0xf] }
 0x475   :  { %v2875_v37 = vpop.f32.mrf.mxu3  ;;  %v3279_v41 = vadd.f32 %v9040_v36, %v9038_v25  ;;  %v3177_v2 = vmul.f32 1.442695, %v7784_v46  ;;  %v9042_v36 = vpop.eup %9041  ;;  %v7916_v7 = vld [vmem:[#allocation4 + $0x370] sm:$0xf0]  ;;  %v3181_v48 = vmul.f32 1.442695, %v7786_v51 }
 0x476   :  { %v2610_v31 = vpop.f32.mrf.mxu0  ;;  %9043 = vpow2.f32 %v3175_v59  ;;  %v2876_v3 = vadd.f32 %v2875_v37, %v2787_v5  ;;  %4103 = vmatpush.bf16.msrb.mxu0 %v7855_v52  ;;  %4370 = vmatpush.bf16.msrb.mxu3 %v8047_v63 }
 0x477   :  { %v2611_v45 = vadd.f32 %v2610_v31, %v10332_v23  ;;  %3280 = vadd.xlane.f32.xlu2 %v3279_v41  ;;  %9045 = vpow2.f32 %v3177_v2 }
 0x478   :  { %v7721_v8 = vclamps-f32 %v2876_v3, 10.0 }
 0x479   :  { %v2700_v25 = vadd.f32 %v2699_v60, %v2611_v45  ;;  %v7919_v60 = vor.u32 %v8730_v61, %v7916_v7 }
 0x47a   :  { %v7785_v4 = vadd.f32 -10.0, %v7721_v8  ;;  %v7724_v8 = vclamps-f32 %v10289_v42, 10.0 }
 0x47b   :  { %v2788_v59 = vpop.f32.mrf.mxu2  ;;  %v2702_v21 = vpop.f32.mrf.mxu1  ;;  %4192 = vmatpush.bf16.msrb.mxu1 %v7919_v60 }
 0x47c   :  { %v9044_v5 = vpop.eup %9043  ;;  %v3179_v37 = vmul.f32 1.442695, %v7785_v4  ;;  %v2789_v31 = vadd.f32 %v2788_v59, %v2700_v25 }
 0x47d   :  { %v2877_v41 = vpop.f32.mrf.mxu3  ;;  %v3282_v46 = vadd.f32 %v9044_v5, %v9042_v36  ;;  %v9046_v63 = vpop.eup %9045  ;;  %v7788_v5 = vadd.f32 -10.0, %v7724_v8 }
 0x47e   :  { %v2613_v57 = vpop.f32.mrf.mxu0  ;;  %9047 = vpow2.f32 %v3179_v37  ;;  %v2878_v58 = vadd.f32 %v2877_v41, %v2789_v31  ;;  %3857 = vmatmul.bf16.gmra.mxu1 %v9754_v50 }
 0x47f   :  { %v2614_v3 = vadd.f32 %v2613_v57, %v10332_v23  ;;  %3283 = vadd.xlane.f32.xlu0 %v3282_v46  ;;  %9049 = vpow2.f32 %v3181_v48  ;;  %v3185_v51 = vmul.f32 1.442695, %v7788_v5  ;;  %v11997_v5 = vld [vmem:[#allocation75_spill] sm:$0xff] }
 0x480   :  { %v7723_v45 = vclamps-f32 %v2878_v58, 10.0  ;;  %3946 = vmatmul.bf16.gmra.mxu2 %v9756_v54 }
 0x481   :  { %3768 = vmatmul.bf16.gmra.mxu0 %v9752_v49  ;;  %v2703_v56 = vadd.f32 %v2702_v21, %v2614_v3  ;;  %v7726_v3 = vclamps-f32 %v10292_v29, 10.0 }
 0x482   :  { %4035 = vmatmul.bf16.gmra.mxu3 %v9758_v55  ;;  %v7787_v52 = vadd.f32 -10.0, %v7723_v45 }
 0x483   :  { %v2791_v2 = vpop.f32.mrf.mxu2  ;;  %v2704_v37 = vpop.f32.mrf.mxu1  ;;  %v7790_v8 = vadd.f32 -10.0, %v7726_v3 }
 0x484   :  { %v9048_v47 = vpop.eup %9047  ;;  %v3183_v4 = vmul.f32 1.442695, %v7787_v52  ;;  %v2792_v25 = vadd.f32 %v2791_v2, %v2703_v56 }
 0x485   :  { %v2880_v36 = vpop.f32.mrf.mxu3  ;;  %v3285_v31 = vadd.f32 %v9048_v47, %v9046_v63  ;;  %v9050_v58 = vpop.eup %9049 }
 0x486   :  { %v2615_v59 = vpop.f32.mrf.mxu0  ;;  %9051 = vpow2.f32 %v3183_v4  ;;  %v2881_v41 = vadd.f32 %v2880_v36, %v2792_v25  ;;  %v11995_v25 = vld [vmem:[#allocation16_spill] sm:$0xff]  ;;  %v11996_v36 = vld [vmem:[#allocation17_spill] sm:$0xff] }
 0x487   :  { %v2616_v57 = vadd.f32 %v2615_v59, %v10332_v23  ;;  %3286 = vadd.xlane.f32.xlu1 %v3285_v31  ;;  %9053 = vpow2.f32 %v3185_v51  ;;  %v3189_v59 = vmul.f32 1.442695, %v7790_v8  ;;  %v11998_v31 = vld [vmem:[#allocation18_spill] sm:$0xff] }
 0x488   :  { %v7725_v42 = vclamps-f32 %v2881_v41, 10.0  ;;  %v7972_v8 = vld [vmem:[#allocation4 + $0x530] sm:$0xf0] }
 0x489   :  { %v2705_v46 = vadd.f32 %v2704_v37, %v2616_v57  ;;  %v7728_v37 = vclamps-f32 %v11997_v5, 10.0 }
 0x48a   :  { %v7789_v21 = vadd.f32 -10.0, %v7725_v42 }
 0x48b   :  { %v2793_v61 = vpop.f32.mrf.mxu2  ;;  %v2707_v63 = vpop.f32.mrf.mxu1 }
 0x48c   :  { %v9052_v7 = vpop.eup %9051  ;;  %v3187_v60 = vmul.f32 1.442695, %v7789_v21  ;;  %v2794_v45 = vadd.f32 %v2793_v61, %v2705_v46  ;;  %v7792_v61 = vadd.f32 -10.0, %v7728_v37 }
 0x48d   :  { %v2882_v56 = vpop.f32.mrf.mxu3  ;;  %v3288_v2 = vadd.f32 %v9052_v7, %v9050_v58  ;;  %v9054_v57 = vpop.eup %9053 }
 0x48e   :  { %v2618_v48 = vpop.f32.mrf.mxu0  ;;  %9055 = vpow2.f32 %v3187_v60  ;;  %v2883_v47 = vadd.f32 %v2882_v56, %v2794_v45  ;;  %3862 = vmatmul.bf16.gmra.mxu1 %v11995_v25 }
 0x48f   :  { %v2619_v52 = vadd.f32 %v2618_v48, %v10332_v23  ;;  %3289 = vadd.xlane.f32.xlu2 %v3288_v2  ;;  %9057 = vpow2.f32 %v3189_v59  ;;  %v8744_v48 = vld [vmem:[#allocation4 + $0x514] sm:$0xf]  ;;  %v7730_v59 = vclamps-f32 %v10302_v30, 10.0 }
 0x490   :  { %v7727_v29 = vclamps-f32 %v2883_v47, 10.0  ;;  %3951 = vmatmul.bf16.gmra.mxu2 %v11996_v36  ;;  %v7844_v2 = vld [vmem:[#allocation4 + $0x130] sm:$0xf0] }
 0x491   :  { %3773 = vmatmul.bf16.gmra.mxu0 %v9764_v0  ;;  %v2708_v4 = vadd.f32 %v2707_v63, %v2619_v52  ;;  %v8712_v52 = vld [vmem:[#allocation4 + $0x114] sm:$0xf]  ;;  %v7975_v63 = vor.u32 %v8744_v48, %v7972_v8  ;;  %v7794_v8 = vadd.f32 -10.0, %v7730_v59 }
 0x492   :  { %4040 = vmatmul.bf16.gmra.mxu3 %v11998_v31  ;;  %v7791_v41 = vadd.f32 -10.0, %v7727_v29  ;;  %v8760_v47 = vld [vmem:[#allocation4 + $0x714] sm:$0xf] }
 0x493   :  { %v2796_v42 = vpop.f32.mrf.mxu2  ;;  %v2709_v7 = vpop.f32.mrf.mxu1  ;;  %v8036_v29 = vld [vmem:[#allocation4 + $0x730] sm:$0xf0]  ;;  %4282 = vmatpush.bf16.msrb.mxu2 %v7975_v63 }
 0x494   :  { %v9056_v51 = vpop.eup %9055  ;;  %v3191_v3 = vmul.f32 1.442695, %v7791_v41  ;;  %v2797_v21 = vadd.f32 %v2796_v42, %v2708_v4  ;;  %v7847_v4 = vor.u32 %v8712_v52, %v7844_v2  ;;  %v8039_v41 = vor.u32 %v8760_v47, %v8036_v29  ;;  %v8728_v63 = vld [vmem:[#allocation4 + $0x314] sm:$0xf] }
 0x495   :  { %v2885_v46 = vpop.f32.mrf.mxu3  ;;  %v3291_v60 = vadd.f32 %v9056_v51, %v9054_v57  ;;  %v3193_v42 = vmul.f32 1.442695, %v7792_v61  ;;  %v9058_v51 = vpop.eup %9057  ;;  %v7908_v2 = vld [vmem:[#allocation4 + $0x330] sm:$0xf0]  ;;  %v3197_v29 = vmul.f32 1.442695, %v7794_v8 }
 0x496   :  { %v2620_v58 = vpop.f32.mrf.mxu0  ;;  %9059 = vpow2.f32 %v3191_v3  ;;  %v2886_v45 = vadd.f32 %v2885_v46, %v2797_v21  ;;  %4104 = vmatpush.bf16.msrb.mxu0 %v7847_v4  ;;  %4371 = vmatpush.bf16.msrb.mxu3 %v8039_v41 }
 0x497   :  { %v2621_v56 = vadd.f32 %v2620_v58, %v10332_v23  ;;  %3292 = vadd.xlane.f32.xlu0 %v3291_v60  ;;  %9061 = vpow2.f32 %v3193_v42 }
 0x498   :  { %v7729_v5 = vclamps-f32 %v2886_v45, 10.0 }
 0x499   :  { %v2710_v57 = vadd.f32 %v2709_v7, %v2621_v56  ;;  %v7911_v7 = vor.u32 %v8728_v63, %v7908_v2 }
 0x49a   :  { %v7793_v37 = vadd.f32 -10.0, %v7729_v5  ;;  %v7732_v5 = vclamps-f32 %v10309_v6, 10.0 }
 0x49b   :  { %v2798_v3 = vpop.f32.mrf.mxu2  ;;  %v2712_v52 = vpop.f32.mrf.mxu1  ;;  %4193 = vmatpush.bf16.msrb.mxu1 %v7911_v7 }
 0x49c   :  { %v9060_v21 = vpop.eup %9059  ;;  %v3195_v46 = vmul.f32 1.442695, %v7793_v37  ;;  %v2799_v58 = vadd.f32 %v2798_v3, %v2710_v57 }
 0x49d   :  { %v2887_v60 = vpop.f32.mrf.mxu3  ;;  %v3294_v61 = vadd.f32 %v9060_v21, %v9058_v51  ;;  %v9062_v41 = vpop.eup %9061  ;;  %v7796_v21 = vadd.f32 -10.0, %v7732_v5 }
 0x49e   :  { %v2623_v48 = vpop.f32.mrf.mxu0  ;;  %9063 = vpow2.f32 %v3195_v46  ;;  %v2888_v30 = vadd.f32 %v2887_v60, %v2799_v58  ;;  %3867 = vmatmul.bf16.gmra.mxu1 %v9778_v33 }
 0x49f   :  { %v2624_v45 = vadd.f32 %v2623_v48, %v10332_v23  ;;  %3295 = vadd.xlane.f32.xlu1 %v3294_v61  ;;  %9065 = vpow2.f32 %v3197_v29  ;;  %v3201_v8 = vmul.f32 1.442695, %v7796_v21  ;;  %v12001_v21 = vld [vmem:[#allocation76_spill] sm:$0xff] }
 0x4a0   :  { %v7731_v56 = vclamps-f32 %v2888_v30, 10.0  ;;  %3956 = vmatmul.bf16.gmra.mxu2 %v9780_v34 }
 0x4a1   :  { %3778 = vmatmul.bf16.gmra.mxu0 %v9776_v32  ;;  %v2713_v47 = vadd.f32 %v2712_v52, %v2624_v45  ;;  %v7734_v45 = vclamps-f32 %v10312_v62, 10.0 }
 0x4a2   :  { %4045 = vmatmul.bf16.gmra.mxu3 %v9782_v35  ;;  %v7795_v4 = vadd.f32 -10.0, %v7731_v56 }
 0x4a3   :  { %v2801_v42 = vpop.f32.mrf.mxu2  ;;  %v2714_v46 = vpop.f32.mrf.mxu1  ;;  %v7798_v5 = vadd.f32 -10.0, %v7734_v45 }
 0x4a4   :  { %v9064_v59 = vpop.eup %9063  ;;  %v3199_v37 = vmul.f32 1.442695, %v7795_v4  ;;  %v2802_v57 = vadd.f32 %v2801_v42, %v2713_v47 }
 0x4a5   :  { %v2890_v51 = vpop.f32.mrf.mxu3  ;;  %v3297_v58 = vadd.f32 %v9064_v59, %v9062_v41  ;;  %v9066_v30 = vpop.eup %9065 }
 0x4a6   :  { %v2625_v3 = vpop.f32.mrf.mxu0  ;;  %9067 = vpow2.f32 %v3199_v37  ;;  %v2891_v60 = vadd.f32 %v2890_v51, %v2802_v57  ;;  %v11999_v57 = vld [vmem:[#allocation24_spill] sm:$0xff]  ;;  %v12000_v51 = vld [vmem:[#allocation25_spill] sm:$0xff] }
 0x4a7   :  { %v2626_v48 = vadd.f32 %v2625_v3, %v10332_v23  ;;  %3298 = vadd.xlane.f32.xlu2 %v3297_v58  ;;  %9069 = vpow2.f32 %v3201_v8  ;;  %v3205_v3 = vmul.f32 1.442695, %v7798_v5  ;;  %v12002_v58 = vld [vmem:[#allocation26_spill] sm:$0xff] }
 0x4a8   :  { %v7733_v6 = vclamps-f32 %v2891_v60, 10.0  ;;  %v7964_v5 = vld [vmem:[#allocation4 + $0x4f0] sm:$0xf0] }
 0x4a9   :  { %v2715_v61 = vadd.f32 %v2714_v46, %v2626_v48  ;;  %v7736_v46 = vclamps-f32 %v12001_v21, 10.0 }
 0x4aa   :  { %v7797_v52 = vadd.f32 -10.0, %v7733_v6 }
 0x4ab   :  { %v2803_v63 = vpop.f32.mrf.mxu2  ;;  %v2717_v41 = vpop.f32.mrf.mxu1 }
 0x4ac   :  { %v9068_v2 = vpop.eup %9067  ;;  %v3203_v7 = vmul.f32 1.442695, %v7797_v52  ;;  %v2804_v56 = vadd.f32 %v2803_v63, %v2715_v61  ;;  %v7800_v63 = vadd.f32 -10.0, %v7736_v46 }
 0x4ad   :  { %v2892_v47 = vpop.f32.mrf.mxu3  ;;  %v3300_v42 = vadd.f32 %v9068_v2, %v9066_v30  ;;  %v9070_v48 = vpop.eup %9069 }
 0x4ae   :  { %v2628_v29 = vpop.f32.mrf.mxu0  ;;  %9071 = vpow2.f32 %v3203_v7  ;;  %v2893_v59 = vadd.f32 %v2892_v47, %v2804_v56  ;;  %3872 = vmatmul.bf16.gmra.mxu1 %v11999_v57 }
 0x4af   :  { %v2629_v4 = vadd.f32 %v2628_v29, %v10332_v23  ;;  %3301 = vadd.xlane.f32.xlu0 %v3300_v42  ;;  %9073 = vpow2.f32 %v3205_v3  ;;  %v8742_v29 = vld [vmem:[#allocation4 + $0x4d4] sm:$0xf]  ;;  %v7738_v3 = vclamps-f32 %v10322_v26, 10.0 }
 0x4b0   :  { %v7735_v62 = vclamps-f32 %v2893_v59, 10.0  ;;  %3961 = vmatmul.bf16.gmra.mxu2 %v12000_v51  ;;  %v7836_v42 = vld [vmem:[#allocation4 + $0xf0] sm:$0xf0] }
 0x4b1   :  { %3783 = vmatmul.bf16.gmra.mxu0 %v9788_v44  ;;  %v2718_v37 = vadd.f32 %v2717_v41, %v2629_v4  ;;  %v8710_v4 = vld [vmem:[#allocation4 + $0xd4] sm:$0xf]  ;;  %v7967_v41 = vor.u32 %v8742_v29, %v7964_v5  ;;  %v7802_v5 = vadd.f32 -10.0, %v7738_v3 }
 0x4b2   :  { %4050 = vmatmul.bf16.gmra.mxu3 %v12002_v58  ;;  %v7799_v60 = vadd.f32 -10.0, %v7735_v62  ;;  %v8758_v59 = vld [vmem:[#allocation4 + $0x6d4] sm:$0xf] }
 0x4b3   :  { %v2806_v6 = vpop.f32.mrf.mxu2  ;;  %v2719_v2 = vpop.f32.mrf.mxu1  ;;  %v8028_v62 = vld [vmem:[#allocation4 + $0x6f0] sm:$0xf0]  ;;  %4283 = vmatpush.bf16.msrb.mxu2 %v7967_v41 }
 0x4b4   :  { %v9072_v8 = vpop.eup %9071  ;;  %v3207_v45 = vmul.f32 1.442695, %v7799_v60  ;;  %v2807_v52 = vadd.f32 %v2806_v6, %v2718_v37  ;;  %v7839_v37 = vor.u32 %v8710_v4, %v7836_v42  ;;  %v8031_v60 = vor.u32 %v8758_v59, %v8028_v62  ;;  %v8726_v41 = vld [vmem:[#allocation4 + $0x2d4] sm:$0xf] }
 0x4b5   :  { %v2895_v61 = vpop.f32.mrf.mxu3  ;;  %v3303_v7 = vadd.f32 %v9072_v8, %v9070_v48  ;;  %v3209_v6 = vmul.f32 1.442695, %v7800_v63  ;;  %v9074_v8 = vpop.eup %9073  ;;  %v7900_v42 = vld [vmem:[#allocation4 + $0x2f0] sm:$0xf0]  ;;  %v3213_v62 = vmul.f32 1.442695, %v7802_v5 }
 0x4b6   :  { %v2630_v30 = vpop.f32.mrf.mxu0  ;;  %9075 = vpow2.f32 %v3207_v45  ;;  %v2896_v56 = vadd.f32 %v2895_v61, %v2807_v52  ;;  %4105 = vmatpush.bf16.msrb.mxu0 %v7839_v37  ;;  %4372 = vmatpush.bf16.msrb.mxu3 %v8031_v60 }
 0x4b7   :  { %v2631_v47 = vadd.f32 %v2630_v30, %v10332_v23  ;;  %3304 = vadd.xlane.f32.xlu1 %v3303_v7  ;;  %9077 = vpow2.f32 %v3209_v6 }
 0x4b8   :  { %v7737_v21 = vclamps-f32 %v2896_v56, 10.0 }
 0x4b9   :  { %v2720_v48 = vadd.f32 %v2719_v2, %v2631_v47  ;;  %v7903_v2 = vor.u32 %v8726_v41, %v7900_v42 }
 0x4ba   :  { %v7801_v46 = vadd.f32 -10.0, %v7737_v21  ;;  %v7740_v21 = vclamps-f32 %v10329_v53, 10.0  ;;  %v10463_v53 = vld [vmem:[#allocation6 + $0x4] sm:$0x3] }
 0x4bb   :  { %v2808_v45 = vpop.f32.mrf.mxu2  ;;  %v2722_v4 = vpop.f32.mrf.mxu1  ;;  %4194 = vmatpush.bf16.msrb.mxu1 %v7903_v2 }
 0x4bc   :  { %v9076_v52 = vpop.eup %9075  ;;  %v3211_v61 = vmul.f32 1.442695, %v7801_v46  ;;  %v2809_v30 = vadd.f32 %v2808_v45, %v2720_v48 }
 0x4bd   :  { %v2897_v7 = vpop.f32.mrf.mxu3  ;;  %v3306_v63 = vadd.f32 %v9076_v52, %v9074_v8  ;;  %v9078_v60 = vpop.eup %9077  ;;  %v7804_v52 = vadd.f32 -10.0, %v7740_v21 }
 0x4be   :  { %v2633_v29 = vpop.f32.mrf.mxu0  ;;  %9079 = vpow2.f32 %v3211_v61  ;;  %v2898_v26 = vadd.f32 %v2897_v7, %v2809_v30  ;;  %3877 = vmatmul.bf16.gmra.mxu1 %v9802_v18 }
 0x4bf   :  { %v2634_v56 = vadd.f32 %v2633_v29, %v10332_v23  ;;  %3307 = vadd.xlane.f32.xlu2 %v3306_v63  ;;  %9081 = vpow2.f32 %v3213_v62 }
 0x4c0   :  { %v7739_v47 = vclamps-f32 %v2898_v26, 10.0  ;;  %3966 = vmatmul.bf16.gmra.mxu2 %v9804_v19  ;;  %v10467_v26 = vperm.slane %v10463_v53, 0 }
 0x4c1   :  { %3788 = vmatmul.bf16.gmra.mxu0 %v9800_v17  ;;  %v2723_v59 = vadd.f32 %v2722_v4, %v2634_v56  ;;  %v3217_v56 = vmul.f32 1.442695, %v7804_v52  ;;  %v12003_v4 = vld [vmem:[#allocation77_spill] sm:$0xff] }
 0x4c2   :  { %4055 = vmatmul.bf16.gmra.mxu3 %v9806_v20  ;;  %v7803_v37 = vadd.f32 -10.0, %v7739_v47  ;;  %v7742_v63 = vclamps-f32 %v12003_v4, 10.0 }
 0x4c3   :  { %v2811_v6 = vpop.f32.mrf.mxu2  ;;  %v2724_v61 = vpop.f32.mrf.mxu1 }
 0x4c4   :  { %v9080_v3 = vpop.eup %9079  ;;  %v3215_v46 = vmul.f32 1.442695, %v7803_v37  ;;  %v2812_v48 = vadd.f32 %v2811_v6, %v2723_v59 }
 0x4c5   :  { %v2900_v8 = vpop.f32.mrf.mxu3  ;;  %v3309_v30 = vadd.f32 %v9080_v3, %v9078_v60  ;;  %v9082_v2 = vpop.eup %9081 }
 0x4c6   :  { %v2635_v45 = vpop.f32.mrf.mxu0  ;;  %9083 = vpow2.f32 %v3215_v46  ;;  %v2901_v7 = vadd.f32 %v2900_v8, %v2812_v48 }
 0x4c7   :  { %v2636_v29 = vadd.f32 %v2635_v45, %v10332_v23  ;;  %3310 = vadd.xlane.f32.xlu0 %v3309_v30  ;;  %9085 = vpow2.f32 %v3217_v56  ;;  %v7806_v23 = vadd.f32 -10.0, %v7742_v63  ;;  %v12004_v45 = vld [vmem:[#allocation31_spill] sm:$0xff]  ;;  %v12006_v30 = vld [vmem:[#allocation33_spill] sm:$0xff] }
 0x4c8   :  { %v7741_v5 = vclamps-f32 %v2901_v7, 10.0 }
 0x4c9   :  { %v2725_v42 = vadd.f32 %v2724_v61, %v2636_v29  ;;  %v12005_v61 = vld [vmem:[#allocation32_spill] sm:$0xff]  ;;  %v3221_v7 = vmul.f32 1.442695, %v7806_v23  ;;  %v12007_v29 = vld [vmem:[#allocation34_spill] sm:$0xff] }
 0x4ca   :  { %v7805_v41 = vadd.f32 -10.0, %v7741_v5  ;;  %v7956_v23 = vld [vmem:[#allocation4 + $0x4b0] sm:$0xf0] }
 0x4cb   :  { %v2813_v47 = vpop.f32.mrf.mxu2  ;;  %v3843_v3 = vpop.f32.mrf.mxu1 }
 0x4cc   :  { %v9084_v59 = vpop.eup %9083  ;;  %v3219_v62 = vmul.f32 1.442695, %v7805_v41  ;;  %v2814_v21 = vadd.f32 %v2813_v47, %v2725_v42 }
 0x4cd   :  { %v2902_v37 = vpop.f32.mrf.mxu3  ;;  %v3312_v46 = vadd.f32 %v9084_v59, %v9082_v2  ;;  %v9086_v56 = vpop.eup %9085 }
 0x4ce   :  { %v3754_v60 = vpop.f32.mrf.mxu0  ;;  %9087 = vpow2.f32 %v3219_v62  ;;  %v2903_v48 = vadd.f32 %v2902_v37, %v2814_v21  ;;  %3882 = vmatmul.bf16.gmra.mxu1 %v12005_v61 }
 0x4cf   :  { %v3755_v6 = vadd.f32 %v3754_v60, %v10467_v26  ;;  %3313 = vadd.xlane.f32.xlu1 %v3312_v46  ;;  %9089 = vpow2.f32 %v3221_v7  ;;  %v8740_v60 = vld [vmem:[#allocation4 + $0x494] sm:$0xf] }
 0x4d0   :  { %v7743_v52 = vclamps-f32 %v2903_v48, 10.0  ;;  %3971 = vmatmul.bf16.gmra.mxu2 %v12006_v30  ;;  %v7959_v46 = vor.u32 %v8740_v60, %v7956_v23  ;;  %v7828_v48 = vld [vmem:[#allocation4 + $0xb0] sm:$0xf0] }
 0x4d1   :  { %v3844_v8 = vadd.f32 %v3843_v3, %v3755_v6  ;;  %3793 = vmatmul.bf16.gmra.mxu0 %v12004_v45  ;;  %v8708_v6 = vld [vmem:[#allocation4 + $0x94] sm:$0xf] }
 0x4d2   :  { %4060 = vmatmul.bf16.gmra.mxu3 %v12007_v29  ;;  %v7807_v5 = vadd.f32 -10.0, %v7743_v52  ;;  %v8756_v52 = vld [vmem:[#allocation4 + $0x694] sm:$0xf]  ;;  %4284 = vmatpush.bf16.msrb.mxu2 %v7959_v46 }
 0x4d3   :  { %v3932_v4 = vpop.f32.mrf.mxu2  ;;  %v3845_v62 = vpop.f32.mrf.mxu1  ;;  %v7892_v60 = vld [vmem:[#allocation4 + $0x2b0] sm:$0xf0] }
 0x4d4   :  { %v9088_v63 = vpop.eup %9087  ;;  %v3223_v41 = vmul.f32 1.442695, %v7807_v5  ;;  %v3933_v42 = vadd.f32 %v3932_v4, %v3844_v8  ;;  %v8020_v5 = vld [vmem:[#allocation4 + $0x6b0] sm:$0xf0]  ;;  %v7831_v8 = vor.u32 %v8708_v6, %v7828_v48  ;;  %v12008_v6 = vld [vmem:[#allocation35_spill] sm:$0xff]  ;;  %v12009_v48 = vld [vmem:[#allocation36_spill] sm:$0xff] }
 0x4d5   :  { %v4021_v2 = vpop.f32.mrf.mxu3  ;;  %v3315_v21 = vadd.f32 %v9088_v63, %v9086_v56  ;;  %v8023_v4 = vor.u32 %v8756_v52, %v8020_v5  ;;  %v9090_v7 = vpop.eup %9089  ;;  %v12010_v52 = vld [vmem:[#allocation37_spill] sm:$0xff] }
 0x4d6   :  { %v3756_v47 = vpop.f32.mrf.mxu0  ;;  %9091 = vpow2.f32 %v3223_v41  ;;  %v10475_v37 = vadd.f32 %v4021_v2, %v3933_v42  ;;  %4106 = vmatpush.bf16.msrb.mxu0 %v7831_v8 }
 0x4d7   :  { %v3757_v59 = vadd.f32 %v3756_v47, %v10467_v26  ;;  %3316 = vadd.xlane.f32.xlu2 %v3315_v21  ;;  %4373 = vmatpush.bf16.msrb.mxu3 %v8023_v4  ;;  %v8724_v21 = vld [vmem:[#allocation4 + $0x294] sm:$0xf] }
 0x4d8   :  { %v7895_v46 = vor.u32 %v8724_v21, %v7892_v60 }
 0x4d9   :  { %v3846_v3 = vadd.f32 %v3845_v62, %v3757_v59 }
 0x4da   :  { %4195 = vmatpush.bf16.msrb.mxu1 %v7895_v46 }
 0x4db   :  { %v3934_v47 = vpop.f32.mrf.mxu2  ;;  %v3848_v29 = vpop.f32.mrf.mxu1 }
 0x4dc   :  { %v9092_v56 = vpop.eup %9091  ;;  %v3935_v63 = vadd.f32 %v3934_v47, %v3846_v3  ;;  %v12011_v3 = vld [vmem:[#allocation38_spill] sm:$0xff] }
 0x4dd   :  { %v4023_v41 = vpop.f32.mrf.mxu3  ;;  %v3318_v59 = vadd.f32 %v9092_v56, %v9090_v7 }
 0x4de   :  { %v3759_v42 = vpop.f32.mrf.mxu0  ;;  %v10478_v62 = vadd.f32 %v4023_v41, %v3935_v63  ;;  %3887 = vmatmul.bf16.gmra.mxu1 %v12009_v48 }
 0x4df   :  { %v3760_v2 = vadd.f32 %v3759_v42, %v10467_v26  ;;  %3319 = vadd.xlane.f32.xlu0 %v3318_v59 }
 0x4e0   :  { %3976 = vmatmul.bf16.gmra.mxu2 %v12010_v52 }
 0x4e1   :  { %v3849_v23 = vadd.f32 %v3848_v29, %v3760_v2  ;;  %3798 = vmatmul.bf16.gmra.mxu0 %v12008_v6  ;;  %v8722_v6 = vld [vmem:[#allocation4 + $0x254] sm:$0xf] }
 0x4e2   :  { %4065 = vmatmul.bf16.gmra.mxu3 %v12011_v3  ;;  %v12014_v3 = vld [vmem:[#allocation40_spill] sm:$0xff] }
 0x4e3   :  { %v3937_v5 = vpop.f32.mrf.mxu2  ;;  %v3850_v56 = vpop.f32.mrf.mxu1 }
 0x4e4   :  { %v3938_v8 = vadd.f32 %v3937_v5, %v3849_v23  ;;  %v12015_v23 = vld [vmem:[#allocation41_spill] sm:$0xff]  ;;  %v12016_v5 = vld [vmem:[#allocation42_spill] sm:$0xff] }
 0x4e5   :  { %v4026_v4 = vpop.f32.mrf.mxu3 }
 0x4e6   :  { %v3761_v7 = vpop.f32.mrf.mxu0  ;;  %v10485_v63 = vadd.f32 %v4026_v4, %v3938_v8 }
 0x4e7   :  { %v3762_v47 = vadd.f32 %v3761_v7, %v10467_v26  ;;  %v12017_v7 = vld [vmem:[#allocation43_spill] sm:$0xff] }
 0x4e8   :  { %12012 = vst [vmem:[#allocation78_spill] sm:$0xff] %v10485_v63  ;;  %v8012_v63 = vld [vmem:[#allocation4 + $0x670] sm:$0xf0] }
 0x4e9   :  { %v3851_v29 = vadd.f32 %v3850_v56, %v3762_v47 }
 0x4eb   :  { %v3939_v41 = vpop.f32.mrf.mxu2  ;;  %v3853_v60 = vpop.f32.mrf.mxu1 }
 0x4ec   :  { %v3940_v42 = vadd.f32 %v3939_v41, %v3851_v29 }
 0x4ed   :  { %v4028_v2 = vpop.f32.mrf.mxu3 }
 0x4ee   :  { %v3764_v59 = vpop.f32.mrf.mxu0  ;;  %v10488_v52 = vadd.f32 %v4028_v2, %v3940_v42  ;;  %3892 = vmatmul.bf16.gmra.mxu1 %v12015_v23  ;;  %v8738_v42 = vld [vmem:[#allocation4 + $0x454] sm:$0xf] }
 0x4ef   :  { %v3765_v21 = vadd.f32 %v3764_v59, %v10467_v26  ;;  %v7948_v2 = vld [vmem:[#allocation4 + $0x470] sm:$0xf0] }
 0x4f0   :  { %12013 = vst [vmem:[#allocation39_spill] sm:$0xff] %v10488_v52  ;;  %3981 = vmatmul.bf16.gmra.mxu2 %v12016_v5  ;;  %v7820_v52 = vld [vmem:[#allocation4 + $0x70] sm:$0xf0] }
 0x4f1   :  { %v3854_v46 = vadd.f32 %v3853_v60, %v3765_v21  ;;  %3803 = vmatmul.bf16.gmra.mxu0 %v12014_v3  ;;  %v8706_v21 = vld [vmem:[#allocation4 + $0x54] sm:$0xf]  ;;  %v7951_v3 = vor.u32 %v8738_v42, %v7948_v2 }
 0x4f2   :  { %4070 = vmatmul.bf16.gmra.mxu3 %v12017_v7  ;;  %v8754_v23 = vld [vmem:[#allocation4 + $0x654] sm:$0xf]  ;;  %v7823_v5 = vor.u32 %v8706_v21, %v7820_v52  ;;  %v12019_v52 = vld [vmem:[#allocation47_spill] sm:$0xff] }
 0x4f3   :  { %v3942_v8 = vpop.f32.mrf.mxu2  ;;  %v3855_v41 = vpop.f32.mrf.mxu1  ;;  %v8015_v48 = vor.u32 %v8754_v23, %v8012_v63  ;;  %4285 = vmatpush.bf16.msrb.mxu2 %v7951_v3  ;;  %v12020_v3 = vld [vmem:[#allocation48_spill] sm:$0xff] }
 0x4f4   :  { %v3943_v4 = vadd.f32 %v3942_v8, %v3854_v46  ;;  %4107 = vmatpush.bf16.msrb.mxu0 %v7823_v5 }
 0x4f5   :  { %v4031_v47 = vpop.f32.mrf.mxu3  ;;  %4374 = vmatpush.bf16.msrb.mxu3 %v8015_v48  ;;  %v12021_v48 = vld [vmem:[#allocation49_spill] sm:$0xff] }
 0x4f6   :  { %v3766_v56 = vpop.f32.mrf.mxu0  ;;  %v10495_v59 = vadd.f32 %v4031_v47, %v3943_v4 }
 0x4f7   :  { %v3767_v29 = vadd.f32 %v3766_v56, %v10467_v26 }
 0x4f8   :  { %12018 = vst [vmem:[#allocation44_spill] sm:$0xff] %v10495_v59 }
 0x4f9   :  { %v3856_v60 = vadd.f32 %v3855_v41, %v3767_v29  ;;  %v7884_v29 = vld [vmem:[#allocation4 + $0x270] sm:$0xf0] }
 0x4fa   :  { %v7887_v42 = vor.u32 %v8722_v6, %v7884_v29 }
 0x4fb   :  { %v3944_v46 = vpop.f32.mrf.mxu2  ;;  %v3858_v47 = vpop.f32.mrf.mxu1 }
 0x4fc   :  { %v3945_v8 = vadd.f32 %v3944_v46, %v3856_v60  ;;  %4196 = vmatpush.bf16.msrb.mxu1 %v7887_v42 }
 0x4fd   :  { %v4033_v7 = vpop.f32.mrf.mxu3 }
 0x4fe   :  { %v3769_v56 = vpop.f32.mrf.mxu0  ;;  %v10498_v59 = vadd.f32 %v4033_v7, %v3945_v8  ;;  %3897 = vmatmul.bf16.gmra.mxu1 %v12019_v52 }
 0x4ff   :  { %v3770_v4 = vadd.f32 %v3769_v56, %v10467_v26 }
 0x500   :  { %3986 = vmatmul.bf16.gmra.mxu2 %v12020_v3 }
 0x501   :  { %v3859_v41 = vadd.f32 %v3858_v47, %v3770_v4  ;;  %3808 = vmatmul.bf16.gmra.mxu0 %v11964_v1  ;;  %v8720_v1 = vld [vmem:[#allocation4 + $0x214] sm:$0xf] }
 0x502   :  { %4075 = vmatmul.bf16.gmra.mxu3 %v12021_v48  ;;  %v12024_v48 = vld [vmem:[#allocation52_spill] sm:$0xff] }
 0x503   :  { %v3947_v63 = vpop.f32.mrf.mxu2  ;;  %v3860_v21 = vpop.f32.mrf.mxu1 }
 0x504   :  { %v3948_v23 = vadd.f32 %v3947_v63, %v3859_v41  ;;  %v12025_v41 = vld [vmem:[#allocation53_spill] sm:$0xff]  ;;  %v12026_v63 = vld [vmem:[#allocation54_spill] sm:$0xff] }
 0x505   :  { %v4036_v5 = vpop.f32.mrf.mxu3 }
 0x506   :  { %v3771_v2 = vpop.f32.mrf.mxu0  ;;  %v10505_v60 = vadd.f32 %v4036_v5, %v3948_v23 }
 0x507   :  { %v3772_v7 = vadd.f32 %v3771_v2, %v10467_v26  ;;  %v12027_v2 = vld [vmem:[#allocation55_spill] sm:$0xff] }
 0x508   :  { %12022 = vst [vmem:[#allocation45_spill] sm:$0xff] %v10505_v60  ;;  %v8004_v60 = vld [vmem:[#allocation4 + $0x630] sm:$0xf0] }
 0x509   :  { %v3861_v46 = vadd.f32 %v3860_v21, %v3772_v7 }
 0x50b   :  { %v3949_v8 = vpop.f32.mrf.mxu2  ;;  %v3863_v29 = vpop.f32.mrf.mxu1 }
 0x50c   :  { %v3950_v56 = vadd.f32 %v3949_v8, %v3861_v46 }
 0x50d   :  { %v4038_v6 = vpop.f32.mrf.mxu3 }
 0x50e   :  { %v3774_v4 = vpop.f32.mrf.mxu0  ;;  %v10508_v3 = vadd.f32 %v4038_v6, %v3950_v56  ;;  %3902 = vmatmul.bf16.gmra.mxu1 %v12025_v41  ;;  %v8736_v56 = vld [vmem:[#allocation4 + $0x414] sm:$0xf] }
 0x50f   :  { %v3775_v47 = vadd.f32 %v3774_v4, %v10467_v26  ;;  %v7940_v6 = vld [vmem:[#allocation4 + $0x430] sm:$0xf0] }
 0x510   :  { %12023 = vst [vmem:[#allocation50_spill] sm:$0xff] %v10508_v3  ;;  %3991 = vmatmul.bf16.gmra.mxu2 %v12026_v63  ;;  %v7812_v3 = vld [vmem:[#allocation4 + $0x30] sm:$0xf0] }
 0x511   :  { %v3864_v42 = vadd.f32 %v3863_v29, %v3775_v47  ;;  %3813 = vmatmul.bf16.gmra.mxu0 %v12024_v48  ;;  %v8704_v47 = vld [vmem:[#allocation4 + $0x14] sm:$0xf]  ;;  %v7943_v48 = vor.u32 %v8736_v56, %v7940_v6 }
 0x512   :  { %4080 = vmatmul.bf16.gmra.mxu3 %v12027_v2  ;;  %v8752_v41 = vld [vmem:[#allocation4 + $0x614] sm:$0xf]  ;;  %v7815_v63 = vor.u32 %v8704_v47, %v7812_v3  ;;  %v12029_v3 = vld [vmem:[#allocation59_spill] sm:$0xff] }
 0x513   :  { %v3952_v23 = vpop.f32.mrf.mxu2  ;;  %v3865_v8 = vpop.f32.mrf.mxu1  ;;  %v8007_v52 = vor.u32 %v8752_v41, %v8004_v60  ;;  %4286 = vmatpush.bf16.msrb.mxu2 %v7943_v48  ;;  %v12030_v48 = vld [vmem:[#allocation60_spill] sm:$0xff] }
 0x514   :  { %v3953_v5 = vadd.f32 %v3952_v23, %v3864_v42  ;;  %4108 = vmatpush.bf16.msrb.mxu0 %v7815_v63 }
 0x515   :  { %v4041_v7 = vpop.f32.mrf.mxu3  ;;  %4375 = vmatpush.bf16.msrb.mxu3 %v8007_v52  ;;  %v12031_v52 = vld [vmem:[#allocation61_spill] sm:$0xff] }
 0x516   :  { %v3776_v21 = vpop.f32.mrf.mxu0  ;;  %v10515_v4 = vadd.f32 %v4041_v7, %v3953_v5 }
 0x517   :  { %v3777_v46 = vadd.f32 %v3776_v21, %v10467_v26 }
 0x518   :  { %12028 = vst [vmem:[#allocation51_spill] sm:$0xff] %v10515_v4 }
 0x519   :  { %v3866_v29 = vadd.f32 %v3865_v8, %v3777_v46  ;;  %v7876_v46 = vld [vmem:[#allocation4 + $0x230] sm:$0xf0] }
 0x51a   :  { %v7879_v56 = vor.u32 %v8720_v1, %v7876_v46 }
 0x51b   :  { %v3954_v42 = vpop.f32.mrf.mxu2  ;;  %v3868_v7 = vpop.f32.mrf.mxu1 }
 0x51c   :  { %v3955_v23 = vadd.f32 %v3954_v42, %v3866_v29  ;;  %4197 = vmatpush.bf16.msrb.mxu1 %v7879_v56 }
 0x51d   :  { %v4043_v2 = vpop.f32.mrf.mxu3 }
 0x51e   :  { %v3779_v21 = vpop.f32.mrf.mxu0  ;;  %v10518_v4 = vadd.f32 %v4043_v2, %v3955_v23  ;;  %3907 = vmatmul.bf16.gmra.mxu1 %v12029_v3 }
 0x51f   :  { %v3780_v5 = vadd.f32 %v3779_v21, %v10467_v26 }
 0x520   :  { %3996 = vmatmul.bf16.gmra.mxu2 %v12030_v48 }
 0x521   :  { %v3869_v8 = vadd.f32 %v3868_v7, %v3780_v5  ;;  %3818 = vmatmul.bf16.gmra.mxu0 %v11975_v40  ;;  %v8314_v40 = vld [vmem:[#allocation4 + $0x3d8] sm:$0xf] }
 0x522   :  { %4085 = vmatmul.bf16.gmra.mxu3 %v12031_v52  ;;  %v12034_v52 = vld [vmem:[#allocation64_spill] sm:$0xff] }
 0x523   :  { %v3957_v60 = vpop.f32.mrf.mxu2  ;;  %v3870_v47 = vpop.f32.mrf.mxu1 }
 0x524   :  { %v3958_v41 = vadd.f32 %v3957_v60, %v3869_v8  ;;  %v12035_v8 = vld [vmem:[#allocation65_spill] sm:$0xff]  ;;  %v12036_v60 = vld [vmem:[#allocation66_spill] sm:$0xff] }
 0x525   :  { %v4046_v63 = vpop.f32.mrf.mxu3 }
 0x526   :  { %v3781_v6 = vpop.f32.mrf.mxu0  ;;  %v10525_v29 = vadd.f32 %v4046_v63, %v3958_v41 }
 0x527   :  { %v3782_v2 = vadd.f32 %v3781_v6, %v10467_v26  ;;  %v12037_v6 = vld [vmem:[#allocation67_spill] sm:$0xff] }
 0x528   :  { %12032 = vst [vmem:[#allocation56_spill] sm:$0xff] %v10525_v29  ;;  %v8831_v29 = vld [vmem:[#allocation4 + $0x7f4] sm:$0xf0] }
 0x529   :  { %v3871_v42 = vadd.f32 %v3870_v47, %v3782_v2 }
 0x52b   :  { %v3959_v23 = vpop.f32.mrf.mxu2  ;;  %v3873_v46 = vpop.f32.mrf.mxu1 }
 0x52c   :  { %v3960_v21 = vadd.f32 %v3959_v23, %v3871_v42 }
 0x52d   :  { %v4048_v1 = vpop.f32.mrf.mxu3 }
 0x52e   :  { %v3784_v5 = vpop.f32.mrf.mxu0  ;;  %v10528_v48 = vadd.f32 %v4048_v1, %v3960_v21  ;;  %3912 = vmatmul.bf16.gmra.mxu1 %v12035_v8  ;;  %v8378_v21 = vld [vmem:[#allocation4 + $0x5d8] sm:$0xf] }
 0x52f   :  { %v3785_v7 = vadd.f32 %v3784_v5, %v10467_v26  ;;  %v8815_v1 = vld [vmem:[#allocation4 + $0x5f4] sm:$0xf0] }
 0x530   :  { %12033 = vst [vmem:[#allocation57_spill] sm:$0xff] %v10528_v48  ;;  %4001 = vmatmul.bf16.gmra.mxu2 %v12036_v60  ;;  %v8783_v48 = vld [vmem:[#allocation4 + $0x1f4] sm:$0xf0] }
 0x531   :  { %v3874_v56 = vadd.f32 %v3873_v46, %v3785_v7  ;;  %3823 = vmatmul.bf16.gmra.mxu0 %v12034_v52  ;;  %v8250_v7 = vld [vmem:[#allocation4 + $0x1d8] sm:$0xf]  ;;  %v8379_v52 = vor.u32 %v8815_v1, %v8378_v21 }
 0x532   :  { %4090 = vmatmul.bf16.gmra.mxu3 %v12037_v6  ;;  %v8442_v8 = vld [vmem:[#allocation4 + $0x7d8] sm:$0xf]  ;;  %v8251_v60 = vor.u32 %v8783_v48, %v8250_v7 }
 0x533   :  { %v3962_v41 = vpop.f32.mrf.mxu2  ;;  %v3875_v23 = vpop.f32.mrf.mxu1  ;;  %v8443_v3 = vor.u32 %v8831_v29, %v8442_v8  ;;  %5475 = vmatpush.bf16.msra.mxu2 %v8379_v52 }
 0x534   :  { %v3963_v63 = vadd.f32 %v3962_v41, %v3874_v56  ;;  %5297 = vmatpush.bf16.msra.mxu0 %v8251_v60 }
 0x535   :  { %v4051_v2 = vpop.f32.mrf.mxu3  ;;  %5564 = vmatpush.bf16.msra.mxu3 %v8443_v3 }
 0x536   :  { %v3786_v47 = vpop.f32.mrf.mxu0  ;;  %v10535_v5 = vadd.f32 %v4051_v2, %v3963_v63 }
 0x537   :  { %v3787_v42 = vadd.f32 %v3786_v47, %v10467_v26 }
 0x538   :  { %12038 = vst [vmem:[#allocation62_spill] sm:$0xff] %v10535_v5 }
 0x539   :  { %v3876_v46 = vadd.f32 %v3875_v23, %v3787_v42  ;;  %v8799_v42 = vld [vmem:[#allocation4 + $0x3f4] sm:$0xf0] }
 0x53a   :  { %v8315_v21 = vor.u32 %v8799_v42, %v8314_v40  ;;  %v12039_v42 = vld [vmem:[#allocation12_spill] sm:$0xff] }
 0x53b   :  { %v3964_v56 = vpop.f32.mrf.mxu2  ;;  %v3878_v2 = vpop.f32.mrf.mxu1 }
 0x53c   :  { %v3965_v41 = vadd.f32 %v3964_v56, %v3876_v46  ;;  %5386 = vmatpush.bf16.msra.mxu1 %v8315_v21 }
 0x53d   :  { %v4053_v6 = vpop.f32.mrf.mxu3 }
 0x53e   :  { %v3789_v47 = vpop.f32.mrf.mxu0  ;;  %v10538_v5 = vadd.f32 %v4053_v6, %v3965_v41  ;;  %3917 = vmatmul.bf16.gmra.mxu1 %v9940_v39 }
 0x53f   :  { %v3790_v63 = vadd.f32 %v3789_v47, %v10467_v26 }
 0x540   :  { %4006 = vmatmul.bf16.gmra.mxu2 %v9942_v10 }
 0x541   :  { %v3879_v23 = vadd.f32 %v3878_v2, %v3790_v63  ;;  %3828 = vmatmul.bf16.gmra.mxu0 %v9938_v9 }
 0x542   :  { %4095 = vmatmul.bf16.gmra.mxu3 %v9945_v38 }
 0x543   :  { %v3967_v3 = vpop.f32.mrf.mxu2  ;;  %v3880_v60 = vpop.f32.mrf.mxu1 }
 0x544   :  { %v3968_v48 = vadd.f32 %v3967_v3, %v3879_v23 }
 0x545   :  { %v4056_v52 = vpop.f32.mrf.mxu3 }
 0x546   :  { %v3791_v29 = vpop.f32.mrf.mxu0  ;;  %v10545_v6 = vadd.f32 %v4056_v52, %v3968_v48 }
 0x547   :  { %v3792_v8 = vadd.f32 %v3791_v29, %v10467_v26 }
 0x549   :  { %v3881_v1 = vadd.f32 %v3880_v60, %v3792_v8  ;;  %v8370_v60 = vld [vmem:[#allocation4 + $0x598] sm:$0xf] }
 0x54b   :  { %v3969_v7 = vpop.f32.mrf.mxu2  ;;  %v3883_v47 = vpop.f32.mrf.mxu1 }
 0x54c   :  { %v3970_v46 = vadd.f32 %v3969_v7, %v3881_v1  ;;  %v8813_v1 = vld [vmem:[#allocation4 + $0x5b4] sm:$0xf0] }
 0x54d   :  { %v4058_v40 = vpop.f32.mrf.mxu3  ;;  %v8242_v7 = vld [vmem:[#allocation4 + $0x198] sm:$0xf] }
 0x54e   :  { %v3794_v56 = vpop.f32.mrf.mxu0  ;;  %v10548_v63 = vadd.f32 %v4058_v40, %v3970_v46  ;;  %4198 = vmatmul.bf16.vlgmr.msrb.gmra.mxu1 %v11987_v43  ;;  %v8371_v40 = vor.u32 %v8813_v1, %v8370_v60 }
 0x54f   :  { %v3795_v41 = vadd.f32 %v3794_v56, %v10467_v26  ;;  %v8781_v56 = vld [vmem:[#allocation4 + $0x1b4] sm:$0xf0] }
 0x550   :  { %4287 = vmatmul.bf16.vlgmr.msrb.gmra.mxu2 %v11988_v28  ;;  %v8243_v28 = vor.u32 %v8781_v56, %v8242_v7 }
 0x551   :  { %v3884_v2 = vadd.f32 %v3883_v47, %v3795_v41  ;;  %4109 = vmatmul.bf16.vlgmr.msrb.gmra.mxu0 %v11986_v27  ;;  %v8434_v41 = vld [vmem:[#allocation4 + $0x798] sm:$0xf]  ;;  %5476 = vmatpush.bf16.msra.mxu2 %v8371_v40 }
 0x552   :  { %4376 = vmatmul.bf16.vlgmr.msrb.gmra.mxu3 %v12039_v42  ;;  %v8829_v47 = vld [vmem:[#allocation4 + $0x7b4] sm:$0xf0]  ;;  %5298 = vmatpush.bf16.msra.mxu0 %v8243_v28 }
 0x553   :  { %v3972_v23 = vpop.f32.mrf.mxu2  ;;  %v3885_v29 = vpop.f32.mrf.mxu1  ;;  %v8435_v43 = vor.u32 %v8829_v47, %v8434_v41  ;;  %v8306_v27 = vld [vmem:[#allocation4 + $0x398] sm:$0xf] }
 0x554   :  { %v3973_v21 = vadd.f32 %v3972_v23, %v3884_v2 }
 0x555   :  { %v4061_v3 = vpop.f32.mrf.mxu3  ;;  %5565 = vmatpush.bf16.msra.mxu3 %v8435_v43 }
 0x556   :  { %v3796_v48 = vpop.f32.mrf.mxu0  ;;  %v10555_v8 = vadd.f32 %v4061_v3, %v3973_v21 }
 0x557   :  { %v3797_v52 = vadd.f32 %v3796_v48, %v10467_v26 }
 0x558   :  { %12040 = vst [vmem:[#allocation63_spill] sm:$0xff] %v10555_v8 }
 0x559   :  { %v3886_v46 = vadd.f32 %v3885_v29, %v3797_v52  ;;  %v8797_v52 = vld [vmem:[#allocation4 + $0x3b4] sm:$0xf0] }
 0x55a   :  { %v8307_v60 = vor.u32 %v8797_v52, %v8306_v27 }
 0x55b   :  { %v3974_v2 = vpop.f32.mrf.mxu2  ;;  %v3888_v3 = vpop.f32.mrf.mxu1 }
 0x55c   :  { %v3975_v23 = vadd.f32 %v3974_v2, %v3886_v46  ;;  %5387 = vmatpush.bf16.msra.mxu1 %v8307_v60 }
 0x55d   :  { %v4063_v42 = vpop.f32.mrf.mxu3 }
 0x55e   :  { %v3799_v48 = vpop.f32.mrf.mxu0  ;;  %v10558_v8 = vadd.f32 %v4063_v42, %v3975_v23  ;;  %4203 = vmatmul.bf16.gmra.mxu1 %v9730_v13 }
 0x55f   :  { %v3800_v21 = vadd.f32 %v3799_v48, %v10467_v26 }
 0x560   :  { %4292 = vmatmul.bf16.gmra.mxu2 %v9732_v14 }
 0x561   :  { %v3889_v29 = vadd.f32 %v3888_v3, %v3800_v21  ;;  %4114 = vmatmul.bf16.gmra.mxu0 %v9728_v12 }
 0x562   :  { %4381 = vmatmul.bf16.gmra.mxu3 %v9734_v15 }
 0x563   :  { %v3977_v43 = vpop.f32.mrf.mxu2  ;;  %v3890_v46 = vpop.f32.mrf.mxu1 }
 0x564   :  { %v3978_v28 = vadd.f32 %v3977_v43, %v3889_v29 }
 0x565   :  { %v4066_v1 = vpop.f32.mrf.mxu3 }
 0x566   :  { %v3801_v7 = vpop.f32.mrf.mxu0  ;;  %v10565_v40 = vadd.f32 %v4066_v1, %v3978_v28 }
 0x567   :  { %v3802_v42 = vadd.f32 %v3801_v7, %v10467_v26 }
 0x569   :  { %v3891_v56 = vadd.f32 %v3890_v46, %v3802_v42  ;;  %v8362_v42 = vld [vmem:[#allocation4 + $0x558] sm:$0xf] }
 0x56a   :  { %v8811_v46 = vld [vmem:[#allocation4 + $0x574] sm:$0xf0] }
 0x56b   :  { %v3979_v41 = vpop.f32.mrf.mxu2  ;;  %v3893_v48 = vpop.f32.mrf.mxu1 }
 0x56c   :  { %v3980_v47 = vadd.f32 %v3979_v41, %v3891_v56  ;;  %v8234_v56 = vld [vmem:[#allocation4 + $0x158] sm:$0xf] }
 0x56d   :  { %v4068_v27 = vpop.f32.mrf.mxu3 }
 0x56e   :  { %v3804_v2 = vpop.f32.mrf.mxu0  ;;  %v10568_v21 = vadd.f32 %v4068_v27, %v3980_v47  ;;  %4208 = vmatmul.bf16.gmra.mxu1 %v11991_v11  ;;  %v8363_v47 = vor.u32 %v8811_v46, %v8362_v42  ;;  %v8779_v27 = vld [vmem:[#allocation4 + $0x174] sm:$0xf0] }
 0x56f   :  { %v3805_v23 = vadd.f32 %v3804_v2, %v10467_v26  ;;  %v8426_v2 = vld [vmem:[#allocation4 + $0x758] sm:$0xf] }
 0x570   :  { %4297 = vmatmul.bf16.gmra.mxu2 %v11992_v22  ;;  %v8298_v11 = vld [vmem:[#allocation4 + $0x358] sm:$0xf] }
 0x571   :  { %v3894_v3 = vadd.f32 %v3893_v48, %v3805_v23  ;;  %4119 = vmatmul.bf16.gmra.mxu0 %v9740_v24  ;;  %v8827_v23 = vld [vmem:[#allocation4 + $0x774] sm:$0xf0]  ;;  %v8235_v48 = vor.u32 %v8779_v27, %v8234_v56  ;;  %5477 = vmatpush.bf16.msra.mxu2 %v8363_v47 }
 0x572   :  { %4386 = vmatmul.bf16.gmra.mxu3 %v11994_v16  ;;  %v8427_v22 = vor.u32 %v8827_v23, %v8426_v2 }
 0x573   :  { %v3982_v52 = vpop.f32.mrf.mxu2  ;;  %v3895_v1 = vpop.f32.mrf.mxu1  ;;  %5299 = vmatpush.bf16.msra.mxu0 %v8235_v48 }
 0x574   :  { %v3983_v29 = vadd.f32 %v3982_v52, %v3894_v3  ;;  %5566 = vmatpush.bf16.msra.mxu3 %v8427_v22 }
 0x575   :  { %v4071_v60 = vpop.f32.mrf.mxu3 }
 0x576   :  { %v3806_v43 = vpop.f32.mrf.mxu0  ;;  %v10575_v7 = vadd.f32 %v4071_v60, %v3983_v29 }
 0x577   :  { %v3807_v28 = vadd.f32 %v3806_v43, %v10467_v26 }
 0x578   :  { %12041 = vst [vmem:[#allocation68_spill] sm:$0xff] %v10575_v7 }
 0x579   :  { %v3896_v41 = vadd.f32 %v3895_v1, %v3807_v28  ;;  %v8795_v28 = vld [vmem:[#allocation4 + $0x374] sm:$0xf0] }
 0x57a   :  { %v8299_v42 = vor.u32 %v8795_v28, %v8298_v11 }
 0x57b   :  { %v3984_v3 = vpop.f32.mrf.mxu2  ;;  %v3898_v60 = vpop.f32.mrf.mxu1 }
 0x57c   :  { %v3985_v52 = vadd.f32 %v3984_v3, %v3896_v41  ;;  %5388 = vmatpush.bf16.msra.mxu1 %v8299_v42 }
 0x57d   :  { %v4073_v16 = vpop.f32.mrf.mxu3 }
 0x57e   :  { %v3809_v43 = vpop.f32.mrf.mxu0  ;;  %v10578_v7 = vadd.f32 %v4073_v16, %v3985_v52  ;;  %4213 = vmatmul.bf16.gmra.mxu1 %v9754_v50 }
 0x57f   :  { %v3810_v29 = vadd.f32 %v3809_v43, %v10467_v26 }
 0x580   :  { %4302 = vmatmul.bf16.gmra.mxu2 %v9756_v54 }
 0x581   :  { %v3899_v1 = vadd.f32 %v3898_v60, %v3810_v29  ;;  %4124 = vmatmul.bf16.gmra.mxu0 %v9752_v49 }
 0x582   :  { %4391 = vmatmul.bf16.gmra.mxu3 %v9758_v55 }
 0x583   :  { %v3987_v22 = vpop.f32.mrf.mxu2  ;;  %v3900_v47 = vpop.f32.mrf.mxu1 }
 0x584   :  { %v3988_v46 = vadd.f32 %v3987_v22, %v3899_v1 }
 0x585   :  { %v4076_v56 = vpop.f32.mrf.mxu3 }
 0x586   :  { %v3811_v41 = vpop.f32.mrf.mxu0  ;;  %v10585_v27 = vadd.f32 %v4076_v56, %v3988_v46 }
 0x587   :  { %v3812_v16 = vadd.f32 %v3811_v41, %v10467_v26 }
 0x589   :  { %v3901_v2 = vadd.f32 %v3900_v47, %v3812_v16  ;;  %v8354_v16 = vld [vmem:[#allocation4 + $0x518] sm:$0xf] }
 0x58a   :  { %v8809_v47 = vld [vmem:[#allocation4 + $0x534] sm:$0xf0] }
 0x58b   :  { %v3989_v23 = vpop.f32.mrf.mxu2  ;;  %v3903_v43 = vpop.f32.mrf.mxu1 }
 0x58c   :  { %v3990_v48 = vadd.f32 %v3989_v23, %v3901_v2  ;;  %v8226_v2 = vld [vmem:[#allocation4 + $0x118] sm:$0xf] }
 0x58d   :  { %v4078_v11 = vpop.f32.mrf.mxu3 }
 0x58e   :  { %v3814_v3 = vpop.f32.mrf.mxu0  ;;  %v10588_v29 = vadd.f32 %v4078_v11, %v3990_v48  ;;  %4218 = vmatmul.bf16.gmra.mxu1 %v11995_v25  ;;  %v8355_v48 = vor.u32 %v8809_v47, %v8354_v16  ;;  %v8777_v11 = vld [vmem:[#allocation4 + $0x134] sm:$0xf0] }
 0x58f   :  { %v3815_v52 = vadd.f32 %v3814_v3, %v10467_v26  ;;  %v8418_v3 = vld [vmem:[#allocation4 + $0x718] sm:$0xf] }
 0x590   :  { %4307 = vmatmul.bf16.gmra.mxu2 %v11996_v36  ;;  %v8290_v25 = vld [vmem:[#allocation4 + $0x318] sm:$0xf] }
 0x591   :  { %v3904_v60 = vadd.f32 %v3903_v43, %v3815_v52  ;;  %4129 = vmatmul.bf16.gmra.mxu0 %v9764_v0  ;;  %v8825_v52 = vld [vmem:[#allocation4 + $0x734] sm:$0xf0]  ;;  %v8227_v43 = vor.u32 %v8777_v11, %v8226_v2  ;;  %5478 = vmatpush.bf16.msra.mxu2 %v8355_v48 }
 0x592   :  { %4396 = vmatmul.bf16.gmra.mxu3 %v11998_v31  ;;  %v8419_v36 = vor.u32 %v8825_v52, %v8418_v3 }
 0x593   :  { %v3992_v28 = vpop.f32.mrf.mxu2  ;;  %v3905_v56 = vpop.f32.mrf.mxu1  ;;  %5300 = vmatpush.bf16.msra.mxu0 %v8227_v43 }
 0x594   :  { %v3993_v1 = vadd.f32 %v3992_v28, %v3904_v60  ;;  %5567 = vmatpush.bf16.msra.mxu3 %v8419_v36 }
 0x595   :  { %v4081_v42 = vpop.f32.mrf.mxu3 }
 0x596   :  { %v3816_v22 = vpop.f32.mrf.mxu0  ;;  %v10595_v41 = vadd.f32 %v4081_v42, %v3993_v1 }
 0x597   :  { %v3817_v46 = vadd.f32 %v3816_v22, %v10467_v26 }
 0x598   :  { %12042 = vst [vmem:[#allocation69_spill] sm:$0xff] %v10595_v41 }
 0x599   :  { %v3906_v23 = vadd.f32 %v3905_v56, %v3817_v46  ;;  %v8793_v46 = vld [vmem:[#allocation4 + $0x334] sm:$0xf0] }
 0x59a   :  { %v8291_v16 = vor.u32 %v8793_v46, %v8290_v25  ;;  %v10611_v46 = vpop.xlane.xlu1 %1680 }
 0x59b   :  { %v3994_v60 = vpop.f32.mrf.mxu2  ;;  %v3908_v42 = vpop.f32.mrf.mxu1 }
 0x59c   :  { %v3995_v28 = vadd.f32 %v3994_v60, %v3906_v23  ;;  %5389 = vmatpush.bf16.msra.mxu1 %v8291_v16 }
 0x59d   :  { %v4083_v31 = vpop.f32.mrf.mxu3 }
 0x59e   :  { %v3819_v22 = vpop.f32.mrf.mxu0  ;;  %v10598_v41 = vadd.f32 %v4083_v31, %v3995_v28  ;;  %4223 = vmatmul.bf16.gmra.mxu1 %v9778_v33  ;;  %v8817_v33 = vld [vmem:[#allocation4 + $0x634] sm:$0xf0] }
 0x59f   :  { %v3820_v1 = vadd.f32 %v3819_v22, %v10467_v26 }
 0x5a0   :  { %12043 = vst [vmem:[#allocation74_spill] sm:$0xff] %v10598_v41  ;;  %4312 = vmatmul.bf16.gmra.mxu2 %v9780_v34  ;;  %v8386_v34 = vld [vmem:[#allocation4 + $0x618] sm:$0xf] }
 0x5a1   :  { %v3909_v56 = vadd.f32 %v3908_v42, %v3820_v1  ;;  %4134 = vmatmul.bf16.gmra.mxu0 %v9776_v32 }
 0x5a2   :  { %4401 = vmatmul.bf16.gmra.mxu3 %v9782_v35 }
 0x5a3   :  { %v3997_v36 = vpop.f32.mrf.mxu2  ;;  %v3910_v48 = vpop.f32.mrf.mxu1 }
 0x5a4   :  { %v3998_v47 = vadd.f32 %v3997_v36, %v3909_v56 }
 0x5a5   :  { %v4086_v2 = vpop.f32.mrf.mxu3 }
 0x5a6   :  { %v3821_v23 = vpop.f32.mrf.mxu0  ;;  %v10605_v11 = vadd.f32 %v4086_v2, %v3998_v47 }
 0x5a7   :  { %v3822_v31 = vadd.f32 %v3821_v23, %v10467_v26 }
 0x5a8   :  { %12044 = vst [vmem:[#allocation75_spill] sm:$0xff] %v10605_v11 }
 0x5a9   :  { %v3911_v3 = vadd.f32 %v3910_v48, %v3822_v31  ;;  %v8346_v48 = vld [vmem:[#allocation4 + $0x4d8] sm:$0xf] }
 0x5ab   :  { %v3999_v52 = vpop.f32.mrf.mxu2  ;;  %v3913_v22 = vpop.f32.mrf.mxu1 }
 0x5ac   :  { %v4000_v43 = vadd.f32 %v3999_v52, %v3911_v3  ;;  %v8807_v3 = vld [vmem:[#allocation4 + $0x4f4] sm:$0xf0] }
 0x5ad   :  { %v4088_v25 = vpop.f32.mrf.mxu3  ;;  %v8218_v52 = vld [vmem:[#allocation4 + $0xd8] sm:$0xf] }
 0x5ae   :  { %v3824_v60 = vpop.f32.mrf.mxu0  ;;  %v10608_v1 = vadd.f32 %v4088_v25, %v4000_v43  ;;  %4228 = vmatmul.bf16.gmra.mxu1 %v11999_v57  ;;  %v10619_v43 = vpop.xlane.xlu0 %1674 }
 0x5af   :  { %v3825_v28 = vadd.f32 %v3824_v60, %v10467_v26  ;;  %v8347_v60 = vor.u32 %v8807_v3, %v8346_v48  ;;  %v10623_v57 = vpop.xlane.xlu1 %1683  ;;  %v8282_v48 = vld [vmem:[#allocation4 + $0x2d8] sm:$0xf] }
 0x5b0   :  { %12045 = vst [vmem:[#allocation76_spill] sm:$0xff] %v10608_v1  ;;  %4317 = vmatmul.bf16.gmra.mxu2 %v12000_v51  ;;  %v8823_v51 = vld [vmem:[#allocation4 + $0x6f4] sm:$0xf0] }
 0x5b1   :  { %v3914_v42 = vadd.f32 %v3913_v22, %v3825_v28  ;;  %4139 = vmatmul.bf16.gmra.mxu0 %v9788_v44  ;;  %v8775_v28 = vld [vmem:[#allocation4 + $0xf4] sm:$0xf0]  ;;  %5479 = vmatpush.bf16.msra.mxu2 %v8347_v60 }
 0x5b2   :  { %4406 = vmatmul.bf16.gmra.mxu3 %v12002_v58  ;;  %v8410_v22 = vld [vmem:[#allocation4 + $0x6d8] sm:$0xf]  ;;  %v10621_v58 = vpop.xlane.xlu2 %1686 }
 0x5b3   :  { %v4002_v56 = vpop.f32.mrf.mxu2  ;;  %v3915_v23 = vpop.f32.mrf.mxu1  ;;  %v8791_v3 = vld [vmem:[#allocation4 + $0x2f4] sm:$0xf0] }
 0x5b4   :  { %v4003_v16 = vadd.f32 %v4002_v56, %v3914_v42  ;;  %v8219_v42 = vor.u32 %v8775_v28, %v8218_v52  ;;  %v8411_v56 = vor.u32 %v8823_v51, %v8410_v22  ;;  %v8283_v51 = vor.u32 %v8791_v3, %v8282_v48 }
 0x5b5   :  { %v4091_v36 = vpop.f32.mrf.mxu3 }
 0x5b6   :  { %v3826_v47 = vpop.f32.mrf.mxu0  ;;  %v10617_v31 = vadd.f32 %v4091_v36, %v4003_v16  ;;  %5301 = vmatpush.bf16.msra.mxu0 %v8219_v42  ;;  %5568 = vmatpush.bf16.msra.mxu3 %v8411_v56  ;;  %v10631_v52 = vpop.xlane.xlu0 %1677 }
 0x5b7   :  { %v3827_v2 = vadd.f32 %v3826_v47, %v10467_v26  ;;  %5390 = vmatpush.bf16.msra.mxu1 %v8283_v51 }
 0x5b8   :  { %12046 = vst [vmem:[#allocation77_spill] sm:$0xff] %v10617_v31 }
 0x5b9   :  { %v3916_v25 = vadd.f32 %v3915_v23, %v3827_v2 }
 0x5bb   :  { %v4004_v16 = vpop.f32.mrf.mxu2  ;;  %v3918_v2 = vpop.f32.mrf.mxu1 }
 0x5bc   :  { %v4005_v36 = vadd.f32 %v4004_v16, %v3916_v25  ;;  %v10634_v25 = vpop.xlane.xlu2 %1689 }
 0x5bd   :  { %v4093_v47 = vpop.f32.mrf.mxu3 }
 0x5be   :  { %v3829_v31 = vpop.f32.mrf.mxu0  ;;  %v10626_v23 = vadd.f32 %v4093_v47, %v4005_v36  ;;  %4233 = vmatmul.bf16.gmra.mxu1 %v9802_v18  ;;  %v10641_v47 = vpop.xlane.xlu0 %1692 }
 0x5bf   :  { %v3830_v44 = vadd.f32 %v3829_v31, %v10467_v26  ;;  %v10636_v31 = vpop.xlane.xlu1 %1695 }
 0x5c0   :  { %12047 = vst [vmem:[#allocation79_spill] sm:$0xff] %v10626_v23  ;;  %4322 = vmatmul.bf16.gmra.mxu2 %v9804_v19 }
 0x5c1   :  { %v3919_v1 = vadd.f32 %v3918_v2, %v3830_v44  ;;  %4144 = vmatmul.bf16.gmra.mxu0 %v9800_v17  ;;  %v10644_v2 = vperm.slane %v10463_v53, 1  ;;  %v8402_v17 = vld [vmem:[#allocation4 + $0x698] sm:$0xf] }
 0x5c2   :  { %4411 = vmatmul.bf16.gmra.mxu3 %v9806_v20 }
 0x5c3   :  { %v4007_v60 = vpop.f32.mrf.mxu2  ;;  %v3920_v56 = vpop.f32.mrf.mxu1 }
 0x5c4   :  { %v4008_v28 = vadd.f32 %v4007_v60, %v3919_v1  ;;  %v10646_v48 = vpop.xlane.xlu2 %1698 }
 0x5c5   :  { %v4096_v22 = vpop.f32.mrf.mxu3  ;;  %12049 = vst [vmem:[#allocation81_spill] sm:$0xff] %v10646_v48 }
 0x5c6   :  { %v3831_v44 = vpop.f32.mrf.mxu0  ;;  %v10639_v16 = vadd.f32 %v4096_v22, %v4008_v28  ;;  %v10656_v53 = vpop.xlane.xlu0 %1701  ;;  %v8064_v22 = vclamps-f32 %v10475_v37, 10.0  ;;  %v8773_v37 = vld [vmem:[#allocation4 + $0xb4] sm:$0xf0] }
 0x5c7   :  { %v3832_v42 = vadd.f32 %v3831_v44, %v10467_v26  ;;  %v10648_v3 = vpop.xlane.xlu1 %1704  ;;  %12052 = vst [vmem:[#allocation84_spill] sm:$0xff] %v10656_v53  ;;  %v8769_v53 = vld [vmem:[#allocation4 + $0x34] sm:$0xf0] }
 0x5c8   :  { %12048 = vst [vmem:[#allocation80_spill] sm:$0xff] %v10639_v16  ;;  %v8210_v16 = vld [vmem:[#allocation4 + $0x98] sm:$0xf] }
 0x5c9   :  { %v3921_v36 = vadd.f32 %v3920_v56, %v3832_v42  ;;  %12050 = vst [vmem:[#allocation82_spill] sm:$0xff] %v10648_v3  ;;  %v12053_v42 = vld [vmem:[#allocation34_spill] sm:$0xff] }
 0x5cb   :  { %v4009_v51 = vpop.f32.mrf.mxu2  ;;  %v4199_v26 = vpop.f32.mrf.mxu1 }
 0x5cc   :  { %v4010_v20 = vadd.f32 %v4009_v51, %v3921_v36  ;;  %v10660_v56 = vpop.xlane.xlu2 %1707 }
 0x5cd   :  { %v4098_v1 = vpop.f32.mrf.mxu3  ;;  %12054 = vst [vmem:[#allocation85_spill] sm:$0xff] %v10660_v56  ;;  %v8211_v56 = vor.u32 %v8773_v37, %v8210_v16  ;;  %v8789_v37 = vld [vmem:[#allocation4 + $0x2b4] sm:$0xf0] }
 0x5ce   :  { %v4110_v60 = vpop.f32.mrf.mxu0  ;;  %v10651_v44 = vadd.f32 %v4098_v1, %v4010_v20  ;;  %4238 = vmatmul.bf16.gmra.mxu1 %v12005_v61 }
 0x5cf   :  { %v4111_v19 = vadd.f32 %v4110_v60, %v10644_v2  ;;  %v10662_v36 = vpop.xlane.xlu1 %1713  ;;  %5302 = vmatpush.bf16.msra.mxu0 %v8211_v56 }
 0x5d0   :  { %12051 = vst [vmem:[#allocation83_spill] sm:$0xff] %v10651_v44  ;;  %4327 = vmatmul.bf16.gmra.mxu2 %v12006_v30  ;;  %v8338_v30 = vld [vmem:[#allocation4 + $0x498] sm:$0xf] }
 0x5d1   :  { %4149 = vmatmul.bf16.gmra.mxu0 %v12004_v45  ;;  %v4200_v28 = vadd.f32 %v4199_v26, %v4111_v19  ;;  %12055 = vst [vmem:[#allocation86_spill] sm:$0xff] %v10662_v36  ;;  %v8128_v45 = vadd.f32 -10.0, %v8064_v22  ;;  %v8805_v44 = vld [vmem:[#allocation4 + $0x4b4] sm:$0xf0]  ;;  %v10665_v36 = vpop.xlane.xlu0 %1710 }
 0x5d2   :  { %4416 = vmatmul.bf16.gmra.mxu3 %v12053_v42  ;;  %v8339_v18 = vor.u32 %v8805_v44, %v8338_v30  ;;  %v8821_v42 = vld [vmem:[#allocation4 + $0x6b4] sm:$0xf0]  ;;  %12056 = vst [vmem:[#allocation87_spill] sm:$0xff] %v10665_v36 }
 0x5d3   :  { %v4288_v51 = vpop.f32.mrf.mxu2  ;;  %v4201_v19 = vpop.f32.mrf.mxu1  ;;  %v8403_v3 = vor.u32 %v8821_v42, %v8402_v17  ;;  %v8819_v36 = vld [vmem:[#allocation4 + $0x674] sm:$0xf0] }
 0x5d4   :  { %v4289_v20 = vadd.f32 %v4288_v51, %v4200_v28  ;;  %v4649_v28 = vmul.f32 1.442695, %v8128_v45  ;;  %v8066_v51 = vclamps-f32 %v10478_v62, 10.0  ;;  %5480 = vmatpush.bf16.msra.mxu2 %v8339_v18  ;;  %v10668_v22 = vpop.xlane.xlu2 %1716  ;;  %v8274_v62 = vld [vmem:[#allocation4 + $0x298] sm:$0xf] }
 0x5d5   :  { %v4377_v1 = vpop.f32.mrf.mxu3  ;;  %12057 = vst [vmem:[#allocation88_spill] sm:$0xff] %v10668_v22  ;;  %5569 = vmatpush.bf16.msra.mxu3 %v8403_v3  ;;  %v12059_v22 = vld [vmem:[#allocation35_spill] sm:$0xff]  ;;  %v12060_v3 = vld [vmem:[#allocation36_spill] sm:$0xff] }
 0x5d6   :  { %v4112_v60 = vpop.f32.mrf.mxu0  ;;  %v4378_v26 = vadd.f32 %v4377_v1, %v4289_v20  ;;  %9093 = vpow2.f32 %v4649_v28  ;;  %v8130_v17 = vadd.f32 -10.0, %v8066_v51  ;;  %v12063_v51 = vld [vmem:[#allocation78_spill] sm:$0xff] }
 0x5d7   :  { %v4113_v61 = vadd.f32 %v4112_v60, %v10644_v2  ;;  %v10670_v20 = vpop.xlane.xlu1 %1722 }
 0x5d8   :  { %v8065_v23 = vclamps-f32 %v4378_v26, 10.0  ;;  %12058 = vst [vmem:[#allocation89_spill] sm:$0xff] %v10670_v20  ;;  %v4653_v28 = vmul.f32 1.442695, %v8130_v17 }
 0x5d9   :  { %v4202_v60 = vadd.f32 %v4201_v19, %v4113_v61  ;;  %v12061_v19 = vld [vmem:[#allocation37_spill] sm:$0xff] }
 0x5da   :  { %v8129_v1 = vadd.f32 -10.0, %v8065_v23  ;;  %v8275_v23 = vor.u32 %v8789_v37, %v8274_v62 }
 0x5db   :  { %v4290_v30 = vpop.f32.mrf.mxu2  ;;  %v4204_v42 = vpop.f32.mrf.mxu1 }
 0x5dc   :  { %v4651_v44 = vmul.f32 1.442695, %v8129_v1  ;;  %v4291_v35 = vadd.f32 %v4290_v30, %v4202_v60  ;;  %v10676_v1 = vpop.xlane.xlu0 %1719  ;;  %v8068_v60 = vclamps-f32 %v12063_v51, 10.0  ;;  %v12064_v30 = vld [vmem:[#allocation38_spill] sm:$0xff]  ;;  %5391 = vmatpush.bf16.msra.mxu1 %v8275_v23 }
 0x5dd   :  { %v4379_v26 = vpop.f32.mrf.mxu3  ;;  %12062 = vst [vmem:[#allocation90_spill] sm:$0xff] %v10676_v1 }
 0x5de   :  { %v4115_v16 = vpop.f32.mrf.mxu0  ;;  %9095 = vpow2.f32 %v4651_v44  ;;  %v4380_v18 = vadd.f32 %v4379_v26, %v4291_v35  ;;  %4243 = vmatmul.bf16.gmra.mxu1 %v12060_v3  ;;  %v10680_v35 = vpop.xlane.xlu2 %1725  ;;  %v8132_v3 = vadd.f32 -10.0, %v8068_v60 }
 0x5df   :  { %v4116_v45 = vadd.f32 %v4115_v16, %v10644_v2  ;;  %12065 = vst [vmem:[#allocation78_spill] sm:$0xff] %v10680_v35  ;;  %v10682_v44 = vpop.xlane.xlu1 %1731  ;;  %v9094_v16 = vpop.eup %9093  ;;  %9097 = vpow2.f32 %v4653_v28 }
 0x5e0   :  { %v8067_v61 = vclamps-f32 %v4380_v18, 10.0  ;;  %4332 = vmatmul.bf16.gmra.mxu2 %v12061_v19  ;;  %12066 = vst [vmem:[#allocation91_spill] sm:$0xff] %v10682_v44  ;;  %v12068_v44 = vld [vmem:[#allocation39_spill] sm:$0xff] }
 0x5e1   :  { %4154 = vmatmul.bf16.gmra.mxu0 %v12059_v22  ;;  %v4205_v56 = vadd.f32 %v4204_v42, %v4116_v45  ;;  %v8070_v20 = vclamps-f32 %v12068_v44, 10.0 }
 0x5e2   :  { %4421 = vmatmul.bf16.gmra.mxu3 %v12064_v30  ;;  %v8131_v26 = vadd.f32 -10.0, %v8067_v61  ;;  %v4657_v61 = vmul.f32 1.442695, %v8132_v3 }
 0x5e3   :  { %v4293_v18 = vpop.f32.mrf.mxu2  ;;  %v4206_v17 = vpop.f32.mrf.mxu1 }
 0x5e4   :  { %v9096_v45 = vpop.eup %9095  ;;  %v4655_v42 = vmul.f32 1.442695, %v8131_v26  ;;  %v4294_v62 = vadd.f32 %v4293_v18, %v4205_v56  ;;  %v10685_v35 = vpop.xlane.xlu0 %1728 }
 0x5e5   :  { %v4382_v37 = vpop.f32.mrf.mxu3  ;;  %v4777_v22 = vadd.f32 %v9096_v45, %v9094_v16  ;;  %12067 = vst [vmem:[#allocation92_spill] sm:$0xff] %v10685_v35  ;;  %v9098_v60 = vpop.eup %9097  ;;  %v8394_v35 = vld [vmem:[#allocation4 + $0x658] sm:$0xf] }
 0x5e6   :  { %v4117_v19 = vpop.f32.mrf.mxu0  ;;  %9099 = vpow2.f32 %v4655_v42  ;;  %v4383_v51 = vadd.f32 %v4382_v37, %v4294_v62  ;;  %v10688_v1 = vpop.xlane.xlu2 %1734 }
 0x5e7   :  { %v4118_v23 = vadd.f32 %v4117_v19, %v10644_v2  ;;  %4778 = vadd.xlane.f32.xlu1 %v4777_v22  ;;  %12069 = vst [vmem:[#allocation39_spill] sm:$0xff] %v10688_v1  ;;  %v10690_v56 = vpop.xlane.xlu1 %1740  ;;  %9101 = vpow2.f32 %v4657_v61  ;;  %v8134_v22 = vadd.f32 -10.0, %v8070_v20  ;;  %v12071_v1 = vld [vmem:[#allocation40_spill] sm:$0xff] }
 0x5e8   :  { %v8069_v30 = vclamps-f32 %v4383_v51, 10.0  ;;  %12070 = vst [vmem:[#allocation93_spill] sm:$0xff] %v10690_v56  ;;  %v12073_v56 = vld [vmem:[#allocation42_spill] sm:$0xff]  ;;  %v12075_v61 = vld [vmem:[#allocation44_spill] sm:$0xff] }
 0x5e9   :  { %v4207_v28 = vadd.f32 %v4206_v17, %v4118_v23  ;;  %v12072_v23 = vld [vmem:[#allocation41_spill] sm:$0xff]  ;;  %v8072_v20 = vclamps-f32 %v12075_v61, 10.0 }
 0x5ea   :  { %v8133_v26 = vadd.f32 -10.0, %v8069_v30 }
 0x5eb   :  { %v4295_v18 = vpop.f32.mrf.mxu2  ;;  %v4209_v3 = vpop.f32.mrf.mxu1 }
 0x5ec   :  { %v9100_v16 = vpop.eup %9099  ;;  %v4659_v45 = vmul.f32 1.442695, %v8133_v26  ;;  %v4296_v42 = vadd.f32 %v4295_v18, %v4207_v28  ;;  %v10696_v26 = vpop.xlane.xlu0 %1737  ;;  %v4661_v28 = vmul.f32 1.442695, %v8134_v22  ;;  %v12076_v18 = vld [vmem:[#allocation43_spill] sm:$0xff] }
 0x5ed   :  { %v4384_v62 = vpop.f32.mrf.mxu3  ;;  %v4780_v51 = vadd.f32 %v9100_v16, %v9098_v60  ;;  %12074 = vst [vmem:[#allocation94_spill] sm:$0xff] %v10696_v26 }
 0x5ee   :  { %v4120_v19 = vpop.f32.mrf.mxu0  ;;  %9103 = vpow2.f32 %v4659_v45  ;;  %v4385_v44 = vadd.f32 %v4384_v62, %v4296_v42  ;;  %4248 = vmatmul.bf16.gmra.mxu1 %v12072_v23  ;;  %v9102_v45 = vpop.eup %9101  ;;  %v8330_v23 = vld [vmem:[#allocation4 + $0x458] sm:$0xf] }
 0x5ef   :  { %v4121_v37 = vadd.f32 %v4120_v19, %v10644_v2  ;;  %4781 = vadd.xlane.f32.xlu2 %v4780_v51  ;;  %v10700_v19 = vpop.xlane.xlu2 %1743  ;;  %v10702_v60 = vpop.xlane.xlu1 %1749  ;;  %9105 = vpow2.f32 %v4661_v28 }
 0x5f0   :  { %v8071_v30 = vclamps-f32 %v4385_v44, 10.0  ;;  %4337 = vmatmul.bf16.gmra.mxu2 %v12073_v56  ;;  %12077 = vst [vmem:[#allocation44_spill] sm:$0xff] %v10700_v19  ;;  %v8136_v56 = vadd.f32 -10.0, %v8072_v20  ;;  %v8803_v19 = vld [vmem:[#allocation4 + $0x474] sm:$0xf0]  ;;  %v8074_v20 = vclamps-f32 %v10498_v59, 10.0 }
 0x5f1   :  { %4159 = vmatmul.bf16.gmra.mxu0 %v12071_v1  ;;  %v4210_v17 = vadd.f32 %v4209_v3, %v4121_v37  ;;  %12078 = vst [vmem:[#allocation95_spill] sm:$0xff] %v10702_v60  ;;  %v8202_v1 = vld [vmem:[#allocation4 + $0x58] sm:$0xf] }
 0x5f2   :  { %4426 = vmatmul.bf16.gmra.mxu3 %v12076_v18  ;;  %v8135_v16 = vadd.f32 -10.0, %v8071_v30  ;;  %v8331_v30 = vor.u32 %v8803_v19, %v8330_v23  ;;  %v8771_v60 = vld [vmem:[#allocation4 + $0x74] sm:$0xf0]  ;;  %v4665_v28 = vmul.f32 1.442695, %v8136_v56  ;;  %v8138_v56 = vadd.f32 -10.0, %v8074_v20 }
 0x5f3   :  { %v4298_v42 = vpop.f32.mrf.mxu2  ;;  %v4211_v26 = vpop.f32.mrf.mxu1 }
 0x5f4   :  { %v9104_v62 = vpop.eup %9103  ;;  %v4663_v37 = vmul.f32 1.442695, %v8135_v16  ;;  %v4299_v3 = vadd.f32 %v4298_v42, %v4210_v17  ;;  %v8203_v17 = vor.u32 %v8771_v60, %v8202_v1  ;;  %v8395_v42 = vor.u32 %v8819_v36, %v8394_v35  ;;  %v10705_v11 = vpop.xlane.xlu0 %1746  ;;  %5481 = vmatpush.bf16.msra.mxu2 %v8331_v30  ;;  %v8266_v30 = vld [vmem:[#allocation4 + $0x258] sm:$0xf] }
 0x5f5   :  { %v4387_v51 = vpop.f32.mrf.mxu3  ;;  %v4783_v22 = vadd.f32 %v9104_v62, %v9102_v45  ;;  %12079 = vst [vmem:[#allocation96_spill] sm:$0xff] %v10705_v11  ;;  %v9106_v23 = vpop.eup %9105  ;;  %v4669_v20 = vmul.f32 1.442695, %v8138_v56 }
 0x5f6   :  { %v4122_v44 = vpop.f32.mrf.mxu0  ;;  %9107 = vpow2.f32 %v4663_v37  ;;  %v4388_v61 = vadd.f32 %v4387_v51, %v4299_v3  ;;  %5303 = vmatpush.bf16.msra.mxu0 %v8203_v17  ;;  %5570 = vmatpush.bf16.msra.mxu3 %v8395_v42 }
 0x5f7   :  { %v4123_v18 = vadd.f32 %v4122_v44, %v10644_v2  ;;  %4784 = vadd.xlane.f32.xlu0 %v4783_v22  ;;  %v10708_v45 = vpop.xlane.xlu2 %1752  ;;  %v10710_v62 = vpop.xlane.xlu1 %1758  ;;  %9109 = vpow2.f32 %v4665_v28 }
 0x5f8   :  { %v8073_v16 = vclamps-f32 %v4388_v61, 10.0  ;;  %12080 = vst [vmem:[#allocation97_spill] sm:$0xff] %v10708_v45 }
 0x5f9   :  { %12081 = vst [vmem:[#allocation98_spill] sm:$0xff] %v10710_v62  ;;  %v4212_v3 = vadd.f32 %v4211_v26, %v4123_v18  ;;  %v12082_v26 = vld [vmem:[#allocation46_spill] sm:$0xff] }
 0x5fa   :  { %v8137_v37 = vadd.f32 -10.0, %v8073_v16  ;;  %v8787_v16 = vld [vmem:[#allocation4 + $0x274] sm:$0xf0] }
 0x5fb   :  { %v4300_v19 = vpop.f32.mrf.mxu2  ;;  %v4214_v60 = vpop.f32.mrf.mxu1  ;;  %v8267_v18 = vor.u32 %v8787_v16, %v8266_v30 }
 0x5fc   :  { %v9108_v51 = vpop.eup %9107  ;;  %v4667_v44 = vmul.f32 1.442695, %v8137_v37  ;;  %v4301_v1 = vadd.f32 %v4300_v19, %v4212_v3  ;;  %v12083_v37 = vld [vmem:[#allocation47_spill] sm:$0xff]  ;;  %v12084_v3 = vld [vmem:[#allocation48_spill] sm:$0xff]  ;;  %v10716_v28 = vpop.xlane.xlu0 %1755  ;;  %v12086_v19 = vld [vmem:[#allocation45_spill] sm:$0xff] }
 0x5fd   :  { %v4389_v36 = vpop.f32.mrf.mxu3  ;;  %v4786_v22 = vadd.f32 %v9108_v51, %v9106_v23  ;;  %12085 = vst [vmem:[#allocation99_spill] sm:$0xff] %v10716_v28  ;;  %v12087_v23 = vld [vmem:[#allocation49_spill] sm:$0xff]  ;;  %5392 = vmatpush.bf16.msra.mxu1 %v8267_v18 }
 0x5fe   :  { %v4125_v35 = vpop.f32.mrf.mxu0  ;;  %9111 = vpow2.f32 %v4667_v44  ;;  %v4390_v61 = vadd.f32 %v4389_v36, %v4301_v1  ;;  %4253 = vmatmul.bf16.gmra.mxu1 %v12083_v37  ;;  %v9110_v36 = vpop.eup %9109  ;;  %v8801_v37 = vld [vmem:[#allocation4 + $0x434] sm:$0xf0] }
 0x5ff   :  { %v4126_v59 = vadd.f32 %v4125_v35, %v10644_v2  ;;  %4787 = vadd.xlane.f32.xlu1 %v4786_v22  ;;  %v8076_v35 = vclamps-f32 %v12086_v19, 10.0  ;;  %v10720_v51 = vpop.xlane.xlu2 %1761  ;;  %v10722_v44 = vpop.xlane.xlu1 %1767  ;;  %9113 = vpow2.f32 %v4669_v20 }
 0x600   :  { %v8075_v17 = vclamps-f32 %v4390_v61, 10.0  ;;  %4342 = vmatmul.bf16.gmra.mxu2 %v12084_v3  ;;  %12088 = vst [vmem:[#allocation45_spill] sm:$0xff] %v10720_v51  ;;  %v12094_v3 = vld [vmem:[#allocation54_spill] sm:$0xff] }
 0x601   :  { %4164 = vmatmul.bf16.gmra.mxu0 %v12082_v26  ;;  %v4215_v42 = vadd.f32 %v4214_v60, %v4126_v59  ;;  %12089 = vst [vmem:[#allocation100_spill] sm:$0xff] %v10722_v44  ;;  %v8140_v62 = vadd.f32 -10.0, %v8076_v35  ;;  %v12091_v44 = vld [vmem:[#allocation50_spill] sm:$0xff]  ;;  %v8194_v26 = vld [vmem:[#allocation4 + $0x18] sm:$0xf] }
 0x602   :  { %4431 = vmatmul.bf16.gmra.mxu3 %v12087_v23  ;;  %v8139_v1 = vadd.f32 -10.0, %v8075_v17  ;;  %v8078_v11 = vclamps-f32 %v12091_v44, 10.0 }
 0x603   :  { %v4303_v22 = vpop.f32.mrf.mxu2  ;;  %v4216_v56 = vpop.f32.mrf.mxu1  ;;  %v4673_v17 = vmul.f32 1.442695, %v8140_v62 }
 0x604   :  { %v9112_v59 = vpop.eup %9111  ;;  %v4671_v60 = vmul.f32 1.442695, %v8139_v1  ;;  %v4304_v61 = vadd.f32 %v4303_v22, %v4215_v42  ;;  %v10725_v45 = vpop.xlane.xlu0 %1764 }
 0x605   :  { %v4392_v30 = vpop.f32.mrf.mxu3  ;;  %v4789_v28 = vadd.f32 %v9112_v59, %v9110_v36  ;;  %12090 = vst [vmem:[#allocation101_spill] sm:$0xff] %v10725_v45  ;;  %v9114_v35 = vpop.eup %9113  ;;  %v12092_v45 = vld [vmem:[#allocation52_spill] sm:$0xff] }
 0x606   :  { %v4127_v16 = vpop.f32.mrf.mxu0  ;;  %9115 = vpow2.f32 %v4671_v60  ;;  %v4393_v19 = vadd.f32 %v4392_v30, %v4304_v61 }
 0x607   :  { %v4128_v18 = vadd.f32 %v4127_v16, %v10644_v2  ;;  %4790 = vadd.xlane.f32.xlu2 %v4789_v28  ;;  %v10728_v23 = vpop.xlane.xlu2 %3226  ;;  %v10730_v42 = vpop.xlane.xlu1 %3232  ;;  %9117 = vpow2.f32 %v4673_v17  ;;  %v8142_v28 = vadd.f32 -10.0, %v8078_v11  ;;  %v12095_v17 = vld [vmem:[#allocation51_spill] sm:$0xff] }
 0x608   :  { %v8077_v51 = vclamps-f32 %v4393_v19, 10.0  ;;  %v8080_v11 = vclamps-f32 %v12095_v17, 10.0 }
 0x609   :  { %v4217_v20 = vadd.f32 %v4216_v56, %v4128_v18  ;;  %v12093_v18 = vld [vmem:[#allocation53_spill] sm:$0xff] }
 0x60a   :  { %v8141_v1 = vadd.f32 -10.0, %v8077_v51 }
 0x60b   :  { %v4305_v22 = vpop.f32.mrf.mxu2  ;;  %v4219_v62 = vpop.f32.mrf.mxu1 }
 0x60c   :  { %v9116_v36 = vpop.eup %9115  ;;  %v4675_v59 = vmul.f32 1.442695, %v8141_v1  ;;  %v4306_v60 = vadd.f32 %v4305_v22, %v4217_v20  ;;  %v10736_v1 = vpop.xlane.xlu0 %3229  ;;  %v4677_v20 = vmul.f32 1.442695, %v8142_v28  ;;  %v12096_v22 = vld [vmem:[#allocation55_spill] sm:$0xff] }
 0x60d   :  { %v4394_v61 = vpop.f32.mrf.mxu3  ;;  %v4792_v19 = vadd.f32 %v9116_v36, %v9114_v35 }
 0x60e   :  { %v4130_v30 = vpop.f32.mrf.mxu0  ;;  %9119 = vpow2.f32 %v4675_v59  ;;  %v4395_v44 = vadd.f32 %v4394_v61, %v4306_v60  ;;  %4258 = vmatmul.bf16.gmra.mxu1 %v12093_v18  ;;  %v9118_v59 = vpop.eup %9117 }
 0x60f   :  { %v4131_v16 = vadd.f32 %v4130_v30, %v10644_v2  ;;  %4793 = vadd.xlane.f32.xlu0 %v4792_v19  ;;  %v10740_v30 = vpop.xlane.xlu2 %3235  ;;  %v10742_v35 = vpop.xlane.xlu1 %3241  ;;  %9121 = vpow2.f32 %v4677_v20 }
 0x610   :  { %v8079_v51 = vclamps-f32 %v4395_v44, 10.0  ;;  %4347 = vmatmul.bf16.gmra.mxu2 %v12094_v3  ;;  %v8144_v3 = vadd.f32 -10.0, %v8080_v11  ;;  %v8082_v11 = vclamps-f32 %v10518_v4, 10.0 }
 0x611   :  { %4169 = vmatmul.bf16.gmra.mxu0 %v12092_v45  ;;  %v4220_v56 = vadd.f32 %v4219_v62, %v4131_v16  ;;  %v8322_v45 = vld [vmem:[#allocation4 + $0x418] sm:$0xf] }
 0x612   :  { %4436 = vmatmul.bf16.gmra.mxu3 %v12096_v22  ;;  %v8143_v36 = vadd.f32 -10.0, %v8079_v51  ;;  %v8323_v51 = vor.u32 %v8801_v37, %v8322_v45  ;;  %v4681_v20 = vmul.f32 1.442695, %v8144_v3 }
 0x613   :  { %v4308_v60 = vpop.f32.mrf.mxu2  ;;  %v4221_v18 = vpop.f32.mrf.mxu1 }
 0x614   :  { %v9120_v61 = vpop.eup %9119  ;;  %v4679_v16 = vmul.f32 1.442695, %v8143_v36  ;;  %v4309_v62 = vadd.f32 %v4308_v60, %v4220_v56  ;;  %v8195_v56 = vor.u32 %v8769_v53, %v8194_v26  ;;  %v8387_v60 = vor.u32 %v8817_v33, %v8386_v34  ;;  %v10745_v32 = vpop.xlane.xlu0 %3238  ;;  %5482 = vmatpush.bf16.msra.mxu2 %v8323_v51  ;;  %v8258_v51 = vld [vmem:[#allocation4 + $0x218] sm:$0xf] }
 0x615   :  { %v4397_v19 = vpop.f32.mrf.mxu3  ;;  %v4795_v28 = vadd.f32 %v9120_v61, %v9118_v59  ;;  %v9122_v45 = vpop.eup %9121  ;;  %v8146_v26 = vadd.f32 -10.0, %v8082_v11 }
 0x616   :  { %v4132_v44 = vpop.f32.mrf.mxu0  ;;  %9123 = vpow2.f32 %v4679_v16  ;;  %v4398_v17 = vadd.f32 %v4397_v19, %v4309_v62  ;;  %5304 = vmatpush.bf16.msra.mxu0 %v8195_v56  ;;  %5571 = vmatpush.bf16.msra.mxu3 %v8387_v60 }
 0x617   :  { %v4133_v22 = vadd.f32 %v4132_v44, %v10644_v2  ;;  %4796 = vadd.xlane.f32.xlu1 %v4795_v28  ;;  %v10748_v59 = vpop.xlane.xlu2 %3244  ;;  %v10750_v61 = vpop.xlane.xlu1 %3250  ;;  %9125 = vpow2.f32 %v4681_v20  ;;  %v4685_v11 = vmul.f32 1.442695, %v8146_v26 }
 0x618   :  { %v8081_v36 = vclamps-f32 %v4398_v17, 10.0  ;;  %12097 = vst [vmem:[#allocation50_spill] sm:$0xff] %v10750_v61  ;;  %v8444_v61 = vld [vmem:[#allocation4 + $0x7f8] sm:$0xf0] }
 0x619   :  { %v4222_v62 = vadd.f32 %v4221_v18, %v4133_v22  ;;  %v12098_v18 = vld [vmem:[#allocation58_spill] sm:$0xff] }
 0x61a   :  { %v8145_v16 = vadd.f32 -10.0, %v8081_v36  ;;  %v8785_v36 = vld [vmem:[#allocation4 + $0x234] sm:$0xf0] }
 0x61b   :  { %v4310_v37 = vpop.f32.mrf.mxu2  ;;  %v4224_v3 = vpop.f32.mrf.mxu1  ;;  %v8259_v22 = vor.u32 %v8785_v36, %v8258_v51 }
 0x61c   :  { %v9124_v19 = vpop.eup %9123  ;;  %v4683_v44 = vmul.f32 1.442695, %v8145_v16  ;;  %v4311_v53 = vadd.f32 %v4310_v37, %v4222_v62  ;;  %v12099_v16 = vld [vmem:[#allocation59_spill] sm:$0xff]  ;;  %v12100_v62 = vld [vmem:[#allocation60_spill] sm:$0xff]  ;;  %v10756_v20 = vpop.xlane.xlu0 %3247 }
 0x61d   :  { %v4399_v33 = vpop.f32.mrf.mxu3  ;;  %v4798_v28 = vadd.f32 %v9124_v19, %v9122_v45  ;;  %v12101_v37 = vld [vmem:[#allocation56_spill] sm:$0xff]  ;;  %v12102_v45 = vld [vmem:[#allocation61_spill] sm:$0xff]  ;;  %5393 = vmatpush.bf16.msra.mxu1 %v8259_v22 }
 0x61e   :  { %v4135_v34 = vpop.f32.mrf.mxu0  ;;  %9127 = vpow2.f32 %v4683_v44  ;;  %v4400_v17 = vadd.f32 %v4399_v33, %v4311_v53  ;;  %4263 = vmatmul.bf16.gmra.mxu1 %v12099_v16  ;;  %v9126_v33 = vpop.eup %9125 }
 0x61f   :  { %v4136_v4 = vadd.f32 %v4135_v34, %v10644_v2  ;;  %4799 = vadd.xlane.f32.xlu2 %v4798_v28  ;;  %v8084_v34 = vclamps-f32 %v12101_v37, 10.0  ;;  %v10760_v19 = vpop.xlane.xlu2 %3253  ;;  %v10762_v44 = vpop.xlane.xlu1 %3259  ;;  %9129 = vpow2.f32 %v4685_v11 }
 0x620   :  { %v8083_v56 = vclamps-f32 %v4400_v17, 10.0  ;;  %4352 = vmatmul.bf16.gmra.mxu2 %v12100_v62  ;;  %12103 = vst [vmem:[#allocation51_spill] sm:$0xff] %v10760_v19 }
 0x621   :  { %4174 = vmatmul.bf16.gmra.mxu0 %v12098_v18  ;;  %v4225_v60 = vadd.f32 %v4224_v3, %v4136_v4  ;;  %12104 = vst [vmem:[#allocation56_spill] sm:$0xff] %v10762_v44  ;;  %v8148_v62 = vadd.f32 -10.0, %v8084_v34  ;;  %v12106_v44 = vld [vmem:[#allocation57_spill] sm:$0xff] }
 0x622   :  { %4441 = vmatmul.bf16.gmra.mxu3 %v12102_v45  ;;  %v8147_v53 = vadd.f32 -10.0, %v8083_v56  ;;  %v8086_v19 = vclamps-f32 %v12106_v44, 10.0 }
 0x623   :  { %v4313_v28 = vpop.f32.mrf.mxu2  ;;  %v4226_v26 = vpop.f32.mrf.mxu1  ;;  %v4689_v56 = vmul.f32 1.442695, %v8148_v62 }
 0x624   :  { %v9128_v4 = vpop.eup %9127  ;;  %v4687_v3 = vmul.f32 1.442695, %v8147_v53  ;;  %v4314_v17 = vadd.f32 %v4313_v28, %v4225_v60  ;;  %v10765_v18 = vpop.xlane.xlu0 %3256 }
 0x625   :  { %v4402_v51 = vpop.f32.mrf.mxu3  ;;  %v4801_v16 = vadd.f32 %v9128_v4, %v9126_v33  ;;  %12105 = vst [vmem:[#allocation102_spill] sm:$0xff] %v10765_v18  ;;  %v9130_v34 = vpop.eup %9129  ;;  %v8830_v18 = vld [vmem:[#allocation4 + $0x7dc] sm:$0xf] }
 0x626   :  { %v4137_v36 = vpop.f32.mrf.mxu0  ;;  %9131 = vpow2.f32 %v4687_v3  ;;  %v4403_v37 = vadd.f32 %v4402_v51, %v4314_v17 }
 0x627   :  { %v4138_v22 = vadd.f32 %v4137_v36, %v10644_v2  ;;  %4802 = vadd.xlane.f32.xlu0 %v4801_v16  ;;  %v10768_v41 = vpop.xlane.xlu2 %3262  ;;  %v10770_v60 = vpop.xlane.xlu1 %3268  ;;  %9133 = vpow2.f32 %v4689_v56  ;;  %v8150_v16 = vadd.f32 -10.0, %v8086_v19  ;;  %v12113_v56 = vld [vmem:[#allocation62_spill] sm:$0xff] }
 0x628   :  { %v8085_v45 = vclamps-f32 %v4403_v37, 10.0  ;;  %12107 = vst [vmem:[#allocation57_spill] sm:$0xff] %v10768_v41  ;;  %v12109_v41 = vld [vmem:[#allocation64_spill] sm:$0xff]  ;;  %v8088_v19 = vclamps-f32 %v12113_v56, 10.0 }
 0x629   :  { %12108 = vst [vmem:[#allocation103_spill] sm:$0xff] %v10770_v60  ;;  %v4227_v11 = vadd.f32 %v4226_v26, %v4138_v22  ;;  %v12110_v22 = vld [vmem:[#allocation65_spill] sm:$0xff]  ;;  %v12111_v60 = vld [vmem:[#allocation66_spill] sm:$0xff] }
 0x62a   :  { %v8149_v53 = vadd.f32 -10.0, %v8085_v45 }
 0x62b   :  { %v4315_v28 = vpop.f32.mrf.mxu2  ;;  %v4229_v62 = vpop.f32.mrf.mxu1 }
 0x62c   :  { %v9132_v33 = vpop.eup %9131  ;;  %v4691_v4 = vmul.f32 1.442695, %v8149_v53  ;;  %v4316_v3 = vadd.f32 %v4315_v28, %v4227_v11  ;;  %v10776_v53 = vpop.xlane.xlu0 %3265  ;;  %v4693_v11 = vmul.f32 1.442695, %v8150_v16  ;;  %v12114_v28 = vld [vmem:[#allocation67_spill] sm:$0xff] }
 0x62d   :  { %v4404_v17 = vpop.f32.mrf.mxu3  ;;  %v4804_v37 = vadd.f32 %v9132_v33, %v9130_v34  ;;  %12112 = vst [vmem:[#allocation104_spill] sm:$0xff] %v10776_v53  ;;  %v8782_v53 = vld [vmem:[#allocation4 + $0x1dc] sm:$0xf] }
 0x62e   :  { %v4140_v51 = vpop.f32.mrf.mxu0  ;;  %9135 = vpow2.f32 %v4691_v4  ;;  %v4405_v44 = vadd.f32 %v4404_v17, %v4316_v3  ;;  %4268 = vmatmul.bf16.gmra.mxu1 %v12110_v22  ;;  %v9134_v4 = vpop.eup %9133 }
 0x62f   :  { %v4141_v36 = vadd.f32 %v4140_v51, %v10644_v2  ;;  %4805 = vadd.xlane.f32.xlu1 %v4804_v37  ;;  %v10780_v51 = vpop.xlane.xlu2 %3271  ;;  %v10782_v34 = vpop.xlane.xlu1 %3277  ;;  %9137 = vpow2.f32 %v4693_v11 }
 0x630   :  { %v8087_v45 = vclamps-f32 %v4405_v44, 10.0  ;;  %4357 = vmatmul.bf16.gmra.mxu2 %v12111_v60  ;;  %12115 = vst [vmem:[#allocation62_spill] sm:$0xff] %v10780_v51  ;;  %v8152_v60 = vadd.f32 -10.0, %v8088_v19  ;;  %v8380_v51 = vld [vmem:[#allocation4 + $0x5f8] sm:$0xf0]  ;;  %v8090_v19 = vclamps-f32 %v10538_v5, 10.0 }
 0x631   :  { %4179 = vmatmul.bf16.gmra.mxu0 %v12109_v41  ;;  %v4230_v26 = vadd.f32 %v4229_v62, %v4141_v36  ;;  %12116 = vst [vmem:[#allocation105_spill] sm:$0xff] %v10782_v34  ;;  %v8814_v41 = vld [vmem:[#allocation4 + $0x5dc] sm:$0xf] }
 0x632   :  { %4446 = vmatmul.bf16.gmra.mxu3 %v12114_v28  ;;  %v8151_v33 = vadd.f32 -10.0, %v8087_v45  ;;  %v8383_v45 = vor.u32 %v8814_v41, %v8380_v51  ;;  %v8252_v34 = vld [vmem:[#allocation4 + $0x1f8] sm:$0xf0]  ;;  %v4697_v11 = vmul.f32 1.442695, %v8152_v60  ;;  %v8154_v60 = vadd.f32 -10.0, %v8090_v19 }
 0x633   :  { %v4318_v3 = vpop.f32.mrf.mxu2  ;;  %v4231_v22 = vpop.f32.mrf.mxu1  ;;  %v8092_v19 = vclamps-f32 %v10545_v6, 10.0 }
 0x634   :  { %v9136_v17 = vpop.eup %9135  ;;  %v4695_v36 = vmul.f32 1.442695, %v8151_v33  ;;  %v4319_v62 = vadd.f32 %v4318_v3, %v4230_v26  ;;  %v8255_v26 = vor.u32 %v8782_v53, %v8252_v34  ;;  %v8447_v3 = vor.u32 %v8830_v18, %v8444_v61  ;;  %v10785_v48 = vpop.xlane.xlu0 %3274  ;;  %5831 = vmatpush.bf16.msrb.mxu2 %v8383_v45  ;;  %v8798_v45 = vld [vmem:[#allocation4 + $0x3dc] sm:$0xf] }
 0x635   :  { %v4407_v37 = vpop.f32.mrf.mxu3  ;;  %v4807_v16 = vadd.f32 %v9136_v17, %v9134_v4  ;;  %v9138_v41 = vpop.eup %9137 }
 0x636   :  { %v4142_v44 = vpop.f32.mrf.mxu0  ;;  %9139 = vpow2.f32 %v4695_v36  ;;  %v4408_v56 = vadd.f32 %v4407_v37, %v4319_v62  ;;  %5653 = vmatpush.bf16.msrb.mxu0 %v8255_v26  ;;  %5920 = vmatpush.bf16.msrb.mxu3 %v8447_v3 }
 0x637   :  { %v4143_v28 = vadd.f32 %v4142_v44, %v10644_v2  ;;  %4808 = vadd.xlane.f32.xlu2 %v4807_v16  ;;  %v10788_v4 = vpop.xlane.xlu2 %3280  ;;  %v10790_v17 = vpop.xlane.xlu1 %3286  ;;  %9141 = vpow2.f32 %v4697_v11  ;;  %v4701_v11 = vmul.f32 1.442695, %v8154_v60 }
 0x638   :  { %v8089_v33 = vclamps-f32 %v4408_v56, 10.0 }
 0x639   :  { %v4232_v62 = vadd.f32 %v4231_v22, %v4143_v28 }
 0x63a   :  { %v8153_v36 = vadd.f32 -10.0, %v8089_v33  ;;  %v8316_v33 = vld [vmem:[#allocation4 + $0x3f8] sm:$0xf0] }
 0x63b   :  { %v4320_v51 = vpop.f32.mrf.mxu2  ;;  %v4234_v34 = vpop.f32.mrf.mxu1  ;;  %v8319_v22 = vor.u32 %v8798_v45, %v8316_v33 }
 0x63c   :  { %v9140_v37 = vpop.eup %9139  ;;  %v4699_v44 = vmul.f32 1.442695, %v8153_v36  ;;  %v4321_v53 = vadd.f32 %v4320_v51, %v4232_v62  ;;  %v10796_v3 = vpop.xlane.xlu0 %3283 }
 0x63d   :  { %v4409_v61 = vpop.f32.mrf.mxu3  ;;  %v4810_v16 = vadd.f32 %v9140_v37, %v9138_v41  ;;  %5742 = vmatpush.bf16.msrb.mxu1 %v8319_v22  ;;  %v9142_v51 = vpop.eup %9141 }
 0x63e   :  { %v4145_v18 = vpop.f32.mrf.mxu0  ;;  %9143 = vpow2.f32 %v4699_v44  ;;  %v4410_v56 = vadd.f32 %v4409_v61, %v4321_v53  ;;  %4273 = vmatmul.bf16.gmra.mxu1 %v9940_v39  ;;  %v12120_v39 = vld [vmem:[#allocation11_spill] sm:$0xff] }
 0x63f   :  { %v4146_v5 = vadd.f32 %v4145_v18, %v10644_v2  ;;  %4811 = vadd.xlane.f32.xlu0 %v4810_v16  ;;  %v10800_v36 = vpop.xlane.xlu2 %3289  ;;  %v10802_v62 = vpop.xlane.xlu1 %3295  ;;  %9145 = vpow2.f32 %v4701_v11 }
 0x640   :  { %v8091_v28 = vclamps-f32 %v4410_v56, 10.0  ;;  %4362 = vmatmul.bf16.gmra.mxu2 %v9942_v10  ;;  %v12118_v10 = vld [vmem:[#allocation9_spill] sm:$0xff] }
 0x641   :  { %4184 = vmatmul.bf16.gmra.mxu0 %v9938_v9  ;;  %v4235_v26 = vadd.f32 %v4234_v34, %v4146_v5  ;;  %v8156_v34 = vadd.f32 -10.0, %v8092_v19  ;;  %v8372_v9 = vld [vmem:[#allocation4 + $0x5b8] sm:$0xf0] }
 0x642   :  { %4451 = vmatmul.bf16.gmra.mxu3 %v9945_v38  ;;  %v8155_v41 = vadd.f32 -10.0, %v8091_v28  ;;  %v8094_v28 = vclamps-f32 %v10548_v63, 10.0 }
 0x643   :  { %v4323_v37 = vpop.f32.mrf.mxu2  ;;  %v4236_v60 = vpop.f32.mrf.mxu1  ;;  %v4705_v22 = vmul.f32 1.442695, %v8156_v34 }
 0x644   :  { %v9144_v44 = vpop.eup %9143  ;;  %v4703_v53 = vmul.f32 1.442695, %v8155_v41  ;;  %v4324_v61 = vadd.f32 %v4323_v37, %v4235_v26  ;;  %v10805_v33 = vpop.xlane.xlu0 %3292 }
 0x645   :  { %v4412_v18 = vpop.f32.mrf.mxu3  ;;  %v4813_v16 = vadd.f32 %v9144_v44, %v9142_v51  ;;  %v9146_v19 = vpop.eup %9145 }
 0x646   :  { %v4147_v5 = vpop.f32.mrf.mxu0  ;;  %9147 = vpow2.f32 %v4703_v53  ;;  %v4413_v6 = vadd.f32 %v4412_v18, %v4324_v61 }
 0x647   :  { %v4148_v56 = vadd.f32 %v4147_v5, %v10644_v2  ;;  %4814 = vadd.xlane.f32.xlu1 %v4813_v16  ;;  %v10808_v38 = vpop.xlane.xlu2 %3298  ;;  %v10810_v26 = vpop.xlane.xlu1 %3304  ;;  %9149 = vpow2.f32 %v4705_v22  ;;  %v8158_v5 = vadd.f32 -10.0, %v8094_v28  ;;  %v12122_v22 = vld [vmem:[#allocation63_spill] sm:$0xff] }
 0x648   :  { %v8093_v45 = vclamps-f32 %v4413_v6, 10.0  ;;  %12117 = vst [vmem:[#allocation106_spill] sm:$0xff] %v10810_v26  ;;  %v8096_v28 = vclamps-f32 %v12122_v22, 10.0  ;;  %v8828_v26 = vld [vmem:[#allocation4 + $0x79c] sm:$0xf] }
 0x649   :  { %v4237_v11 = vadd.f32 %v4236_v60, %v4148_v56  ;;  %v12119_v56 = vld [vmem:[#allocation10_spill] sm:$0xff] }
 0x64a   :  { %v8157_v41 = vadd.f32 -10.0, %v8093_v45 }
 0x64b   :  { %v4325_v37 = vpop.f32.mrf.mxu2  ;;  %v4239_v34 = vpop.f32.mrf.mxu1 }
 0x64c   :  { %v9148_v51 = vpop.eup %9147  ;;  %v4707_v44 = vmul.f32 1.442695, %v8157_v41  ;;  %v4326_v53 = vadd.f32 %v4325_v37, %v4237_v11  ;;  %v10816_v41 = vpop.xlane.xlu0 %3301  ;;  %v4709_v11 = vmul.f32 1.442695, %v8158_v5  ;;  %v12123_v37 = vld [vmem:[#allocation12_spill] sm:$0xff] }
 0x64d   :  { %v4414_v61 = vpop.f32.mrf.mxu3  ;;  %v4816_v6 = vadd.f32 %v9148_v51, %v9146_v19  ;;  %12121 = vst [vmem:[#allocation107_spill] sm:$0xff] %v10816_v41  ;;  %v8436_v41 = vld [vmem:[#allocation4 + $0x7b8] sm:$0xf0] }
 0x64e   :  { %v4150_v18 = vpop.f32.mrf.mxu0  ;;  %9151 = vpow2.f32 %v4707_v44  ;;  %v4415_v63 = vadd.f32 %v4414_v61, %v4326_v53  ;;  %5394 = vmatmul.bf16.vlgmr.msra.gmra.mxu1 %v12119_v56  ;;  %v9150_v44 = vpop.eup %9149 }
 0x64f   :  { %v4151_v16 = vadd.f32 %v4150_v18, %v10644_v2  ;;  %4817 = vadd.xlane.f32.xlu2 %v4816_v6  ;;  %v10820_v18 = vpop.xlane.xlu2 %3307  ;;  %v10822_v19 = vpop.xlane.xlu1 %3313  ;;  %9153 = vpow2.f32 %v4709_v11  ;;  %v3321_v11 = vadd.f32 %v10728_v23, %v10619_v43 }
 0x650   :  { %v8095_v45 = vclamps-f32 %v4415_v63, 10.0  ;;  %5483 = vmatmul.bf16.vlgmr.msra.gmra.mxu2 %v12120_v39  ;;  %12124 = vst [vmem:[#allocation63_spill] sm:$0xff] %v10820_v18  ;;  %v8160_v39 = vadd.f32 -10.0, %v8096_v28  ;;  %v8780_v18 = vld [vmem:[#allocation4 + $0x19c] sm:$0xf] }
 0x651   :  { %5305 = vmatmul.bf16.vlgmr.msra.gmra.mxu0 %v12118_v10  ;;  %v4240_v60 = vadd.f32 %v4239_v34, %v4151_v16  ;;  %12125 = vst [vmem:[#allocation108_spill] sm:$0xff] %v10822_v19  ;;  %v8812_v10 = vld [vmem:[#allocation4 + $0x59c] sm:$0xf] }
 0x652   :  { %5572 = vmatmul.bf16.vlgmr.msra.gmra.mxu3 %v12123_v37  ;;  %v8159_v51 = vadd.f32 -10.0, %v8095_v45  ;;  %v8375_v45 = vor.u32 %v8812_v10, %v8372_v9  ;;  %v8244_v19 = vld [vmem:[#allocation4 + $0x1b8] sm:$0xf0] }
 0x653   :  { %v4328_v53 = vpop.f32.mrf.mxu2  ;;  %v4241_v56 = vpop.f32.mrf.mxu1 }
 0x654   :  { %v9152_v61 = vpop.eup %9151  ;;  %v4711_v16 = vmul.f32 1.442695, %v8159_v51  ;;  %v4329_v34 = vadd.f32 %v4328_v53, %v4240_v60  ;;  %v8247_v60 = vor.u32 %v8780_v18, %v8244_v19  ;;  %v8439_v53 = vor.u32 %v8828_v26, %v8436_v41  ;;  %v10827_v28 = vpop.xlane.xlu0 %3310  ;;  %5832 = vmatpush.bf16.msrb.mxu2 %v8375_v45  ;;  %v8308_v45 = vld [vmem:[#allocation4 + $0x3b8] sm:$0xf0] }
 0x655   :  { %v4417_v6 = vpop.f32.mrf.mxu3  ;;  %v4819_v5 = vadd.f32 %v9152_v61, %v9150_v44  ;;  %v4713_v44 = vmul.f32 1.442695, %v8160_v39  ;;  %v8098_v61 = vclamps-f32 %v10558_v8, 10.0  ;;  %v9154_v9 = vpop.eup %9153 }
 0x656   :  { %v4152_v63 = vpop.f32.mrf.mxu0  ;;  %9155 = vpow2.f32 %v4711_v16  ;;  %v4418_v22 = vadd.f32 %v4417_v6, %v4329_v34  ;;  %5654 = vmatpush.bf16.msrb.mxu0 %v8247_v60  ;;  %5921 = vmatpush.bf16.msrb.mxu3 %v8439_v53 }
 0x657   :  { %v4153_v37 = vadd.f32 %v4152_v63, %v10644_v2  ;;  %4820 = vadd.xlane.f32.xlu0 %v4819_v5  ;;  %v10830_v16 = vpop.xlane.xlu2 %3316  ;;  %9157 = vpow2.f32 %v4713_v44  ;;  %v8162_v39 = vadd.f32 -10.0, %v8098_v61  ;;  %v8100_v61 = vclamps-f32 %v10565_v40, 10.0 }
 0x658   :  { %v8097_v51 = vclamps-f32 %v4418_v22, 10.0  ;;  %12126 = vst [vmem:[#allocation109_spill] sm:$0xff] %v10830_v16 }
 0x659   :  { %v4242_v6 = vadd.f32 %v4241_v56, %v4153_v37  ;;  %v8796_v37 = vld [vmem:[#allocation4 + $0x39c] sm:$0xf]  ;;  %v4717_v44 = vmul.f32 1.442695, %v8162_v39 }
 0x65a   :  { %v8161_v34 = vadd.f32 -10.0, %v8097_v51  ;;  %v4779_v10 = vpop.xlane.xlu1 %4778  ;;  %v8311_v51 = vor.u32 %v8796_v37, %v8308_v45  ;;  %v8102_v45 = vclamps-f32 %v10568_v21, 10.0 }
 0x65b   :  { %v10832_v63 = vadd.f32 %v4779_v10, %v3321_v11  ;;  %v4330_v26 = vpop.f32.mrf.mxu2  ;;  %v4244_v5 = vpop.f32.mrf.mxu1  ;;  %v3322_v11 = vadd.f32 %v10736_v1, %v10631_v52  ;;  %v8164_v52 = vadd.f32 -10.0, %v8100_v61 }
 0x65c   :  { %v9156_v41 = vpop.eup %9155  ;;  %v4715_v18 = vmul.f32 1.442695, %v8161_v34  ;;  %v4331_v43 = vadd.f32 %v4330_v26, %v4242_v6  ;;  %5743 = vmatpush.bf16.msrb.mxu1 %v8311_v51  ;;  %v10842_v34 = vpop.xlane.xlu0 %3319 }
 0x65d   :  { %12127 = vst [vmem:[#allocation110_spill] sm:$0xff] %v10832_v63  ;;  %v4419_v23 = vpop.f32.mrf.mxu3  ;;  %v4822_v22 = vadd.f32 %v9156_v41, %v9154_v9  ;;  %v9158_v9 = vpop.eup %9157  ;;  %v4721_v37 = vmul.f32 1.442695, %v8164_v52  ;;  %v12131_v52 = vld [vmem:[#allocation13_spill] sm:$0xff] }
 0x65e   :  { %v4155_v19 = vpop.f32.mrf.mxu0  ;;  %9159 = vpow2.f32 %v4715_v18  ;;  %v4420_v56 = vadd.f32 %v4419_v23, %v4331_v43  ;;  %5399 = vmatmul.bf16.gmra.mxu1 %v9730_v13  ;;  %12128 = vst [vmem:[#allocation111_spill] sm:$0xff] %v10842_v34 }
 0x65f   :  { %v4156_v8 = vadd.f32 %v4155_v19, %v10644_v2  ;;  %4823 = vadd.xlane.f32.xlu1 %v4822_v22  ;;  %9161 = vpow2.f32 %v4717_v44 }
 0x660   :  { %v8099_v60 = vclamps-f32 %v4420_v56, 10.0  ;;  %5488 = vmatmul.bf16.gmra.mxu2 %v9732_v14  ;;  %v3323_v56 = vadd.f32 %v10730_v42, %v10611_v46 }
 0x661   :  { %5310 = vmatmul.bf16.gmra.mxu0 %v9728_v12  ;;  %v4245_v53 = vadd.f32 %v4244_v5, %v4156_v8 }
 0x662   :  { %5577 = vmatmul.bf16.gmra.mxu3 %v9734_v15  ;;  %v8163_v6 = vadd.f32 -10.0, %v8099_v60  ;;  %v4782_v10 = vpop.xlane.xlu2 %4781 }
 0x663   :  { %v10844_v26 = vadd.f32 %v4782_v10, %v3322_v11  ;;  %v4333_v41 = vpop.f32.mrf.mxu2  ;;  %v4246_v1 = vpop.f32.mrf.mxu1 }
 0x664   :  { %v9160_v18 = vpop.eup %9159  ;;  %v4719_v43 = vmul.f32 1.442695, %v8163_v6  ;;  %v4334_v23 = vadd.f32 %v4333_v41, %v4245_v53 }
 0x665   :  { %12129 = vst [vmem:[#allocation112_spill] sm:$0xff] %v10844_v26  ;;  %v4422_v19 = vpop.f32.mrf.mxu3  ;;  %v4825_v40 = vadd.f32 %v9160_v18, %v9158_v9  ;;  %v9162_v11 = vpop.eup %9161 }
 0x666   :  { %v4157_v8 = vpop.f32.mrf.mxu0  ;;  %9163 = vpow2.f32 %v4719_v43  ;;  %v4423_v39 = vadd.f32 %v4422_v19, %v4334_v23  ;;  %v8166_v43 = vadd.f32 -10.0, %v8102_v45 }
 0x667   :  { %v4158_v5 = vadd.f32 %v4157_v8, %v10644_v2  ;;  %4826 = vadd.xlane.f32.xlu2 %v4825_v40  ;;  %9165 = vpow2.f32 %v4721_v37  ;;  %v3324_v40 = vadd.f32 %v10740_v30, %v10623_v57 }
 0x668   :  { %v8101_v22 = vclamps-f32 %v4423_v39, 10.0  ;;  %v4725_v39 = vmul.f32 1.442695, %v8166_v43 }
 0x669   :  { %v4247_v60 = vadd.f32 %v4246_v1, %v4158_v5  ;;  %v12132_v1 = vld [vmem:[#allocation14_spill] sm:$0xff]  ;;  %v12133_v5 = vld [vmem:[#allocation68_spill] sm:$0xff] }
 0x66a   :  { %v8165_v51 = vadd.f32 -10.0, %v8101_v22  ;;  %v4785_v53 = vpop.xlane.xlu0 %4784  ;;  %v8104_v22 = vclamps-f32 %v12133_v5, 10.0  ;;  %v8428_v5 = vld [vmem:[#allocation4 + $0x778] sm:$0xf0] }
 0x66b   :  { %v10850_v44 = vadd.f32 %v4785_v53, %v3323_v56  ;;  %v4335_v61 = vpop.f32.mrf.mxu2  ;;  %v4249_v46 = vpop.f32.mrf.mxu1  ;;  %v12134_v56 = vld [vmem:[#allocation15_spill] sm:$0xff] }
 0x66c   :  { %v9164_v6 = vpop.eup %9163  ;;  %v4723_v10 = vmul.f32 1.442695, %v8165_v51  ;;  %v4336_v9 = vadd.f32 %v4335_v61, %v4247_v60 }
 0x66d   :  { %12130 = vst [vmem:[#allocation113_spill] sm:$0xff] %v10850_v44  ;;  %v4424_v41 = vpop.f32.mrf.mxu3  ;;  %v4828_v42 = vadd.f32 %v9164_v6, %v9162_v11  ;;  %v9166_v51 = vpop.eup %9165 }
 0x66e   :  { %v4160_v18 = vpop.f32.mrf.mxu0  ;;  %9167 = vpow2.f32 %v4723_v10  ;;  %v4425_v21 = vadd.f32 %v4424_v41, %v4336_v9  ;;  %5404 = vmatmul.bf16.gmra.mxu1 %v12131_v52  ;;  %v8168_v41 = vadd.f32 -10.0, %v8104_v22 }
 0x66f   :  { %v4161_v23 = vadd.f32 %v4160_v18, %v10644_v2  ;;  %4829 = vadd.xlane.f32.xlu0 %v4828_v42  ;;  %9169 = vpow2.f32 %v4725_v39  ;;  %v8778_v42 = vld [vmem:[#allocation4 + $0x15c] sm:$0xf]  ;;  %v3325_v39 = vadd.f32 %v10745_v32, %v10621_v58 }
 0x670   :  { %v8103_v19 = vclamps-f32 %v4425_v21, 10.0  ;;  %5493 = vmatmul.bf16.gmra.mxu2 %v12132_v1  ;;  %v4729_v22 = vmul.f32 1.442695, %v8168_v41 }
 0x671   :  { %5315 = vmatmul.bf16.gmra.mxu0 %v9740_v24  ;;  %v4250_v8 = vadd.f32 %v4249_v46, %v4161_v23  ;;  %v8810_v23 = vld [vmem:[#allocation4 + $0x55c] sm:$0xf] }
 0x672   :  { %5582 = vmatmul.bf16.gmra.mxu3 %v12134_v56  ;;  %v8167_v37 = vadd.f32 -10.0, %v8103_v19  ;;  %v4788_v45 = vpop.xlane.xlu1 %4787  ;;  %v8364_v46 = vld [vmem:[#allocation4 + $0x578] sm:$0xf0] }
 0x673   :  { %v10860_v60 = vadd.f32 %v4788_v45, %v3324_v40  ;;  %v4338_v53 = vpop.f32.mrf.mxu2  ;;  %v4251_v18 = vpop.f32.mrf.mxu1  ;;  %v8367_v21 = vor.u32 %v8810_v23, %v8364_v46  ;;  %v8236_v19 = vld [vmem:[#allocation4 + $0x178] sm:$0xf0] }
 0x674   :  { %v9168_v11 = vpop.eup %9167  ;;  %v4727_v61 = vmul.f32 1.442695, %v8167_v37  ;;  %v4339_v6 = vadd.f32 %v4338_v53, %v4250_v8  ;;  %v8826_v40 = vld [vmem:[#allocation4 + $0x75c] sm:$0xf]  ;;  %v8239_v8 = vor.u32 %v8778_v42, %v8236_v19 }
 0x675   :  { %12135 = vst [vmem:[#allocation13_spill] sm:$0xff] %v10860_v60  ;;  %v4427_v10 = vpop.f32.mrf.mxu3  ;;  %v4831_v57 = vadd.f32 %v9168_v11, %v9166_v51  ;;  %v8431_v45 = vor.u32 %v8826_v40, %v8428_v5  ;;  %v8106_v51 = vclamps-f32 %v10578_v7, 10.0  ;;  %5833 = vmatpush.bf16.msrb.mxu2 %v8367_v21  ;;  %v8300_v21 = vld [vmem:[#allocation4 + $0x378] sm:$0xf0] }
 0x676   :  { %v4162_v9 = vpop.f32.mrf.mxu0  ;;  %9171 = vpow2.f32 %v4727_v61  ;;  %v4428_v30 = vadd.f32 %v4427_v10, %v4339_v6  ;;  %5655 = vmatpush.bf16.msrb.mxu0 %v8239_v8  ;;  %v9170_v6 = vpop.eup %9169 }
 0x677   :  { %v4163_v43 = vadd.f32 %v4162_v9, %v10644_v2  ;;  %4832 = vadd.xlane.f32.xlu1 %v4831_v57  ;;  %5922 = vmatpush.bf16.msrb.mxu3 %v8431_v45  ;;  %9173 = vpow2.f32 %v4729_v22  ;;  %v8170_v32 = vadd.f32 -10.0, %v8106_v51  ;;  %v8108_v45 = vclamps-f32 %v10585_v27, 10.0 }
 0x678   :  { %v8105_v37 = vclamps-f32 %v4428_v30, 10.0 }
 0x679   :  { %v4252_v11 = vadd.f32 %v4251_v18, %v4163_v43  ;;  %v8794_v43 = vld [vmem:[#allocation4 + $0x35c] sm:$0xf]  ;;  %v4733_v8 = vmul.f32 1.442695, %v8170_v32  ;;  %v3327_v32 = vadd.f32 %v10748_v59, %v10641_v47 }
 0x67a   :  { %v8169_v53 = vadd.f32 -10.0, %v8105_v37  ;;  %v4791_v61 = vpop.xlane.xlu2 %4790  ;;  %v8303_v19 = vor.u32 %v8794_v43, %v8300_v21  ;;  %v3326_v37 = vadd.f32 %v10742_v35, %v10634_v25 }
 0x67b   :  { %v10866_v10 = vadd.f32 %v4791_v61, %v3325_v39  ;;  %v4340_v9 = vpop.f32.mrf.mxu2  ;;  %v4254_v7 = vpop.f32.mrf.mxu1 }
 0x67c   :  { %v9172_v57 = vpop.eup %9171  ;;  %v4731_v30 = vmul.f32 1.442695, %v8169_v53  ;;  %v4341_v23 = vadd.f32 %v4340_v9, %v4252_v11  ;;  %5744 = vmatpush.bf16.msrb.mxu1 %v8303_v19 }
 0x67d   :  { %12136 = vst [vmem:[#allocation14_spill] sm:$0xff] %v10866_v10  ;;  %v4429_v46 = vpop.f32.mrf.mxu3  ;;  %v4834_v41 = vadd.f32 %v9172_v57, %v9170_v6  ;;  %v9174_v51 = vpop.eup %9173 }
 0x67e   :  { %v4165_v42 = vpop.f32.mrf.mxu0  ;;  %9175 = vpow2.f32 %v4731_v30  ;;  %v4430_v18 = vadd.f32 %v4429_v46, %v4341_v23  ;;  %5409 = vmatmul.bf16.gmra.mxu1 %v9754_v50  ;;  %v8172_v23 = vadd.f32 -10.0, %v8108_v45 }
 0x67f   :  { %v4166_v58 = vadd.f32 %v4165_v42, %v10644_v2  ;;  %4835 = vadd.xlane.f32.xlu2 %v4834_v41  ;;  %9177 = vpow2.f32 %v4733_v8 }
 0x680   :  { %v8107_v40 = vclamps-f32 %v4430_v18, 10.0  ;;  %5498 = vmatmul.bf16.gmra.mxu2 %v9756_v54 }
 0x681   :  { %5320 = vmatmul.bf16.gmra.mxu0 %v9752_v49  ;;  %v4255_v5 = vadd.f32 %v4254_v7, %v4166_v58  ;;  %v4737_v58 = vmul.f32 1.442695, %v8172_v23  ;;  %v8110_v7 = vclamps-f32 %v10588_v29, 10.0  ;;  %v12141_v23 = vld [vmem:[#allocation69_spill] sm:$0xff] }
 0x682   :  { %5587 = vmatmul.bf16.gmra.mxu3 %v9758_v55  ;;  %v8171_v39 = vadd.f32 -10.0, %v8107_v40  ;;  %v4794_v22 = vpop.xlane.xlu0 %4793 }
 0x683   :  { %v10876_v53 = vadd.f32 %v4794_v22, %v3326_v37  ;;  %v4343_v11 = vpop.f32.mrf.mxu2  ;;  %v4256_v25 = vpop.f32.mrf.mxu1  ;;  %v8174_v22 = vadd.f32 -10.0, %v8110_v7 }
 0x684   :  { %v9176_v61 = vpop.eup %9175  ;;  %v4735_v6 = vmul.f32 1.442695, %v8171_v39  ;;  %v4344_v9 = vadd.f32 %v4343_v11, %v4255_v5 }
 0x685   :  { %12137 = vst [vmem:[#allocation68_spill] sm:$0xff] %v10876_v53  ;;  %v4432_v57 = vpop.f32.mrf.mxu3  ;;  %v4837_v35 = vadd.f32 %v9176_v61, %v9174_v51  ;;  %v9178_v21 = vpop.eup %9177 }
 0x686   :  { %v4167_v30 = vpop.f32.mrf.mxu0  ;;  %9179 = vpow2.f32 %v4735_v6  ;;  %v4433_v27 = vadd.f32 %v4432_v57, %v4344_v9  ;;  %v12139_v6 = vld [vmem:[#allocation16_spill] sm:$0xff]  ;;  %v12140_v9 = vld [vmem:[#allocation17_spill] sm:$0xff]  ;;  %v3328_v57 = vadd.f32 %v10756_v20, %v10636_v31 }
 0x687   :  { %v4168_v46 = vadd.f32 %v4167_v30, %v10644_v2  ;;  %4838 = vadd.xlane.f32.xlu0 %v4837_v35  ;;  %9181 = vpow2.f32 %v4737_v58  ;;  %v4741_v30 = vmul.f32 1.442695, %v8174_v22  ;;  %v12142_v35 = vld [vmem:[#allocation18_spill] sm:$0xff] }
 0x688   :  { %v8109_v42 = vclamps-f32 %v4433_v27, 10.0 }
 0x689   :  { %v4257_v18 = vadd.f32 %v4256_v25, %v4168_v46  ;;  %v8112_v25 = vclamps-f32 %v12141_v23, 10.0 }
 0x68a   :  { %v8173_v41 = vadd.f32 -10.0, %v8109_v42  ;;  %v4797_v43 = vpop.xlane.xlu1 %4796 }
 0x68b   :  { %v10882_v19 = vadd.f32 %v4797_v43, %v3327_v32  ;;  %v4345_v40 = vpop.f32.mrf.mxu2  ;;  %v4259_v47 = vpop.f32.mrf.mxu1 }
 0x68c   :  { %v9180_v5 = vpop.eup %9179  ;;  %v4739_v37 = vmul.f32 1.442695, %v8173_v41  ;;  %v4346_v8 = vadd.f32 %v4345_v40, %v4257_v18  ;;  %v8176_v40 = vadd.f32 -10.0, %v8112_v25 }
 0x68d   :  { %12138 = vst [vmem:[#allocation15_spill] sm:$0xff] %v10882_v19  ;;  %v4434_v45 = vpop.f32.mrf.mxu3  ;;  %v4840_v59 = vadd.f32 %v9180_v5, %v9178_v21  ;;  %v9182_v42 = vpop.eup %9181  ;;  %v12168_v19 = vld [vmem:[#allocation87_spill] sm:$0xff] }
 0x68e   :  { %v4170_v39 = vpop.f32.mrf.mxu0  ;;  %9183 = vpow2.f32 %v4739_v37  ;;  %v4435_v29 = vadd.f32 %v4434_v45, %v4346_v8  ;;  %5414 = vmatmul.bf16.gmra.mxu1 %v12139_v6  ;;  %v8808_v8 = vld [vmem:[#allocation4 + $0x51c] sm:$0xf]  ;;  %v4745_v25 = vmul.f32 1.442695, %v8176_v40 }
 0x68f   :  { %v4171_v51 = vadd.f32 %v4170_v39, %v10644_v2  ;;  %4841 = vadd.xlane.f32.xlu1 %v4840_v59  ;;  %9185 = vpow2.f32 %v4741_v30  ;;  %v8356_v45 = vld [vmem:[#allocation4 + $0x538] sm:$0xf0]  ;;  %v12145_v30 = vld [vmem:[#allocation50_spill] sm:$0xff] }
 0x690   :  { %v8111_v11 = vclamps-f32 %v4435_v29, 10.0  ;;  %5503 = vmatmul.bf16.gmra.mxu2 %v12140_v9  ;;  %v8776_v39 = vld [vmem:[#allocation4 + $0x11c] sm:$0xf]  ;;  %v8359_v22 = vor.u32 %v8808_v8, %v8356_v45 }
 0x691   :  { %5325 = vmatmul.bf16.gmra.mxu0 %v9764_v0  ;;  %v4260_v61 = vadd.f32 %v4259_v47, %v4171_v51  ;;  %v8228_v51 = vld [vmem:[#allocation4 + $0x138] sm:$0xf0] }
 0x692   :  { %5592 = vmatmul.bf16.gmra.mxu3 %v12142_v35  ;;  %v8175_v27 = vadd.f32 -10.0, %v8111_v11  ;;  %v4800_v46 = vpop.xlane.xlu2 %4799  ;;  %v8824_v47 = vld [vmem:[#allocation4 + $0x71c] sm:$0xf]  ;;  %v8231_v11 = vor.u32 %v8776_v39, %v8228_v51  ;;  %5834 = vmatpush.bf16.msrb.mxu2 %v8359_v22 }
 0x693   :  { %v10892_v32 = vadd.f32 %v4800_v46, %v3328_v57  ;;  %v4348_v58 = vpop.f32.mrf.mxu2  ;;  %v4261_v5 = vpop.f32.mrf.mxu1  ;;  %v8420_v59 = vld [vmem:[#allocation4 + $0x738] sm:$0xf0]  ;;  %v12144_v57 = vld [vmem:[#allocation81_spill] sm:$0xff] }
 0x694   :  { %v9184_v7 = vpop.eup %9183  ;;  %v4743_v41 = vmul.f32 1.442695, %v8175_v27  ;;  %v4349_v18 = vadd.f32 %v4348_v58, %v4260_v61  ;;  %v8423_v61 = vor.u32 %v8824_v47, %v8420_v59  ;;  %v3329_v23 = vadd.f32 %v12145_v30, %v12144_v57  ;;  %v12146_v27 = vld [vmem:[#allocation74_spill] sm:$0xff]  ;;  %5656 = vmatpush.bf16.msrb.mxu0 %v8231_v11  ;;  %v8292_v47 = vld [vmem:[#allocation4 + $0x338] sm:$0xf0]  ;;  %v12149_v57 = vld [vmem:[#allocation20_spill] sm:$0xff] }
 0x695   :  { %12143 = vst [vmem:[#allocation16_spill] sm:$0xff] %v10892_v32  ;;  %v4437_v43 = vpop.f32.mrf.mxu3  ;;  %v4843_v31 = vadd.f32 %v9184_v7, %v9182_v42  ;;  %v8114_v46 = vclamps-f32 %v12146_v27, 10.0  ;;  %v12148_v59 = vld [vmem:[#allocation19_spill] sm:$0xff]  ;;  %v12150_v30 = vld [vmem:[#allocation21_spill] sm:$0xff] }
 0x696   :  { %v4172_v21 = vpop.f32.mrf.mxu0  ;;  %9187 = vpow2.f32 %v4743_v41  ;;  %v4438_v20 = vadd.f32 %v4437_v43, %v4349_v18  ;;  %5923 = vmatpush.bf16.msrb.mxu3 %v8423_v61  ;;  %v9186_v41 = vpop.eup %9185  ;;  %v8412_v32 = vld [vmem:[#allocation4 + $0x6f8] sm:$0xf0] }
 0x697   :  { %v4173_v37 = vadd.f32 %v4172_v21, %v10644_v2  ;;  %4844 = vadd.xlane.f32.xlu2 %v4843_v31  ;;  %9189 = vpow2.f32 %v4745_v25  ;;  %v8178_v39 = vadd.f32 -10.0, %v8114_v46  ;;  %v12152_v25 = vld [vmem:[#allocation51_spill] sm:$0xff] }
 0x698   :  { %v8113_v29 = vclamps-f32 %v4438_v20, 10.0 }
 0x699   :  { %v4262_v58 = vadd.f32 %v4261_v5, %v4173_v37  ;;  %v8792_v37 = vld [vmem:[#allocation4 + $0x31c] sm:$0xf]  ;;  %v4749_v46 = vmul.f32 1.442695, %v8178_v39 }
 0x69a   :  { %v8177_v42 = vadd.f32 -10.0, %v8113_v29  ;;  %v4803_v7 = vpop.xlane.xlu0 %4802  ;;  %v8295_v29 = vor.u32 %v8792_v37, %v8292_v47 }
 0x69b   :  { %v10898_v18 = vadd.f32 %v4803_v7, %v3329_v23  ;;  %v4350_v43 = vpop.f32.mrf.mxu2  ;;  %v4264_v51 = vpop.f32.mrf.mxu1  ;;  %v12151_v23 = vld [vmem:[#allocation84_spill] sm:$0xff]  ;;  %v12154_v7 = vld [vmem:[#allocation22_spill] sm:$0xff] }
 0x69c   :  { %v9188_v21 = vpop.eup %9187  ;;  %v4747_v31 = vmul.f32 1.442695, %v8177_v42  ;;  %v4351_v20 = vadd.f32 %v4350_v43, %v4262_v58  ;;  %v3330_v27 = vadd.f32 %v12152_v25, %v12151_v23  ;;  %v12153_v42 = vld [vmem:[#allocation75_spill] sm:$0xff]  ;;  %5745 = vmatpush.bf16.msrb.mxu1 %v8295_v29  ;;  %v12157_v25 = vld [vmem:[#allocation102_spill] sm:$0xff] }
 0x69d   :  { %12147 = vst [vmem:[#allocation17_spill] sm:$0xff] %v10898_v18  ;;  %v4439_v8 = vpop.f32.mrf.mxu3  ;;  %v4846_v22 = vadd.f32 %v9188_v21, %v9186_v41  ;;  %v8116_v58 = vclamps-f32 %v12153_v42, 10.0  ;;  %v9190_v21 = vpop.eup %9189  ;;  %v8774_v18 = vld [vmem:[#allocation4 + $0xdc] sm:$0xf] }
 0x69e   :  { %v4175_v45 = vpop.f32.mrf.mxu0  ;;  %9191 = vpow2.f32 %v4747_v31  ;;  %v4440_v5 = vadd.f32 %v4439_v8, %v4351_v20  ;;  %5419 = vmatmul.bf16.gmra.mxu1 %v12149_v57 }
 0x69f   :  { %v4176_v40 = vadd.f32 %v4175_v45, %v10644_v2  ;;  %4847 = vadd.xlane.f32.xlu0 %v4846_v22  ;;  %9193 = vpow2.f32 %v4749_v46 }
 0x6a0   :  { %v8115_v11 = vclamps-f32 %v4440_v5, 10.0  ;;  %5508 = vmatmul.bf16.gmra.mxu2 %v12150_v30  ;;  %v8180_v5 = vadd.f32 -10.0, %v8116_v58 }
 0x6a1   :  { %5330 = vmatmul.bf16.gmra.mxu0 %v12148_v59  ;;  %v4265_v61 = vadd.f32 %v4264_v51, %v4176_v40 }
 0x6a2   :  { %5597 = vmatmul.bf16.gmra.mxu3 %v12154_v7  ;;  %v8179_v41 = vadd.f32 -10.0, %v8115_v11  ;;  %v4806_v43 = vpop.xlane.xlu1 %4805  ;;  %v12156_v11 = vld [vmem:[#allocation82_spill] sm:$0xff]  ;;  %v4753_v42 = vmul.f32 1.442695, %v8180_v5 }
 0x6a3   :  { %v10908_v31 = vadd.f32 %v4806_v43, %v3330_v27  ;;  %v4353_v20 = vpop.f32.mrf.mxu2  ;;  %v4266_v37 = vpop.f32.mrf.mxu1  ;;  %v3331_v27 = vadd.f32 %v12157_v25, %v12156_v11  ;;  %v12158_v43 = vld [vmem:[#allocation76_spill] sm:$0xff] }
 0x6a4   :  { %v9192_v8 = vpop.eup %9191  ;;  %v4751_v45 = vmul.f32 1.442695, %v8179_v41  ;;  %v4354_v40 = vadd.f32 %v4353_v20, %v4265_v61  ;;  %v8118_v34 = vclamps-f32 %v12158_v43, 10.0  ;;  %v12161_v25 = vld [vmem:[#allocation24_spill] sm:$0xff]  ;;  %v12163_v43 = vld [vmem:[#allocation85_spill] sm:$0xff] }
 0x6a5   :  { %12155 = vst [vmem:[#allocation69_spill] sm:$0xff] %v10908_v31  ;;  %v4442_v51 = vpop.f32.mrf.mxu3  ;;  %v4849_v39 = vadd.f32 %v9192_v8, %v9190_v21  ;;  %v9194_v16 = vpop.eup %9193 }
 0x6a6   :  { %v4177_v22 = vpop.f32.mrf.mxu0  ;;  %9195 = vpow2.f32 %v4751_v45  ;;  %v4443_v47 = vadd.f32 %v4442_v51, %v4354_v40 }
 0x6a7   :  { %v4178_v23 = vadd.f32 %v4177_v22, %v10644_v2  ;;  %4850 = vadd.xlane.f32.xlu1 %v4849_v39  ;;  %9197 = vpow2.f32 %v4753_v42  ;;  %v8182_v22 = vadd.f32 -10.0, %v8118_v34  ;;  %v12165_v34 = vld [vmem:[#allocation77_spill] sm:$0xff] }
 0x6a8   :  { %v8117_v29 = vclamps-f32 %v4443_v47, 10.0 }
 0x6a9   :  { %v4267_v61 = vadd.f32 %v4266_v37, %v4178_v23  ;;  %v12160_v37 = vld [vmem:[#allocation23_spill] sm:$0xff]  ;;  %v4757_v42 = vmul.f32 1.442695, %v8182_v22 }
 0x6aa   :  { %v8181_v41 = vadd.f32 -10.0, %v8117_v29  ;;  %v4809_v20 = vpop.xlane.xlu2 %4808 }
 0x6ab   :  { %v10914_v46 = vadd.f32 %v4809_v20, %v3331_v27  ;;  %v4355_v58 = vpop.f32.mrf.mxu2  ;;  %v4269_v47 = vpop.f32.mrf.mxu1  ;;  %v12162_v27 = vld [vmem:[#allocation25_spill] sm:$0xff]  ;;  %v8120_v20 = vclamps-f32 %v12165_v34, 10.0  ;;  %v8806_v34 = vld [vmem:[#allocation4 + $0x4dc] sm:$0xf] }
 0x6ac   :  { %v9196_v21 = vpop.eup %9195  ;;  %v4755_v8 = vmul.f32 1.442695, %v8181_v41  ;;  %v4356_v45 = vadd.f32 %v4355_v58, %v4267_v61  ;;  %v12164_v41 = vld [vmem:[#allocation56_spill] sm:$0xff]  ;;  %v12166_v58 = vld [vmem:[#allocation26_spill] sm:$0xff] }
 0x6ad   :  { %12159 = vst [vmem:[#allocation18_spill] sm:$0xff] %v10914_v46  ;;  %v4444_v40 = vpop.f32.mrf.mxu3  ;;  %v4852_v5 = vadd.f32 %v9196_v21, %v9194_v16  ;;  %v3332_v61 = vadd.f32 %v12164_v41, %v12163_v43  ;;  %v8184_v46 = vadd.f32 -10.0, %v8120_v20 }
 0x6ae   :  { %v4180_v51 = vpop.f32.mrf.mxu0  ;;  %9199 = vpow2.f32 %v4755_v8  ;;  %v4445_v11 = vadd.f32 %v4444_v40, %v4356_v45  ;;  %5424 = vmatmul.bf16.gmra.mxu1 %v12161_v25  ;;  %v9198_v8 = vpop.eup %9197 }
 0x6af   :  { %v4181_v39 = vadd.f32 %v4180_v51, %v10644_v2  ;;  %4853 = vadd.xlane.f32.xlu2 %v4852_v5  ;;  %9201 = vpow2.f32 %v4757_v42  ;;  %v12169_v42 = vld [vmem:[#allocation57_spill] sm:$0xff]  ;;  %v4761_v53 = vmul.f32 1.442695, %v8184_v46 }
 0x6b0   :  { %v8119_v23 = vclamps-f32 %v4445_v11, 10.0  ;;  %5513 = vmatmul.bf16.gmra.mxu2 %v12162_v27  ;;  %v3333_v20 = vadd.f32 %v12169_v42, %v12168_v19 }
 0x6b1   :  { %5335 = vmatmul.bf16.gmra.mxu0 %v12160_v37  ;;  %v4270_v29 = vadd.f32 %v4269_v47, %v4181_v39 }
 0x6b2   :  { %5602 = vmatmul.bf16.gmra.mxu3 %v12166_v58  ;;  %v8183_v16 = vadd.f32 -10.0, %v8119_v23  ;;  %v4812_v21 = vpop.xlane.xlu0 %4811  ;;  %v8348_v23 = vld [vmem:[#allocation4 + $0x4f8] sm:$0xf0] }
 0x6b3   :  { %v10924_v45 = vadd.f32 %v4812_v21, %v3332_v61  ;;  %v4358_v40 = vpop.f32.mrf.mxu2  ;;  %v4271_v31 = vpop.f32.mrf.mxu1  ;;  %v8351_v61 = vor.u32 %v8806_v34, %v8348_v23  ;;  %v8220_v21 = vld [vmem:[#allocation4 + $0xf8] sm:$0xf0] }
 0x6b4   :  { %v9200_v51 = vpop.eup %9199  ;;  %v4759_v39 = vmul.f32 1.442695, %v8183_v16  ;;  %v4359_v47 = vadd.f32 %v4358_v40, %v4270_v29  ;;  %v8223_v29 = vor.u32 %v8774_v18, %v8220_v21 }
 0x6b5   :  { %12167 = vst [vmem:[#allocation81_spill] sm:$0xff] %v10924_v45  ;;  %v4447_v5 = vpop.f32.mrf.mxu3  ;;  %v4855_v43 = vadd.f32 %v9200_v51, %v9198_v8  ;;  %v8822_v45 = vld [vmem:[#allocation4 + $0x6dc] sm:$0xf]  ;;  %5835 = vmatpush.bf16.msrb.mxu2 %v8351_v61 }
 0x6b6   :  { %v4182_v11 = vpop.f32.mrf.mxu0  ;;  %9203 = vpow2.f32 %v4759_v39  ;;  %v4448_v22 = vadd.f32 %v4447_v5, %v4359_v47  ;;  %v8415_v40 = vor.u32 %v8822_v45, %v8412_v32  ;;  %v12170_v8 = vld [vmem:[#allocation79_spill] sm:$0xff]  ;;  %5657 = vmatpush.bf16.msrb.mxu0 %v8223_v29 }
 0x6b7   :  { %v4183_v41 = vadd.f32 %v4182_v11, %v10644_v2  ;;  %4856 = vadd.xlane.f32.xlu0 %v4855_v43  ;;  %v8122_v51 = vclamps-f32 %v12170_v8, 10.0  ;;  %v9202_v11 = vpop.eup %9201  ;;  %9205 = vpow2.f32 %v4761_v53  ;;  %v12172_v29 = vld [vmem:[#allocation27_spill] sm:$0xff]  ;;  %v12173_v8 = vld [vmem:[#allocation28_spill] sm:$0xff]  ;;  %v12175_v53 = vld [vmem:[#allocation86_spill] sm:$0xff] }
 0x6b8   :  { %v8121_v16 = vclamps-f32 %v4448_v22, 10.0  ;;  %5924 = vmatpush.bf16.msrb.mxu3 %v8415_v40 }
 0x6b9   :  { %v4272_v47 = vadd.f32 %v4271_v31, %v4183_v41  ;;  %v8186_v19 = vadd.f32 -10.0, %v8122_v51  ;;  %v8790_v41 = vld [vmem:[#allocation4 + $0x2dc] sm:$0xf]  ;;  %v12176_v51 = vld [vmem:[#allocation104_spill] sm:$0xff] }
 0x6ba   :  { %v8185_v39 = vadd.f32 -10.0, %v8121_v16  ;;  %v4815_v5 = vpop.xlane.xlu1 %4814  ;;  %v8284_v16 = vld [vmem:[#allocation4 + $0x2f8] sm:$0xf0] }
 0x6bb   :  { %v10930_v43 = vadd.f32 %v4815_v5, %v3333_v20  ;;  %v4360_v34 = vpop.f32.mrf.mxu2  ;;  %v4274_v21 = vpop.f32.mrf.mxu1  ;;  %v8287_v40 = vor.u32 %v8790_v41, %v8284_v16  ;;  %v4765_v5 = vmul.f32 1.442695, %v8186_v19 }
 0x6bc   :  { %v9204_v23 = vpop.eup %9203  ;;  %v4763_v22 = vmul.f32 1.442695, %v8185_v39  ;;  %v4361_v18 = vadd.f32 %v4360_v34, %v4272_v47  ;;  %v12174_v39 = vld [vmem:[#allocation29_spill] sm:$0xff]  ;;  %v3334_v47 = vadd.f32 %v12176_v51, %v12175_v53  ;;  %v12177_v34 = vld [vmem:[#allocation80_spill] sm:$0xff] }
 0x6bd   :  { %12171 = vst [vmem:[#allocation50_spill] sm:$0xff] %v10930_v43  ;;  %v4449_v32 = vpop.f32.mrf.mxu3  ;;  %v4858_v61 = vadd.f32 %v9204_v23, %v9202_v11  ;;  %v8124_v11 = vclamps-f32 %v12177_v34, 10.0  ;;  %v12178_v23 = vld [vmem:[#allocation30_spill] sm:$0xff]  ;;  %5746 = vmatpush.bf16.msrb.mxu1 %v8287_v40  ;;  %v10943_v40 = vld [vmem:[#allocation6 + $0x6] sm:$0x3] }
 0x6be   :  { %v4185_v45 = vpop.f32.mrf.mxu0  ;;  %9207 = vpow2.f32 %v4763_v22  ;;  %v4450_v31 = vadd.f32 %v4449_v32, %v4361_v18  ;;  %5429 = vmatmul.bf16.gmra.mxu1 %v12173_v8  ;;  %v9206_v32 = vpop.eup %9205 }
 0x6bf   :  { %v4186_v46 = vadd.f32 %v4185_v45, %v10644_v2  ;;  %4859 = vadd.xlane.f32.xlu1 %v4858_v61  ;;  %9209 = vpow2.f32 %v4765_v5  ;;  %v8188_v43 = vadd.f32 -10.0, %v8124_v11 }
 0x6c0   :  { %v8123_v42 = vclamps-f32 %v4450_v31, 10.0  ;;  %5518 = vmatmul.bf16.gmra.mxu2 %v12174_v39 }
 0x6c1   :  { %5340 = vmatmul.bf16.gmra.mxu0 %v12172_v29  ;;  %v4275_v20 = vadd.f32 %v4274_v21, %v4186_v46  ;;  %v4769_v10 = vmul.f32 1.442695, %v8188_v43 }
 0x6c2   :  { %5607 = vmatmul.bf16.gmra.mxu3 %v12178_v23  ;;  %v8187_v22 = vadd.f32 -10.0, %v8123_v42  ;;  %v4818_v18 = vpop.xlane.xlu2 %4817 }
 0x6c3   :  { %v10940_v45 = vadd.f32 %v4818_v18, %v3334_v47  ;;  %v4363_v61 = vpop.f32.mrf.mxu2  ;;  %v4276_v53 = vpop.f32.mrf.mxu1  ;;  %v12180_v47 = vld [vmem:[#allocation88_spill] sm:$0xff]  ;;  %v12181_v18 = vld [vmem:[#allocation103_spill] sm:$0xff] }
 0x6c4   :  { %v9208_v46 = vpop.eup %9207  ;;  %v4767_v21 = vmul.f32 1.442695, %v8187_v22  ;;  %v4364_v31 = vadd.f32 %v4363_v61, %v4275_v20  ;;  %v12182_v22 = vld [vmem:[#allocation83_spill] sm:$0xff]  ;;  %v10949_v61 = vperm.slane %v10943_v40, 0 }
 0x6c5   :  { %12179 = vst [vmem:[#allocation74_spill] sm:$0xff] %v10940_v45  ;;  %v4452_v41 = vpop.f32.mrf.mxu3  ;;  %v4861_v19 = vadd.f32 %v9208_v46, %v9206_v32  ;;  %v3335_v45 = vadd.f32 %v12181_v18, %v12180_v47  ;;  %v8126_v20 = vclamps-f32 %v12182_v22, 10.0  ;;  %v9210_v46 = vpop.eup %9209 }
 0x6c6   :  { %v4187_v16 = vpop.f32.mrf.mxu0  ;;  %9211 = vpow2.f32 %v4767_v21  ;;  %v4453_v51 = vadd.f32 %v4452_v41, %v4364_v31 }
 0x6c7   :  { %v4188_v34 = vadd.f32 %v4187_v16, %v10644_v2  ;;  %4862 = vadd.xlane.f32.xlu2 %v4861_v19  ;;  %9213 = vpow2.f32 %v4769_v10  ;;  %v8190_v47 = vadd.f32 -10.0, %v8126_v20  ;;  %v12189_v20 = vld [vmem:[#allocation34_spill] sm:$0xff] }
 0x6c8   :  { %v8125_v42 = vclamps-f32 %v4453_v51, 10.0 }
 0x6c9   :  { %v4277_v11 = vadd.f32 %v4276_v53, %v4188_v34  ;;  %v12184_v53 = vld [vmem:[#allocation31_spill] sm:$0xff]  ;;  %v12185_v34 = vld [vmem:[#allocation32_spill] sm:$0xff]  ;;  %v4773_v10 = vmul.f32 1.442695, %v8190_v47 }
 0x6ca   :  { %v8189_v5 = vadd.f32 -10.0, %v8125_v42  ;;  %v4821_v32 = vpop.xlane.xlu0 %4820 }
 0x6cb   :  { %v10951_v21 = vadd.f32 %v4821_v32, %v3335_v45  ;;  %v4365_v2 = vpop.f32.mrf.mxu2  ;;  %v5395_v18 = vpop.f32.mrf.mxu1  ;;  %v12186_v32 = vld [vmem:[#allocation33_spill] sm:$0xff] }
 0x6cc   :  { %v9212_v31 = vpop.eup %9211  ;;  %v4771_v41 = vmul.f32 1.442695, %v8189_v5  ;;  %v4366_v16 = vadd.f32 %v4365_v2, %v4277_v11  ;;  %v12187_v5 = vld [vmem:[#allocation90_spill] sm:$0xff] }
 0x6cd   :  { %12183 = vst [vmem:[#allocation19_spill] sm:$0xff] %v10951_v21  ;;  %v4454_v19 = vpop.f32.mrf.mxu3  ;;  %v4864_v22 = vadd.f32 %v9212_v31, %v9210_v46  ;;  %v12188_v11 = vld [vmem:[#allocation62_spill] sm:$0xff]  ;;  %v9214_v46 = vpop.eup %9213 }
 0x6ce   :  { %v5306_v51 = vpop.f32.mrf.mxu0  ;;  %9215 = vpow2.f32 %v4771_v41  ;;  %v4455_v60 = vadd.f32 %v4454_v19, %v4366_v16  ;;  %5434 = vmatmul.bf16.gmra.mxu1 %v12185_v34  ;;  %v3336_v2 = vadd.f32 %v12188_v11, %v12187_v5  ;;  %v8804_v5 = vld [vmem:[#allocation4 + $0x49c] sm:$0xf] }
 0x6cf   :  { %v5307_v43 = vadd.f32 %v5306_v51, %v10949_v61  ;;  %4865 = vadd.xlane.f32.xlu0 %v4864_v22  ;;  %9217 = vpow2.f32 %v4773_v10  ;;  %v8772_v11 = vld [vmem:[#allocation4 + $0x9c] sm:$0xf] }
 0x6d0   :  { %v8127_v45 = vclamps-f32 %v4455_v60, 10.0  ;;  %5523 = vmatmul.bf16.gmra.mxu2 %v12186_v32 }
 0x6d1   :  { %v5396_v42 = vadd.f32 %v5395_v18, %v5307_v43  ;;  %5345 = vmatmul.bf16.gmra.mxu0 %v12184_v53 }
 0x6d2   :  { %5612 = vmatmul.bf16.gmra.mxu3 %v12189_v20  ;;  %v8191_v51 = vadd.f32 -10.0, %v8127_v45  ;;  %v4824_v21 = vpop.xlane.xlu1 %4823  ;;  %v8340_v45 = vld [vmem:[#allocation4 + $0x4b8] sm:$0xf0]  ;;  %v12191_v20 = vld [vmem:[#allocation89_spill] sm:$0xff] }
 0x6d3   :  { %v10960_v31 = vadd.f32 %v4824_v21, %v3336_v2  ;;  %v5484_v41 = vpop.f32.mrf.mxu2  ;;  %v5397_v44 = vpop.f32.mrf.mxu1  ;;  %v8343_v21 = vor.u32 %v8804_v5, %v8340_v45  ;;  %v8212_v2 = vld [vmem:[#allocation4 + $0xb8] sm:$0xf0]  ;;  %v3337_v10 = vadd.f32 %v10785_v48, %v12191_v20 }
 0x6d4   :  { %v9216_v16 = vpop.eup %9215  ;;  %v4775_v19 = vmul.f32 1.442695, %v8191_v51  ;;  %v5485_v43 = vadd.f32 %v5484_v41, %v5396_v42  ;;  %v8404_v51 = vld [vmem:[#allocation4 + $0x6b8] sm:$0xf0]  ;;  %v8215_v42 = vor.u32 %v8772_v11, %v8212_v2 }
 0x6d5   :  { %12190 = vst [vmem:[#allocation20_spill] sm:$0xff] %v10960_v31  ;;  %v5573_v60 = vpop.f32.mrf.mxu3  ;;  %v4867_v26 = vadd.f32 %v9216_v16, %v9214_v46  ;;  %v8820_v31 = vld [vmem:[#allocation4 + $0x69c] sm:$0xf]  ;;  %5836 = vmatpush.bf16.msrb.mxu2 %v8343_v21  ;;  %v9218_v46 = vpop.eup %9217 }
 0x6d6   :  { %v5308_v18 = vpop.f32.mrf.mxu0  ;;  %9219 = vpow2.f32 %v4775_v19  ;;  %v10963_v47 = vadd.f32 %v5573_v60, %v5485_v43  ;;  %v8407_v41 = vor.u32 %v8820_v31, %v8404_v51  ;;  %5658 = vmatpush.bf16.msrb.mxu0 %v8215_v42  ;;  %v8788_v11 = vld [vmem:[#allocation4 + $0x29c] sm:$0xf]  ;;  %v12194_v51 = vld [vmem:[#allocation36_spill] sm:$0xff]  ;;  %v12195_v42 = vld [vmem:[#allocation37_spill] sm:$0xff] }
 0x6d7   :  { %v5309_v22 = vadd.f32 %v5308_v18, %v10949_v61  ;;  %4868 = vadd.xlane.f32.xlu1 %v4867_v26  ;;  %v8276_v48 = vld [vmem:[#allocation4 + $0x2b8] sm:$0xf0] }
 0x6d8   :  { %5925 = vmatpush.bf16.msrb.mxu3 %v8407_v41  ;;  %v12193_v21 = vld [vmem:[#allocation35_spill] sm:$0xff]  ;;  %v8279_v2 = vor.u32 %v8788_v11, %v8276_v48  ;;  %v12197_v41 = vld [vmem:[#allocation105_spill] sm:$0xff]  ;;  %v12200_v48 = vld [vmem:[#allocation92_spill] sm:$0xff] }
 0x6d9   :  { %v5398_v63 = vadd.f32 %v5397_v44, %v5309_v22 }
 0x6da   :  { %v4827_v18 = vpop.xlane.xlu2 %4826  ;;  %5747 = vmatpush.bf16.msrb.mxu1 %v8279_v2 }
 0x6db   :  { %v10967_v16 = vadd.f32 %v4827_v18, %v3337_v10  ;;  %v5486_v19 = vpop.f32.mrf.mxu2  ;;  %v5400_v5 = vpop.f32.mrf.mxu1  ;;  %v12198_v18 = vld [vmem:[#allocation38_spill] sm:$0xff] }
 0x6dc   :  { %v9220_v43 = vpop.eup %9219  ;;  %v5487_v44 = vadd.f32 %v5486_v19, %v5398_v63  ;;  %v12196_v63 = vld [vmem:[#allocation78_spill] sm:$0xff] }
 0x6dd   :  { %12192 = vst [vmem:[#allocation21_spill] sm:$0xff] %v10967_v16  ;;  %v5575_v26 = vpop.f32.mrf.mxu3  ;;  %v4870_v45 = vadd.f32 %v9220_v43, %v9218_v46  ;;  %v3338_v10 = vadd.f32 %v12197_v41, %v12196_v63  ;;  %v3339_v16 = vadd.f32 %v10788_v4, %v12200_v48  ;;  %v12206_v4 = vld [vmem:[#allocation91_spill] sm:$0xff] }
 0x6de   :  { %v5311_v60 = vpop.f32.mrf.mxu0  ;;  %v10970_v31 = vadd.f32 %v5575_v26, %v5487_v44  ;;  %5439 = vmatmul.bf16.gmra.mxu1 %v12194_v51 }
 0x6df   :  { %v5312_v22 = vadd.f32 %v5311_v60, %v10949_v61  ;;  %4871 = vadd.xlane.f32.xlu2 %v4870_v45 }
 0x6e0   :  { %5528 = vmatmul.bf16.gmra.mxu2 %v12195_v42  ;;  %v12203_v42 = vld [vmem:[#allocation40_spill] sm:$0xff] }
 0x6e1   :  { %v5401_v20 = vadd.f32 %v5400_v5, %v5312_v22  ;;  %5350 = vmatmul.bf16.gmra.mxu0 %v12193_v21 }
 0x6e2   :  { %5617 = vmatmul.bf16.gmra.mxu3 %v12198_v18  ;;  %v4830_v46 = vpop.xlane.xlu0 %4829 }
 0x6e3   :  { %v10978_v19 = vadd.f32 %v4830_v46, %v3338_v10  ;;  %v5489_v43 = vpop.f32.mrf.mxu2  ;;  %v5402_v5 = vpop.f32.mrf.mxu1 }
 0x6e4   :  { %v5490_v44 = vadd.f32 %v5489_v43, %v5401_v20 }
 0x6e5   :  { %12199 = vst [vmem:[#allocation84_spill] sm:$0xff] %v10978_v19  ;;  %v5578_v26 = vpop.f32.mrf.mxu3 }
 0x6e6   :  { %v5313_v60 = vpop.f32.mrf.mxu0  ;;  %v10981_v45 = vadd.f32 %v5578_v26, %v5490_v44  ;;  %v12204_v44 = vld [vmem:[#allocation41_spill] sm:$0xff]  ;;  %v12205_v26 = vld [vmem:[#allocation42_spill] sm:$0xff] }
 0x6e7   :  { %v5314_v22 = vadd.f32 %v5313_v60, %v10949_v61 }
 0x6e9   :  { %v5403_v11 = vadd.f32 %v5402_v5, %v5314_v22  ;;  %v12207_v22 = vld [vmem:[#allocation43_spill] sm:$0xff] }
 0x6ea   :  { %v4833_v63 = vpop.xlane.xlu1 %4832 }
 0x6eb   :  { %v10985_v41 = vadd.f32 %v4833_v63, %v3339_v16  ;;  %v5491_v2 = vpop.f32.mrf.mxu2  ;;  %v5405_v43 = vpop.f32.mrf.mxu1  ;;  %v3340_v16 = vadd.f32 %v10796_v3, %v12206_v4  ;;  %v8204_v3 = vld [vmem:[#allocation4 + $0x78] sm:$0xf0] }
 0x6ec   :  { %v5492_v18 = vadd.f32 %v5491_v2, %v5403_v11  ;;  %v8818_v4 = vld [vmem:[#allocation4 + $0x65c] sm:$0xf] }
 0x6ed   :  { %12201 = vst [vmem:[#allocation51_spill] sm:$0xff] %v10985_v41  ;;  %v5580_v10 = vpop.f32.mrf.mxu3  ;;  %v8332_v41 = vld [vmem:[#allocation4 + $0x478] sm:$0xf0] }
 0x6ee   :  { %v5316_v46 = vpop.f32.mrf.mxu0  ;;  %v10988_v19 = vadd.f32 %v5580_v10, %v5492_v18  ;;  %5444 = vmatmul.bf16.gmra.mxu1 %v12204_v44 }
 0x6ef   :  { %v5317_v20 = vadd.f32 %v5316_v46, %v10949_v61 }
 0x6f0   :  { %12202 = vst [vmem:[#allocation75_spill] sm:$0xff] %v10988_v19  ;;  %5533 = vmatmul.bf16.gmra.mxu2 %v12205_v26  ;;  %v8770_v26 = vld [vmem:[#allocation4 + $0x5c] sm:$0xf] }
 0x6f1   :  { %v5406_v60 = vadd.f32 %v5405_v43, %v5317_v20  ;;  %5355 = vmatmul.bf16.gmra.mxu0 %v12203_v42  ;;  %v8802_v43 = vld [vmem:[#allocation4 + $0x45c] sm:$0xf]  ;;  %v8207_v19 = vor.u32 %v8770_v26, %v8204_v3  ;;  %v12212_v3 = vld [vmem:[#allocation46_spill] sm:$0xff] }
 0x6f2   :  { %5622 = vmatmul.bf16.gmra.mxu3 %v12207_v22  ;;  %v4836_v5 = vpop.xlane.xlu2 %4835  ;;  %v8335_v42 = vor.u32 %v8802_v43, %v8332_v41  ;;  %v8396_v22 = vld [vmem:[#allocation4 + $0x678] sm:$0xf0] }
 0x6f3   :  { %v10996_v11 = vadd.f32 %v4836_v5, %v3340_v16  ;;  %v5494_v48 = vpop.f32.mrf.mxu2  ;;  %v5407_v46 = vpop.f32.mrf.mxu1  ;;  %v8399_v16 = vor.u32 %v8818_v4, %v8396_v22  ;;  %v12210_v5 = vld [vmem:[#allocation39_spill] sm:$0xff]  ;;  %5659 = vmatpush.bf16.msrb.mxu0 %v8207_v19  ;;  %v12214_v19 = vld [vmem:[#allocation48_spill] sm:$0xff]  ;;  %v12215_v4 = vld [vmem:[#allocation94_spill] sm:$0xff] }
 0x6f4   :  { %v5495_v63 = vadd.f32 %v5494_v48, %v5406_v60  ;;  %v3341_v60 = vadd.f32 %v10790_v17, %v12210_v5  ;;  %5837 = vmatpush.bf16.msrb.mxu2 %v8335_v42  ;;  %v8786_v26 = vld [vmem:[#allocation4 + $0x25c] sm:$0xf] }
 0x6f5   :  { %12208 = vst [vmem:[#allocation22_spill] sm:$0xff] %v10996_v11  ;;  %v5583_v2 = vpop.f32.mrf.mxu3  ;;  %5926 = vmatpush.bf16.msrb.mxu3 %v8399_v16  ;;  %v8268_v22 = vld [vmem:[#allocation4 + $0x278] sm:$0xf0]  ;;  %v12216_v16 = vld [vmem:[#allocation49_spill] sm:$0xff] }
 0x6f6   :  { %v5318_v18 = vpop.f32.mrf.mxu0  ;;  %v10999_v20 = vadd.f32 %v5583_v2, %v5495_v63  ;;  %v8271_v17 = vor.u32 %v8786_v26, %v8268_v22  ;;  %v12213_v42 = vld [vmem:[#allocation47_spill] sm:$0xff]  ;;  %v12218_v22 = vld [vmem:[#allocation93_spill] sm:$0xff] }
 0x6f7   :  { %v5319_v10 = vadd.f32 %v5318_v18, %v10949_v61 }
 0x6f8   :  { %12209 = vst [vmem:[#allocation82_spill] sm:$0xff] %v10999_v20  ;;  %5748 = vmatpush.bf16.msrb.mxu1 %v8271_v17 }
 0x6f9   :  { %v5408_v44 = vadd.f32 %v5407_v46, %v5319_v10 }
 0x6fa   :  { %v4839_v48 = vpop.xlane.xlu0 %4838 }
 0x6fb   :  { %v11003_v18 = vadd.f32 %v4839_v48, %v3341_v60  ;;  %v5496_v63 = vpop.f32.mrf.mxu2  ;;  %v5410_v10 = vpop.f32.mrf.mxu1 }
 0x6fc   :  { %v5497_v2 = vadd.f32 %v5496_v63, %v5408_v44  ;;  %v3342_v44 = vadd.f32 %v10800_v36, %v12215_v4 }
 0x6fd   :  { %12211 = vst [vmem:[#allocation102_spill] sm:$0xff] %v11003_v18  ;;  %v5585_v11 = vpop.f32.mrf.mxu3  ;;  %v3343_v18 = vadd.f32 %v10805_v33, %v12218_v22  ;;  %v12224_v33 = vld [vmem:[#allocation44_spill] sm:$0xff] }
 0x6fe   :  { %v5321_v20 = vpop.f32.mrf.mxu0  ;;  %v11006_v46 = vadd.f32 %v5585_v11, %v5497_v2  ;;  %5449 = vmatmul.bf16.gmra.mxu1 %v12213_v42 }
 0x6ff   :  { %v5322_v41 = vadd.f32 %v5321_v20, %v10949_v61 }
 0x700   :  { %5538 = vmatmul.bf16.gmra.mxu2 %v12214_v19  ;;  %v12221_v19 = vld [vmem:[#allocation52_spill] sm:$0xff] }
 0x701   :  { %v5411_v43 = vadd.f32 %v5410_v10, %v5322_v41  ;;  %5360 = vmatmul.bf16.gmra.mxu0 %v12212_v3 }
 0x702   :  { %5627 = vmatmul.bf16.gmra.mxu3 %v12216_v16  ;;  %v4842_v20 = vpop.xlane.xlu1 %4841 }
 0x703   :  { %v11014_v5 = vadd.f32 %v4842_v20, %v3342_v44  ;;  %v5499_v11 = vpop.f32.mrf.mxu2  ;;  %v5412_v41 = vpop.f32.mrf.mxu1 }
 0x704   :  { %v5500_v60 = vadd.f32 %v5499_v11, %v5411_v43 }
 0x705   :  { %12217 = vst [vmem:[#allocation76_spill] sm:$0xff] %v11014_v5  ;;  %v5588_v48 = vpop.f32.mrf.mxu3 }
 0x706   :  { %v5323_v63 = vpop.f32.mrf.mxu0  ;;  %v11017_v10 = vadd.f32 %v5588_v48, %v5500_v60  ;;  %v12222_v60 = vld [vmem:[#allocation53_spill] sm:$0xff]  ;;  %v12223_v48 = vld [vmem:[#allocation54_spill] sm:$0xff] }
 0x707   :  { %v5324_v2 = vadd.f32 %v5323_v63, %v10949_v61 }
 0x709   :  { %v5413_v26 = vadd.f32 %v5412_v41, %v5324_v2  ;;  %v12225_v2 = vld [vmem:[#allocation55_spill] sm:$0xff] }
 0x70a   :  { %v4845_v36 = vpop.xlane.xlu2 %4844 }
 0x70b   :  { %v11021_v4 = vadd.f32 %v4845_v36, %v3343_v18  ;;  %v5501_v17 = vpop.f32.mrf.mxu2  ;;  %v5415_v11 = vpop.f32.mrf.mxu1  ;;  %v3344_v18 = vadd.f32 %v10802_v62, %v12224_v33  ;;  %v8196_v62 = vld [vmem:[#allocation4 + $0x38] sm:$0xf0] }
 0x70c   :  { %v5502_v16 = vadd.f32 %v5501_v17, %v5413_v26  ;;  %v8816_v33 = vld [vmem:[#allocation4 + $0x61c] sm:$0xf] }
 0x70d   :  { %12219 = vst [vmem:[#allocation23_spill] sm:$0xff] %v11021_v4  ;;  %v5590_v44 = vpop.f32.mrf.mxu3  ;;  %v8324_v4 = vld [vmem:[#allocation4 + $0x438] sm:$0xf0] }
 0x70e   :  { %v5326_v20 = vpop.f32.mrf.mxu0  ;;  %v11024_v5 = vadd.f32 %v5590_v44, %v5502_v16  ;;  %5454 = vmatmul.bf16.gmra.mxu1 %v12222_v60 }
 0x70f   :  { %v5327_v43 = vadd.f32 %v5326_v20, %v10949_v61 }
 0x710   :  { %12220 = vst [vmem:[#allocation24_spill] sm:$0xff] %v11024_v5  ;;  %5543 = vmatmul.bf16.gmra.mxu2 %v12223_v48  ;;  %v8768_v48 = vld [vmem:[#allocation4 + $0x1c] sm:$0xf] }
 0x711   :  { %v5416_v63 = vadd.f32 %v5415_v11, %v5327_v43  ;;  %5365 = vmatmul.bf16.gmra.mxu0 %v12221_v19  ;;  %v8800_v11 = vld [vmem:[#allocation4 + $0x41c] sm:$0xf]  ;;  %v8199_v5 = vor.u32 %v8768_v48, %v8196_v62  ;;  %v12230_v62 = vld [vmem:[#allocation58_spill] sm:$0xff] }
 0x712   :  { %5632 = vmatmul.bf16.gmra.mxu3 %v12225_v2  ;;  %v4848_v41 = vpop.xlane.xlu0 %4847  ;;  %v8327_v19 = vor.u32 %v8800_v11, %v8324_v4  ;;  %v8388_v2 = vld [vmem:[#allocation4 + $0x638] sm:$0xf0] }
 0x713   :  { %v11032_v26 = vadd.f32 %v4848_v41, %v3344_v18  ;;  %v5504_v22 = vpop.f32.mrf.mxu2  ;;  %v5417_v20 = vpop.f32.mrf.mxu1  ;;  %v8391_v18 = vor.u32 %v8816_v33, %v8388_v2  ;;  %v12228_v41 = vld [vmem:[#allocation96_spill] sm:$0xff]  ;;  %5660 = vmatpush.bf16.msrb.mxu0 %v8199_v5  ;;  %v8784_v48 = vld [vmem:[#allocation4 + $0x21c] sm:$0xf] }
 0x714   :  { %v5505_v36 = vadd.f32 %v5504_v22, %v5416_v63  ;;  %v3345_v63 = vadd.f32 %v10808_v38, %v12228_v41  ;;  %5838 = vmatpush.bf16.msrb.mxu2 %v8327_v19  ;;  %v8260_v2 = vld [vmem:[#allocation4 + $0x238] sm:$0xf0]  ;;  %v12232_v5 = vld [vmem:[#allocation60_spill] sm:$0xff]  ;;  %v12235_v41 = vld [vmem:[#allocation61_spill] sm:$0xff] }
 0x715   :  { %12226 = vst [vmem:[#allocation25_spill] sm:$0xff] %v11032_v26  ;;  %v5593_v17 = vpop.f32.mrf.mxu3  ;;  %5927 = vmatpush.bf16.msrb.mxu3 %v8391_v18  ;;  %v8263_v38 = vor.u32 %v8784_v48, %v8260_v2  ;;  %v12231_v19 = vld [vmem:[#allocation59_spill] sm:$0xff] }
 0x716   :  { %v5328_v16 = vpop.f32.mrf.mxu0  ;;  %v11035_v43 = vadd.f32 %v5593_v17, %v5505_v36  ;;  %v12233_v33 = vld [vmem:[#allocation95_spill] sm:$0xff] }
 0x717   :  { %v5329_v44 = vadd.f32 %v5328_v16, %v10949_v61  ;;  %v12234_v18 = vld [vmem:[#allocation107_spill] sm:$0xff]  ;;  %5749 = vmatpush.bf16.msrb.mxu1 %v8263_v38 }
 0x718   :  { %12227 = vst [vmem:[#allocation85_spill] sm:$0xff] %v11035_v43 }
 0x719   :  { %v5418_v60 = vadd.f32 %v5417_v20, %v5329_v44 }
 0x71a   :  { %v4851_v22 = vpop.xlane.xlu1 %4850 }
 0x71b   :  { %v11039_v16 = vadd.f32 %v4851_v22, %v3345_v63  ;;  %v5506_v36 = vpop.f32.mrf.mxu2  ;;  %v5420_v44 = vpop.f32.mrf.mxu1 }
 0x71c   :  { %v5507_v17 = vadd.f32 %v5506_v36, %v5418_v60  ;;  %v3346_v60 = vadd.f32 %v12234_v18, %v12233_v33 }
 0x71d   :  { %12229 = vst [vmem:[#allocation56_spill] sm:$0xff] %v11039_v16  ;;  %v5595_v26 = vpop.f32.mrf.mxu3  ;;  %v12237_v16 = vld [vmem:[#allocation97_spill] sm:$0xff] }
 0x71e   :  { %v5331_v43 = vpop.f32.mrf.mxu0  ;;  %v11042_v20 = vadd.f32 %v5595_v26, %v5507_v17  ;;  %5459 = vmatmul.bf16.gmra.mxu1 %v12231_v19 }
 0x71f   :  { %v5332_v4 = vadd.f32 %v5331_v43, %v10949_v61 }
 0x720   :  { %5548 = vmatmul.bf16.gmra.mxu2 %v12232_v5  ;;  %v12238_v5 = vld [vmem:[#allocation106_spill] sm:$0xff] }
 0x721   :  { %v5421_v11 = vadd.f32 %v5420_v44, %v5332_v4  ;;  %5370 = vmatmul.bf16.gmra.mxu0 %v12230_v62  ;;  %v3347_v19 = vadd.f32 %v12238_v5, %v12237_v16  ;;  %v12241_v62 = vld [vmem:[#allocation64_spill] sm:$0xff]  ;;  %v12244_v16 = vld [vmem:[#allocation99_spill] sm:$0xff] }
 0x722   :  { %5637 = vmatmul.bf16.gmra.mxu3 %v12235_v41  ;;  %v4854_v43 = vpop.xlane.xlu2 %4853  ;;  %v12245_v5 = vld [vmem:[#allocation63_spill] sm:$0xff] }
 0x723   :  { %v11050_v63 = vadd.f32 %v4854_v43, %v3346_v60  ;;  %v5509_v26 = vpop.f32.mrf.mxu2  ;;  %v5422_v44 = vpop.f32.mrf.mxu1 }
 0x724   :  { %v5510_v22 = vadd.f32 %v5509_v26, %v5421_v11 }
 0x725   :  { %12236 = vst [vmem:[#allocation77_spill] sm:$0xff] %v11050_v63  ;;  %v5598_v36 = vpop.f32.mrf.mxu3 }
 0x726   :  { %v5333_v17 = vpop.f32.mrf.mxu0  ;;  %v11053_v48 = vadd.f32 %v5598_v36, %v5510_v22  ;;  %v12242_v22 = vld [vmem:[#allocation65_spill] sm:$0xff]  ;;  %v12243_v36 = vld [vmem:[#allocation66_spill] sm:$0xff] }
 0x727   :  { %v5334_v4 = vadd.f32 %v5333_v17, %v10949_v61 }
 0x729   :  { %v5423_v2 = vadd.f32 %v5422_v44, %v5334_v4  ;;  %v12246_v4 = vld [vmem:[#allocation67_spill] sm:$0xff] }
 0x72a   :  { %v4857_v33 = vpop.xlane.xlu0 %4856 }
 0x72b   :  { %v11057_v18 = vadd.f32 %v4857_v33, %v3347_v19  ;;  %v5511_v38 = vpop.f32.mrf.mxu2  ;;  %v5425_v26 = vpop.f32.mrf.mxu1  ;;  %v3348_v19 = vadd.f32 %v12245_v5, %v12244_v16 }
 0x72c   :  { %v5512_v41 = vadd.f32 %v5511_v38, %v5423_v2 }
 0x72d   :  { %12239 = vst [vmem:[#allocation26_spill] sm:$0xff] %v11057_v18  ;;  %v5600_v60 = vpop.f32.mrf.mxu3 }
 0x72e   :  { %v5336_v43 = vpop.f32.mrf.mxu0  ;;  %v11060_v63 = vadd.f32 %v5600_v60, %v5512_v41  ;;  %5464 = vmatmul.bf16.gmra.mxu1 %v12242_v22  ;;  %v12248_v22 = vld [vmem:[#allocation98_spill] sm:$0xff] }
 0x72f   :  { %v5337_v11 = vadd.f32 %v5336_v43, %v10949_v61 }
 0x730   :  { %12240 = vst [vmem:[#allocation87_spill] sm:$0xff] %v11060_v63  ;;  %5553 = vmatmul.bf16.gmra.mxu2 %v12243_v36  ;;  %v3349_v36 = vadd.f32 %v10827_v28, %v12248_v22  ;;  %v12250_v63 = vld [vmem:[#allocation70_spill] sm:$0xff]  ;;  %v12253_v28 = vld [vmem:[#allocation73_spill] sm:$0xff] }
 0x731   :  { %v5426_v17 = vadd.f32 %v5425_v26, %v5337_v11  ;;  %5375 = vmatmul.bf16.gmra.mxu0 %v12241_v62 }
 0x732   :  { %5642 = vmatmul.bf16.gmra.mxu3 %v12246_v4  ;;  %v4860_v44 = vpop.xlane.xlu1 %4859 }
 0x733   :  { %v11068_v2 = vadd.f32 %v4860_v44, %v3348_v19  ;;  %v5514_v33 = vpop.f32.mrf.mxu2  ;;  %v5427_v11 = vpop.f32.mrf.mxu1 }
 0x734   :  { %v5515_v38 = vadd.f32 %v5514_v33, %v5426_v17 }
 0x735   :  { %12247 = vst [vmem:[#allocation57_spill] sm:$0xff] %v11068_v2  ;;  %v5603_v43 = vpop.f32.mrf.mxu3 }
 0x736   :  { %v5338_v41 = vpop.f32.mrf.mxu0  ;;  %v11071_v26 = vadd.f32 %v5603_v43, %v5515_v38  ;;  %v12251_v38 = vld [vmem:[#allocation71_spill] sm:$0xff]  ;;  %v12252_v43 = vld [vmem:[#allocation72_spill] sm:$0xff] }
 0x737   :  { %v5339_v60 = vadd.f32 %v5338_v41, %v10949_v61 }
 0x739   :  { %v5428_v18 = vadd.f32 %v5427_v11, %v5339_v60 }
 0x73a   :  { %v4863_v62 = vpop.xlane.xlu2 %4862 }
 0x73b   :  { %v11075_v16 = vadd.f32 %v4863_v62, %v3349_v36  ;;  %v5516_v5 = vpop.f32.mrf.mxu2  ;;  %v5430_v33 = vpop.f32.mrf.mxu1 }
 0x73c   :  { %v5517_v4 = vadd.f32 %v5516_v5, %v5428_v18 }
 0x73d   :  { %12249 = vst [vmem:[#allocation79_spill] sm:$0xff] %v11075_v16  ;;  %v5605_v19 = vpop.f32.mrf.mxu3 }
 0x73e   :  { %v5341_v44 = vpop.f32.mrf.mxu0  ;;  %v11078_v2 = vadd.f32 %v5605_v19, %v5517_v4  ;;  %5469 = vmatmul.bf16.gmra.mxu1 %v12251_v38 }
 0x73f   :  { %v5342_v17 = vadd.f32 %v5341_v44, %v10949_v61 }
 0x740   :  { %5558 = vmatmul.bf16.gmra.mxu2 %v12252_v43 }
 0x741   :  { %v5431_v41 = vadd.f32 %v5430_v33, %v5342_v17  ;;  %5380 = vmatmul.bf16.gmra.mxu0 %v12250_v63  ;;  %v12255_v63 = vld [vmem:[#allocation9_spill] sm:$0xff] }
 0x742   :  { %5647 = vmatmul.bf16.gmra.mxu3 %v12253_v28 }
 0x743   :  { %v5519_v62 = vpop.f32.mrf.mxu2  ;;  %v5432_v11 = vpop.f32.mrf.mxu1 }
 0x744   :  { %v5520_v22 = vadd.f32 %v5519_v62, %v5431_v41  ;;  %v12256_v41 = vld [vmem:[#allocation10_spill] sm:$0xff]  ;;  %v12257_v62 = vld [vmem:[#allocation11_spill] sm:$0xff] }
 0x745   :  { %v5608_v36 = vpop.f32.mrf.mxu3 }
 0x746   :  { %v5343_v18 = vpop.f32.mrf.mxu0  ;;  %v11085_v5 = vadd.f32 %v5608_v36, %v5520_v22 }
 0x747   :  { %v5344_v60 = vadd.f32 %v5343_v18, %v10949_v61  ;;  %v12258_v18 = vld [vmem:[#allocation12_spill] sm:$0xff] }
 0x749   :  { %v5433_v4 = vadd.f32 %v5432_v11, %v5344_v60 }
 0x74b   :  { %v5521_v19 = vpop.f32.mrf.mxu2  ;;  %v5435_v38 = vpop.f32.mrf.mxu1 }
 0x74c   :  { %v5522_v44 = vadd.f32 %v5521_v19, %v5433_v4 }
 0x74d   :  { %v5610_v17 = vpop.f32.mrf.mxu3 }
 0x74e   :  { %v5346_v33 = vpop.f32.mrf.mxu0  ;;  %v11088_v43 = vadd.f32 %v5610_v17, %v5522_v44  ;;  %5750 = vmatmul.bf16.vlgmr.msrb.gmra.mxu1 %v12256_v41 }
 0x74f   :  { %v5347_v16 = vadd.f32 %v5346_v33, %v10949_v61 }
 0x750   :  { %12254 = vst [vmem:[#allocation27_spill] sm:$0xff] %v11088_v43  ;;  %5839 = vmatmul.bf16.vlgmr.msrb.gmra.mxu2 %v12257_v62 }
 0x751   :  { %v5436_v28 = vadd.f32 %v5435_v38, %v5347_v16  ;;  %5661 = vmatmul.bf16.vlgmr.msrb.gmra.mxu0 %v12255_v63 }
 0x752   :  { %5928 = vmatmul.bf16.vlgmr.msrb.gmra.mxu3 %v12258_v18 }
 0x753   :  { %v5524_v22 = vpop.f32.mrf.mxu2  ;;  %v5437_v19 = vpop.f32.mrf.mxu1 }
 0x754   :  { %v5525_v36 = vadd.f32 %v5524_v22, %v5436_v28 }
 0x755   :  { %v5613_v60 = vpop.f32.mrf.mxu3 }
 0x756   :  { %v5348_v11 = vpop.f32.mrf.mxu0  ;;  %v11095_v33 = vadd.f32 %v5613_v60, %v5525_v36 }
 0x757   :  { %v5349_v4 = vadd.f32 %v5348_v11, %v10949_v61 }
 0x759   :  { %v5438_v44 = vadd.f32 %v5437_v19, %v5349_v4 }
 0x75b   :  { %v5526_v17 = vpop.f32.mrf.mxu2  ;;  %v5440_v43 = vpop.f32.mrf.mxu1 }
 0x75c   :  { %v5527_v16 = vadd.f32 %v5526_v17, %v5438_v44 }
 0x75d   :  { %v5615_v38 = vpop.f32.mrf.mxu3 }
 0x75e   :  { %v5351_v63 = vpop.f32.mrf.mxu0  ;;  %v11098_v62 = vadd.f32 %v5615_v38, %v5527_v16  ;;  %5755 = vmatmul.bf16.gmra.mxu1 %v9730_v13 }
 0x75f   :  { %v5352_v41 = vadd.f32 %v5351_v63, %v10949_v61 }
 0x760   :  { %5844 = vmatmul.bf16.gmra.mxu2 %v9732_v14 }
 0x761   :  { %v5441_v18 = vadd.f32 %v5440_v43, %v5352_v41  ;;  %5666 = vmatmul.bf16.gmra.mxu0 %v9728_v12 }
 0x762   :  { %5933 = vmatmul.bf16.gmra.mxu3 %v9734_v15 }
 0x763   :  { %v5529_v28 = vpop.f32.mrf.mxu2  ;;  %v5442_v4 = vpop.f32.mrf.mxu1 }
 0x764   :  { %v5530_v22 = vadd.f32 %v5529_v28, %v5441_v18 }
 0x765   :  { %v5618_v36 = vpop.f32.mrf.mxu3 }
 0x766   :  { %v5353_v60 = vpop.f32.mrf.mxu0  ;;  %v11105_v19 = vadd.f32 %v5618_v36, %v5530_v22 }
 0x767   :  { %v5354_v11 = vadd.f32 %v5353_v60, %v10949_v61 }
 0x769   :  { %v5443_v44 = vadd.f32 %v5442_v4, %v5354_v11 }
 0x76b   :  { %v5531_v17 = vpop.f32.mrf.mxu2  ;;  %v5445_v38 = vpop.f32.mrf.mxu1 }
 0x76c   :  { %v5532_v43 = vadd.f32 %v5531_v17, %v5443_v44 }
 0x76d   :  { %v5620_v16 = vpop.f32.mrf.mxu3 }
 0x76e   :  { %v5356_v12 = vpop.f32.mrf.mxu0  ;;  %v11108_v14 = vadd.f32 %v5620_v16, %v5532_v43  ;;  %5760 = vmatmul.bf16.gmra.mxu1 %v12131_v52 }
 0x76f   :  { %v5357_v13 = vadd.f32 %v5356_v12, %v10949_v61 }
 0x770   :  { %5849 = vmatmul.bf16.gmra.mxu2 %v12132_v1 }
 0x771   :  { %v5446_v15 = vadd.f32 %v5445_v38, %v5357_v13  ;;  %5671 = vmatmul.bf16.gmra.mxu0 %v9740_v24 }
 0x772   :  { %5938 = vmatmul.bf16.gmra.mxu3 %v12134_v56 }
 0x773   :  { %v5534_v63 = vpop.f32.mrf.mxu2  ;;  %v5447_v36 = vpop.f32.mrf.mxu1 }
 0x774   :  { %v5535_v41 = vadd.f32 %v5534_v63, %v5446_v15 }
 0x775   :  { %v5623_v18 = vpop.f32.mrf.mxu3 }
 0x776   :  { %v5358_v28 = vpop.f32.mrf.mxu0  ;;  %v11115_v60 = vadd.f32 %v5623_v18, %v5535_v41 }
 0x777   :  { %v5359_v22 = vadd.f32 %v5358_v28, %v10949_v61 }
 0x779   :  { %v5448_v11 = vadd.f32 %v5447_v36, %v5359_v22 }
 0x77b   :  { %v5536_v4 = vpop.f32.mrf.mxu2  ;;  %v5450_v43 = vpop.f32.mrf.mxu1 }
 0x77c   :  { %v5537_v44 = vadd.f32 %v5536_v4, %v5448_v11 }
 0x77d   :  { %v5625_v17 = vpop.f32.mrf.mxu3 }
 0x77e   :  { %v5361_v24 = vpop.f32.mrf.mxu0  ;;  %v11118_v1 = vadd.f32 %v5625_v17, %v5537_v44  ;;  %5765 = vmatmul.bf16.gmra.mxu1 %v9754_v50 }
 0x77f   :  { %v5362_v52 = vadd.f32 %v5361_v24, %v10949_v61 }
 0x780   :  { %5854 = vmatmul.bf16.gmra.mxu2 %v9756_v54 }
 0x781   :  { %v5451_v56 = vadd.f32 %v5450_v43, %v5362_v52  ;;  %5676 = vmatmul.bf16.gmra.mxu0 %v9752_v49 }
 0x782   :  { %5943 = vmatmul.bf16.gmra.mxu3 %v9758_v55 }
 0x783   :  { %v5539_v16 = vpop.f32.mrf.mxu2  ;;  %v5452_v63 = vpop.f32.mrf.mxu1 }
 0x784   :  { %v5540_v12 = vadd.f32 %v5539_v16, %v5451_v56 }
 0x785   :  { %v5628_v13 = vpop.f32.mrf.mxu3 }
 0x786   :  { %v5363_v38 = vpop.f32.mrf.mxu0  ;;  %v11125_v41 = vadd.f32 %v5628_v13, %v5540_v12 }
 0x787   :  { %v5364_v15 = vadd.f32 %v5363_v38, %v10949_v61 }
 0x789   :  { %v5453_v18 = vadd.f32 %v5452_v63, %v5364_v15 }
 0x78b   :  { %v5541_v28 = vpop.f32.mrf.mxu2  ;;  %v5455_v11 = vpop.f32.mrf.mxu1 }
 0x78c   :  { %v5542_v22 = vadd.f32 %v5541_v28, %v5453_v18 }
 0x78d   :  { %v5630_v36 = vpop.f32.mrf.mxu3 }
 0x78e   :  { %v5366_v49 = vpop.f32.mrf.mxu0  ;;  %v11128_v54 = vadd.f32 %v5630_v36, %v5542_v22  ;;  %5770 = vmatmul.bf16.gmra.mxu1 %v12139_v6 }
 0x78f   :  { %v5367_v50 = vadd.f32 %v5366_v49, %v10949_v61 }
 0x790   :  { %5859 = vmatmul.bf16.gmra.mxu2 %v12140_v9 }
 0x791   :  { %v5456_v55 = vadd.f32 %v5455_v11, %v5367_v50  ;;  %5681 = vmatmul.bf16.gmra.mxu0 %v9764_v0 }
 0x792   :  { %5948 = vmatmul.bf16.gmra.mxu3 %v12142_v35 }
 0x793   :  { %v5544_v4 = vpop.f32.mrf.mxu2  ;;  %v5457_v43 = vpop.f32.mrf.mxu1 }
 0x794   :  { %v5545_v44 = vadd.f32 %v5544_v4, %v5456_v55 }
 0x795   :  { %v5633_v17 = vpop.f32.mrf.mxu3 }
 0x796   :  { %v5368_v24 = vpop.f32.mrf.mxu0  ;;  %v11135_v56 = vadd.f32 %v5633_v17, %v5545_v44 }
 0x797   :  { %v5369_v52 = vadd.f32 %v5368_v24, %v10949_v61 }
 0x799   :  { %v5458_v16 = vadd.f32 %v5457_v43, %v5369_v52 }
 0x79b   :  { %v5546_v12 = vpop.f32.mrf.mxu2  ;;  %v5460_v15 = vpop.f32.mrf.mxu1 }
 0x79c   :  { %v5547_v13 = vadd.f32 %v5546_v12, %v5458_v16 }
 0x79d   :  { %v5635_v38 = vpop.f32.mrf.mxu3 }
 0x79e   :  { %v5371_v0 = vpop.f32.mrf.mxu0  ;;  %v11138_v9 = vadd.f32 %v5635_v38, %v5547_v13  ;;  %5775 = vmatmul.bf16.gmra.mxu1 %v12149_v57 }
 0x79f   :  { %v5372_v6 = vadd.f32 %v5371_v0, %v10949_v61 }
 0x7a0   :  { %5864 = vmatmul.bf16.gmra.mxu2 %v12150_v30 }
 0x7a1   :  { %v5461_v35 = vadd.f32 %v5460_v15, %v5372_v6  ;;  %5686 = vmatmul.bf16.gmra.mxu0 %v12148_v59 }
 0x7a2   :  { %5953 = vmatmul.bf16.gmra.mxu3 %v12154_v7 }
 0x7a3   :  { %v5549_v63 = vpop.f32.mrf.mxu2  ;;  %v5462_v49 = vpop.f32.mrf.mxu1 }
 0x7a4   :  { %v5550_v18 = vadd.f32 %v5549_v63, %v5461_v35 }
 0x7a5   :  { %v5638_v28 = vpop.f32.mrf.mxu3 }
 0x7a6   :  { %v5373_v22 = vpop.f32.mrf.mxu0  ;;  %v11145_v50 = vadd.f32 %v5638_v28, %v5550_v18 }
 0x7a7   :  { %v5374_v36 = vadd.f32 %v5373_v22, %v10949_v61 }
 0x7a9   :  { %v5463_v11 = vadd.f32 %v5462_v49, %v5374_v36 }
 0x7ab   :  { %v5551_v55 = vpop.f32.mrf.mxu2  ;;  %v5465_v17 = vpop.f32.mrf.mxu1 }
 0x7ac   :  { %v5552_v4 = vadd.f32 %v5551_v55, %v5463_v11 }
 0x7ad   :  { %v5640_v44 = vpop.f32.mrf.mxu3 }
 0x7ae   :  { %v5376_v59 = vpop.f32.mrf.mxu0  ;;  %v11148_v30 = vadd.f32 %v5640_v44, %v5552_v4  ;;  %5780 = vmatmul.bf16.gmra.mxu1 %v12161_v25  ;;  %v11168_v44 = vperm.slane %v10943_v40, 1  ;;  %v12259_v40 = vld [vmem:[#allocation34_spill] sm:$0xff] }
 0x7af   :  { %v5377_v57 = vadd.f32 %v5376_v59, %v10949_v61 }
 0x7b0   :  { %5869 = vmatmul.bf16.gmra.mxu2 %v12162_v27 }
 0x7b1   :  { %v5466_v7 = vadd.f32 %v5465_v17, %v5377_v57  ;;  %5691 = vmatmul.bf16.gmra.mxu0 %v12160_v37 }
 0x7b2   :  { %5958 = vmatmul.bf16.gmra.mxu3 %v12166_v58 }
 0x7b3   :  { %v5554_v24 = vpop.f32.mrf.mxu2  ;;  %v5467_v13 = vpop.f32.mrf.mxu1 }
 0x7b4   :  { %v5555_v52 = vadd.f32 %v5554_v24, %v5466_v7 }
 0x7b5   :  { %v5643_v43 = vpop.f32.mrf.mxu3 }
 0x7b6   :  { %v5378_v16 = vpop.f32.mrf.mxu0  ;;  %v11155_v38 = vadd.f32 %v5643_v43, %v5555_v52 }
 0x7b7   :  { %v5379_v12 = vadd.f32 %v5378_v16, %v10949_v61 }
 0x7b9   :  { %v5468_v0 = vadd.f32 %v5467_v13, %v5379_v12 }
 0x7bb   :  { %v5556_v6 = vpop.f32.mrf.mxu2  ;;  %v5470_v63 = vpop.f32.mrf.mxu1 }
 0x7bc   :  { %v5557_v15 = vadd.f32 %v5556_v6, %v5468_v0 }
 0x7bd   :  { %v5645_v35 = vpop.f32.mrf.mxu3 }
 0x7be   :  { %v5381_v37 = vpop.f32.mrf.mxu0  ;;  %v11158_v27 = vadd.f32 %v5645_v35, %v5557_v15  ;;  %5785 = vmatmul.bf16.gmra.mxu1 %v12173_v8  ;;  %v8450_v35 = vclamps-f32 %v10970_v31, 10.0  ;;  %v12260_v31 = vld [vmem:[#allocation37_spill] sm:$0xff] }
 0x7bf   :  { %v5382_v25 = vadd.f32 %v5381_v37, %v10949_v61 }
 0x7c0   :  { %5874 = vmatmul.bf16.gmra.mxu2 %v12174_v39 }
 0x7c1   :  { %v5471_v58 = vadd.f32 %v5470_v63, %v5382_v25  ;;  %5696 = vmatmul.bf16.gmra.mxu0 %v12172_v29 }
 0x7c2   :  { %5963 = vmatmul.bf16.gmra.mxu3 %v12178_v23 }
 0x7c3   :  { %v5559_v18 = vpop.f32.mrf.mxu2  ;;  %v5472_v11 = vpop.f32.mrf.mxu1 }
 0x7c4   :  { %v5560_v28 = vadd.f32 %v5559_v18, %v5471_v58  ;;  %v8514_v18 = vadd.f32 -10.0, %v8450_v35 }
 0x7c5   :  { %v5648_v22 = vpop.f32.mrf.mxu3 }
 0x7c6   :  { %v5383_v36 = vpop.f32.mrf.mxu0  ;;  %v11165_v55 = vadd.f32 %v5648_v22, %v5560_v28 }
 0x7c7   :  { %v5384_v49 = vadd.f32 %v5383_v36, %v10949_v61  ;;  %v8448_v61 = vclamps-f32 %v10963_v47, 10.0 }
 0x7c9   :  { %v5473_v4 = vadd.f32 %v5472_v11, %v5384_v49  ;;  %v8512_v12 = vadd.f32 -10.0, %v8448_v61 }
 0x7cb   :  { %v5561_v29 = vpop.f32.mrf.mxu2  ;;  %v5751_v23 = vpop.f32.mrf.mxu1 }
 0x7cc   :  { %v5562_v59 = vadd.f32 %v5561_v29, %v5473_v4  ;;  %v6205_v4 = vmul.f32 1.442695, %v8514_v18  ;;  %v8452_v29 = vclamps-f32 %v10981_v45, 10.0 }
 0x7cd   :  { %v5650_v8 = vpop.f32.mrf.mxu3 }
 0x7ce   :  { %v5662_v57 = vpop.f32.mrf.mxu0  ;;  %v11171_v17 = vadd.f32 %v5650_v8, %v5562_v59  ;;  %5790 = vmatmul.bf16.gmra.mxu1 %v12185_v34  ;;  %v12261_v59 = vld [vmem:[#allocation38_spill] sm:$0xff] }
 0x7cf   :  { %v5663_v39 = vadd.f32 %v5662_v57, %v11168_v44 }
 0x7d0   :  { %5879 = vmatmul.bf16.gmra.mxu2 %v12186_v32 }
 0x7d1   :  { %5701 = vmatmul.bf16.gmra.mxu0 %v12184_v53  ;;  %v5752_v7 = vadd.f32 %v5751_v23, %v5663_v39  ;;  %v6201_v53 = vmul.f32 1.442695, %v8512_v12 }
 0x7d2   :  { %5968 = vmatmul.bf16.gmra.mxu3 %v12259_v40 }
 0x7d3   :  { %v5840_v24 = vpop.f32.mrf.mxu2  ;;  %v5753_v13 = vpop.f32.mrf.mxu1  ;;  %9221 = vpow2.f32 %v6201_v53 }
 0x7d4   :  { %v5841_v52 = vadd.f32 %v5840_v24, %v5752_v7 }
 0x7d5   :  { %v5929_v43 = vpop.f32.mrf.mxu3 }
 0x7d6   :  { %v5664_v16 = vpop.f32.mrf.mxu0  ;;  %v5930_v0 = vadd.f32 %v5929_v43, %v5841_v52 }
 0x7d7   :  { %v5665_v6 = vadd.f32 %v5664_v16, %v11168_v44 }
 0x7d8   :  { %v8449_v15 = vclamps-f32 %v5930_v0, 10.0 }
 0x7d9   :  { %v5754_v37 = vadd.f32 %v5753_v13, %v5665_v6  ;;  %v9222_v57 = vpop.eup %9221  ;;  %v12262_v13 = vld [vmem:[#allocation75_spill] sm:$0xff] }
 0x7da   :  { %v8513_v34 = vadd.f32 -10.0, %v8449_v15  ;;  %v8454_v0 = vclamps-f32 %v12262_v13, 10.0 }
 0x7db   :  { %v5842_v32 = vpop.f32.mrf.mxu2  ;;  %v5756_v22 = vpop.f32.mrf.mxu1 }
 0x7dc   :  { %v6203_v25 = vmul.f32 1.442695, %v8513_v34  ;;  %v5843_v47 = vadd.f32 %v5842_v32, %v5754_v37 }
 0x7dd   :  { %v5931_v63 = vpop.f32.mrf.mxu3 }
 0x7de   :  { %v5667_v58 = vpop.f32.mrf.mxu0  ;;  %9223 = vpow2.f32 %v6203_v25  ;;  %v5932_v36 = vadd.f32 %v5931_v63, %v5843_v47  ;;  %5795 = vmatmul.bf16.gmra.mxu1 %v12194_v51  ;;  %v8518_v63 = vadd.f32 -10.0, %v8454_v0 }
 0x7df   :  { %v5668_v28 = vadd.f32 %v5667_v58, %v11168_v44  ;;  %9225 = vpow2.f32 %v6205_v4  ;;  %v12265_v4 = vld [vmem:[#allocation42_spill] sm:$0xff] }
 0x7e0   :  { %v8451_v49 = vclamps-f32 %v5932_v36, 10.0  ;;  %5884 = vmatmul.bf16.gmra.mxu2 %v12260_v31  ;;  %v12263_v36 = vld [vmem:[#allocation40_spill] sm:$0xff]  ;;  %v12264_v31 = vld [vmem:[#allocation41_spill] sm:$0xff] }
 0x7e1   :  { %5706 = vmatmul.bf16.gmra.mxu0 %v12193_v21  ;;  %v5757_v11 = vadd.f32 %v5756_v22, %v5668_v28  ;;  %v8516_v21 = vadd.f32 -10.0, %v8452_v29  ;;  %v6213_v29 = vmul.f32 1.442695, %v8518_v63 }
 0x7e2   :  { %5973 = vmatmul.bf16.gmra.mxu3 %v12261_v59  ;;  %v8515_v8 = vadd.f32 -10.0, %v8451_v49  ;;  %v12266_v59 = vld [vmem:[#allocation82_spill] sm:$0xff] }
 0x7e3   :  { %v5845_v39 = vpop.f32.mrf.mxu2  ;;  %v5758_v52 = vpop.f32.mrf.mxu1  ;;  %v6209_v12 = vmul.f32 1.442695, %v8516_v21 }
 0x7e4   :  { %v9224_v23 = vpop.eup %9223  ;;  %v6207_v7 = vmul.f32 1.442695, %v8515_v8  ;;  %v5846_v61 = vadd.f32 %v5845_v39, %v5757_v11  ;;  %v8456_v8 = vclamps-f32 %v12266_v59, 10.0 }
 0x7e5   :  { %v5934_v40 = vpop.f32.mrf.mxu3  ;;  %v6329_v43 = vadd.f32 %v9224_v23, %v9222_v57  ;;  %v9226_v53 = vpop.eup %9225  ;;  %v12267_v57 = vld [vmem:[#allocation43_spill] sm:$0xff] }
 0x7e6   :  { %v5669_v24 = vpop.f32.mrf.mxu0  ;;  %9227 = vpow2.f32 %v6207_v7  ;;  %v5935_v51 = vadd.f32 %v5934_v40, %v5846_v61 }
 0x7e7   :  { %v5670_v16 = vadd.f32 %v5669_v24, %v11168_v44  ;;  %6330 = vadd.xlane.f32.xlu0 %v6329_v43  ;;  %9229 = vpow2.f32 %v6209_v12  ;;  %v8520_v43 = vadd.f32 -10.0, %v8456_v8 }
 0x7e8   :  { %v8453_v45 = vclamps-f32 %v5935_v51, 10.0 }
 0x7e9   :  { %v5759_v15 = vadd.f32 %v5758_v52, %v5670_v16  ;;  %v6217_v0 = vmul.f32 1.442695, %v8520_v43 }
 0x7ea   :  { %v8517_v6 = vadd.f32 -10.0, %v8453_v45 }
 0x7eb   :  { %v5847_v35 = vpop.f32.mrf.mxu2  ;;  %v5761_v18 = vpop.f32.mrf.mxu1 }
 0x7ec   :  { %v9228_v34 = vpop.eup %9227  ;;  %v6211_v37 = vmul.f32 1.442695, %v8517_v6  ;;  %v5848_v32 = vadd.f32 %v5847_v35, %v5759_v15  ;;  %v8458_v6 = vclamps-f32 %v11006_v46, 10.0 }
 0x7ed   :  { %v5936_v25 = vpop.f32.mrf.mxu3  ;;  %v6332_v28 = vadd.f32 %v9228_v34, %v9226_v53  ;;  %v9230_v23 = vpop.eup %9229 }
 0x7ee   :  { %v5672_v47 = vpop.f32.mrf.mxu0  ;;  %9231 = vpow2.f32 %v6211_v37  ;;  %v5937_v22 = vadd.f32 %v5936_v25, %v5848_v32  ;;  %5800 = vmatmul.bf16.gmra.mxu1 %v12264_v31 }
 0x7ef   :  { %v5673_v58 = vadd.f32 %v5672_v47, %v11168_v44  ;;  %6333 = vadd.xlane.f32.xlu1 %v6332_v28  ;;  %9233 = vpow2.f32 %v6213_v29  ;;  %v12269_v29 = vld [vmem:[#allocation49_spill] sm:$0xff] }
 0x7f0   :  { %v8455_v49 = vclamps-f32 %v5937_v22, 10.0  ;;  %5889 = vmatmul.bf16.gmra.mxu2 %v12265_v4  ;;  %v8460_v4 = vclamps-f32 %v11017_v10, 10.0 }
 0x7f1   :  { %5711 = vmatmul.bf16.gmra.mxu0 %v12263_v36  ;;  %v5762_v11 = vadd.f32 %v5761_v18, %v5673_v58  ;;  %v8522_v58 = vadd.f32 -10.0, %v8458_v6 }
 0x7f2   :  { %5978 = vmatmul.bf16.gmra.mxu3 %v12267_v57  ;;  %v8519_v39 = vadd.f32 -10.0, %v8455_v49 }
 0x7f3   :  { %v5850_v7 = vpop.f32.mrf.mxu2  ;;  %v5763_v51 = vpop.f32.mrf.mxu1  ;;  %v6221_v31 = vmul.f32 1.442695, %v8522_v58  ;;  %v12271_v58 = vld [vmem:[#allocation52_spill] sm:$0xff] }
 0x7f4   :  { %v9232_v61 = vpop.eup %9231  ;;  %v6215_v40 = vmul.f32 1.442695, %v8519_v39  ;;  %v5851_v24 = vadd.f32 %v5850_v7, %v5762_v11  ;;  %v12268_v11 = vld [vmem:[#allocation48_spill] sm:$0xff] }
 0x7f5   :  { %v5939_v21 = vpop.f32.mrf.mxu3  ;;  %v6335_v16 = vadd.f32 %v9232_v61, %v9230_v23  ;;  %v9234_v35 = vpop.eup %9233 }
 0x7f6   :  { %v5674_v52 = vpop.f32.mrf.mxu0  ;;  %9235 = vpow2.f32 %v6215_v40  ;;  %v5940_v45 = vadd.f32 %v5939_v21, %v5851_v24 }
 0x7f7   :  { %v5675_v12 = vadd.f32 %v5674_v52, %v11168_v44  ;;  %6336 = vadd.xlane.f32.xlu2 %v6335_v16  ;;  %9237 = vpow2.f32 %v6217_v0 }
 0x7f8   :  { %v8457_v13 = vclamps-f32 %v5940_v45, 10.0 }
 0x7f9   :  { %v5764_v53 = vadd.f32 %v5763_v51, %v5675_v12  ;;  %v12270_v51 = vld [vmem:[#allocation24_spill] sm:$0xff] }
 0x7fa   :  { %v8521_v15 = vadd.f32 -10.0, %v8457_v13  ;;  %v8462_v16 = vclamps-f32 %v12270_v51, 10.0 }
 0x7fb   :  { %v5852_v34 = vpop.f32.mrf.mxu2  ;;  %v5766_v28 = vpop.f32.mrf.mxu1 }
 0x7fc   :  { %v9236_v37 = vpop.eup %9235  ;;  %v6219_v32 = vmul.f32 1.442695, %v8521_v15  ;;  %v5853_v25 = vadd.f32 %v5852_v34, %v5764_v53 }
 0x7fd   :  { %v5941_v47 = vpop.f32.mrf.mxu3  ;;  %v6338_v22 = vadd.f32 %v9236_v37, %v9234_v35  ;;  %v9238_v8 = vpop.eup %9237  ;;  %v8526_v37 = vadd.f32 -10.0, %v8462_v16 }
 0x7fe   :  { %v5677_v63 = vpop.f32.mrf.mxu0  ;;  %9239 = vpow2.f32 %v6219_v32  ;;  %v5942_v36 = vadd.f32 %v5941_v47, %v5853_v25  ;;  %5805 = vmatmul.bf16.gmra.mxu1 %v12213_v42 }
 0x7ff   :  { %v5678_v18 = vadd.f32 %v5677_v63, %v11168_v44  ;;  %6339 = vadd.xlane.f32.xlu0 %v6338_v22  ;;  %9241 = vpow2.f32 %v6221_v31  ;;  %v12272_v22 = vld [vmem:[#allocation53_spill] sm:$0xff]  ;;  %v12275_v31 = vld [vmem:[#allocation55_spill] sm:$0xff] }
 0x800   :  { %v8459_v46 = vclamps-f32 %v5942_v36, 10.0  ;;  %5894 = vmatmul.bf16.gmra.mxu2 %v12268_v11  ;;  %v12273_v36 = vld [vmem:[#allocation54_spill] sm:$0xff] }
 0x801   :  { %5716 = vmatmul.bf16.gmra.mxu0 %v12212_v3  ;;  %v5767_v49 = vadd.f32 %v5766_v28, %v5678_v18  ;;  %v8524_v3 = vadd.f32 -10.0, %v8460_v4 }
 0x802   :  { %5983 = vmatmul.bf16.gmra.mxu3 %v12269_v29  ;;  %v8523_v59 = vadd.f32 -10.0, %v8459_v46  ;;  %v6229_v46 = vmul.f32 1.442695, %v8526_v37 }
 0x803   :  { %v5855_v57 = vpop.f32.mrf.mxu2  ;;  %v5768_v24 = vpop.f32.mrf.mxu1  ;;  %v6225_v43 = vmul.f32 1.442695, %v8524_v3 }
 0x804   :  { %v9240_v39 = vpop.eup %9239  ;;  %v6223_v23 = vmul.f32 1.442695, %v8523_v59  ;;  %v5856_v7 = vadd.f32 %v5855_v57, %v5767_v49  ;;  %v12274_v49 = vld [vmem:[#allocation85_spill] sm:$0xff] }
 0x805   :  { %v5944_v61 = vpop.f32.mrf.mxu3  ;;  %v6341_v21 = vadd.f32 %v9240_v39, %v9238_v8  ;;  %v9242_v13 = vpop.eup %9241  ;;  %v8464_v11 = vclamps-f32 %v12274_v49, 10.0 }
 0x806   :  { %v5679_v40 = vpop.f32.mrf.mxu0  ;;  %9243 = vpow2.f32 %v6223_v23  ;;  %v5945_v42 = vadd.f32 %v5944_v61, %v5856_v7 }
 0x807   :  { %v5680_v52 = vadd.f32 %v5679_v40, %v11168_v44  ;;  %6342 = vadd.xlane.f32.xlu1 %v6341_v21  ;;  %9245 = vpow2.f32 %v6225_v43  ;;  %v8528_v61 = vadd.f32 -10.0, %v8464_v11 }
 0x808   :  { %v8461_v10 = vclamps-f32 %v5945_v42, 10.0 }
 0x809   :  { %v5769_v12 = vadd.f32 %v5768_v24, %v5680_v52  ;;  %v6233_v52 = vmul.f32 1.442695, %v8528_v61 }
 0x80a   :  { %v8525_v45 = vadd.f32 -10.0, %v8461_v10  ;;  %v8466_v10 = vclamps-f32 %v11042_v20, 10.0 }
 0x80b   :  { %v5857_v0 = vpop.f32.mrf.mxu2  ;;  %v5771_v25 = vpop.f32.mrf.mxu1 }
 0x80c   :  { %v9244_v6 = vpop.eup %9243  ;;  %v6227_v15 = vmul.f32 1.442695, %v8525_v45  ;;  %v5858_v53 = vadd.f32 %v5857_v0, %v5769_v12 }
 0x80d   :  { %v5946_v35 = vpop.f32.mrf.mxu3  ;;  %v6344_v47 = vadd.f32 %v9244_v6, %v9242_v13  ;;  %v9246_v29 = vpop.eup %9245 }
 0x80e   :  { %v5682_v34 = vpop.f32.mrf.mxu0  ;;  %9247 = vpow2.f32 %v6227_v15  ;;  %v5947_v63 = vadd.f32 %v5946_v35, %v5858_v53  ;;  %5810 = vmatmul.bf16.gmra.mxu1 %v12272_v22  ;;  %v8530_v53 = vadd.f32 -10.0, %v8466_v10  ;;  %v12279_v22 = vld [vmem:[#allocation61_spill] sm:$0xff] }
 0x80f   :  { %v5683_v32 = vadd.f32 %v5682_v34, %v11168_v44  ;;  %6345 = vadd.xlane.f32.xlu2 %v6344_v47  ;;  %9249 = vpow2.f32 %v6229_v46 }
 0x810   :  { %v8463_v18 = vclamps-f32 %v5947_v63, 10.0  ;;  %5899 = vmatmul.bf16.gmra.mxu2 %v12273_v36  ;;  %v12277_v63 = vld [vmem:[#allocation59_spill] sm:$0xff] }
 0x811   :  { %5721 = vmatmul.bf16.gmra.mxu0 %v12271_v58  ;;  %v5772_v28 = vadd.f32 %v5771_v25, %v5683_v32  ;;  %v12276_v25 = vld [vmem:[#allocation58_spill] sm:$0xff]  ;;  %v12278_v58 = vld [vmem:[#allocation60_spill] sm:$0xff] }
 0x812   :  { %5988 = vmatmul.bf16.gmra.mxu3 %v12275_v31  ;;  %v8527_v4 = vadd.f32 -10.0, %v8463_v18  ;;  %v6237_v18 = vmul.f32 1.442695, %v8530_v53  ;;  %v12281_v53 = vld [vmem:[#allocation64_spill] sm:$0xff] }
 0x813   :  { %v5860_v59 = vpop.f32.mrf.mxu2  ;;  %v5773_v40 = vpop.f32.mrf.mxu1 }
 0x814   :  { %v9248_v8 = vpop.eup %9247  ;;  %v6231_v57 = vmul.f32 1.442695, %v8527_v4  ;;  %v5861_v39 = vadd.f32 %v5860_v59, %v5772_v28  ;;  %v8468_v28 = vclamps-f32 %v11053_v48, 10.0 }
 0x815   :  { %v5949_v23 = vpop.f32.mrf.mxu3  ;;  %v6347_v3 = vadd.f32 %v9248_v8, %v9246_v29  ;;  %v9250_v16 = vpop.eup %9249 }
 0x816   :  { %v5684_v7 = vpop.f32.mrf.mxu0  ;;  %9251 = vpow2.f32 %v6231_v57  ;;  %v5950_v24 = vadd.f32 %v5949_v23, %v5861_v39  ;;  %v8532_v8 = vadd.f32 -10.0, %v8468_v28 }
 0x817   :  { %v5685_v21 = vadd.f32 %v5684_v7, %v11168_v44  ;;  %6348 = vadd.xlane.f32.xlu0 %v6347_v3  ;;  %9253 = vpow2.f32 %v6233_v52 }
 0x818   :  { %v8465_v42 = vclamps-f32 %v5950_v24, 10.0  ;;  %v6241_v61 = vmul.f32 1.442695, %v8532_v8 }
 0x819   :  { %v5774_v51 = vadd.f32 %v5773_v40, %v5685_v21  ;;  %v12280_v40 = vld [vmem:[#allocation87_spill] sm:$0xff] }
 0x81a   :  { %v8529_v43 = vadd.f32 -10.0, %v8465_v42  ;;  %v8470_v3 = vclamps-f32 %v12280_v40, 10.0 }
 0x81b   :  { %v5862_v45 = vpop.f32.mrf.mxu2  ;;  %v5776_v34 = vpop.f32.mrf.mxu1 }
 0x81c   :  { %v9252_v12 = vpop.eup %9251  ;;  %v6235_v13 = vmul.f32 1.442695, %v8529_v43  ;;  %v5863_v0 = vadd.f32 %v5862_v45, %v5774_v51 }
 0x81d   :  { %v5951_v6 = vpop.f32.mrf.mxu3  ;;  %v6350_v37 = vadd.f32 %v9252_v12, %v9250_v16  ;;  %v9254_v46 = vpop.eup %9253  ;;  %v8534_v12 = vadd.f32 -10.0, %v8470_v3 }
 0x81e   :  { %v5687_v15 = vpop.f32.mrf.mxu0  ;;  %9255 = vpow2.f32 %v6235_v13  ;;  %v5952_v32 = vadd.f32 %v5951_v6, %v5863_v0  ;;  %5815 = vmatmul.bf16.gmra.mxu1 %v12277_v63 }
 0x81f   :  { %v5688_v35 = vadd.f32 %v5687_v15, %v11168_v44  ;;  %6351 = vadd.xlane.f32.xlu1 %v6350_v37  ;;  %9257 = vpow2.f32 %v6237_v18  ;;  %v12282_v37 = vld [vmem:[#allocation65_spill] sm:$0xff] }
 0x820   :  { %v8467_v20 = vclamps-f32 %v5952_v32, 10.0  ;;  %5904 = vmatmul.bf16.gmra.mxu2 %v12278_v58  ;;  %v12283_v32 = vld [vmem:[#allocation66_spill] sm:$0xff] }
 0x821   :  { %5726 = vmatmul.bf16.gmra.mxu0 %v12276_v25  ;;  %v5777_v47 = vadd.f32 %v5776_v34, %v5688_v35  ;;  %v6245_v25 = vmul.f32 1.442695, %v8534_v12  ;;  %v12286_v12 = vld [vmem:[#allocation71_spill] sm:$0xff] }
 0x822   :  { %5993 = vmatmul.bf16.gmra.mxu3 %v12279_v22  ;;  %v8531_v36 = vadd.f32 -10.0, %v8467_v20  ;;  %v8472_v20 = vclamps-f32 %v11071_v26, 10.0 }
 0x823   :  { %v5865_v49 = vpop.f32.mrf.mxu2  ;;  %v5778_v57 = vpop.f32.mrf.mxu1 }
 0x824   :  { %v9256_v11 = vpop.eup %9255  ;;  %v6239_v31 = vmul.f32 1.442695, %v8531_v36  ;;  %v5866_v4 = vadd.f32 %v5865_v49, %v5777_v47  ;;  %v12284_v47 = vld [vmem:[#allocation67_spill] sm:$0xff] }
 0x825   :  { %v5954_v29 = vpop.f32.mrf.mxu3  ;;  %v6353_v39 = vadd.f32 %v9256_v11, %v9254_v46  ;;  %v9258_v42 = vpop.eup %9257  ;;  %v8536_v11 = vadd.f32 -10.0, %v8472_v20 }
 0x826   :  { %v5689_v59 = vpop.f32.mrf.mxu0  ;;  %9259 = vpow2.f32 %v6239_v31  ;;  %v5955_v23 = vadd.f32 %v5954_v29, %v5866_v4 }
 0x827   :  { %v5690_v7 = vadd.f32 %v5689_v59, %v11168_v44  ;;  %6354 = vadd.xlane.f32.xlu2 %v6353_v39  ;;  %9261 = vpow2.f32 %v6241_v61  ;;  %v6249_v8 = vmul.f32 1.442695, %v8536_v11 }
 0x828   :  { %v8469_v48 = vclamps-f32 %v5955_v23, 10.0 }
 0x829   :  { %v5779_v21 = vadd.f32 %v5778_v57, %v5690_v7  ;;  %v8474_v57 = vclamps-f32 %v11078_v2, 10.0 }
 0x82a   :  { %v8533_v24 = vadd.f32 -10.0, %v8469_v48 }
 0x82b   :  { %v5867_v52 = vpop.f32.mrf.mxu2  ;;  %v5781_v0 = vpop.f32.mrf.mxu1 }
 0x82c   :  { %v9260_v10 = vpop.eup %9259  ;;  %v6243_v43 = vmul.f32 1.442695, %v8533_v24  ;;  %v5868_v51 = vadd.f32 %v5867_v52, %v5779_v21 }
 0x82d   :  { %v5956_v16 = vpop.f32.mrf.mxu3  ;;  %v6356_v6 = vadd.f32 %v9260_v10, %v9258_v42  ;;  %v9262_v58 = vpop.eup %9261  ;;  %v8538_v42 = vadd.f32 -10.0, %v8474_v57 }
 0x82e   :  { %v5692_v45 = vpop.f32.mrf.mxu0  ;;  %9263 = vpow2.f32 %v6243_v43  ;;  %v5957_v15 = vadd.f32 %v5956_v16, %v5868_v51  ;;  %5820 = vmatmul.bf16.gmra.mxu1 %v12282_v37  ;;  %v12285_v16 = vld [vmem:[#allocation70_spill] sm:$0xff] }
 0x82f   :  { %v5693_v13 = vadd.f32 %v5692_v45, %v11168_v44  ;;  %6357 = vadd.xlane.f32.xlu0 %v6356_v6  ;;  %9265 = vpow2.f32 %v6245_v25  ;;  %v8476_v6 = vclamps-f32 %v11085_v5, 10.0 }
 0x830   :  { %v8471_v35 = vclamps-f32 %v5957_v15, 10.0  ;;  %5909 = vmatmul.bf16.gmra.mxu2 %v12283_v32  ;;  %v12288_v15 = vld [vmem:[#allocation73_spill] sm:$0xff] }
 0x831   :  { %5731 = vmatmul.bf16.gmra.mxu0 %v12281_v53  ;;  %v5782_v34 = vadd.f32 %v5781_v0, %v5693_v13  ;;  %v12287_v13 = vld [vmem:[#allocation72_spill] sm:$0xff]  ;;  %v6253_v0 = vmul.f32 1.442695, %v8538_v42 }
 0x832   :  { %5998 = vmatmul.bf16.gmra.mxu3 %v12284_v47  ;;  %v8535_v63 = vadd.f32 -10.0, %v8471_v35 }
 0x833   :  { %v5870_v18 = vpop.f32.mrf.mxu2  ;;  %v5783_v31 = vpop.f32.mrf.mxu1 }
 0x834   :  { %v9264_v28 = vpop.eup %9263  ;;  %v6247_v22 = vmul.f32 1.442695, %v8535_v63  ;;  %v5871_v36 = vadd.f32 %v5870_v18, %v5782_v34  ;;  %v8540_v63 = vadd.f32 -10.0, %v8476_v6 }
 0x835   :  { %v5959_v46 = vpop.f32.mrf.mxu3  ;;  %v6359_v4 = vadd.f32 %v9264_v28, %v9262_v58  ;;  %v9266_v7 = vpop.eup %9265 }
 0x836   :  { %v5694_v49 = vpop.f32.mrf.mxu0  ;;  %9267 = vpow2.f32 %v6247_v22  ;;  %v5960_v29 = vadd.f32 %v5959_v46, %v5871_v36  ;;  %v6257_v36 = vmul.f32 1.442695, %v8540_v63  ;;  %v12289_v46 = vld [vmem:[#allocation27_spill] sm:$0xff] }
 0x837   :  { %v5695_v59 = vadd.f32 %v5694_v49, %v11168_v44  ;;  %6360 = vadd.xlane.f32.xlu1 %v6359_v4  ;;  %9269 = vpow2.f32 %v6249_v8  ;;  %v8478_v49 = vclamps-f32 %v12289_v46, 10.0 }
 0x838   :  { %v8473_v26 = vclamps-f32 %v5960_v29, 10.0 }
 0x839   :  { %v5784_v23 = vadd.f32 %v5783_v31, %v5695_v59 }
 0x83a   :  { %v8537_v39 = vadd.f32 -10.0, %v8473_v26 }
 0x83b   :  { %v5872_v48 = vpop.f32.mrf.mxu2  ;;  %v5786_v10 = vpop.f32.mrf.mxu1 }
 0x83c   :  { %v9268_v61 = vpop.eup %9267  ;;  %v6251_v40 = vmul.f32 1.442695, %v8537_v39  ;;  %v5873_v3 = vadd.f32 %v5872_v48, %v5784_v23  ;;  %v8542_v23 = vadd.f32 -10.0, %v8478_v49 }
 0x83d   :  { %v5961_v24 = vpop.f32.mrf.mxu3  ;;  %v6362_v43 = vadd.f32 %v9268_v61, %v9266_v7  ;;  %v9270_v35 = vpop.eup %9269 }
 0x83e   :  { %v5697_v21 = vpop.f32.mrf.mxu0  ;;  %9271 = vpow2.f32 %v6251_v40  ;;  %v5962_v51 = vadd.f32 %v5961_v24, %v5873_v3  ;;  %5825 = vmatmul.bf16.gmra.mxu1 %v12286_v12  ;;  %v8480_v3 = vclamps-f32 %v11095_v33, 10.0  ;;  %v6261_v42 = vmul.f32 1.442695, %v8542_v23 }
 0x83f   :  { %v5698_v52 = vadd.f32 %v5697_v21, %v11168_v44  ;;  %6363 = vadd.xlane.f32.xlu2 %v6362_v43  ;;  %9273 = vpow2.f32 %v6253_v0 }
 0x840   :  { %v8475_v2 = vclamps-f32 %v5962_v51, 10.0  ;;  %5914 = vmatmul.bf16.gmra.mxu2 %v12287_v13 }
 0x841   :  { %5736 = vmatmul.bf16.gmra.mxu0 %v12285_v16  ;;  %v5787_v45 = vadd.f32 %v5786_v10, %v5698_v52  ;;  %v11238_v52 = vpop.xlane.xlu0 %4865 }
 0x842   :  { %6003 = vmatmul.bf16.gmra.mxu3 %v12288_v15  ;;  %v8539_v53 = vadd.f32 -10.0, %v8475_v2  ;;  %v8544_v2 = vadd.f32 -10.0, %v8480_v3  ;;  %v8488_v3 = vclamps-f32 %v11115_v60, 10.0 }
 0x843   :  { %v5875_v34 = vpop.f32.mrf.mxu2  ;;  %v5788_v58 = vpop.f32.mrf.mxu1 }
 0x844   :  { %v9272_v37 = vpop.eup %9271  ;;  %v6255_v32 = vmul.f32 1.442695, %v8539_v53  ;;  %v5876_v25 = vadd.f32 %v5875_v34, %v5787_v45  ;;  %v8482_v34 = vclamps-f32 %v11098_v62, 10.0 }
 0x845   :  { %v5964_v20 = vpop.f32.mrf.mxu3  ;;  %v6365_v18 = vadd.f32 %v9272_v37, %v9270_v35  ;;  %v9274_v4 = vpop.eup %9273  ;;  %v6265_v35 = vmul.f32 1.442695, %v8544_v2 }
 0x846   :  { %v5699_v47 = vpop.f32.mrf.mxu0  ;;  %9275 = vpow2.f32 %v6255_v32  ;;  %v5965_v28 = vadd.f32 %v5964_v20, %v5876_v25  ;;  %v11242_v32 = vpop.xlane.xlu1 %4868 }
 0x847   :  { %v5700_v22 = vadd.f32 %v5699_v47, %v11168_v44  ;;  %6366 = vadd.xlane.f32.xlu0 %v6365_v18  ;;  %9277 = vpow2.f32 %v6257_v36 }
 0x848   :  { %v8477_v5 = vclamps-f32 %v5965_v28, 10.0 }
 0x849   :  { %v5789_v31 = vadd.f32 %v5788_v58, %v5700_v22  ;;  %v12290_v58 = vld [vmem:[#allocation110_spill] sm:$0xff] }
 0x84a   :  { %v8541_v11 = vadd.f32 -10.0, %v8477_v5  ;;  %v8546_v5 = vadd.f32 -10.0, %v8482_v34 }
 0x84b   :  { %v5877_v29 = vpop.f32.mrf.mxu2  ;;  %v5791_v48 = vpop.f32.mrf.mxu1 }
 0x84c   :  { %v9276_v59 = vpop.eup %9275  ;;  %v6259_v26 = vmul.f32 1.442695, %v8541_v11  ;;  %v5878_v8 = vadd.f32 %v5877_v29, %v5789_v31  ;;  %v8484_v31 = vclamps-f32 %v11105_v19, 10.0  ;;  %v8486_v19 = vclamps-f32 %v11108_v14, 10.0 }
 0x84d   :  { %v5966_v57 = vpop.f32.mrf.mxu3  ;;  %v6368_v61 = vadd.f32 %v9276_v59, %v9274_v4  ;;  %v9278_v43 = vpop.eup %9277 }
 0x84e   :  { %v5702_v39 = vpop.f32.mrf.mxu0  ;;  %9279 = vpow2.f32 %v6259_v26  ;;  %v5967_v40 = vadd.f32 %v5966_v57, %v5878_v8  ;;  %v6269_v26 = vmul.f32 1.442695, %v8546_v5 }
 0x84f   :  { %v5703_v7 = vadd.f32 %v5702_v39, %v11168_v44  ;;  %6369 = vadd.xlane.f32.xlu1 %v6368_v61  ;;  %9281 = vpow2.f32 %v6261_v42  ;;  %v8548_v39 = vadd.f32 -10.0, %v8484_v31 }
 0x850   :  { %v8479_v24 = vclamps-f32 %v5967_v40, 10.0 }
 0x851   :  { %v5792_v21 = vadd.f32 %v5791_v48, %v5703_v7  ;;  %v11247_v7 = vpop.xlane.xlu2 %4871 }
 0x852   :  { %v8543_v10 = vadd.f32 -10.0, %v8479_v24  ;;  %v12291_v24 = vld [vmem:[#allocation112_spill] sm:$0xff] }
 0x853   :  { %v5880_v51 = vpop.f32.mrf.mxu2  ;;  %v5793_v6 = vpop.f32.mrf.mxu1 }
 0x854   :  { %v9280_v16 = vpop.eup %9279  ;;  %v6263_v45 = vmul.f32 1.442695, %v8543_v10  ;;  %v5881_v12 = vadd.f32 %v5880_v51, %v5792_v21 }
 0x855   :  { %v5969_v13 = vpop.f32.mrf.mxu3  ;;  %v6371_v15 = vadd.f32 %v9280_v16, %v9278_v43  ;;  %v9282_v63 = vpop.eup %9281 }
 0x856   :  { %v5704_v0 = vpop.f32.mrf.mxu0  ;;  %9283 = vpow2.f32 %v6263_v45  ;;  %v5970_v53 = vadd.f32 %v5969_v13, %v5881_v12  ;;  %v6273_v12 = vmul.f32 1.442695, %v8548_v39 }
 0x857   :  { %v5705_v33 = vadd.f32 %v5704_v0, %v11168_v44  ;;  %6372 = vadd.xlane.f32.xlu2 %v6371_v15  ;;  %9285 = vpow2.f32 %v6265_v35  ;;  %v8550_v15 = vadd.f32 -10.0, %v8486_v19 }
 0x858   :  { %v8481_v37 = vclamps-f32 %v5970_v53, 10.0  ;;  %v8552_v53 = vadd.f32 -10.0, %v8488_v3 }
 0x859   :  { %v5794_v20 = vadd.f32 %v5793_v6, %v5705_v33 }
 0x85a   :  { %v8545_v25 = vadd.f32 -10.0, %v8481_v37  ;;  %v6331_v47 = vpop.xlane.xlu0 %6330 }
 0x85b   :  { %v6425_v18 = vadd.f32 %v6331_v47, %v12290_v58  ;;  %v5882_v28 = vpop.f32.mrf.mxu2  ;;  %v5796_v4 = vpop.f32.mrf.mxu1  ;;  %v6281_v58 = vmul.f32 1.442695, %v8552_v53 }
 0x85c   :  { %v9284_v22 = vpop.eup %9283  ;;  %v6267_v36 = vmul.f32 1.442695, %v8545_v25  ;;  %v5883_v46 = vadd.f32 %v5882_v28, %v5794_v20  ;;  %v12292_v28 = vld [vmem:[#allocation113_spill] sm:$0xff] }
 0x85d   :  { %v5971_v49 = vpop.f32.mrf.mxu3  ;;  %9287 = vlog2.f32 %v6425_v18  ;;  %v6374_v29 = vadd.f32 %v9284_v22, %v9282_v63  ;;  %v9286_v23 = vpop.eup %9285  ;;  %v6277_v63 = vmul.f32 1.442695, %v8550_v15  ;;  %v8490_v18 = vclamps-f32 %v11118_v1, 10.0 }
 0x85e   :  { %v5707_v11 = vpop.f32.mrf.mxu0  ;;  %9289 = vpow2.f32 %v6267_v36  ;;  %v5972_v59 = vadd.f32 %v5971_v49, %v5883_v46  ;;  %v8492_v46 = vclamps-f32 %v11125_v41, 10.0 }
 0x85f   :  { %v5708_v62 = vadd.f32 %v5707_v11, %v11168_v44  ;;  %6375 = vadd.xlane.f32.xlu0 %v6374_v29  ;;  %9291 = vpow2.f32 %v6269_v26  ;;  %v8494_v29 = vclamps-f32 %v11128_v54, 10.0 }
 0x860   :  { %v8483_v8 = vclamps-f32 %v5972_v59, 10.0 }
 0x861   :  { %v5797_v57 = vadd.f32 %v5796_v4, %v5708_v62  ;;  %v8558_v54 = vadd.f32 -10.0, %v8494_v29 }
 0x862   :  { %v8547_v48 = vadd.f32 -10.0, %v8483_v8  ;;  %v6334_v61 = vpop.xlane.xlu1 %6333 }
 0x863   :  { %v9288_v40 = vpop.eup %9287  ;;  %v6426_v21 = vadd.f32 %v6334_v61, %v12291_v24  ;;  %v5885_v42 = vpop.f32.mrf.mxu2 }
 0x864   :  { %v9290_v10 = vpop.eup %9289  ;;  %v6458_v43 = vmul.f32 0.6931472, %v9288_v40  ;;  %v6271_v51 = vmul.f32 1.442695, %v8547_v48  ;;  %v5886_v16 = vadd.f32 %v5885_v42, %v5797_v57  ;;  %v5798_v13 = vpop.f32.mrf.mxu1  ;;  %v8556_v48 = vadd.f32 -10.0, %v8492_v46 }
 0x865   :  { %v5974_v2 = vpop.f32.mrf.mxu3  ;;  %9293 = vlog2.f32 %v6426_v21  ;;  %v6377_v0 = vadd.f32 %v9290_v10, %v9286_v23  ;;  %v9292_v34 = vpop.eup %9291  ;;  %v8554_v23 = vadd.f32 -10.0, %v8490_v18 }
 0x866   :  { %v5709_v45 = vpop.f32.mrf.mxu0  ;;  %v11252_v6 = vadd.f32 10.0, %v6458_v43  ;;  %9295 = vpow2.f32 %v6271_v51  ;;  %v5975_v14 = vadd.f32 %v5974_v2, %v5886_v16  ;;  %v12293_v51 = vld [vmem:[#allocation13_spill] sm:$0xff] }
 0x867   :  { %v5710_v60 = vadd.f32 %v5709_v45, %v11168_v44  ;;  %6378 = vadd.xlane.f32.xlu1 %v6377_v0  ;;  %9297 = vpow2.f32 %v6273_v12  ;;  %v6285_v43 = vmul.f32 1.442695, %v8554_v23  ;;  %v6289_v12 = vmul.f32 1.442695, %v8556_v48 }
 0x868   :  { %v6553_v33 = vmul.f32 1.442695, %v11252_v6  ;;  %v8485_v35 = vclamps-f32 %v5975_v14, 10.0 }
 0x869   :  { %v5799_v25 = vadd.f32 %v5798_v13, %v5710_v60 }
 0x86a   :  { %9299 = vpow2.f32 %v6553_v33  ;;  %v8549_v37 = vadd.f32 -10.0, %v8485_v35  ;;  %v6337_v20 = vpop.xlane.xlu2 %6336  ;;  %v6293_v33 = vmul.f32 1.442695, %v8558_v54 }
 0x86b   :  { %v9294_v47 = vpop.eup %9293  ;;  %v6427_v22 = vadd.f32 %v6337_v20, %v12292_v28  ;;  %v5887_v5 = vpop.f32.mrf.mxu2 }
 0x86c   :  { %v9296_v36 = vpop.eup %9295  ;;  %v6460_v49 = vmul.f32 0.6931472, %v9294_v47  ;;  %v6275_v11 = vmul.f32 1.442695, %v8549_v37  ;;  %v5888_v31 = vadd.f32 %v5887_v5, %v5799_v25  ;;  %v5801_v26 = vpop.f32.mrf.mxu1 }
 0x86d   :  { %v5976_v62 = vpop.f32.mrf.mxu3  ;;  %9301 = vlog2.f32 %v6427_v22  ;;  %v6380_v8 = vadd.f32 %v9296_v36, %v9292_v34  ;;  %v9298_v39 = vpop.eup %9297 }
 0x86e   :  { %v5712_v4 = vpop.f32.mrf.mxu0  ;;  %v11261_v57 = vadd.f32 10.0, %v6460_v49  ;;  %9303 = vpow2.f32 %v6275_v11  ;;  %v5977_v1 = vadd.f32 %v5976_v62, %v5888_v31 }
 0x86f   :  { %v5713_v59 = vadd.f32 %v5712_v4, %v11168_v44  ;;  %9305 = vpow2.f32 %v6277_v63  ;;  %6381 = vadd.xlane.f32.xlu2 %v6380_v8 }
 0x870   :  { %v9300_v41 = vpop.eup %9299  ;;  %v6555_v61 = vmul.f32 1.442695, %v11261_v57  ;;  %v8487_v40 = vclamps-f32 %v5977_v1, 10.0  ;;  %9307 = vpow2.f32 %v6281_v58 }
 0x871   :  { %v5802_v19 = vadd.f32 %v5801_v26, %v5713_v59  ;;  %v6617_v3 = vadd.f32 1.0, %v9300_v41  ;;  %v6620_v24 = vmul.f32 -0.5, %v9300_v41  ;;  %v6623_v58 = vand.u32 2147483647, %v9300_v41  ;;  %v12294_v26 = vld [vmem:[#allocation14_spill] sm:$0xff] }
 0x872   :  { %9309 = vpow2.f32 %v6555_v61  ;;  %v8551_v21 = vadd.f32 -10.0, %v8487_v40  ;;  %v6340_v42 = vpop.xlane.xlu0 %6339  ;;  %v8496_v59 = vclamps-f32 %v11135_v56, 10.0 }
 0x873   :  { %v9302_v10 = vpop.eup %9301  ;;  %9311 = vlog2.f32 %v6617_v3  ;;  %v6428_v16 = vadd.f32 %v6340_v42, %v12293_v51  ;;  %v5890_v2 = vpop.f32.mrf.mxu2  ;;  %v6621_v35 = vadd.f32 1.0, %v6620_v24  ;;  %vm6624_vm0 = vcmp.lt.f32.partialorder %v6623_v58, 0.0004427343  ;;  %v12295_v58 = vld [vmem:[#allocation68_spill] sm:$0xff] }
 0x874   :  { %v9304_v45 = vpop.eup %9303  ;;  %v6462_v13 = vmul.f32 0.6931472, %v9302_v10  ;;  %v6279_v0 = vmul.f32 1.442695, %v8551_v21  ;;  %v5891_v14 = vadd.f32 %v5890_v2, %v5802_v19  ;;  %v5803_v34 = vpop.f32.mrf.mxu1 }
 0x875   :  { %v5979_v60 = vpop.f32.mrf.mxu3  ;;  %v9306_v53 = vpop.eup %9305  ;;  %9313 = vlog2.f32 %v6428_v16  ;;  %v6383_v37 = vadd.f32 %v9304_v45, %v9298_v39  ;;  %v6622_v36 = vmul.f32 %v9300_v41, %v6621_v35  ;;  %v8560_v45 = vadd.f32 -10.0, %v8496_v59 }
 0x876   :  { %v5714_v15 = vpop.f32.mrf.mxu0  ;;  %v11265_v25 = vadd.f32 10.0, %v6462_v13  ;;  %9315 = vpow2.f32 %v6279_v0  ;;  %v5980_v20 = vadd.f32 %v5979_v60, %v5891_v14  ;;  %v11268_v63 = vpop.eup %9307  ;;  %v8498_v60 = vclamps-f32 %v11138_v9, 10.0 }
 0x877   :  { %v5715_v47 = vadd.f32 %v5714_v15, %v11168_v44  ;;  %9317 = vpow2.f32 %v6285_v43  ;;  %6384 = vadd.xlane.f32.xlu0 %v6383_v37  ;;  %v6905_v15 = vmul.f32 %v11252_v6, %v11252_v6 }
 0x878   :  { %v9310_v18 = vpop.eup %9309  ;;  %9319 = vpow2.f32 %v6289_v12  ;;  %v6557_v28 = vmul.f32 1.442695, %v11265_v25  ;;  %v8489_v22 = vclamps-f32 %v5980_v20, 10.0 }
 0x879   :  { %v9312_v5 = vpop.eup %9311  ;;  %9321 = vpow2.f32 %v6293_v33  ;;  %v6626_v46 = vadd.f32 1.0, %v9310_v18  ;;  %v6629_v49 = vmul.f32 -0.5, %v9310_v18  ;;  %v5804_v62 = vadd.f32 %v5803_v34, %v5715_v47 }
 0x87a   :  { %v6619_v11 = vmul.f32 0.6931472, %v9312_v5  ;;  %9323 = vpow2.f32 %v6557_v28  ;;  %v8553_v31 = vadd.f32 -10.0, %v8489_v22  ;;  %v6343_v4 = vpop.xlane.xlu1 %6342  ;;  %v6632_v16 = vand.u32 2147483647, %v9310_v18 }
 0x87b   :  { %v9314_v29 = vpop.eup %9313  ;;  %9325 = vlog2.f32 %v6626_v46  ;;  %v6429_v8 = vadd.f32 %v6343_v4, %v12294_v26  ;;  %v5892_v1 = vpop.f32.mrf.mxu2  ;;  %v6630_v3 = vadd.f32 1.0, %v6629_v49 }
 0x87c   :  { %v9316_v39 = vpop.eup %9315  ;;  %v6625_v23 = vsel %vm6624_vm0, %v6622_v36, %v6619_v11  ;;  %v6464_v48 = vmul.f32 0.6931472, %v9314_v29  ;;  %v6283_v61 = vmul.f32 1.442695, %v8553_v31  ;;  %v5893_v41 = vadd.f32 %v5892_v1, %v5804_v62  ;;  %v5806_v21 = vpop.f32.mrf.mxu1 }
 0x87d   :  { %v5981_v40 = vpop.f32.mrf.mxu3  ;;  %v11273_v54 = vpop.eup %9317  ;;  %9327 = vtanh.f32 %v6625_v23  ;;  %v6386_v56 = vadd.f32 %v9316_v39, %v9306_v53  ;;  %v6631_v53 = vmul.f32 %v9310_v18, %v6630_v3  ;;  %vm6633_vm2 = vcmp.lt.f32.partialorder %v6632_v16, 0.0004427343 }
 0x87e   :  { %v5717_v19 = vpop.f32.mrf.mxu0  ;;  %v11276_v42 = vpop.eup %9319  ;;  %v11278_v10 = vadd.f32 10.0, %v6464_v48  ;;  %9329 = vpow2.f32 %v6283_v61  ;;  %v5982_v43 = vadd.f32 %v5981_v40, %v5893_v41  ;;  %v6297_v39 = vmul.f32 1.442695, %v8560_v45 }
 0x87f   :  { %v5718_v24 = vadd.f32 %v5717_v19, %v11168_v44  ;;  %v11280_v51 = vpop.eup %9321  ;;  %9331 = vlog2.f32 %v6429_v8  ;;  %6387 = vadd.xlane.f32.xlu1 %v6386_v56  ;;  %v8562_v23 = vadd.f32 -10.0, %v8498_v60  ;;  %v8500_v41 = vclamps-f32 %v11145_v50, 10.0 }
 0x880   :  { %v9324_v2 = vpop.eup %9323  ;;  %v6559_v12 = vmul.f32 1.442695, %v11278_v10  ;;  %v8491_v13 = vclamps-f32 %v5982_v43, 10.0  ;;  %v6906_v40 = vmul.f32 %v11261_v57, %v11261_v57 }
 0x881   :  { %v5807_v0 = vadd.f32 %v5806_v21, %v5718_v24  ;;  %v9326_v14 = vpop.eup %9325  ;;  %v6635_v33 = vadd.f32 1.0, %v9324_v2  ;;  %v6638_v34 = vmul.f32 -0.5, %v9324_v2  ;;  %v6641_v26 = vand.u32 2147483647, %v9324_v2 }
 0x882   :  { %v6628_v35 = vmul.f32 0.6931472, %v9326_v14  ;;  %9333 = vpow2.f32 %v6559_v12  ;;  %v8555_v37 = vadd.f32 -10.0, %v8491_v13  ;;  %v6346_v20 = vpop.xlane.xlu2 %6345  ;;  %v12296_v13 = vld [vmem:[#allocation15_spill] sm:$0xff] }
 0x883   :  { %v9328_v47 = vpop.eup %9327  ;;  %9335 = vlog2.f32 %v6635_v33  ;;  %v6430_v28 = vadd.f32 %v6346_v20, %v12295_v58  ;;  %v5895_v22 = vpop.f32.mrf.mxu2  ;;  %v6639_v4 = vadd.f32 1.0, %v6638_v34  ;;  %vm6642_vm3 = vcmp.lt.f32.partialorder %v6641_v26, 0.0004427343 }
 0x884   :  { %v9330_v5 = vpop.eup %9329  ;;  %v6969_v36 = vmul.f32 %v9328_v47, %v6905_v15  ;;  %v6634_v9 = vsel %vm6633_vm2, %v6631_v53, %v6628_v35  ;;  %v6287_v46 = vmul.f32 1.442695, %v8555_v37  ;;  %v5896_v49 = vadd.f32 %v5895_v22, %v5807_v0  ;;  %v5808_v31 = vpop.f32.mrf.mxu1 }
 0x885   :  { %v5984_v6 = vpop.f32.mrf.mxu3  ;;  %v9332_v11 = vpop.eup %9331  ;;  %9337 = vtanh.f32 %v6634_v9  ;;  %v6389_v62 = vadd.f32 %v9330_v5, %v11268_v63  ;;  %v6640_v21 = vmul.f32 %v9324_v2, %v6639_v4  ;;  %v6301_v2 = vmul.f32 1.442695, %v8562_v23 }
 0x886   :  { %v5719_v18 = vpop.f32.mrf.mxu0  ;;  %7002 = vst.msk [vmem:[%s11647_s3] sm:$0xff] %vm7001_vm1, %v6969_v36  ;;  %v6466_v29 = vmul.f32 0.6931472, %v9332_v11  ;;  %9339 = vpow2.f32 %v6287_v46  ;;  %v5985_v59 = vadd.f32 %v5984_v6, %v5896_v49  ;;  %v8564_v22 = vadd.f32 -10.0, %v8500_v41 }
 0x887   :  { %9341 = vlog2.f32 %v6430_v28  ;;  %v5720_v8 = vadd.f32 %v5719_v18, %v11168_v44  ;;  %6390 = vadd.xlane.f32.xlu2 %v6389_v62  ;;  %v8502_v49 = vclamps-f32 %v11148_v30, 10.0  ;;  %v6907_v6 = vmul.f32 %v11265_v25, %v11265_v25  ;;  %v12297_v25 = vld [vmem:[#allocation16_spill] sm:$0xff] }
 0x888   :  { %v9334_v1 = vpop.eup %9333  ;;  %v11293_v48 = vadd.f32 10.0, %v6466_v29  ;;  %v8493_v63 = vclamps-f32 %v5985_v59, 10.0  ;;  %v6305_v26 = vmul.f32 1.442695, %v8564_v22 }
 0x889   :  { %v9336_v61 = vpop.eup %9335  ;;  %v6644_v19 = vadd.f32 1.0, %v9334_v1  ;;  %v6647_v3 = vmul.f32 -0.5, %v9334_v1  ;;  %v5809_v45 = vadd.f32 %v5808_v31, %v5720_v8  ;;  %v6650_v5 = vand.u32 2147483647, %v9334_v1 }
 0x88a   :  { %v6637_v24 = vmul.f32 0.6931472, %v9336_v61  ;;  %v6561_v56 = vmul.f32 1.442695, %v11293_v48  ;;  %v8557_v43 = vadd.f32 -10.0, %v8493_v63  ;;  %v6349_v16 = vpop.xlane.xlu0 %6348 }
 0x88b   :  { %v9338_v12 = vpop.eup %9337  ;;  %9343 = vlog2.f32 %v6644_v19  ;;  %v6431_v0 = vadd.f32 %v6349_v16, %v12296_v13  ;;  %v5897_v14 = vpop.f32.mrf.mxu2  ;;  %v6648_v34 = vadd.f32 1.0, %v6647_v3  ;;  %vm6651_vm4 = vcmp.lt.f32.partialorder %v6650_v5, 0.0004427343 }
 0x88c   :  { %v9340_v60 = vpop.eup %9339  ;;  %v6970_v50 = vmul.f32 %v9338_v12, %v6906_v40  ;;  %v6643_v15 = vsel %vm6642_vm3, %v6640_v21, %v6637_v24  ;;  %9345 = vpow2.f32 %v6561_v56  ;;  %v6291_v57 = vmul.f32 1.442695, %v8557_v43  ;;  %v5811_v20 = vpop.f32.mrf.mxu1 }
 0x88d   :  { %v5986_v53 = vpop.f32.mrf.mxu3  ;;  %v9342_v35 = vpop.eup %9341  ;;  %9347 = vtanh.f32 %v6643_v15  ;;  %v5898_v37 = vadd.f32 %v5897_v14, %v5809_v45  ;;  %v6392_v28 = vadd.f32 %v9340_v60, %v11273_v54  ;;  %v6649_v54 = vmul.f32 %v9334_v1, %v6648_v34 }
 0x88e   :  { %v5722_v33 = vpop.f32.mrf.mxu0  ;;  %7003 = vst.msk [vmem:[%s11647_s3 + $0x8] sm:$0xff] %vm7001_vm1, %v6970_v50  ;;  %v6468_v47 = vmul.f32 0.6931472, %v9342_v35  ;;  %9349 = vpow2.f32 %v6291_v57  ;;  %v8566_v3 = vadd.f32 -10.0, %v8502_v49 }
 0x88f   :  { %v5723_v58 = vadd.f32 %v5722_v33, %v11168_v44  ;;  %9351 = vlog2.f32 %v6431_v0  ;;  %v5987_v36 = vadd.f32 %v5986_v53, %v5898_v37  ;;  %6393 = vadd.xlane.f32.xlu0 %v6392_v28  ;;  %v6908_v33 = vmul.f32 %v11278_v10, %v11278_v10  ;;  %v12298_v28 = vld [vmem:[#allocation17_spill] sm:$0xff] }
 0x890   :  { %9353 = vpow2.f32 %v6297_v39  ;;  %v11306_v9 = vadd.f32 10.0, %v6468_v47  ;;  %v6309_v50 = vmul.f32 1.442695, %v8566_v3 }
 0x891   :  { %v9344_v46 = vpop.eup %9343  ;;  %9355 = vpow2.f32 %v6301_v2  ;;  %v8495_v18 = vclamps-f32 %v5987_v36, 10.0  ;;  %v5812_v4 = vadd.f32 %v5811_v20, %v5723_v58  ;;  %v8504_v20 = vclamps-f32 %v11155_v38, 10.0 }
 0x892   :  { %v11311_v11 = vpop.eup %9345  ;;  %v6646_v31 = vmul.f32 0.6931472, %v9344_v46  ;;  %v6563_v62 = vmul.f32 1.442695, %v11306_v9  ;;  %v6352_v29 = vpop.xlane.xlu1 %6351 }
 0x893   :  { %v9348_v59 = vpop.eup %9347  ;;  %v6653_v8 = vadd.f32 1.0, %v11311_v11  ;;  %v8559_v39 = vadd.f32 -10.0, %v8495_v18  ;;  %v5900_v23 = vpop.f32.mrf.mxu2  ;;  %v6432_v41 = vadd.f32 %v6352_v29, %v12297_v25  ;;  %v6656_v24 = vmul.f32 -0.5, %v11311_v11 }
 0x894   :  { %v9350_v30 = vpop.eup %9349  ;;  %v6971_v63 = vmul.f32 %v9348_v59, %v6907_v6  ;;  %v6652_v61 = vsel %vm6651_vm4, %v6649_v54, %v6646_v31  ;;  %9357 = vpow2.f32 %v6563_v62  ;;  %v5813_v56 = vpop.f32.mrf.mxu1  ;;  %v5901_v12 = vadd.f32 %v5900_v23, %v5812_v4 }
 0x895   :  { %v5989_v40 = vpop.f32.mrf.mxu3  ;;  %v9352_v1 = vpop.eup %9351  ;;  %9359 = vtanh.f32 %v6652_v61  ;;  %v6295_v21 = vmul.f32 1.442695, %v8559_v39  ;;  %v6395_v0 = vadd.f32 %v9350_v30, %v11276_v42  ;;  %v6657_v15 = vadd.f32 1.0, %v6656_v24 }
 0x896   :  { %v5724_v19 = vpop.f32.mrf.mxu0  ;;  %v11317_v43 = vpop.eup %9353  ;;  %7004 = vst.msk [vmem:[%s11647_s3 + $0x10] sm:$0xff] %vm7001_vm1, %v6971_v63  ;;  %9361 = vlog2.f32 %v6653_v8  ;;  %v6470_v16 = vmul.f32 0.6931472, %v9352_v1  ;;  %v5990_v60 = vadd.f32 %v5989_v40, %v5901_v12  ;;  %v6659_v57 = vand.u32 2147483647, %v11311_v11 }
 0x897   :  { %v5725_v45 = vadd.f32 %v5724_v19, %v11168_v44  ;;  %v11324_v13 = vpop.eup %9355  ;;  %9363 = vpow2.f32 %v6295_v21  ;;  %6396 = vadd.xlane.f32.xlu1 %v6395_v0  ;;  %v6658_v62 = vmul.f32 %v11311_v11, %v6657_v15  ;;  %v8568_v39 = vadd.f32 -10.0, %v8504_v20 }
 0x898   :  { %v11327_v14 = vadd.f32 10.0, %v6470_v16  ;;  %9365 = vlog2.f32 %v6432_v41  ;;  %v8497_v2 = vclamps-f32 %v5990_v60, 10.0  ;;  %vm6660_vm5 = vcmp.lt.f32.partialorder %v6659_v57, 0.0004427343 }
 0x899   :  { %9367 = vpow2.f32 %v6305_v26  ;;  %v5814_v34 = vadd.f32 %v5813_v56, %v5725_v45  ;;  %v6313_v21 = vmul.f32 1.442695, %v8568_v39  ;;  %v6909_v56 = vmul.f32 %v11293_v48, %v11293_v48 }
 0x89a   :  { %v9358_v53 = vpop.eup %9357  ;;  %v6565_v35 = vmul.f32 1.442695, %v11327_v14  ;;  %v6355_v37 = vpop.xlane.xlu2 %6354  ;;  %v8561_v49 = vadd.f32 -10.0, %v8497_v2  ;;  %v12299_v2 = vld [vmem:[#allocation69_spill] sm:$0xff] }
 0x89b   :  { %v9360_v42 = vpop.eup %9359  ;;  %v6662_v47 = vadd.f32 1.0, %v9358_v53  ;;  %v6665_v58 = vmul.f32 -0.5, %v9358_v53  ;;  %v6433_v22 = vadd.f32 %v6355_v37, %v12298_v28  ;;  %v5902_v5 = vpop.f32.mrf.mxu2  ;;  %v6668_v25 = vand.u32 2147483647, %v9358_v53 }
 0x89c   :  { %v9362_v36 = vpop.eup %9361  ;;  %v6972_v46 = vmul.f32 %v9360_v42, %v6908_v33  ;;  %9369 = vpow2.f32 %v6565_v35  ;;  %v5903_v6 = vadd.f32 %v5902_v5, %v5814_v34  ;;  %v5816_v4 = vpop.f32.mrf.mxu1  ;;  %v6299_v29 = vmul.f32 1.442695, %v8561_v49 }
 0x89d   :  { %v5991_v18 = vpop.f32.mrf.mxu3  ;;  %v9364_v31 = vpop.eup %9363  ;;  %v6655_v54 = vmul.f32 0.6931472, %v9362_v36  ;;  %9371 = vlog2.f32 %v6662_v47  ;;  %v6666_v63 = vadd.f32 1.0, %v6665_v58  ;;  %vm6669_vm6 = vcmp.lt.f32.partialorder %v6668_v25, 0.0004427343 }
 0x89e   :  { %v5727_v10 = vpop.f32.mrf.mxu0  ;;  %v9366_v38 = vpop.eup %9365  ;;  %7005 = vst.msk [vmem:[%s11647_s3 + $0x18] sm:$0xff] %vm7001_vm1, %v6972_v46  ;;  %9373 = vlog2.f32 %v6433_v22  ;;  %v5992_v59 = vadd.f32 %v5991_v18, %v5903_v6  ;;  %v6398_v11 = vadd.f32 %v9364_v31, %v11280_v51  ;;  %v8506_v28 = vclamps-f32 %v11158_v27, 10.0 }
 0x89f   :  { %v5728_v26 = vadd.f32 %v5727_v10, %v11168_v44  ;;  %v11341_v8 = vpop.eup %9367  ;;  %v6661_v23 = vsel %vm6660_vm5, %v6658_v62, %v6655_v54  ;;  %v6472_v30 = vmul.f32 0.6931472, %v9366_v38  ;;  %v6667_v60 = vmul.f32 %v9358_v53, %v6666_v63 }
 0x8a0   :  { %9375 = vtanh.f32 %v6661_v23  ;;  %v8499_v61 = vclamps-f32 %v5992_v59, 10.0  ;;  %6399 = vadd.xlane.f32.xlu2 %v6398_v11  ;;  %v8570_v62 = vadd.f32 -10.0, %v8506_v28 }
 0x8a1   :  { %v11344_v41 = vadd.f32 10.0, %v6472_v30  ;;  %9377 = vpow2.f32 %v6299_v29  ;;  %v5817_v1 = vadd.f32 %v5816_v4, %v5728_v26  ;;  %v6910_v4 = vmul.f32 %v11306_v9, %v11306_v9 }
 0x8a2   :  { %v9370_v40 = vpop.eup %9369  ;;  %9379 = vpow2.f32 %v6309_v50  ;;  %v8563_v19 = vadd.f32 -10.0, %v8499_v61  ;;  %v6358_v3 = vpop.xlane.xlu0 %6357 }
 0x8a3   :  { %v9372_v24 = vpop.eup %9371  ;;  %v6671_v16 = vadd.f32 1.0, %v9370_v40  ;;  %v6567_v51 = vmul.f32 1.442695, %v11344_v41  ;;  %v5905_v12 = vpop.f32.mrf.mxu2  ;;  %v6674_v15 = vmul.f32 -0.5, %v9370_v40  ;;  %v6434_v34 = vadd.f32 %v6358_v3, %v12299_v2 }
 0x8a4   :  { %v9374_v45 = vpop.eup %9373  ;;  %v6664_v0 = vmul.f32 0.6931472, %v9372_v24  ;;  %v6303_v57 = vmul.f32 1.442695, %v8563_v19  ;;  %v5818_v37 = vpop.f32.mrf.mxu1  ;;  %v5906_v48 = vadd.f32 %v5905_v12, %v5817_v1  ;;  %v6677_v6 = vand.u32 2147483647, %v9370_v40 }
 0x8a5   :  { %v5994_v33 = vpop.f32.mrf.mxu3  ;;  %9381 = vlog2.f32 %v6671_v16  ;;  %v6474_v50 = vmul.f32 0.6931472, %v9374_v45  ;;  %v6675_v36 = vadd.f32 1.0, %v6674_v15 }
 0x8a6   :  { %v5729_v35 = vpop.f32.mrf.mxu0  ;;  %v9376_v42 = vpop.eup %9375  ;;  %v6670_v20 = vsel %vm6669_vm6, %v6667_v60, %v6664_v0  ;;  %9383 = vpow2.f32 %v6567_v51  ;;  %v5995_v46 = vadd.f32 %v5994_v33, %v5906_v48  ;;  %vm6678_vm7 = vcmp.lt.f32.partialorder %v6677_v6, 0.0004427343 }
 0x8a7   :  { %v5730_v47 = vadd.f32 %v5729_v35, %v11168_v44  ;;  %v9378_v58 = vpop.eup %9377  ;;  %v6973_v53 = vmul.f32 %v9376_v42, %v6909_v56  ;;  %9385 = vtanh.f32 %v6670_v20  ;;  %v11352_v22 = vadd.f32 10.0, %v6474_v50  ;;  %v12301_v20 = vld [vmem:[#allocation81_spill] sm:$0xff] }
 0x8a8   :  { %v11354_v5 = vpop.eup %9379  ;;  %9387 = vpow2.f32 %v6303_v57  ;;  %v6401_v49 = vadd.f32 %v9378_v58, %v11317_v43  ;;  %v8501_v27 = vclamps-f32 %v5995_v46, 10.0  ;;  %v12300_v43 = vld [vmem:[#allocation18_spill] sm:$0xff]  ;;  %v6676_v39 = vmul.f32 %v9370_v40, %v6675_v36 }
 0x8a9   :  { %7006 = vst.msk [vmem:[%s11647_s3 + $0x20] sm:$0xff] %vm7001_vm1, %v6973_v53  ;;  %v6569_v18 = vmul.f32 1.442695, %v11352_v22  ;;  %9389 = vlog2.f32 %v6434_v34  ;;  %v5819_v10 = vadd.f32 %v5818_v37, %v5730_v47  ;;  %v6317_v51 = vmul.f32 1.442695, %v8570_v62 }
 0x8aa   :  { %9391 = vpow2.f32 %v6313_v21  ;;  %6402 = vadd.xlane.f32.xlu0 %v6401_v49  ;;  %v6361_v31 = vpop.xlane.xlu1 %6360  ;;  %v8565_v23 = vadd.f32 -10.0, %v8501_v27  ;;  %v6911_v58 = vmul.f32 %v11327_v14, %v11327_v14 }
 0x8ab   :  { %v9382_v54 = vpop.eup %9381  ;;  %9393 = vpow2.f32 %v6569_v18  ;;  %v6435_v38 = vadd.f32 %v6361_v31, %v12300_v43  ;;  %v5907_v29 = vpop.f32.mrf.mxu2 }
 0x8ac   :  { %v11365_v59 = vpop.eup %9383  ;;  %v6673_v26 = vmul.f32 0.6931472, %v9382_v54  ;;  %v5908_v30 = vadd.f32 %v5907_v29, %v5819_v10  ;;  %v5821_v9 = vpop.f32.mrf.mxu1  ;;  %v6307_v21 = vmul.f32 1.442695, %v8565_v23 }
 0x8ad   :  { %v5996_v11 = vpop.f32.mrf.mxu3  ;;  %v9386_v61 = vpop.eup %9385  ;;  %v6680_v25 = vadd.f32 1.0, %v11365_v59  ;;  %v6683_v19 = vmul.f32 -0.5, %v11365_v59  ;;  %9395 = vlog2.f32 %v6435_v38 }
 0x8ae   :  { %v5732_v63 = vpop.f32.mrf.mxu0  ;;  %v9388_v1 = vpop.eup %9387  ;;  %v6974_v3 = vmul.f32 %v9386_v61, %v6910_v4  ;;  %v6679_v24 = vsel %vm6678_vm7, %v6676_v39, %v6673_v26  ;;  %v5997_v56 = vadd.f32 %v5996_v11, %v5908_v30 }
 0x8af   :  { %v9390_v16 = vpop.eup %9389  ;;  %9397 = vtanh.f32 %v6679_v24  ;;  %v5733_v40 = vadd.f32 %v5732_v63, %v11168_v44  ;;  %v6404_v60 = vadd.f32 %v9388_v1, %v11324_v13  ;;  %v6684_v57 = vadd.f32 1.0, %v6683_v19 }
 0x8b0   :  { %v11370_v12 = vpop.eup %9391  ;;  %7007 = vst.msk [vmem:[%s11647_s3 + $0x28] sm:$0xff] %vm7001_vm1, %v6974_v3  ;;  %9399 = vlog2.f32 %v6680_v25  ;;  %v6476_v45 = vmul.f32 0.6931472, %v9390_v16  ;;  %v8503_v0 = vclamps-f32 %v5997_v56, 10.0  ;;  %v6686_v13 = vand.u32 2147483647, %v11365_v59 }
 0x8b1   :  { %v9394_v15 = vpop.eup %9393  ;;  %9401 = vpow2.f32 %v6307_v21  ;;  %v5822_v50 = vadd.f32 %v5821_v9, %v5733_v40  ;;  %6405 = vadd.xlane.f32.xlu1 %v6404_v60  ;;  %v6685_v10 = vmul.f32 %v11365_v59, %v6684_v57  ;;  %v12302_v60 = vld [vmem:[#allocation50_spill] sm:$0xff] }
 0x8b2   :  { %v6689_v33 = vadd.f32 1.0, %v9394_v15  ;;  %v11377_v35 = vadd.f32 10.0, %v6476_v45  ;;  %v6364_v2 = vpop.xlane.xlu2 %6363  ;;  %9403 = vpow2.f32 %v6317_v51  ;;  %v6692_v37 = vmul.f32 -0.5, %v9394_v15 }
 0x8b3   :  { %v9396_v34 = vpop.eup %9395  ;;  %v8567_v42 = vadd.f32 -10.0, %v8503_v0  ;;  %v6436_v48 = vadd.f32 %v6364_v2, %v12301_v20  ;;  %v5910_v47 = vpop.f32.mrf.mxu2  ;;  %vm6687_vm8 = vcmp.lt.f32.partialorder %v6686_v13, 0.0004427343  ;;  %v6695_v29 = vand.u32 2147483647, %v9394_v15 }
 0x8b4   :  { %9405 = vlog2.f32 %v6689_v33  ;;  %v6571_v28 = vmul.f32 1.442695, %v11377_v35  ;;  %v6478_v49 = vmul.f32 0.6931472, %v9396_v34  ;;  %v5911_v31 = vadd.f32 %v5910_v47, %v5822_v50  ;;  %v5823_v54 = vpop.f32.mrf.mxu1 }
 0x8b5   :  { %v5999_v53 = vpop.f32.mrf.mxu3  ;;  %v9398_v46 = vpop.eup %9397  ;;  %v6311_v6 = vmul.f32 1.442695, %v8567_v42  ;;  %9407 = vlog2.f32 %v6436_v48  ;;  %v6693_v4 = vadd.f32 1.0, %v6692_v37  ;;  %vm6696_vm9 = vcmp.lt.f32.partialorder %v6695_v29, 0.0004427343 }
 0x8b6   :  { %v5734_v36 = vpop.f32.mrf.mxu0  ;;  %v9400_v18 = vpop.eup %9399  ;;  %v6975_v27 = vmul.f32 %v9398_v46, %v6911_v58  ;;  %9409 = vpow2.f32 %v6571_v28  ;;  %v11385_v43 = vadd.f32 10.0, %v6478_v49  ;;  %v6000_v26 = vadd.f32 %v5999_v53, %v5911_v31 }
 0x8b7   :  { %v9402_v62 = vpop.eup %9401  ;;  %v6682_v14 = vmul.f32 0.6931472, %v9400_v18  ;;  %v5735_v38 = vadd.f32 %v5734_v36, %v11168_v44  ;;  %9411 = vpow2.f32 %v6311_v6  ;;  %v6694_v1 = vmul.f32 %v9394_v15, %v6693_v4 }
 0x8b8   :  { %7008 = vst.msk [vmem:[%s11647_s3 + $0x30] sm:$0xff] %vm7001_vm1, %v6975_v27  ;;  %v6407_v59 = vadd.f32 %v9402_v62, %v11341_v8  ;;  %v11393_v39 = vpop.eup %9403  ;;  %v6573_v30 = vmul.f32 1.442695, %v11385_v43  ;;  %v8505_v63 = vclamps-f32 %v6000_v26, 10.0  ;;  %v6912_v34 = vmul.f32 %v11344_v41, %v11344_v41 }
 0x8b9   :  { %v6688_v23 = vsel %vm6687_vm8, %v6685_v10, %v6682_v14  ;;  %v5824_v61 = vadd.f32 %v5823_v54, %v5735_v38  ;;  %v8508_v20 = vclamps-f32 %v11165_v55, 10.0  ;;  %v6913_v46 = vmul.f32 %v11352_v22, %v11352_v22  ;;  %v12303_v10 = vld [vmem:[#allocation74_spill] sm:$0xff] }
 0x8ba   :  { %v9406_v11 = vpop.eup %9405  ;;  %9413 = vtanh.f32 %v6688_v23  ;;  %6408 = vadd.xlane.f32.xlu2 %v6407_v59  ;;  %v6367_v25 = vpop.xlane.xlu0 %6366  ;;  %v8569_v21 = vadd.f32 -10.0, %v8505_v63  ;;  %v8510_v22 = vclamps-f32 %v11171_v17, 10.0 }
 0x8bb   :  { %v9408_v19 = vpop.eup %9407  ;;  %v6691_v9 = vmul.f32 0.6931472, %v9406_v11  ;;  %9415 = vpow2.f32 %v6573_v30  ;;  %v5912_v3 = vpop.f32.mrf.mxu2  ;;  %v6437_v57 = vadd.f32 %v6367_v25, %v12302_v60  ;;  %v8572_v14 = vadd.f32 -10.0, %v8508_v20 }
 0x8bc   :  { %v9410_v24 = vpop.eup %9409  ;;  %v6480_v8 = vmul.f32 0.6931472, %v9408_v19  ;;  %v5913_v56 = vadd.f32 %v5912_v3, %v5824_v61  ;;  %v6315_v50 = vmul.f32 1.442695, %v8569_v21  ;;  %v5826_v58 = vpop.f32.mrf.mxu1 }
 0x8bd   :  { %v6001_v16 = vpop.f32.mrf.mxu3  ;;  %v6697_v40 = vsel %vm6696_vm9, %v6694_v1, %v6691_v9  ;;  %v6698_v45 = vadd.f32 1.0, %v9410_v24  ;;  %v6701_v0 = vmul.f32 -0.5, %v9410_v24  ;;  %v9412_v15 = vpop.eup %9411  ;;  %v6704_v53 = vand.u32 2147483647, %v9410_v24 }
 0x8be   :  { %v5737_v51 = vpop.f32.mrf.mxu0  ;;  %9417 = vtanh.f32 %v6697_v40  ;;  %v11397_v33 = vadd.f32 10.0, %v6480_v8  ;;  %v6002_v2 = vadd.f32 %v6001_v16, %v5913_v56  ;;  %v6410_v27 = vadd.f32 %v9412_v15, %v11354_v5 }
 0x8bf   :  { %9419 = vlog2.f32 %v6698_v45  ;;  %v5738_v37 = vadd.f32 %v5737_v51, %v11168_v44  ;;  %v6702_v41 = vadd.f32 1.0, %v6701_v0  ;;  %vm11413_vm10 = vcmp.lt.f32.partialorder %v6704_v53, 0.0004427343  ;;  %v12308_v53 = vld [vmem:[#allocation19_spill] sm:$0xff]  ;;  %v12310_v45 = vld [vmem:[#allocation21_spill] sm:$0xff] }
 0x8c0   :  { %v9414_v42 = vpop.eup %9413  ;;  %v6575_v48 = vmul.f32 1.442695, %v11397_v33  ;;  %9421 = vpow2.f32 %v6315_v50  ;;  %v8507_v47 = vclamps-f32 %v6002_v2, 10.0  ;;  %6411 = vadd.xlane.f32.xlu0 %v6410_v27  ;;  %v6321_v8 = vmul.f32 1.442695, %v8572_v14 }
 0x8c1   :  { %v9416_v13 = vpop.eup %9415  ;;  %v6976_v28 = vmul.f32 %v9414_v42, %v6912_v34  ;;  %9423 = vlog2.f32 %v6437_v57  ;;  %v5827_v36 = vadd.f32 %v5826_v58, %v5738_v37  ;;  %v6703_v63 = vmul.f32 %v9410_v24, %v6702_v41 }
 0x8c2   :  { %v6707_v49 = vadd.f32 1.0, %v9416_v13  ;;  %9425 = vpow2.f32 %v6575_v48  ;;  %v6370_v6 = vpop.xlane.xlu1 %6369  ;;  %v6710_v55 = vmul.f32 -0.5, %v9416_v13  ;;  %v8571_v18 = vadd.f32 -10.0, %v8507_v47 }
 0x8c3   :  { %7009 = vst.msk [vmem:[%s11647_s3 + $0x38] sm:$0xff] %vm7001_vm1, %v6976_v28  ;;  %v6438_v31 = vadd.f32 %v6370_v6, %v12303_v10  ;;  %v5915_v54 = vpop.f32.mrf.mxu2  ;;  %v6713_v61 = vand.u32 2147483647, %v9416_v13  ;;  %v8574_v16 = vadd.f32 -10.0, %v8510_v22  ;;  %v6914_v58 = vmul.f32 %v11377_v35, %v11377_v35 }
 0x8c4   :  { %v9418_v62 = vpop.eup %9417  ;;  %9427 = vlog2.f32 %v6707_v49  ;;  %v5916_v4 = vadd.f32 %v5915_v54, %v5827_v36  ;;  %v6319_v30 = vmul.f32 1.442695, %v8571_v18  ;;  %v6711_v17 = vadd.f32 1.0, %v6710_v55  ;;  %v5828_v60 = vpop.f32.mrf.mxu1 }
 0x8c5   :  { %v6004_v38 = vpop.f32.mrf.mxu3  ;;  %v9420_v26 = vpop.eup %9419  ;;  %v6977_v59 = vmul.f32 %v9418_v62, %v6913_v46  ;;  %9429 = vlog2.f32 %v6438_v31  ;;  %vm11425_vm11 = vcmp.lt.f32.partialorder %v6713_v61, 0.0004427343  ;;  %v6325_v10 = vmul.f32 1.442695, %v8574_v16 }
 0x8c6   :  { %v5739_v29 = vpop.f32.mrf.mxu0  ;;  %v9422_v5 = vpop.eup %9421  ;;  %v6700_v11 = vmul.f32 0.6931472, %v9420_v26  ;;  %v6005_v25 = vadd.f32 %v6004_v38, %v5916_v4  ;;  %9431 = vpow2.f32 %v6319_v30  ;;  %v6712_v15 = vmul.f32 %v9416_v13, %v6711_v17  ;;  %v12309_v26 = vld [vmem:[#allocation20_spill] sm:$0xff] }
 0x8c7   :  { %v9424_v19 = vpop.eup %9423  ;;  %7010 = vst.msk [vmem:[%s11647_s3 + $0x40] sm:$0xff] %vm7001_vm1, %v6977_v59  ;;  %v5740_v9 = vadd.f32 %v5739_v29, %v11168_v44  ;;  %v6413_v1 = vadd.f32 %v9422_v5, %v11370_v12  ;;  %v6915_v38 = vmul.f32 %v11385_v43, %v11385_v43 }
 0x8c8   :  { %v9426_v3 = vpop.eup %9425  ;;  %v6706_v21 = vsel %vm11413_vm10, %v6703_v63, %v6700_v11  ;;  %v6482_v24 = vmul.f32 0.6931472, %v9424_v19  ;;  %v8509_v56 = vclamps-f32 %v6005_v25, 10.0 }
 0x8c9   :  { %9433 = vtanh.f32 %v6706_v21  ;;  %v6716_v51 = vadd.f32 1.0, %v9426_v3  ;;  %6414 = vadd.xlane.f32.xlu1 %v6413_v1  ;;  %v6719_v0 = vmul.f32 -0.5, %v9426_v3  ;;  %v5829_v34 = vadd.f32 %v5828_v60, %v5740_v9 }
 0x8ca   :  { %v9428_v40 = vpop.eup %9427  ;;  %v11429_v44 = vadd.f32 10.0, %v6482_v24  ;;  %v8573_v12 = vadd.f32 -10.0, %v8509_v56  ;;  %v6373_v57 = vpop.xlane.xlu2 %6372  ;;  %v6722_v18 = vand.u32 2147483647, %v9426_v3  ;;  %v6916_v21 = vmul.f32 %v11397_v33, %v11397_v33 }
 0x8cb   :  { %v9430_v50 = vpop.eup %9429  ;;  %v6709_v2 = vmul.f32 0.6931472, %v9428_v40  ;;  %9435 = vlog2.f32 %v6716_v51  ;;  %v5917_v37 = vpop.f32.mrf.mxu2  ;;  %v6439_v36 = vadd.f32 %v6373_v57, %v12308_v53  ;;  %v6720_v13 = vadd.f32 1.0, %v6719_v0 }
 0x8cc   :  { %9437 = vpow2.f32 %v6321_v8  ;;  %v6577_v42 = vmul.f32 1.442695, %v11429_v44  ;;  %v6484_v20 = vmul.f32 0.6931472, %v9430_v50  ;;  %v6323_v48 = vmul.f32 1.442695, %v8573_v12  ;;  %v9432_v47 = vpop.eup %9431 }
 0x8cd   :  { %v6715_v28 = vsel %vm11425_vm11, %v6712_v15, %v6709_v2  ;;  %v5918_v46 = vadd.f32 %v5917_v37, %v5829_v34  ;;  %v6006_v49 = vpop.f32.mrf.mxu3  ;;  %v6416_v6 = vadd.f32 %v9432_v47, %v11393_v39  ;;  %v6721_v22 = vmul.f32 %v9426_v3, %v6720_v13 }
 0x8ce   :  { %9439 = vtanh.f32 %v6715_v28  ;;  %v11437_v41 = vadd.f32 10.0, %v6484_v20  ;;  %vm6723_vm12 = vcmp.lt.f32.partialorder %v6722_v18, 0.0004427343 }
 0x8cf   :  { %v9434_v55 = vpop.eup %9433  ;;  %9441 = vpow2.f32 %v6577_v42  ;;  %v6007_v27 = vadd.f32 %v6006_v49, %v5918_v46  ;;  %6417 = vadd.xlane.f32.xlu2 %v6416_v6  ;;  %v12311_v6 = vld [vmem:[#allocation84_spill] sm:$0xff] }
 0x8d0   :  { %v6978_v31 = vmul.f32 %v9434_v55, %v6914_v58  ;;  %v6579_v35 = vmul.f32 1.442695, %v11437_v41  ;;  %9443 = vpow2.f32 %v6323_v48 }
 0x8d1   :  { %v9436_v54 = vpop.eup %9435  ;;  %9445 = vlog2.f32 %v6439_v36  ;;  %v8511_v62 = vclamps-f32 %v6007_v27, 10.0 }
 0x8d2   :  { %v9438_v14 = vpop.eup %9437  ;;  %7011 = vst.msk [vmem:[%s11647_s3 + $0x48] sm:$0xff] %vm7001_vm1, %v6978_v31  ;;  %v6718_v39 = vmul.f32 0.6931472, %v9436_v54  ;;  %9447 = vpow2.f32 %v6579_v35  ;;  %v6376_v4 = vpop.xlane.xlu0 %6375 }
 0x8d3   :  { %v8575_v29 = vadd.f32 -10.0, %v8511_v62  ;;  %v6440_v59 = vadd.f32 %v6376_v4, %v12309_v26  ;;  %9449 = vpow2.f32 %v6325_v10  ;;  %v6917_v62 = vmul.f32 %v11429_v44, %v11429_v44 }
 0x8d4   :  { %v9440_v23 = vpop.eup %9439  ;;  %v6724_v30 = vsel %vm6723_vm12, %v6721_v22, %v6718_v39 }
 0x8d5   :  { %v9442_v5 = vpop.eup %9441  ;;  %v6979_v11 = vmul.f32 %v9440_v23, %v6915_v38  ;;  %9451 = vtanh.f32 %v6724_v30  ;;  %v6327_v63 = vmul.f32 1.442695, %v8575_v29  ;;  %v6918_v38 = vmul.f32 %v11437_v41, %v11437_v41 }
 0x8d6   :  { %v9444_v61 = vpop.eup %9443  ;;  %v6725_v25 = vadd.f32 1.0, %v9442_v5  ;;  %9453 = vlog2.f32 %v6440_v59  ;;  %v6728_v43 = vmul.f32 -0.5, %v9442_v5  ;;  %v6731_v57 = vand.u32 2147483647, %v9442_v5 }
 0x8d7   :  { %v9446_v19 = vpop.eup %9445  ;;  %7012 = vst.msk [vmem:[%s11647_s3 + $0x50] sm:$0xff] %vm7001_vm1, %v6979_v11  ;;  %9455 = vpow2.f32 %v6327_v63  ;;  %v6419_v17 = vadd.f32 %v9444_v61, %v9438_v14 }
 0x8d8   :  { %v9448_v9 = vpop.eup %9447  ;;  %9457 = vlog2.f32 %v6725_v25  ;;  %v6486_v1 = vmul.f32 0.6931472, %v9446_v19  ;;  %v6729_v40 = vadd.f32 1.0, %v6728_v43  ;;  %vm6732_vm13 = vcmp.lt.f32.partialorder %v6731_v57, 0.0004427343  ;;  %v12313_v57 = vld [vmem:[#allocation22_spill] sm:$0xff] }
 0x8d9   :  { %v6734_v3 = vadd.f32 1.0, %v9448_v9  ;;  %6420 = vadd.xlane.f32.xlu0 %v6419_v17  ;;  %v9450_v8 = vpop.eup %9449  ;;  %v6737_v24 = vmul.f32 -0.5, %v9448_v9  ;;  %v6740_v48 = vand.u32 2147483647, %v9448_v9 }
 0x8da   :  { %v11454_v56 = vadd.f32 10.0, %v6486_v1  ;;  %v6379_v16 = vpop.xlane.xlu1 %6378  ;;  %v6730_v20 = vmul.f32 %v9442_v5, %v6729_v40  ;;  %v12312_v5 = vld [vmem:[#allocation51_spill] sm:$0xff] }
 0x8db   :  { %v9452_v51 = vpop.eup %9451  ;;  %9459 = vlog2.f32 %v6734_v3  ;;  %v6441_v0 = vadd.f32 %v6379_v16, %v12310_v45  ;;  %v6738_v33 = vadd.f32 1.0, %v6737_v24  ;;  %vm6741_vm14 = vcmp.lt.f32.partialorder %v6740_v48, 0.0004427343 }
 0x8dc   :  { %v9454_v12 = vpop.eup %9453  ;;  %v6980_v60 = vmul.f32 %v9452_v51, %v6916_v21  ;;  %v6581_v50 = vmul.f32 1.442695, %v11454_v56 }
 0x8dd   :  { %v9456_v2 = vpop.eup %9455  ;;  %v6488_v15 = vmul.f32 0.6931472, %v9454_v12  ;;  %9461 = vlog2.f32 %v6441_v0  ;;  %v6739_v46 = vmul.f32 %v9448_v9, %v6738_v33 }
 0x8de   :  { %v9458_v34 = vpop.eup %9457  ;;  %7013 = vst.msk [vmem:[%s11647_s3 + $0x58] sm:$0xff] %vm7001_vm1, %v6980_v60  ;;  %9463 = vpow2.f32 %v6581_v50  ;;  %v6422_v37 = vadd.f32 %v9456_v2, %v9450_v8 }
 0x8df   :  { %v6727_v42 = vmul.f32 0.6931472, %v9458_v34  ;;  %v11462_v47 = vadd.f32 10.0, %v6488_v15  ;;  %v6919_v15 = vmul.f32 %v11454_v56, %v11454_v56 }
 0x8e0   :  { %6423 = vadd.xlane.f32.xlu1 %v6422_v37 }
 0x8e1   :  { %v9460_v58 = vpop.eup %9459  ;;  %v6733_v28 = vsel %vm6732_vm13, %v6730_v20, %v6727_v42  ;;  %v6583_v53 = vmul.f32 1.442695, %v11462_v47 }
 0x8e2   :  { %9465 = vtanh.f32 %v6733_v28  ;;  %v6736_v36 = vmul.f32 0.6931472, %v9460_v58  ;;  %v6382_v13 = vpop.xlane.xlu2 %6381 }
 0x8e3   :  { %v9462_v49 = vpop.eup %9461  ;;  %9467 = vpow2.f32 %v6583_v53  ;;  %v6442_v55 = vadd.f32 %v6382_v13, %v12311_v6 }
 0x8e4   :  { %v9464_v18 = vpop.eup %9463  ;;  %v6742_v27 = vsel %vm6741_vm14, %v6739_v46, %v6736_v36  ;;  %v6490_v10 = vmul.f32 0.6931472, %v9462_v49  ;;  %v6920_v46 = vmul.f32 %v11462_v47, %v11462_v47  ;;  %v12314_v49 = vld [vmem:[#allocation102_spill] sm:$0xff] }
 0x8e5   :  { %9469 = vtanh.f32 %v6742_v27  ;;  %v6743_v31 = vadd.f32 1.0, %v9464_v18  ;;  %v6746_v35 = vmul.f32 -0.5, %v9464_v18  ;;  %v6749_v44 = vand.u32 2147483647, %v9464_v18 }
 0x8e6   :  { %v11466_v54 = vadd.f32 10.0, %v6490_v10  ;;  %9471 = vlog2.f32 %v6442_v55 }
 0x8e7   :  { %9473 = vlog2.f32 %v6743_v31  ;;  %v6747_v29 = vadd.f32 1.0, %v6746_v35  ;;  %vm6750_vm15 = vcmp.lt.f32.partialorder %v6749_v44, 0.0004427343 }
 0x8e8   :  { %v9466_v14 = vpop.eup %9465  ;;  %v6585_v39 = vmul.f32 1.442695, %v11466_v54 }
 0x8e9   :  { %v9468_v22 = vpop.eup %9467  ;;  %v6981_v4 = vmul.f32 %v9466_v14, %v6917_v62  ;;  %v6748_v43 = vmul.f32 %v9464_v18, %v6747_v29 }
 0x8ea   :  { %v6752_v26 = vadd.f32 1.0, %v9468_v22  ;;  %9475 = vpow2.f32 %v6585_v39  ;;  %v6385_v59 = vpop.xlane.xlu0 %6384  ;;  %v6755_v30 = vmul.f32 -0.5, %v9468_v22  ;;  %v6758_v8 = vand.u32 2147483647, %v9468_v22 }
 0x8eb   :  { %v9470_v23 = vpop.eup %9469  ;;  %7014 = vst.msk [vmem:[%s11647_s3 + $0x60] sm:$0xff] %vm7001_vm1, %v6981_v4  ;;  %v6443_v11 = vadd.f32 %v6385_v59, %v12312_v5 }
 0x8ec   :  { %v9472_v63 = vpop.eup %9471  ;;  %v6982_v61 = vmul.f32 %v9470_v23, %v6918_v38  ;;  %9477 = vlog2.f32 %v6752_v26  ;;  %v6756_v17 = vadd.f32 1.0, %v6755_v30  ;;  %vm6759_vm0 = vcmp.lt.f32.partialorder %v6758_v8, 0.0004427343  ;;  %v12315_v30 = vld [vmem:[#allocation76_spill] sm:$0xff] }
 0x8ed   :  { %v9474_v25 = vpop.eup %9473  ;;  %v6492_v19 = vmul.f32 0.6931472, %v9472_v63  ;;  %9479 = vlog2.f32 %v6443_v11 }
 0x8ee   :  { %7015 = vst.msk [vmem:[%s11647_s3 + $0x68] sm:$0xff] %vm7001_vm1, %v6982_v61  ;;  %v6745_v41 = vmul.f32 0.6931472, %v9474_v25  ;;  %v6757_v12 = vmul.f32 %v9468_v22, %v6756_v17  ;;  %v6921_v22 = vmul.f32 %v11466_v54, %v11466_v54 }
 0x8ef   :  { %v11482_v9 = vadd.f32 10.0, %v6492_v19 }
 0x8f0   :  { %v9476_v1 = vpop.eup %9475  ;;  %v6751_v3 = vsel %vm6750_vm15, %v6748_v43, %v6745_v41 }
 0x8f1   :  { %9481 = vtanh.f32 %v6751_v3  ;;  %v6761_v21 = vadd.f32 1.0, %v9476_v1  ;;  %v6764_v16 = vmul.f32 -0.5, %v9476_v1  ;;  %v6587_v51 = vmul.f32 1.442695, %v11482_v9 }
 0x8f2   :  { %v9478_v24 = vpop.eup %9477  ;;  %v6388_v40 = vpop.xlane.xlu1 %6387  ;;  %v6767_v42 = vand.u32 2147483647, %v9476_v1 }
 0x8f3   :  { %v9480_v45 = vpop.eup %9479  ;;  %v6754_v0 = vmul.f32 0.6931472, %v9478_v24  ;;  %9483 = vlog2.f32 %v6761_v21  ;;  %v6444_v50 = vadd.f32 %v6388_v40, %v12313_v57  ;;  %v6765_v34 = vadd.f32 1.0, %v6764_v16  ;;  %v12316_v57 = vld [vmem:[#allocation23_spill] sm:$0xff] }
 0x8f4   :  { %9485 = vpow2.f32 %v6587_v51  ;;  %v6494_v60 = vmul.f32 0.6931472, %v9480_v45  ;;  %vm6768_vm2 = vcmp.lt.f32.partialorder %v6767_v42, 0.0004427343  ;;  %v6922_v45 = vmul.f32 %v11482_v9, %v11482_v9 }
 0x8f5   :  { %v6760_v2 = vsel %vm6759_vm0, %v6757_v12, %v6754_v0  ;;  %v6766_v36 = vmul.f32 %v9476_v1, %v6765_v34 }
 0x8f6   :  { %9487 = vtanh.f32 %v6760_v2  ;;  %v11488_v33 = vadd.f32 10.0, %v6494_v60 }
 0x8f7   :  { %v9482_v37 = vpop.eup %9481  ;;  %9489 = vlog2.f32 %v6444_v50 }
 0x8f8   :  { %v6983_v20 = vmul.f32 %v9482_v37, %v6919_v15  ;;  %v6589_v48 = vmul.f32 1.442695, %v11488_v33  ;;  %v6923_v42 = vmul.f32 %v11488_v33, %v11488_v33 }
 0x8f9   :  { %v9484_v58 = vpop.eup %9483 }
 0x8fa   :  { %v9486_v28 = vpop.eup %9485  ;;  %7016 = vst.msk [vmem:[%s11647_s3 + $0x70] sm:$0xff] %vm7001_vm1, %v6983_v20  ;;  %v6763_v53 = vmul.f32 0.6931472, %v9484_v58  ;;  %9491 = vpow2.f32 %v6589_v48  ;;  %v6391_v56 = vpop.xlane.xlu2 %6390 }
 0x8fb   :  { %v6770_v13 = vadd.f32 1.0, %v9486_v28  ;;  %v6445_v6 = vadd.f32 %v6391_v56, %v12314_v49  ;;  %v6773_v31 = vmul.f32 -0.5, %v9486_v28  ;;  %v6776_v4 = vand.u32 2147483647, %v9486_v28 }
 0x8fc   :  { %v9488_v55 = vpop.eup %9487  ;;  %v6769_v18 = vsel %vm6768_vm2, %v6766_v36, %v6763_v53 }
 0x8fd   :  { %v9490_v27 = vpop.eup %9489  ;;  %v6984_v10 = vmul.f32 %v9488_v55, %v6920_v46  ;;  %9493 = vtanh.f32 %v6769_v18  ;;  %v6774_v14 = vadd.f32 1.0, %v6773_v31  ;;  %vm6777_vm3 = vcmp.lt.f32.partialorder %v6776_v4, 0.0004427343 }
 0x8fe   :  { %9495 = vlog2.f32 %v6770_v13  ;;  %v6496_v35 = vmul.f32 0.6931472, %v9490_v27 }
 0x8ff   :  { %7017 = vst.msk [vmem:[%s11647_s3 + $0x78] sm:$0xff] %vm7001_vm1, %v6984_v10  ;;  %9497 = vlog2.f32 %v6445_v6  ;;  %v6775_v61 = vmul.f32 %v9486_v28, %v6774_v14  ;;  %v12317_v6 = vld [vmem:[#allocation25_spill] sm:$0xff] }
 0x900   :  { %v9492_v62 = vpop.eup %9491  ;;  %v11502_v47 = vadd.f32 10.0, %v6496_v35 }
 0x901   :  { %v6779_v39 = vadd.f32 1.0, %v9492_v62  ;;  %v6782_v38 = vmul.f32 -0.5, %v9492_v62  ;;  %v6785_v41 = vand.u32 2147483647, %v9492_v62 }
 0x902   :  { %v6591_v29 = vmul.f32 1.442695, %v11502_v47  ;;  %v6394_v59 = vpop.xlane.xlu0 %6393 }
 0x903   :  { %v9494_v26 = vpop.eup %9493  ;;  %9499 = vlog2.f32 %v6779_v39  ;;  %v6446_v5 = vadd.f32 %v6394_v59, %v12315_v30  ;;  %v6783_v54 = vadd.f32 1.0, %v6782_v38  ;;  %vm6786_vm4 = vcmp.lt.f32.partialorder %v6785_v41, 0.0004427343 }
 0x904   :  { %v9496_v23 = vpop.eup %9495  ;;  %v6985_v44 = vmul.f32 %v9494_v26, %v6921_v22  ;;  %9501 = vpow2.f32 %v6591_v29  ;;  %v6924_v29 = vmul.f32 %v11502_v47, %v11502_v47 }
 0x905   :  { %v9498_v11 = vpop.eup %9497  ;;  %v6772_v63 = vmul.f32 0.6931472, %v9496_v23  ;;  %9503 = vlog2.f32 %v6446_v5  ;;  %v6784_v8 = vmul.f32 %v9492_v62, %v6783_v54 }
 0x906   :  { %7018 = vst.msk [vmem:[%s11647_s3 + $0x80] sm:$0xff] %vm7001_vm1, %v6985_v44  ;;  %v6498_v25 = vmul.f32 0.6931472, %v9498_v11  ;;  %v12318_v44 = vld [vmem:[#allocation56_spill] sm:$0xff] }
 0x907   :  { %v6778_v19 = vsel %vm6777_vm3, %v6775_v61, %v6772_v63 }
 0x908   :  { %9505 = vtanh.f32 %v6778_v19  ;;  %v11512_v43 = vadd.f32 10.0, %v6498_v25 }
 0x909   :  { %v9500_v17 = vpop.eup %9499 }
 0x90a   :  { %v9502_v1 = vpop.eup %9501  ;;  %v6781_v3 = vmul.f32 0.6931472, %v9500_v17  ;;  %v6593_v21 = vmul.f32 1.442695, %v11512_v43  ;;  %v6397_v40 = vpop.xlane.xlu1 %6396 }
 0x90b   :  { %v6788_v24 = vadd.f32 1.0, %v9502_v1  ;;  %v9504_v16 = vpop.eup %9503  ;;  %v6791_v0 = vmul.f32 -0.5, %v9502_v1  ;;  %v6447_v50 = vadd.f32 %v6397_v40, %v12316_v57  ;;  %v6794_v20 = vand.u32 2147483647, %v9502_v1 }
 0x90c   :  { %v6787_v51 = vsel %vm6786_vm4, %v6784_v8, %v6781_v3  ;;  %9507 = vpow2.f32 %v6593_v21  ;;  %v6500_v12 = vmul.f32 0.6931472, %v9504_v16 }
 0x90d   :  { %9509 = vtanh.f32 %v6787_v51  ;;  %v6792_v34 = vadd.f32 1.0, %v6791_v0  ;;  %vm6795_vm5 = vcmp.lt.f32.partialorder %v6794_v20, 0.0004427343 }
 0x90e   :  { %v9506_v60 = vpop.eup %9505  ;;  %9511 = vlog2.f32 %v6788_v24  ;;  %v11518_v15 = vadd.f32 10.0, %v6500_v12  ;;  %v12319_v12 = vld [vmem:[#allocation77_spill] sm:$0xff] }
 0x90f   :  { %v6986_v2 = vmul.f32 %v9506_v60, %v6922_v45  ;;  %9513 = vlog2.f32 %v6447_v50  ;;  %v6793_v13 = vmul.f32 %v9502_v1, %v6792_v34  ;;  %v6925_v1 = vmul.f32 %v11512_v43, %v11512_v43 }
 0x910   :  { %v6595_v37 = vmul.f32 1.442695, %v11518_v15  ;;  %v6926_v50 = vmul.f32 %v11518_v15, %v11518_v15 }
 0x911   :  { %7019 = vst.msk [vmem:[%s11647_s3 + $0x88] sm:$0xff] %vm7001_vm1, %v6986_v2 }
 0x912   :  { %v9508_v9 = vpop.eup %9507  ;;  %9515 = vpow2.f32 %v6595_v37 }
 0x913   :  { %v9510_v48 = vpop.eup %9509  ;;  %v6797_v58 = vadd.f32 1.0, %v9508_v9  ;;  %v6800_v36 = vmul.f32 -0.5, %v9508_v9  ;;  %v6400_v56 = vpop.xlane.xlu2 %6399  ;;  %v6803_v31 = vand.u32 2147483647, %v9508_v9 }
 0x914   :  { %v9512_v28 = vpop.eup %9511  ;;  %v6987_v53 = vmul.f32 %v9510_v48, %v6923_v42  ;;  %v6448_v33 = vadd.f32 %v6400_v56, %v12317_v6 }
 0x915   :  { %v6790_v46 = vmul.f32 0.6931472, %v9512_v28  ;;  %9517 = vlog2.f32 %v6797_v58  ;;  %v9514_v49 = vpop.eup %9513  ;;  %v6801_v27 = vadd.f32 1.0, %v6800_v36  ;;  %vm6804_vm6 = vcmp.lt.f32.partialorder %v6803_v31, 0.0004427343 }
 0x916   :  { %7020 = vst.msk [vmem:[%s11647_s3 + $0x90] sm:$0xff] %vm7001_vm1, %v6987_v53  ;;  %v6502_v18 = vmul.f32 0.6931472, %v9514_v49  ;;  %v12320_v53 = vld [vmem:[#allocation26_spill] sm:$0xff] }
 0x917   :  { %v6796_v55 = vsel %vm6795_vm5, %v6793_v13, %v6790_v46  ;;  %v6802_v38 = vmul.f32 %v9508_v9, %v6801_v27 }
 0x918   :  { %9519 = vtanh.f32 %v6796_v55  ;;  %v9516_v10 = vpop.eup %9515  ;;  %v11532_v35 = vadd.f32 10.0, %v6502_v18 }
 0x919   :  { %9521 = vlog2.f32 %v6448_v33  ;;  %v6806_v62 = vadd.f32 1.0, %v9516_v10  ;;  %v6809_v39 = vmul.f32 -0.5, %v9516_v10  ;;  %v6812_v61 = vand.u32 2147483647, %v9516_v10 }
 0x91a   :  { %v6597_v22 = vmul.f32 1.442695, %v11532_v35 }
 0x91b   :  { %v9518_v14 = vpop.eup %9517  ;;  %9523 = vlog2.f32 %v6806_v62  ;;  %v6810_v63 = vadd.f32 1.0, %v6809_v39  ;;  %vm6813_vm7 = vcmp.lt.f32.partialorder %v6812_v61, 0.0004427343  ;;  %v6927_v62 = vmul.f32 %v11532_v35, %v11532_v35 }
 0x91c   :  { %v6799_v4 = vmul.f32 0.6931472, %v9518_v14  ;;  %9525 = vpow2.f32 %v6597_v22 }
 0x91d   :  { %v6403_v26 = vpop.xlane.xlu0 %6402  ;;  %v6811_v17 = vmul.f32 %v9516_v10, %v6810_v63 }
 0x91e   :  { %v9520_v59 = vpop.eup %9519  ;;  %v6805_v23 = vsel %vm6804_vm6, %v6802_v38, %v6799_v4  ;;  %v6449_v30 = vadd.f32 %v6403_v26, %v12318_v44 }
 0x91f   :  { %v9522_v5 = vpop.eup %9521  ;;  %v6988_v11 = vmul.f32 %v9520_v59, %v6924_v29  ;;  %9527 = vtanh.f32 %v6805_v23 }
 0x920   :  { %v6504_v54 = vmul.f32 0.6931472, %v9522_v5  ;;  %9529 = vlog2.f32 %v6449_v30  ;;  %v12321_v30 = vld [vmem:[#allocation57_spill] sm:$0xff] }
 0x921   :  { %7021 = vst.msk [vmem:[%s11647_s3 + $0x98] sm:$0xff] %vm7001_vm1, %v6988_v11  ;;  %v9524_v47 = vpop.eup %9523 }
 0x922   :  { %v11542_v25 = vadd.f32 10.0, %v6504_v54  ;;  %v9526_v19 = vpop.eup %9525  ;;  %v6808_v41 = vmul.f32 0.6931472, %v9524_v47 }
 0x923   :  { %v6815_v3 = vadd.f32 1.0, %v9526_v19  ;;  %v6818_v45 = vmul.f32 -0.5, %v9526_v19  ;;  %v6821_v2 = vand.u32 2147483647, %v9526_v19 }
 0x924   :  { %v6599_v8 = vmul.f32 1.442695, %v11542_v25  ;;  %v6814_v24 = vsel %vm6813_vm7, %v6811_v17, %v6808_v41  ;;  %v6406_v16 = vpop.xlane.xlu1 %6405  ;;  %v12322_v17 = vld [vmem:[#allocation79_spill] sm:$0xff] }
 0x925   :  { %v9528_v21 = vpop.eup %9527  ;;  %9531 = vtanh.f32 %v6814_v24  ;;  %v6450_v60 = vadd.f32 %v6406_v16, %v12319_v12  ;;  %v6819_v57 = vadd.f32 1.0, %v6818_v45  ;;  %vm6822_vm8 = vcmp.lt.f32.partialorder %v6821_v2, 0.0004427343  ;;  %v12323_v16 = vld [vmem:[#allocation45_spill] sm:$0xff] }
 0x926   :  { %v9530_v51 = vpop.eup %9529  ;;  %v6989_v40 = vmul.f32 %v9528_v21, %v6925_v1  ;;  %9533 = vlog2.f32 %v6815_v3  ;;  %v6928_v45 = vmul.f32 %v11542_v25, %v11542_v25 }
 0x927   :  { %v6506_v0 = vmul.f32 0.6931472, %v9530_v51  ;;  %9535 = vpow2.f32 %v6599_v8  ;;  %v6820_v28 = vmul.f32 %v9526_v19, %v6819_v57  ;;  %v12324_v51 = vld [vmem:[#allocation108_spill] sm:$0xff] }
 0x928   :  { %7022 = vst.msk [vmem:[%s11647_s3 + $0xa0] sm:$0xff] %vm7001_vm1, %v6989_v40  ;;  %9537 = vlog2.f32 %v6450_v60  ;;  %v3350_v40 = vadd.f32 %v12324_v51, %v12323_v16 }
 0x929   :  { %v11552_v43 = vadd.f32 10.0, %v6506_v0 }
 0x92a   :  { %v4902_v57 = vadd.f32 %v11238_v52, %v3350_v40 }
 0x92b   :  { %v6601_v34 = vmul.f32 1.442695, %v11552_v43  ;;  %v9532_v37 = vpop.eup %9531  ;;  %v6929_v25 = vmul.f32 %v11552_v43, %v11552_v43 }
 0x92c   :  { %v9534_v9 = vpop.eup %9533  ;;  %v6990_v42 = vmul.f32 %v9532_v37, %v6926_v50 }
 0x92d   :  { %9539 = vpow2.f32 %v6601_v34  ;;  %v6409_v20 = vpop.xlane.xlu2 %6408  ;;  %v9536_v48 = vpop.eup %9535  ;;  %v6817_v58 = vmul.f32 0.6931472, %v9534_v9 }
 0x92e   :  { %v6451_v36 = vadd.f32 %v6409_v20, %v12320_v53  ;;  %v9538_v56 = vpop.eup %9537  ;;  %7023 = vst.msk [vmem:[%s11647_s3 + $0xa8] sm:$0xff] %vm7001_vm1, %v6990_v42  ;;  %v6824_v15 = vadd.f32 1.0, %v9536_v48  ;;  %v6827_v13 = vmul.f32 -0.5, %v9536_v48  ;;  %v6830_v14 = vand.u32 2147483647, %v9536_v48 }
 0x92f   :  { %v6823_v46 = vsel %vm6822_vm8, %v6820_v28, %v6817_v58  ;;  %v6508_v49 = vmul.f32 0.6931472, %v9538_v56 }
 0x930   :  { %9541 = vlog2.f32 %v6451_v36  ;;  %v6828_v55 = vadd.f32 1.0, %v6827_v13  ;;  %vm6831_vm9 = vcmp.lt.f32.partialorder %v6830_v14, 0.0004427343 }
 0x931   :  { %9543 = vtanh.f32 %v6823_v46  ;;  %v11562_v6 = vadd.f32 10.0, %v6508_v49  ;;  %v12325_v49 = vld [vmem:[#allocation101_spill] sm:$0xff] }
 0x932   :  { %9545 = vlog2.f32 %v6824_v15  ;;  %v6829_v29 = vmul.f32 %v9536_v48, %v6828_v55 }
 0x933   :  { %v9540_v33 = vpop.eup %9539  ;;  %v6603_v27 = vmul.f32 1.442695, %v11562_v6  ;;  %v6412_v26 = vpop.xlane.xlu0 %6411 }
 0x934   :  { %v6833_v18 = vadd.f32 1.0, %v9540_v33  ;;  %v6836_v10 = vmul.f32 -0.5, %v9540_v33  ;;  %v6452_v5 = vadd.f32 %v6412_v26, %v12321_v30  ;;  %v6839_v35 = vand.u32 2147483647, %v9540_v33 }
 0x935   :  { %v6930_v30 = vmul.f32 %v11562_v6, %v11562_v6 }
 0x936   :  { %v9542_v31 = vpop.eup %9541  ;;  %9547 = vlog2.f32 %v6833_v18  ;;  %v6837_v23 = vadd.f32 1.0, %v6836_v10  ;;  %vm6840_vm10 = vcmp.lt.f32.partialorder %v6839_v35, 0.0004427343 }
 0x937   :  { %v9544_v39 = vpop.eup %9543  ;;  %9549 = vpow2.f32 %v6603_v27  ;;  %v6510_v22 = vmul.f32 0.6931472, %v9542_v31 }
 0x938   :  { %v9546_v4 = vpop.eup %9545  ;;  %v6991_v38 = vmul.f32 %v9544_v39, %v6927_v62  ;;  %9551 = vlog2.f32 %v6452_v5  ;;  %v6838_v41 = vmul.f32 %v9540_v33, %v6837_v23  ;;  %v12326_v33 = vld [vmem:[#allocation109_spill] sm:$0xff] }
 0x939   :  { %v6826_v59 = vmul.f32 0.6931472, %v9546_v4  ;;  %v11567_v44 = vadd.f32 10.0, %v6510_v22  ;;  %v3351_v55 = vadd.f32 %v12326_v33, %v12325_v49 }
 0x93a   :  { %7024 = vst.msk [vmem:[%s11647_s3 + $0xb0] sm:$0xff] %vm7001_vm1, %v6991_v38 }
 0x93b   :  { %v6832_v11 = vsel %vm6831_vm9, %v6829_v29, %v6826_v59  ;;  %v6605_v63 = vmul.f32 1.442695, %v11567_v44  ;;  %v4903_v62 = vadd.f32 %v11242_v32, %v3351_v55  ;;  %v12327_v32 = vld [vmem:[#allocation100_spill] sm:$0xff] }
 0x93c   :  { %v9548_v61 = vpop.eup %9547  ;;  %9553 = vtanh.f32 %v6832_v11  ;;  %v6415_v54 = vpop.xlane.xlu1 %6414 }
 0x93d   :  { %v9550_v47 = vpop.eup %9549  ;;  %v6835_v19 = vmul.f32 0.6931472, %v9548_v61  ;;  %9555 = vpow2.f32 %v6605_v63  ;;  %v6453_v1 = vadd.f32 %v6415_v54, %v12322_v17  ;;  %v12328_v63 = vld [vmem:[#allocation111_spill] sm:$0xff] }
 0x93e   :  { %v6842_v3 = vadd.f32 1.0, %v9550_v47  ;;  %v6845_v21 = vmul.f32 -0.5, %v9550_v47  ;;  %v9552_v24 = vpop.eup %9551  ;;  %v6848_v20 = vand.u32 2147483647, %v9550_v47  ;;  %v3352_v61 = vadd.f32 %v12328_v63, %v12327_v32 }
 0x93f   :  { %v6841_v8 = vsel %vm6840_vm10, %v6838_v41, %v6835_v19  ;;  %9557 = vlog2.f32 %v6453_v1  ;;  %v6512_v12 = vmul.f32 0.6931472, %v9552_v24 }
 0x940   :  { %9559 = vtanh.f32 %v6841_v8  ;;  %v6846_v34 = vadd.f32 1.0, %v6845_v21  ;;  %vm6849_vm11 = vcmp.lt.f32.partialorder %v6848_v20, 0.0004427343  ;;  %v4904_v41 = vadd.f32 %v11247_v7, %v3352_v61 }
 0x941   :  { %9561 = vlog2.f32 %v6842_v3  ;;  %v11581_v9 = vadd.f32 10.0, %v6512_v12  ;;  %v6931_v3 = vmul.f32 %v11567_v44, %v11567_v44 }
 0x942   :  { %v9554_v0 = vpop.eup %9553  ;;  %v6418_v2 = vpop.xlane.xlu2 %6417  ;;  %v6847_v46 = vmul.f32 %v9550_v47, %v6846_v34 }
 0x943   :  { %v9556_v60 = vpop.eup %9555  ;;  %v6992_v50 = vmul.f32 %v9554_v0, %v6928_v45  ;;  %v6454_v58 = vadd.f32 %v6418_v2, %v4902_v57  ;;  %v6607_v52 = vmul.f32 1.442695, %v11581_v9 }
 0x944   :  { %v6851_v37 = vadd.f32 1.0, %v9556_v60  ;;  %v6854_v48 = vmul.f32 -0.5, %v9556_v60  ;;  %v6857_v27 = vand.u32 2147483647, %v9556_v60 }
 0x945   :  { %v9558_v42 = vpop.eup %9557  ;;  %7025 = vst.msk [vmem:[%s11647_s3 + $0xb8] sm:$0xff] %vm7001_vm1, %v6992_v50 }
 0x946   :  { %v9560_v28 = vpop.eup %9559  ;;  %9563 = vlog2.f32 %v6851_v37  ;;  %v6514_v56 = vmul.f32 0.6931472, %v9558_v42  ;;  %v6855_v43 = vadd.f32 1.0, %v6854_v48  ;;  %vm6858_vm12 = vcmp.lt.f32.partialorder %v6857_v27, 0.0004427343 }
 0x947   :  { %v9562_v53 = vpop.eup %9561  ;;  %v6993_v36 = vmul.f32 %v9560_v28, %v6929_v25  ;;  %9565 = vlog2.f32 %v6454_v58 }
 0x948   :  { %v6844_v15 = vmul.f32 0.6931472, %v9562_v53  ;;  %9567 = vpow2.f32 %v6607_v52  ;;  %v11594_v13 = vadd.f32 10.0, %v6514_v56  ;;  %v6856_v4 = vmul.f32 %v9556_v60, %v6855_v43 }
 0x949   :  { %7026 = vst.msk [vmem:[%s11647_s3 + $0xc0] sm:$0xff] %vm7001_vm1, %v6993_v36  ;;  %v6932_v53 = vmul.f32 %v11581_v9, %v11581_v9 }
 0x94a   :  { %v6850_v18 = vsel %vm6849_vm11, %v6847_v46, %v6844_v15  ;;  %v6609_v10 = vmul.f32 1.442695, %v11594_v13  ;;  %v6933_v9 = vmul.f32 %v11594_v13, %v11594_v13 }
 0x94b   :  { %9569 = vtanh.f32 %v6850_v18 }
 0x94c   :  { %v9564_v31 = vpop.eup %9563  ;;  %v6421_v14 = vpop.xlane.xlu0 %6420  ;;  %9571 = vpow2.f32 %v6609_v10 }
 0x94d   :  { %v9566_v39 = vpop.eup %9565  ;;  %v6853_v22 = vmul.f32 0.6931472, %v9564_v31  ;;  %v6455_v26 = vadd.f32 %v6421_v14, %v4903_v62 }
 0x94e   :  { %v9568_v38 = vpop.eup %9567  ;;  %v6516_v29 = vmul.f32 0.6931472, %v9566_v39 }
 0x94f   :  { %v6859_v59 = vsel %vm6858_vm12, %v6856_v4, %v6853_v22  ;;  %v6860_v23 = vadd.f32 1.0, %v9568_v38  ;;  %v6863_v5 = vmul.f32 -0.5, %v9568_v38  ;;  %v6866_v8 = vand.u32 2147483647, %v9568_v38 }
 0x950   :  { %9573 = vtanh.f32 %v6859_v59  ;;  %v11602_v35 = vadd.f32 10.0, %v6516_v29 }
 0x951   :  { %v9570_v11 = vpop.eup %9569  ;;  %9575 = vlog2.f32 %v6860_v23  ;;  %v6864_v6 = vadd.f32 1.0, %v6863_v5  ;;  %vm6867_vm13 = vcmp.lt.f32.partialorder %v6866_v8, 0.0004427343 }
 0x952   :  { %v6994_v54 = vmul.f32 %v9570_v11, %v6930_v30  ;;  %v6611_v47 = vmul.f32 1.442695, %v11602_v35  ;;  %9577 = vlog2.f32 %v6455_v26  ;;  %v9572_v19 = vpop.eup %9571 }
 0x953   :  { %v6424_v17 = vpop.xlane.xlu1 %6423  ;;  %v6869_v1 = vadd.f32 1.0, %v9572_v19  ;;  %v6872_v21 = vmul.f32 -0.5, %v9572_v19  ;;  %v6865_v0 = vmul.f32 %v9568_v38, %v6864_v6  ;;  %v6875_v50 = vand.u32 2147483647, %v9572_v19 }
 0x954   :  { %7027 = vst.msk [vmem:[%s11647_s3 + $0xc8] sm:$0xff] %vm7001_vm1, %v6994_v54  ;;  %9579 = vpow2.f32 %v6611_v47  ;;  %v6456_v24 = vadd.f32 %v6424_v17, %v4904_v41  ;;  %v6934_v38 = vmul.f32 %v11602_v35, %v11602_v35 }
 0x955   :  { %9581 = vlog2.f32 %v6869_v1  ;;  %v6873_v12 = vadd.f32 1.0, %v6872_v21  ;;  %vm6876_vm14 = vcmp.lt.f32.partialorder %v6875_v50, 0.0004427343 }
 0x956   :  { %v9574_v16 = vpop.eup %9573  ;;  %9583 = vlog2.f32 %v6456_v24 }
 0x957   :  { %v9576_v51 = vpop.eup %9575  ;;  %v6995_v40 = vmul.f32 %v9574_v16, %v6931_v3  ;;  %v6874_v48 = vmul.f32 %v9572_v19, %v6873_v12 }
 0x958   :  { %v9578_v7 = vpop.eup %9577  ;;  %v6862_v45 = vmul.f32 0.6931472, %v9576_v51 }
 0x959   :  { %7028 = vst.msk [vmem:[%s11647_s3 + $0xd0] sm:$0xff] %vm7001_vm1, %v6995_v40  ;;  %v6518_v60 = vmul.f32 0.6931472, %v9578_v7 }
 0x95a   :  { %v9580_v44 = vpop.eup %9579  ;;  %v6868_v57 = vsel %vm6867_vm13, %v6865_v0, %v6862_v45 }
 0x95b   :  { %9585 = vtanh.f32 %v6868_v57  ;;  %v6878_v2 = vadd.f32 1.0, %v9580_v44  ;;  %v9582_v34 = vpop.eup %9581  ;;  %v6881_v37 = vmul.f32 -0.5, %v9580_v44  ;;  %v6551_v42 = vadd.f32 10.0, %v6518_v60 }
 0x95c   :  { %v9584_v25 = vpop.eup %9583  ;;  %v6871_v20 = vmul.f32 0.6931472, %v9582_v34  ;;  %v6884_v46 = vand.u32 2147483647, %v9580_v44 }
 0x95d   :  { %9587 = vlog2.f32 %v6878_v2  ;;  %v6613_v58 = vmul.f32 1.442695, %v6551_v42  ;;  %v6520_v28 = vmul.f32 0.6931472, %v9584_v25  ;;  %v6882_v36 = vadd.f32 1.0, %v6881_v37 }
 0x95e   :  { %v6877_v52 = vsel %vm6876_vm14, %v6874_v48, %v6871_v20  ;;  %vm6885_vm15 = vcmp.lt.f32.partialorder %v6884_v46, 0.0004427343  ;;  %v6935_v41 = vmul.f32 %v6551_v42, %v6551_v42 }
 0x95f   :  { %9589 = vtanh.f32 %v6877_v52  ;;  %v6552_v56 = vadd.f32 10.0, %v6520_v28  ;;  %v6883_v18 = vmul.f32 %v9580_v44, %v6882_v36 }
 0x960   :  { %9591 = vpow2.f32 %v6613_v58 }
 0x961   :  { %v9586_v15 = vpop.eup %9585  ;;  %v6615_v49 = vmul.f32 1.442695, %v6552_v56  ;;  %v6936_v1 = vmul.f32 %v6552_v56, %v6552_v56 }
 0x962   :  { %v6996_v43 = vmul.f32 %v9586_v15, %v6932_v53 }
 0x963   :  { %v9588_v33 = vpop.eup %9587  ;;  %9593 = vpow2.f32 %v6615_v49 }
 0x964   :  { %7029 = vst.msk [vmem:[%s11647_s3 + $0xd8] sm:$0xff] %vm7001_vm1, %v6996_v43  ;;  %v6880_v55 = vmul.f32 0.6931472, %v9588_v33 }
 0x965   :  { %v9590_v27 = vpop.eup %9589 }
 0x966   :  { %v6886_v10 = vsel %vm6885_vm15, %v6883_v18, %v6880_v55  ;;  %v9592_v31 = vpop.eup %9591  ;;  %v6997_v62 = vmul.f32 %v9590_v27, %v6933_v9 }
 0x967   :  { %9595 = vtanh.f32 %v6886_v10  ;;  %v6887_v14 = vadd.f32 1.0, %v9592_v31  ;;  %v6890_v39 = vmul.f32 -0.5, %v9592_v31  ;;  %v6893_v23 = vand.u32 2147483647, %v9592_v31 }
 0x968   :  { %7030 = vst.msk [vmem:[%s11647_s3 + $0xe0] sm:$0xff] %vm7001_vm1, %v6997_v62 }
 0x969   :  { %v9594_v22 = vpop.eup %9593  ;;  %9597 = vlog2.f32 %v6887_v14  ;;  %v6891_v26 = vadd.f32 1.0, %v6890_v39  ;;  %vm6894_vm0 = vcmp.lt.f32.partialorder %v6893_v23, 0.0004427343 }
 0x96a   :  { %v6896_v4 = vadd.f32 1.0, %v9594_v22  ;;  %v6899_v13 = vmul.f32 -0.5, %v9594_v22  ;;  %v6902_v63 = vand.u32 2147483647, %v9594_v22 }
 0x96b   :  { %v6892_v32 = vmul.f32 %v9592_v31, %v6891_v26 }
 0x96c   :  { %9599 = vlog2.f32 %v6896_v4  ;;  %v6900_v5 = vadd.f32 1.0, %v6899_v13  ;;  %vm6903_vm2 = vcmp.lt.f32.partialorder %v6902_v63, 0.0004427343 }
 0x96d   :  { %v9596_v29 = vpop.eup %9595 }
 0x96e   :  { %v6998_v59 = vmul.f32 %v9596_v29, %v6934_v38  ;;  %v6901_v47 = vmul.f32 %v9594_v22, %v6900_v5 }
 0x96f   :  { %v9598_v30 = vpop.eup %9597 }
 0x970   :  { %7031 = vst.msk [vmem:[%s11647_s3 + $0xe8] sm:$0xff] %vm7001_vm1, %v6998_v59  ;;  %v6889_v11 = vmul.f32 0.6931472, %v9598_v30 }
 0x972   :  { %v9600_v61 = vpop.eup %9599  ;;  %v6895_v54 = vsel %vm6894_vm0, %v6892_v32, %v6889_v11 }
 0x973   :  { %9601 = vtanh.f32 %v6895_v54  ;;  %v6898_v35 = vmul.f32 0.6931472, %v9600_v61 }
 0x975   :  { %v6904_v19 = vsel %vm6903_vm2, %v6901_v47, %v6898_v35 }
 0x976   :  { %9603 = vtanh.f32 %v6904_v19 }
 0x979   :  { %v9602_v17 = vpop.eup %9601 }
 0x97a   :  { %v6999_v6 = vmul.f32 %v9602_v17, %v6935_v41 }
 0x97c   :  { %v9604_v3 = vpop.eup %9603  ;;  %7032 = vst.msk [vmem:[%s11647_s3 + $0xf0] sm:$0xff] %vm7001_vm1, %v6999_v6 }
 0x97d   :  { %v7000_v8 = vmul.f32 %v9604_v3, %v6936_v1 }
 0x97f   :  { %7033 = vst.msk [vmem:[%s11647_s3 + $0xf8] sm:$0xff] %vm7001_vm1, %v7000_v8 }
 0x980   :  { %7038 = vsyncpa [#allocation3], 1 }
 0x981   :  { %7039 = vsyncpa [#allocation5], 1 }

</bundles_post_ra>
